<compile_context>
chip_gen: v7x
topology: tpu7x:2x2x1
jax: 0.10.0
libtpu: 0.0.40
codegen_flags: <defaults>
</compile_context>

<pallas_src>
import jax
import jax.numpy as jnp
import numpy as np
from jax.experimental import pallas as pl
from jax.experimental.pallas import tpu as pltpu

# ----------------------------- configuration -------------------------------
IC = 2                        # image count
NC = 3                        # neighbor count
R_RAYS = 256                  # rays per image
S_SAMP = 4                    # samples per ray
N = R_RAYS * S_SAMP           # samples per image (positions.shape[1]) = 1024
TN = 256                      # row tile -> grid (IC, N // TN) = (2, 4)
ENC_LATENT = 64               # encoder_latent_size
OUT_FEAT = 4                  # out_feature_dim
D_OUT = 4 + OUT_FEAT          # 8
D_OUT_PAD = 128               # lane-dense padded output width
D_HIDDEN = 128
N_BLOCKS = 5
COMBINE_LAYER = 3
NUM_FREQ = 6
PE_SCALE = 1.5
D_PE = 3 * (1 + 2 * NUM_FREQ)           # 39
D_IN = D_PE + 3                         # + view dirs = 42
D_LATENT = ENC_LATENT                   # 64 (global encoder disabled)
D_PACK = 128                            # D_IN + D_LATENT = 106, padded to 128
FH = FW = 16                            # feature-map spatial size


# ------------------------------ Pallas kernel -------------------------------
def _resblock_bf16(x, w0, b0, w1, b1):
    # ResnetBlockFC: dx = fc_1(relu(fc_0(relu(x)))); return x + dx
    # bf16 MXU operands, f32 accumulation + f32 residual stream.
    net = jnp.dot(jnp.maximum(x, 0.0).astype(jnp.bfloat16), w0,
                  preferred_element_type=jnp.float32) + b0
    dx = jnp.dot(jnp.maximum(net, 0.0).astype(jnp.bfloat16), w1,
                 preferred_element_type=jnp.float32) + b1
    return x + dx


def pixelnerf_mlp_kernel(xz_ref, wbig_ref, bbig_ref, w0_ref, b0_ref,
                         w1_ref, b1_ref, wout_ref, bout_ref, out_ref):
    nc = xz_ref.shape[1]
    tn = xz_ref.shape[2]
    dp = xz_ref.shape[3]

    xz = xz_ref[0].reshape(nc * tn, dp)          # bf16 (NC*TN, 128), leading-dim merge

    # Fused lin_in + lin_z[0..2]: one (M,128)x(128,384) MXU pass.
    big = jnp.dot(xz, wbig_ref[...], preferred_element_type=jnp.float32) \
        + bbig_ref[...]                          # f32 (NC*TN, 3*D_HIDDEN)

    # block 0 (lin_in + lin_z0 already in big[:, :128])
    x = big[:, 0:D_HIDDEN]
    x = _resblock_bf16(x, w0_ref[0], b0_ref[0], w1_ref[0], b1_ref[0])
    # blocks 1..combine_layer-1: add precomputed lin_z slice, then residual block
    for blk in range(1, COMBINE_LAYER):
        x = x + big[:, blk * D_HIDDEN:(blk + 1) * D_HIDDEN]
        x = _resblock_bf16(x, w0_ref[blk], b0_ref[blk], w1_ref[blk], b1_ref[blk])

    # combine_interleaved("average") over neighbors: static sublane slices + VPU adds
    acc = x[0:tn, :]
    for i in range(1, nc):
        acc = acc + x[i * tn:(i + 1) * tn, :]
    x = acc * (1.0 / nc)

    # blocks after the combine layer
    for blk in range(COMBINE_LAYER, N_BLOCKS):
        x = _resblock_bf16(x, w0_ref[blk], b0_ref[blk], w1_ref[blk], b1_ref[blk])

    # lin_out(relu(x)) with output padded to 128 lanes (zero weight columns)
    out = jnp.dot(jnp.maximum(x, 0.0).astype(jnp.bfloat16), wout_ref[...],
                  preferred_element_type=jnp.float32) + bout_ref[...]

    # heads: softplus(density) / sigmoid(rgb) / identity(features + zero pad),
    # via lane-index select (no narrow lane slicing).
    col = jax.lax.broadcasted_iota(jnp.int32, out.shape, 1)
    act = jnp.where(col < 1, jax.nn.softplus(out),
                    jnp.where(col < 4, jax.nn.sigmoid(out), out))
    out_ref[0] = act.astype(out_ref.dtype)       # (tn, 128) full-lane dense store


def fuse_params(params):
    """Host-side weight fusion + bf16 casts (done once, outside the kernel)."""
    # W_big rows: [0:42]=xin -> win ; [42:106]=z -> wz[blk] ; [106:128]=pad(0)
    wbig = jnp.zeros((D_PACK, COMBINE_LAYER * D_HIDDEN), jnp.float32)
    wbig = wbig.at[:D_IN, :D_HIDDEN].set(params['win'])
    for blk in range(COMBINE_LAYER):
        wbig = wbig.at[D_IN:D_IN + D_LATENT,
                       blk * D_HIDDEN:(blk + 1) * D_HIDDEN].set(params['wz'][blk])
    bbig = jnp.concatenate(
        [params['bin'] + params['bz'][0]]
        + [params['bz'][blk] for blk in range(1, COMBINE_LAYER)], axis=-1)  # (1, 384)
    wout = jnp.zeros((D_HIDDEN, D_OUT_PAD), jnp.float32).at[:, :D_OUT].set(params['wout'])
    bout = jnp.zeros((1, D_OUT_PAD), jnp.float32).at[:, :D_OUT].set(params['bout'])
    return {
        'wbig': wbig.astype(jnp.bfloat16), 'bbig': bbig,
        'w0': params['w0'].astype(jnp.bfloat16), 'b0': params['b0'],
        'w1': params['w1'].astype(jnp.bfloat16), 'b1': params['b1'],
        'wout': wout.astype(jnp.bfloat16), 'bout': bout,
    }


def run_mlp_pallas(z, xin, fused, tn):
    """z: (IC,NC,N,64) f32, xin: (IC,NC,N,42) f32 -> (IC, N, D_OUT) f32."""
    ic, nc, n, dl = z.shape
    din = xin.shape[-1]
    pad = D_PACK - (din + dl)
    # pack [xin | z | pad] to 128 lanes, bf16 (halves input DMA bytes too)
    xz = jnp.concatenate(
        [xin, z, jnp.zeros((ic, nc, n, pad), xin.dtype)], axis=-1
    ).astype(jnp.bfloat16)

    assert n % tn == 0
    grid = (ic, n // tn)

    def full_spec(arr):
        nd = arr.ndim
        return pl.BlockSpec(arr.shape, lambda i, j, _nd=nd: (0,) * _nd)

    in_specs = [
        pl.BlockSpec((1, nc, tn, D_PACK), lambda i, j: (i, 0, j, 0)),
        full_spec(fused['wbig']), full_spec(fused['bbig']),
        full_spec(fused['w0']), full_spec(fused['b0']),
        full_spec(fused['w1']), full_spec(fused['b1']),
        full_spec(fused['wout']), full_spec(fused['bout']),
    ]
    # lane-dense output block: (1, tn, 128) -> unmasked full-lane stores,
    # contiguous writeback DMA; real 8 channels sliced out in the wrapper.
    out_specs = pl.BlockSpec((1, tn, D_OUT_PAD), lambda i, j: (i, j, 0))

    out = pl.pallas_call(
        pixelnerf_mlp_kernel,
        out_shape=jax.ShapeDtypeStruct((ic, n, D_OUT_PAD), jnp.float32),
        grid_spec=pltpu.PrefetchScalarGridSpec(
            num_scalar_prefetch=0, grid=grid,
            in_specs=in_specs, out_specs=out_specs),
        compiler_params=pltpu.CompilerParams(
            # ic across cores (v7x megacore); n-tiles iterate per core so the
            # next xz tile DMA overlaps the MLP compute.
            dimension_semantics=("parallel", "arbitrary")),
    )(xz, fused['wbig'], fused['bbig'], fused['w0'], fused['b0'],
      fused['w1'], fused['b1'], fused['wout'], fused['bout'])
    return out[..., :D_OUT]


# ------------------------------- JAX glue -----------------------------------
def scaled_nerf_encoding(x, num_freq=NUM_FREQ, min_exp=0.0, max_exp=5.0,
                         scale=PE_SCALE):
    """ScaledNeRFEncoding: NeRFEncoding(include_input=True) applied to scale*x."""
    xs = scale * x
    freqs = 2.0 ** jnp.linspace(min_exp, max_exp, num_freq)
    scaled = (2.0 * jnp.pi * xs)[..., None] * freqs          # (..., 3, F)
    scaled = scaled.reshape(*scaled.shape[:-2], -1)          # (..., 3*F)
    enc = jnp.sin(jnp.concatenate([scaled, scaled + jnp.pi / 2.0], axis=-1))
    return jnp.concatenate([enc, xs], axis=-1)               # (..., 39)


def grid_sample_bilinear_border(feats, grid):
    """F.grid_sample(bilinear, padding_mode='border', align_corners=True).
    feats: (B, C, H, W) NCHW; grid: (B, N, 2) with (x, y) in [-1, 1] -> (B, N, C).
    # TODO(synk): data-dependent gather — no clean Pallas equivalent, kept in JAX glue.
    """
    B, C, H, W = feats.shape
    fh = jnp.transpose(feats, (0, 2, 3, 1))                  # (B, H, W, C)
    gx = jnp.clip((grid[..., 0] + 1.0) * 0.5 * (W - 1), 0.0, W - 1)
    gy = jnp.clip((grid[..., 1] + 1.0) * 0.5 * (H - 1), 0.0, H - 1)
    x0 = jnp.floor(gx)
    y0 = jnp.floor(gy)
    wx = gx - x0
    wy = gy - y0
    x0i = jnp.clip(x0, 0, W - 1).astype(jnp.int32)
    x1i = jnp.clip(x0 + 1, 0, W - 1).astype(jnp.int32)
    y0i = jnp.clip(y0, 0, H - 1).astype(jnp.int32)
    y1i = jnp.clip(y0 + 1, 0, H - 1).astype(jnp.int32)

    def per_batch(f, x0i, x1i, y0i, y1i, wx, wy):
        v00 = f[y0i, x0i]
        v01 = f[y0i, x1i]
        v10 = f[y1i, x0i]
        v11 = f[y1i, x1i]
        wx = wx[:, None]
        wy = wy[:, None]
        return (v00 * (1 - wx) * (1 - wy) + v01 * wx * (1 - wy)
                + v10 * (1 - wx) * wy + v11 * wx * wy)

    return jax.vmap(per_batch)(fh, x0i, x1i, y0i, y1i, wx, wy)


def build_mlp_inputs(positions, directions, image_features, neighboring_w2c,
                     fx, fy, cx, cy, uv_scaling):
    """Projection + pixel-aligned feature sampling + positional encoding."""
    ic, n, _ = positions.shape
    b = neighboring_w2c.shape[0]
    nc = b // ic

    xyz = jnp.repeat(positions, nc, axis=0)                  # (B, N, 3)
    rot = neighboring_w2c[:, :3, :3]
    trans = neighboring_w2c[:, :3, 3]
    xyz_rot = jnp.einsum('brc,bnc->bnr', rot, xyz)           # (B, N, 3)
    xyz_cam = xyz_rot + trans[:, None, :]

    uv = -xyz_cam[:, :, :2] / xyz_cam[:, :, 2:]
    focal = jnp.stack([fx, -fy], axis=-1)                    # (B, 2)
    uv = uv * focal[:, None, :]
    center = jnp.stack([cx, cy], axis=-1)
    uv = uv + center[:, None, :]

    # TODO(synk): exact get_pixel_aligned_features normalization not given;
    # assuming grid = uv * uv_scaling - 1 mapped into a border-padded,
    # align_corners=True bilinear grid_sample.
    grid = uv * uv_scaling - 1.0
    latent = grid_sample_bilinear_border(image_features, grid)  # (B, N, C)

    pe = scaled_nerf_encoding(xyz_rot)                        # normalize_z=True
    dirs = directions.reshape(ic, -1, 3)
    dirs = jnp.repeat(dirs, nc, axis=0)
    dirs_rot = jnp.einsum('brc,bnc->bnr', rot, dirs)
    xin = jnp.concatenate([pe, dirs_rot], axis=-1)            # (B, N, 42)

    z = latent.reshape(ic, nc, n, D_LATENT)
    xin = xin.reshape(ic, nc, n, D_IN)
    return z, xin


def pixelnerf_forward(fused_params, positions, directions, image_features,
                      neighboring_w2c, fx, fy, cx, cy, uv_scaling):
    z, xin = build_mlp_inputs(positions, directions, image_features,
                              neighboring_w2c, fx, fy, cx, cy, uv_scaling)
    mlp_out = run_mlp_pallas(z, xin, fused_params, tn=TN)     # (IC, N, D_OUT)
    mlp_out = mlp_out.reshape(IC, R_RAYS, S_SAMP, D_OUT)      # frustums shape
    density = mlp_out[..., :1]                                # softplus'd in kernel
    rgb = mlp_out[..., 1:4]                                   # sigmoid'd in kernel
    features = mlp_out[..., 4:]
    return density, rgb, features


# --------------------------- pure-JAX reference ------------------------------
def resnetfc_ref_bf16(z, xin, params):
    """Unfused reference mirroring the module structure with bf16 matmul
    operands / f32 accumulation (same precision policy as the kernel)."""
    def bdot(a, w):
        return jnp.dot(a.astype(jnp.bfloat16), w.astype(jnp.bfloat16),
                       preferred_element_type=jnp.float32)

    def block(x, blk):
        net = bdot(jnp.maximum(x, 0.0), params['w0'][blk]) + params['b0'][blk, 0]
        dx = bdot(jnp.maximum(net, 0.0), params['w1'][blk]) + params['b1'][blk, 0]
        return x + dx

    ic, nc, n, dl = z.shape
    zf = z.reshape(-1, dl)
    xf = xin.reshape(-1, xin.shape[-1])
    x = bdot(xf, params['win']) + params['bin'][0]
    for blk in range(COMBINE_LAYER):
        x = x + bdot(zf, params['wz'][blk]) + params['bz'][blk, 0]
        x = block(x, blk)
    x = x.reshape(ic, nc, n, -1).mean(axis=1).reshape(ic * n, -1)
    for blk in range(COMBINE_LAYER, N_BLOCKS):
        x = block(x, blk)
    out = bdot(jnp.maximum(x, 0.0), params['wout']) + params['bout'][0]
    out = out.reshape(ic, n, -1)
    return jnp.concatenate(
        [jax.nn.softplus(out[..., :1]), jax.nn.sigmoid(out[..., 1:4]), out[..., 4:]],
        axis=-1)


# ----------------------------- parameter init --------------------------------
def init_params(key):
    ks = jax.random.split(key, 8)

    def lin(k, din, dout, s=1.0):
        return s * jax.random.normal(k, (din, dout), jnp.float32) / np.sqrt(din)

    return {
        'win': lin(ks[0], D_IN, D_HIDDEN),
        'bin': jnp.zeros((1, D_HIDDEN), jnp.float32),
        'wz': jnp.stack([lin(k, D_LATENT, D_HIDDEN)
                         for k in jax.random.split(ks[1], COMBINE_LAYER)]),
        'bz': jnp.zeros((COMBINE_LAYER, 1, D_HIDDEN), jnp.float32),
        'w0': jnp.stack([lin(k, D_HIDDEN, D_HIDDEN)
                         for k in jax.random.split(ks[2], N_BLOCKS)]),
        'b0': 0.01 * jax.random.normal(ks[3], (N_BLOCKS, 1, D_HIDDEN), jnp.float32),
        'w1': jnp.stack([lin(k, D_HIDDEN, D_HIDDEN, s=0.1)
                         for k in jax.random.split(ks[4], N_BLOCKS)]),
        'b1': jnp.zeros((N_BLOCKS, 1, D_HIDDEN), jnp.float32),
        'wout': lin(ks[5], D_HIDDEN, D_OUT),
        'bout': jnp.zeros((1, D_OUT), jnp.float32),
    }


# ---------------------------------- main -------------------------------------
if __name__ == "__main__":
    key = jax.random.PRNGKey(0)
    kp, kpos, kdir, kfeat, kr, kt1, kt2 = jax.random.split(key, 7)
    params = init_params(kp)
    fused = fuse_params(params)

    # world-space sample positions, centered away from the camera plane
    positions = 0.5 * jax.random.normal(kpos, (IC, N, 3), jnp.float32) \
        + jnp.array([0.0, 0.0, 2.0], jnp.float32)
    d = jax.random.normal(kdir, (IC, R_RAYS, S_SAMP, 3), jnp.float32)
    directions = d / jnp.linalg.norm(d, axis=-1, keepdims=True)

    image_features = jax.random.normal(
        kfeat, (IC * NC, ENC_LATENT, FH, FW), jnp.float32)    # NCHW

    # near-identity rotations + positive-z translations -> safe projection
    rot = jnp.eye(3, dtype=jnp.float32)[None] \
        + 0.05 * jax.random.normal(kr, (IC * NC, 3, 3), jnp.float32)
    trans_xy = 0.1 * jax.random.normal(kt1, (IC * NC, 2), jnp.float32)
    trans_z = 2.0 + 0.1 * jnp.abs(jax.random.normal(kt2, (IC * NC, 1), jnp.float32))
    trans = jnp.concatenate([trans_xy, trans_z], axis=-1)
    w2c = jnp.concatenate([rot, trans[..., None]], axis=-1)   # (B, 3, 4)
    bottom = jnp.tile(jnp.array([[[0.0, 0.0, 0.0, 1.0]]], jnp.float32),
                      (IC * NC, 1, 1))
    neighboring_w2c = jnp.concatenate([w2c, bottom], axis=1)  # (B, 4, 4)

    fx = jnp.full((IC * NC,), 20.0, jnp.float32)
    fy = jnp.full((IC * NC,), 20.0, jnp.float32)
    cx = jnp.full((IC * NC,), 8.0, jnp.float32)
    cy = jnp.full((IC * NC,), 8.0, jnp.float32)
    uv_scaling = jnp.array([2.0 / (FW - 1), 2.0 / (FH - 1)], jnp.float32)

    fwd = jax.jit(pixelnerf_forward)
    density, rgb, features = fwd(fused, positions, directions, image_features,
                                 neighboring_w2c, fx, fy, cx, cy, uv_scaling)
    jax.block_until_ready((density, rgb, features))

    assert density.shape == (IC, R_RAYS, S_SAMP, 1)
    assert rgb.shape == (IC, R_RAYS, S_SAMP, 3)
    assert features.shape == (IC, R_RAYS, S_SAMP, OUT_FEAT)

    # reference check (pure JAX, unfused, same bf16 operand precision)
    z, xin = build_mlp_inputs(positions, directions, image_features,
                              neighboring_w2c, fx, fy, cx, cy, uv_scaling)
    ref = resnetfc_ref_bf16(z, xin, params).reshape(IC, R_RAYS, S_SAMP, D_OUT)
    got = jnp.concatenate([density, rgb, features], axis=-1)
    np.testing.assert_allclose(np.asarray(got), np.asarray(ref),
                               rtol=1e-2, atol=1e-2)
    assert np.all(np.isfinite(np.asarray(got)))

    print("KERNEL_OK")
</pallas_src>

<mosaic_0001>
module attributes {stable_mosaic.version = 11 : i64} {
  func.func @pixelnerf_mlp_kernel(%arg0: i32, %arg1: i32, %arg2: memref<1x3x256x128xbf16, #tpu.memory_space<vmem>>, %arg3: memref<128x384xbf16, #tpu.memory_space<vmem>>, %arg4: memref<1x384xf32, #tpu.memory_space<vmem>>, %arg5: memref<5x128x128xbf16, #tpu.memory_space<vmem>>, %arg6: memref<5x1x128xf32, #tpu.memory_space<vmem>>, %arg7: memref<5x128x128xbf16, #tpu.memory_space<vmem>>, %arg8: memref<5x1x128xf32, #tpu.memory_space<vmem>>, %arg9: memref<128x128xbf16, #tpu.memory_space<vmem>>, %arg10: memref<1x128xf32, #tpu.memory_space<vmem>>, %arg11: memref<1x256x128xf32, #tpu.memory_space<vmem>>) attributes {dimension_semantics = [#tpu.dimension_semantics<parallel>, #tpu.dimension_semantics<arbitrary>], iteration_bounds = array<i64: 2, 4>, scalar_prefetch = 0 : i64, scratch_operands = 0 : i64, tpu.core_type = #tpu.core_type<tc>, window_params = [{transform_indices = @transform_0, window_bounds = array<i64: 1, 3, 256, 128>}, {pipeline_mode = #tpu.pipeline_mode<synchronous>, transform_indices = @transform_1, window_bounds = array<i64: 128, 384>}, {pipeline_mode = #tpu.pipeline_mode<synchronous>, transform_indices = @transform_2, window_bounds = array<i64: 1, 384>}, {pipeline_mode = #tpu.pipeline_mode<synchronous>, transform_indices = @transform_3, window_bounds = array<i64: 5, 128, 128>}, {pipeline_mode = #tpu.pipeline_mode<synchronous>, transform_indices = @transform_4, window_bounds = array<i64: 5, 1, 128>}, {pipeline_mode = #tpu.pipeline_mode<synchronous>, transform_indices = @transform_5, window_bounds = array<i64: 5, 128, 128>}, {pipeline_mode = #tpu.pipeline_mode<synchronous>, transform_indices = @transform_6, window_bounds = array<i64: 5, 1, 128>}, {pipeline_mode = #tpu.pipeline_mode<synchronous>, transform_indices = @transform_7, window_bounds = array<i64: 128, 128>}, {pipeline_mode = #tpu.pipeline_mode<synchronous>, transform_indices = @transform_8, window_bounds = array<i64: 1, 128>}, {transform_indices = @transform_9, window_bounds = array<i64: 1, 256, 128>}]} {
    %c0 = arith.constant 0 : index
    %c0_0 = arith.constant 0 : index
    %c0_1 = arith.constant 0 : index
    %c0_2 = arith.constant 0 : index
    %0 = vector.load %arg2[%c0, %c0_0, %c0_1, %c0_2] : memref<1x3x256x128xbf16, #tpu.memory_space<vmem>>, vector<1x3x256x128xbf16>
    %1 = vector.shape_cast %0 : vector<1x3x256x128xbf16> to vector<3x256x128xbf16>
    %2 = vector.shape_cast %1 : vector<3x256x128xbf16> to vector<768x128xbf16>
    %c0_3 = arith.constant 0 : index
    %c0_4 = arith.constant 0 : index
    %3 = vector.load %arg3[%c0_3, %c0_4] : memref<128x384xbf16, #tpu.memory_space<vmem>>, vector<128x384xbf16>
    %cst = arith.constant dense<0.000000e+00> : vector<768x384xf32>
    %4 = tpu.matmul %2, %3, %cst {dimension_numbers = #tpu.dot_dimension_numbers<[1], [0], [0], [1], [0, 0, 1, 1], [], []>} : vector<768x128xbf16>, vector<128x384xbf16>, vector<768x384xf32> -> vector<768x384xf32>
    %c0_5 = arith.constant 0 : index
    %c0_6 = arith.constant 0 : index
    %5 = vector.load %arg4[%c0_5, %c0_6] : memref<1x384xf32, #tpu.memory_space<vmem>>, vector<1x384xf32>
    %6 = vector.broadcast %5 : vector<1x384xf32> to vector<768x384xf32>
    %7 = arith.addf %4, %6 : vector<768x384xf32>
    %8 = vector.extract_strided_slice %7 {offsets = [0, 0], sizes = [768, 128], strides = [1, 1]} : vector<768x384xf32> to vector<768x128xf32>
    %c0_7 = arith.constant 0 : index
    %c0_8 = arith.constant 0 : index
    %c0_9 = arith.constant 0 : index
    %9 = vector.load %arg5[%c0_7, %c0_8, %c0_9] : memref<5x128x128xbf16, #tpu.memory_space<vmem>>, vector<1x128x128xbf16>
    %10 = vector.shape_cast %9 : vector<1x128x128xbf16> to vector<128x128xbf16>
    %c0_10 = arith.constant 0 : index
    %c0_11 = arith.constant 0 : index
    %c0_12 = arith.constant 0 : index
    %11 = vector.load %arg6[%c0_10, %c0_11, %c0_12] : memref<5x1x128xf32, #tpu.memory_space<vmem>>, vector<1x1x128xf32>
    %12 = vector.shape_cast %11 : vector<1x1x128xf32> to vector<1x128xf32>
    %c0_13 = arith.constant 0 : index
    %c0_14 = arith.constant 0 : index
    %c0_15 = arith.constant 0 : index
    %13 = vector.load %arg7[%c0_13, %c0_14, %c0_15] : memref<5x128x128xbf16, #tpu.memory_space<vmem>>, vector<1x128x128xbf16>
    %14 = vector.shape_cast %13 : vector<1x128x128xbf16> to vector<128x128xbf16>
    %c0_16 = arith.constant 0 : index
    %c0_17 = arith.constant 0 : index
    %c0_18 = arith.constant 0 : index
    %15 = vector.load %arg8[%c0_16, %c0_17, %c0_18] : memref<5x1x128xf32, #tpu.memory_space<vmem>>, vector<1x1x128xf32>
    %16 = vector.shape_cast %15 : vector<1x1x128xf32> to vector<1x128xf32>
    %cst_19 = arith.constant 0.000000e+00 : f32
    %17 = vector.broadcast %cst_19 : f32 to vector<768x128xf32>
    %18 = arith.maximumf %8, %17 : vector<768x128xf32>
    %19 = arith.truncf %18 : vector<768x128xf32> to vector<768x128xbf16>
    %cst_20 = arith.constant dense<0.000000e+00> : vector<768x128xf32>
    %20 = tpu.matmul %19, %10, %cst_20 {dimension_numbers = #tpu.dot_dimension_numbers<[1], [0], [0], [1], [0, 0, 1, 1], [], []>} : vector<768x128xbf16>, vector<128x128xbf16>, vector<768x128xf32> -> vector<768x128xf32>
    %21 = vector.broadcast %12 : vector<1x128xf32> to vector<768x128xf32>
    %22 = arith.addf %20, %21 : vector<768x128xf32>
    %cst_21 = arith.constant 0.000000e+00 : f32
    %23 = vector.broadcast %cst_21 : f32 to vector<768x128xf32>
    %24 = arith.maximumf %22, %23 : vector<768x128xf32>
    %25 = arith.truncf %24 : vector<768x128xf32> to vector<768x128xbf16>
    %cst_22 = arith.constant dense<0.000000e+00> : vector<768x128xf32>
    %26 = tpu.matmul %25, %14, %cst_22 {dimension_numbers = #tpu.dot_dimension_numbers<[1], [0], [0], [1], [0, 0, 1, 1], [], []>} : vector<768x128xbf16>, vector<128x128xbf16>, vector<768x128xf32> -> vector<768x128xf32>
    %27 = vector.broadcast %16 : vector<1x128xf32> to vector<768x128xf32>
    %28 = arith.addf %26, %27 : vector<768x128xf32>
    %29 = arith.addf %8, %28 : vector<768x128xf32>
    %30 = vector.extract_strided_slice %7 {offsets = [0, 128], sizes = [768, 128], strides = [1, 1]} : vector<768x384xf32> to vector<768x128xf32>
    %31 = arith.addf %29, %30 : vector<768x128xf32>
    %c1 = arith.constant 1 : index
    %c0_23 = arith.constant 0 : index
    %c0_24 = arith.constant 0 : index
    %32 = vector.load %arg5[%c1, %c0_23, %c0_24] : memref<5x128x128xbf16, #tpu.memory_space<vmem>>, vector<1x128x128xbf16>
    %33 = vector.shape_cast %32 : vector<1x128x128xbf16> to vector<128x128xbf16>
    %c1_25 = arith.constant 1 : index
    %c0_26 = arith.constant 0 : index
    %c0_27 = arith.constant 0 : index
    %34 = vector.load %arg6[%c1_25, %c0_26, %c0_27] : memref<5x1x128xf32, #tpu.memory_space<vmem>>, vector<1x1x128xf32>
    %35 = vector.shape_cast %34 : vector<1x1x128xf32> to vector<1x128xf32>
    %c1_28 = arith.constant 1 : index
    %c0_29 = arith.constant 0 : index
    %c0_30 = arith.constant 0 : index
    %36 = vector.load %arg7[%c1_28, %c0_29, %c0_30] : memref<5x128x128xbf16, #tpu.memory_space<vmem>>, vector<1x128x128xbf16>
    %37 = vector.shape_cast %36 : vector<1x128x128xbf16> to vector<128x128xbf16>
    %c1_31 = arith.constant 1 : index
    %c0_32 = arith.constant 0 : index
    %c0_33 = arith.constant 0 : index
    %38 = vector.load %arg8[%c1_31, %c0_32, %c0_33] : memref<5x1x128xf32, #tpu.memory_space<vmem>>, vector<1x1x128xf32>
    %39 = vector.shape_cast %38 : vector<1x1x128xf32> to vector<1x128xf32>
    %cst_34 = arith.constant 0.000000e+00 : f32
    %40 = vector.broadcast %cst_34 : f32 to vector<768x128xf32>
    %41 = arith.maximumf %31, %40 : vector<768x128xf32>
    %42 = arith.truncf %41 : vector<768x128xf32> to vector<768x128xbf16>
    %cst_35 = arith.constant dense<0.000000e+00> : vector<768x128xf32>
    %43 = tpu.matmul %42, %33, %cst_35 {dimension_numbers = #tpu.dot_dimension_numbers<[1], [0], [0], [1], [0, 0, 1, 1], [], []>} : vector<768x128xbf16>, vector<128x128xbf16>, vector<768x128xf32> -> vector<768x128xf32>
    %44 = vector.broadcast %35 : vector<1x128xf32> to vector<768x128xf32>
    %45 = arith.addf %43, %44 : vector<768x128xf32>
    %cst_36 = arith.constant 0.000000e+00 : f32
    %46 = vector.broadcast %cst_36 : f32 to vector<768x128xf32>
    %47 = arith.maximumf %45, %46 : vector<768x128xf32>
    %48 = arith.truncf %47 : vector<768x128xf32> to vector<768x128xbf16>
    %cst_37 = arith.constant dense<0.000000e+00> : vector<768x128xf32>
    %49 = tpu.matmul %48, %37, %cst_37 {dimension_numbers = #tpu.dot_dimension_numbers<[1], [0], [0], [1], [0, 0, 1, 1], [], []>} : vector<768x128xbf16>, vector<128x128xbf16>, vector<768x128xf32> -> vector<768x128xf32>
    %50 = vector.broadcast %39 : vector<1x128xf32> to vector<768x128xf32>
    %51 = arith.addf %49, %50 : vector<768x128xf32>
    %52 = arith.addf %31, %51 : vector<768x128xf32>
    %53 = vector.extract_strided_slice %7 {offsets = [0, 256], sizes = [768, 128], strides = [1, 1]} : vector<768x384xf32> to vector<768x128xf32>
    %54 = arith.addf %52, %53 : vector<768x128xf32>
    %c2 = arith.constant 2 : index
    %c0_38 = arith.constant 0 : index
    %c0_39 = arith.constant 0 : index
    %55 = vector.load %arg5[%c2, %c0_38, %c0_39] : memref<5x128x128xbf16, #tpu.memory_space<vmem>>, vector<1x128x128xbf16>
    %56 = vector.shape_cast %55 : vector<1x128x128xbf16> to vector<128x128xbf16>
    %c2_40 = arith.constant 2 : index
    %c0_41 = arith.constant 0 : index
    %c0_42 = arith.constant 0 : index
    %57 = vector.load %arg6[%c2_40, %c0_41, %c0_42] : memref<5x1x128xf32, #tpu.memory_space<vmem>>, vector<1x1x128xf32>
    %58 = vector.shape_cast %57 : vector<1x1x128xf32> to vector<1x128xf32>
    %c2_43 = arith.constant 2 : index
    %c0_44 = arith.constant 0 : index
    %c0_45 = arith.constant 0 : index
    %59 = vector.load %arg7[%c2_43, %c0_44, %c0_45] : memref<5x128x128xbf16, #tpu.memory_space<vmem>>, vector<1x128x128xbf16>
    %60 = vector.shape_cast %59 : vector<1x128x128xbf16> to vector<128x128xbf16>
    %c2_46 = arith.constant 2 : index
    %c0_47 = arith.constant 0 : index
    %c0_48 = arith.constant 0 : index
    %61 = vector.load %arg8[%c2_46, %c0_47, %c0_48] : memref<5x1x128xf32, #tpu.memory_space<vmem>>, vector<1x1x128xf32>
    %62 = vector.shape_cast %61 : vector<1x1x128xf32> to vector<1x128xf32>
    %cst_49 = arith.constant 0.000000e+00 : f32
    %63 = vector.broadcast %cst_49 : f32 to vector<768x128xf32>
    %64 = arith.maximumf %54, %63 : vector<768x128xf32>
    %65 = arith.truncf %64 : vector<768x128xf32> to vector<768x128xbf16>
    %cst_50 = arith.constant dense<0.000000e+00> : vector<768x128xf32>
    %66 = tpu.matmul %65, %56, %cst_50 {dimension_numbers = #tpu.dot_dimension_numbers<[1], [0], [0], [1], [0, 0, 1, 1], [], []>} : vector<768x128xbf16>, vector<128x128xbf16>, vector<768x128xf32> -> vector<768x128xf32>
    %67 = vector.broadcast %58 : vector<1x128xf32> to vector<768x128xf32>
    %68 = arith.addf %66, %67 : vector<768x128xf32>
    %cst_51 = arith.constant 0.000000e+00 : f32
    %69 = vector.broadcast %cst_51 : f32 to vector<768x128xf32>
    %70 = arith.maximumf %68, %69 : vector<768x128xf32>
    %71 = arith.truncf %70 : vector<768x128xf32> to vector<768x128xbf16>
    %cst_52 = arith.constant dense<0.000000e+00> : vector<768x128xf32>
    %72 = tpu.matmul %71, %60, %cst_52 {dimension_numbers = #tpu.dot_dimension_numbers<[1], [0], [0], [1], [0, 0, 1, 1], [], []>} : vector<768x128xbf16>, vector<128x128xbf16>, vector<768x128xf32> -> vector<768x128xf32>
    %73 = vector.broadcast %62 : vector<1x128xf32> to vector<768x128xf32>
    %74 = arith.addf %72, %73 : vector<768x128xf32>
    %75 = arith.addf %54, %74 : vector<768x128xf32>
    %76 = vector.extract_strided_slice %75 {offsets = [0, 0], sizes = [256, 128], strides = [1, 1]} : vector<768x128xf32> to vector<256x128xf32>
    %77 = vector.extract_strided_slice %75 {offsets = [256, 0], sizes = [256, 128], strides = [1, 1]} : vector<768x128xf32> to vector<256x128xf32>
    %78 = arith.addf %76, %77 : vector<256x128xf32>
    %79 = vector.extract_strided_slice %75 {offsets = [512, 0], sizes = [256, 128], strides = [1, 1]} : vector<768x128xf32> to vector<256x128xf32>
    %80 = arith.addf %78, %79 : vector<256x128xf32>
    %cst_53 = arith.constant 0.333333343 : f32
    %81 = vector.broadcast %cst_53 : f32 to vector<256x128xf32>
    %82 = arith.mulf %80, %81 : vector<256x128xf32>
    %c3 = arith.constant 3 : index
    %c0_54 = arith.constant 0 : index
    %c0_55 = arith.constant 0 : index
    %83 = vector.load %arg5[%c3, %c0_54, %c0_55] : memref<5x128x128xbf16, #tpu.memory_space<vmem>>, vector<1x128x128xbf16>
    %84 = vector.shape_cast %83 : vector<1x128x128xbf16> to vector<128x128xbf16>
    %c3_56 = arith.constant 3 : index
    %c0_57 = arith.constant 0 : index
    %c0_58 = arith.constant 0 : index
    %85 = vector.load %arg6[%c3_56, %c0_57, %c0_58] : memref<5x1x128xf32, #tpu.memory_space<vmem>>, vector<1x1x128xf32>
    %86 = vector.shape_cast %85 : vector<1x1x128xf32> to vector<1x128xf32>
    %c3_59 = arith.constant 3 : index
    %c0_60 = arith.constant 0 : index
    %c0_61 = arith.constant 0 : index
    %87 = vector.load %arg7[%c3_59, %c0_60, %c0_61] : memref<5x128x128xbf16, #tpu.memory_space<vmem>>, vector<1x128x128xbf16>
    %88 = vector.shape_cast %87 : vector<1x128x128xbf16> to vector<128x128xbf16>
    %c3_62 = arith.constant 3 : index
    %c0_63 = arith.constant 0 : index
    %c0_64 = arith.constant 0 : index
    %89 = vector.load %arg8[%c3_62, %c0_63, %c0_64] : memref<5x1x128xf32, #tpu.memory_space<vmem>>, vector<1x1x128xf32>
    %90 = vector.shape_cast %89 : vector<1x1x128xf32> to vector<1x128xf32>
    %cst_65 = arith.constant 0.000000e+00 : f32
    %91 = vector.broadcast %cst_65 : f32 to vector<256x128xf32>
    %92 = arith.maximumf %82, %91 : vector<256x128xf32>
    %93 = arith.truncf %92 : vector<256x128xf32> to vector<256x128xbf16>
    %cst_66 = arith.constant dense<0.000000e+00> : vector<256x128xf32>
    %94 = tpu.matmul %93, %84, %cst_66 {dimension_numbers = #tpu.dot_dimension_numbers<[1], [0], [0], [1], [0, 0, 1, 1], [], []>} : vector<256x128xbf16>, vector<128x128xbf16>, vector<256x128xf32> -> vector<256x128xf32>
    %95 = vector.broadcast %86 : vector<1x128xf32> to vector<256x128xf32>
    %96 = arith.addf %94, %95 : vector<256x128xf32>
    %cst_67 = arith.constant 0.000000e+00 : f32
    %97 = vector.broadcast %cst_67 : f32 to vector<256x128xf32>
    %98 = arith.maximumf %96, %97 : vector<256x128xf32>
    %99 = arith.truncf %98 : vector<256x128xf32> to vector<256x128xbf16>
    %cst_68 = arith.constant dense<0.000000e+00> : vector<256x128xf32>
    %100 = tpu.matmul %99, %88, %cst_68 {dimension_numbers = #tpu.dot_dimension_numbers<[1], [0], [0], [1], [0, 0, 1, 1], [], []>} : vector<256x128xbf16>, vector<128x128xbf16>, vector<256x128xf32> -> vector<256x128xf32>
    %101 = vector.broadcast %90 : vector<1x128xf32> to vector<256x128xf32>
    %102 = arith.addf %100, %101 : vector<256x128xf32>
    %103 = arith.addf %82, %102 : vector<256x128xf32>
    %c4 = arith.constant 4 : index
    %c0_69 = arith.constant 0 : index
    %c0_70 = arith.constant 0 : index
    %104 = vector.load %arg5[%c4, %c0_69, %c0_70] : memref<5x128x128xbf16, #tpu.memory_space<vmem>>, vector<1x128x128xbf16>
    %105 = vector.shape_cast %104 : vector<1x128x128xbf16> to vector<128x128xbf16>
    %c4_71 = arith.constant 4 : index
    %c0_72 = arith.constant 0 : index
    %c0_73 = arith.constant 0 : index
    %106 = vector.load %arg6[%c4_71, %c0_72, %c0_73] : memref<5x1x128xf32, #tpu.memory_space<vmem>>, vector<1x1x128xf32>
    %107 = vector.shape_cast %106 : vector<1x1x128xf32> to vector<1x128xf32>
    %c4_74 = arith.constant 4 : index
    %c0_75 = arith.constant 0 : index
    %c0_76 = arith.constant 0 : index
    %108 = vector.load %arg7[%c4_74, %c0_75, %c0_76] : memref<5x128x128xbf16, #tpu.memory_space<vmem>>, vector<1x128x128xbf16>
    %109 = vector.shape_cast %108 : vector<1x128x128xbf16> to vector<128x128xbf16>
    %c4_77 = arith.constant 4 : index
    %c0_78 = arith.constant 0 : index
    %c0_79 = arith.constant 0 : index
    %110 = vector.load %arg8[%c4_77, %c0_78, %c0_79] : memref<5x1x128xf32, #tpu.memory_space<vmem>>, vector<1x1x128xf32>
    %111 = vector.shape_cast %110 : vector<1x1x128xf32> to vector<1x128xf32>
    %cst_80 = arith.constant 0.000000e+00 : f32
    %112 = vector.broadcast %cst_80 : f32 to vector<256x128xf32>
    %113 = arith.maximumf %103, %112 : vector<256x128xf32>
    %114 = arith.truncf %113 : vector<256x128xf32> to vector<256x128xbf16>
    %cst_81 = arith.constant dense<0.000000e+00> : vector<256x128xf32>
    %115 = tpu.matmul %114, %105, %cst_81 {dimension_numbers = #tpu.dot_dimension_numbers<[1], [0], [0], [1], [0, 0, 1, 1], [], []>} : vector<256x128xbf16>, vector<128x128xbf16>, vector<256x128xf32> -> vector<256x128xf32>
    %116 = vector.broadcast %107 : vector<1x128xf32> to vector<256x128xf32>
    %117 = arith.addf %115, %116 : vector<256x128xf32>
    %cst_82 = arith.constant 0.000000e+00 : f32
    %118 = vector.broadcast %cst_82 : f32 to vector<256x128xf32>
    %119 = arith.maximumf %117, %118 : vector<256x128xf32>
    %120 = arith.truncf %119 : vector<256x128xf32> to vector<256x128xbf16>
    %cst_83 = arith.constant dense<0.000000e+00> : vector<256x128xf32>
    %121 = tpu.matmul %120, %109, %cst_83 {dimension_numbers = #tpu.dot_dimension_numbers<[1], [0], [0], [1], [0, 0, 1, 1], [], []>} : vector<256x128xbf16>, vector<128x128xbf16>, vector<256x128xf32> -> vector<256x128xf32>
    %122 = vector.broadcast %111 : vector<1x128xf32> to vector<256x128xf32>
    %123 = arith.addf %121, %122 : vector<256x128xf32>
    %124 = arith.addf %103, %123 : vector<256x128xf32>
    %cst_84 = arith.constant 0.000000e+00 : f32
    %125 = vector.broadcast %cst_84 : f32 to vector<256x128xf32>
    %126 = arith.maximumf %124, %125 : vector<256x128xf32>
    %127 = arith.truncf %126 : vector<256x128xf32> to vector<256x128xbf16>
    %c0_85 = arith.constant 0 : index
    %c0_86 = arith.constant 0 : index
    %128 = vector.load %arg9[%c0_85, %c0_86] : memref<128x128xbf16, #tpu.memory_space<vmem>>, vector<128x128xbf16>
    %cst_87 = arith.constant dense<0.000000e+00> : vector<256x128xf32>
    %129 = tpu.matmul %127, %128, %cst_87 {dimension_numbers = #tpu.dot_dimension_numbers<[1], [0], [0], [1], [0, 0, 1, 1], [], []>} : vector<256x128xbf16>, vector<128x128xbf16>, vector<256x128xf32> -> vector<256x128xf32>
    %c0_88 = arith.constant 0 : index
    %c0_89 = arith.constant 0 : index
    %130 = vector.load %arg10[%c0_88, %c0_89] : memref<1x128xf32, #tpu.memory_space<vmem>>, vector<1x128xf32>
    %131 = vector.broadcast %130 : vector<1x128xf32> to vector<256x128xf32>
    %132 = arith.addf %129, %131 : vector<256x128xf32>
    %133 = tpu.iota {dimensions = array<i32: 1>} : vector<256x128xi32>
    %c1_i32 = arith.constant 1 : i32
    %134 = vector.broadcast %c1_i32 : i32 to vector<256x128xi32>
    %135 = arith.cmpi slt, %133, %134 : vector<256x128xi32>
    %cst_90 = arith.constant 0.000000e+00 : f32
    %136 = vector.broadcast %cst_90 : f32 to vector<256x128xf32>
    %137 = arith.maximumf %132, %136 : vector<256x128xf32>
    %138 = vector.broadcast %cst_90 : f32 to vector<256x128xf32>
    %139 = arith.subf %132, %138 : vector<256x128xf32>
    %140 = arith.cmpf one, %139, %139 : vector<256x128xf32>
    %141 = vector.broadcast %cst_90 : f32 to vector<256x128xf32>
    %142 = arith.addf %132, %141 : vector<256x128xf32>
    %143 = math.absf %139 : vector<256x128xf32>
    %cst_91 = arith.constant 0.000000e+00 : f32
    %144 = vector.broadcast %cst_91 : f32 to vector<256x128xf32>
    %145 = arith.subf %144, %143 : vector<256x128xf32>
    %146 = math.exp %145 : vector<256x128xf32>
    %147 = math.log1p %146 : vector<256x128xf32>
    %148 = arith.addf %137, %147 : vector<256x128xf32>
    %149 = arith.select %140, %142, %148 : vector<256x128xi1>, vector<256x128xf32>
    %c4_i32 = arith.constant 4 : i32
    %150 = vector.broadcast %c4_i32 : i32 to vector<256x128xi32>
    %151 = arith.cmpi slt, %133, %150 : vector<256x128xi32>
    %152 = arith.negf %132 : vector<256x128xf32>
    %153 = math.exp %152 : vector<256x128xf32>
    %cst_92 = arith.constant 1.000000e+00 : f32
    %154 = vector.broadcast %cst_92 : f32 to vector<256x128xf32>
    %155 = arith.addf %154, %153 : vector<256x128xf32>
    %156 = arith.divf %154, %155 : vector<256x128xf32>
    %157 = arith.select %151, %156, %132 : vector<256x128xi1>, vector<256x128xf32>
    %158 = arith.select %135, %149, %157 : vector<256x128xi1>, vector<256x128xf32>
    %c0_93 = arith.constant 0 : index
    %c0_94 = arith.constant 0 : index
    %c0_95 = arith.constant 0 : index
    %159 = vector.load %arg11[%c0_93, %c0_94, %c0_95] : memref<1x256x128xf32, #tpu.memory_space<vmem>>, vector<1x256x128xf32>
    %160 = vector.shape_cast %159 : vector<1x256x128xf32> to vector<256x128xf32>
    %161 = vector.shape_cast %158 : vector<256x128xf32> to vector<1x256x128xf32>
    tpu.vector_store %arg11[%c0_93, %c0_94, %c0_95], %161 {strides = array<i32>} : memref<1x256x128xf32, #tpu.memory_space<vmem>>, vector<1x256x128xf32>,
    return
  }
  func.func @transform_0(%arg0: i32, %arg1: i32) -> (i32, i32, i32, i32) {
    %c0_i32 = arith.constant 0 : i32
    %c0_i32_0 = arith.constant 0 : i32
    %c0_i32_1 = arith.constant 0 : i32
    return %arg0, %c0_i32, %arg1, %c0_i32_0 : i32, i32, i32, i32
  }
  func.func @transform_1(%arg0: i32, %arg1: i32) -> (i32, i32) {
    %c0_i32 = arith.constant 0 : i32
    %c0_i32_0 = arith.constant 0 : i32
    %c0_i32_1 = arith.constant 0 : i32
    return %c0_i32, %c0_i32_0 : i32, i32
  }
  func.func @transform_2(%arg0: i32, %arg1: i32) -> (i32, i32) {
    %c0_i32 = arith.constant 0 : i32
    %c0_i32_0 = arith.constant 0 : i32
    %c0_i32_1 = arith.constant 0 : i32
    return %c0_i32, %c0_i32_0 : i32, i32
  }
  func.func @transform_3(%arg0: i32, %arg1: i32) -> (i32, i32, i32) {
    %c0_i32 = arith.constant 0 : i32
    %c0_i32_0 = arith.constant 0 : i32
    %c0_i32_1 = arith.constant 0 : i32
    %c0_i32_2 = arith.constant 0 : i32
    return %c0_i32, %c0_i32_0, %c0_i32_1 : i32, i32, i32
  }
  func.func @transform_4(%arg0: i32, %arg1: i32) -> (i32, i32, i32) {
    %c0_i32 = arith.constant 0 : i32
    %c0_i32_0 = arith.constant 0 : i32
    %c0_i32_1 = arith.constant 0 : i32
    %c0_i32_2 = arith.constant 0 : i32
    return %c0_i32, %c0_i32_0, %c0_i32_1 : i32, i32, i32
  }
  func.func @transform_5(%arg0: i32, %arg1: i32) -> (i32, i32, i32) {
    %c0_i32 = arith.constant 0 : i32
    %c0_i32_0 = arith.constant 0 : i32
    %c0_i32_1 = arith.constant 0 : i32
    %c0_i32_2 = arith.constant 0 : i32
    return %c0_i32, %c0_i32_0, %c0_i32_1 : i32, i32, i32
  }
  func.func @transform_6(%arg0: i32, %arg1: i32) -> (i32, i32, i32) {
    %c0_i32 = arith.constant 0 : i32
    %c0_i32_0 = arith.constant 0 : i32
    %c0_i32_1 = arith.constant 0 : i32
    %c0_i32_2 = arith.constant 0 : i32
    return %c0_i32, %c0_i32_0, %c0_i32_1 : i32, i32, i32
  }
  func.func @transform_7(%arg0: i32, %arg1: i32) -> (i32, i32) {
    %c0_i32 = arith.constant 0 : i32
    %c0_i32_0 = arith.constant 0 : i32
    %c0_i32_1 = arith.constant 0 : i32
    return %c0_i32, %c0_i32_0 : i32, i32
  }
  func.func @transform_8(%arg0: i32, %arg1: i32) -> (i32, i32) {
    %c0_i32 = arith.constant 0 : i32
    %c0_i32_0 = arith.constant 0 : i32
    %c0_i32_1 = arith.constant 0 : i32
    return %c0_i32, %c0_i32_0 : i32, i32
  }
  func.func @transform_9(%arg0: i32, %arg1: i32) -> (i32, i32, i32) {
    %c0_i32 = arith.constant 0 : i32
    %c0_i32_0 = arith.constant 0 : i32
    return %arg0, %arg1, %c0_i32 : i32, i32, i32
  }
}

</mosaic_0001>

<bundles_post_ra>
// kernel: pixelnerf_forward.1
= control target key start
LH: loop header
LB: loop body
LE: loop exit
PB: predicated region body
PF: predicated region fallthrough
CT: control target
= control target key end

     0   :  { %s12207_s30 = smov 0   ;;  %s12209_s10 = smov 0   ;;  %s17244_s0 = inlined_call_operand.vmem [shape: bf16[2,3,1024,128], index: 0, kind: input, shape index: {}]   ;;  %s17245_s1 = inlined_call_operand.vmem [shape: bf16[128,384], index: 1, kind: input, shape index: {}]   ;;  %s17246_s2 = inlined_call_operand.vmem [shape: f32[1,384], index: 2, kind: input, shape index: {}]   ;;  %s17247_s3 = inlined_call_operand.vmem [shape: bf16[5,128,128], index: 3, kind: input, shape index: {}]   ;;  %s17248_s4 = inlined_call_operand.vmem [shape: f32[5,1,128], index: 4, kind: input, shape index: {}]   ;;  %s17249_s5 = inlined_call_operand.vmem [shape: bf16[5,128,128], index: 5, kind: input, shape index: {}]   ;;  %s17250_s6 = inlined_call_operand.vmem [shape: f32[5,1,128], index: 6, kind: input, shape index: {}]   ;;  %s17251_s7 = inlined_call_operand.vmem [shape: bf16[128,128], index: 7, kind: input, shape index: {}]   ;;  %s17252_s8 = inlined_call_operand.vmem [shape: f32[1,128], index: 8, kind: input, shape index: {}]   ;;  %s17253_s9 = inlined_call_operand.vmem [shape: f32[2,1024,128], index: 9, kind: output, shape index: {}]  }
   0x1   :  { %s12211_s11 = smov 0   ;;  %s12213_s12 = smov 0  }
   0x2   :  { %s12215_s13 = smov 0   ;;  %s12217_s14 = smov 0  }
   0x3   :  { %s12219_s15 = smov 0  }
   0x4 LB: > { %s28_s16 = sadd.s32 1, %s12146_s13  ;;  %s31_s17 = sadd.s32 1, %s12150_s14  ;;  %s12154_s15 = sphi %s12219_s15, %s19_s15   ;;  %s12150_s14 = sphi %s12217_s14, %s18147_s14   ;;  %s12146_s13 = sphi %s12215_s13, %s18146_s13   ;;  %s12142_s12 = sphi %s12213_s12, %s18145_s12   ;;  %s12138_s11 = sphi %s12211_s11, %s18144_s11   ;;  %s12134_s10 = sphi %s12209_s10, %s18143_s10   ;;  %s12130_s30 = sphi %s12207_s30, %s18142_s30  }
   0x5   : > { %p29_p0 = scmp.ge.s32.totalorder %s28_s16, 4  ;;  %p47_p1 = scmp.ne.s32.totalorder %s12134_s10, %s12130_s30 }
   0x6   : > { %p48_p2 = scmp.eq.s32.totalorder %s12154_s15, 0  ;;  %s40_s21 = sadd.s32 1, %s12134_s10 }
   0x7   : > { %s18149_s16 = smov (%p29_p0, %s28_s16), 0  ;;  %s18151_s17 = smov (!%p29_p0, %s31_s17), %s12150_s14 }
   0x8   : > { %p49_p3 = por %p48_p2, %p47_p1  ;;  %p33_p4 = scmp.ge.s32.totalorder %s18151_s17, 2 }
   0x9   : > { %s36_s18 = ssub.s32 %s12146_s13, %s18149_s16  ;;  %p9087_p6 = scmp.ge.s32.totalorder %s12154_s15, 8 }
   0xa   : > { %s18153_s17 = smov (%p33_p4, %s18151_s17), 0 }
   0xb   : > { %17501 = sst [smem:[#allocation3_spill]] %s18153_s17  ;;  %s35_s19 = ssub.s32 %s12150_s14, %s18153_s17 }
   0xc   : > { %s37_s20 = sor.u32 %s36_s18, %s35_s19  ;;  %293 = sbr.rel (%p9087_p6) target bundleno = 51 (0x33), region = 48 }
   0xd   : > { %p38_p5 = scmp.eq.s32.totalorder %s37_s20, 0 }
   0xf   : > { %s12258_s22 = scalar_select %p38_p5, %s12134_s10, %s40_s21  }
  0x13   : > { %296 = sbr.rel (!%p49_p3) target bundleno = 51 (0x33), region = 52  ;;  %s298_s23 = sand.u32 (%p49_p3), 1, %s12134_s10  }
  0x14   : > { %s11611_s24 = smul.u32 (%p49_p3), 384, %s298_s23  ;;  %s9088_s25 = sshll.u32 (%p49_p3), %s12146_s13, 5 }
  0x15   : > { %s11612_s26 = smul.u32 (%p49_p3), 384, %s12150_s14 }
  0x16   : > { %s12272_s19 = scalar_lea.vmem (%p49_p3), [#allocation2], %s11611_s24 }
  0x17   : > { %s303_s27 = sadd.s32 (%p49_p3), %s11612_s26, %s9088_s25 }
  0x18   : > { %s9089_s28 = sshll.u32 (%p49_p3), %s303_s27, 2 }
  0x19   : > { %s12267_s18 = scalar_lea.vmem (%p49_p3), %s17244_s0, %s9089_s28 }
  0x1a   : > { %v321_v0 = vld [vmem:[%s12267_s18] sm:$0xff]   ;;  %v325_v1 = vld [vmem:[%s12267_s18 + $0x8] sm:$0xff]   ;;  %v329_v2 = vld [vmem:[%s12267_s18 + $0x10] sm:$0xff]  }
  0x1b   : > { %322 = vst [vmem:[%s12272_s19] sm:$0xff] %v321_v0   ;;  %326 = vst [vmem:[%s12272_s19 + $0x8] sm:$0xff] %v325_v1   ;;  %v333_v3 = vld [vmem:[%s12267_s18 + $0x18] sm:$0xff]   ;;  %v337_v4 = vld [vmem:[%s12267_s18 + $0x20] sm:$0xff]  }
  0x1c   : > { %330 = vst [vmem:[%s12272_s19 + $0x10] sm:$0xff] %v329_v2   ;;  %v341_v5 = vld [vmem:[%s12267_s18 + $0x28] sm:$0xff]   ;;  %334 = vst [vmem:[%s12272_s19 + $0x18] sm:$0xff] %v333_v3   ;;  %v345_v6 = vld [vmem:[%s12267_s18 + $0x30] sm:$0xff]  }
  0x1d   : > { %338 = vst [vmem:[%s12272_s19 + $0x20] sm:$0xff] %v337_v4   ;;  %342 = vst [vmem:[%s12272_s19 + $0x28] sm:$0xff] %v341_v5   ;;  %v349_v7 = vld [vmem:[%s12267_s18 + $0x38] sm:$0xff]   ;;  %v353_v8 = vld [vmem:[%s12267_s18 + $0x40] sm:$0xff]  }
  0x1e   : > { %346 = vst [vmem:[%s12272_s19 + $0x30] sm:$0xff] %v345_v6   ;;  %350 = vst [vmem:[%s12272_s19 + $0x38] sm:$0xff] %v349_v7   ;;  %v357_v9 = vld [vmem:[%s12267_s18 + $0x48] sm:$0xff]   ;;  %v361_v10 = vld [vmem:[%s12267_s18 + $0x50] sm:$0xff]  }
  0x1f   : > { %354 = vst [vmem:[%s12272_s19 + $0x40] sm:$0xff] %v353_v8   ;;  %v365_v11 = vld [vmem:[%s12267_s18 + $0x58] sm:$0xff]   ;;  %358 = vst [vmem:[%s12272_s19 + $0x48] sm:$0xff] %v357_v9   ;;  %v369_v12 = vld [vmem:[%s12267_s18 + $0x60] sm:$0xff]  }
  0x20   : > { %362 = vst [vmem:[%s12272_s19 + $0x50] sm:$0xff] %v361_v10   ;;  %366 = vst [vmem:[%s12272_s19 + $0x58] sm:$0xff] %v365_v11   ;;  %v373_v13 = vld [vmem:[%s12267_s18 + $0x68] sm:$0xff]   ;;  %v377_v14 = vld [vmem:[%s12267_s18 + $0x70] sm:$0xff]  }
  0x21   : > { %370 = vst [vmem:[%s12272_s19 + $0x60] sm:$0xff] %v369_v12   ;;  %374 = vst [vmem:[%s12272_s19 + $0x68] sm:$0xff] %v373_v13   ;;  %v381_v15 = vld [vmem:[%s12267_s18 + $0x78] sm:$0xff]   ;;  %v385_v16 = vld [vmem:[%s12267_s18 + $0x200] sm:$0xff]  }
  0x22   : > { %378 = vst [vmem:[%s12272_s19 + $0x70] sm:$0xff] %v377_v14   ;;  %v389_v17 = vld [vmem:[%s12267_s18 + $0x208] sm:$0xff]   ;;  %382 = vst [vmem:[%s12272_s19 + $0x78] sm:$0xff] %v381_v15   ;;  %v393_v18 = vld [vmem:[%s12267_s18 + $0x210] sm:$0xff]  }
  0x23   : > { %386 = vst [vmem:[%s12272_s19 + $0x80] sm:$0xff] %v385_v16   ;;  %390 = vst [vmem:[%s12272_s19 + $0x88] sm:$0xff] %v389_v17   ;;  %v397_v19 = vld [vmem:[%s12267_s18 + $0x218] sm:$0xff]   ;;  %v401_v20 = vld [vmem:[%s12267_s18 + $0x220] sm:$0xff]  }
  0x24   : > { %394 = vst [vmem:[%s12272_s19 + $0x90] sm:$0xff] %v393_v18   ;;  %398 = vst [vmem:[%s12272_s19 + $0x98] sm:$0xff] %v397_v19   ;;  %v405_v21 = vld [vmem:[%s12267_s18 + $0x228] sm:$0xff]   ;;  %v409_v22 = vld [vmem:[%s12267_s18 + $0x230] sm:$0xff]  }
  0x25   : > { %402 = vst [vmem:[%s12272_s19 + $0xa0] sm:$0xff] %v401_v20   ;;  %v413_v23 = vld [vmem:[%s12267_s18 + $0x238] sm:$0xff]   ;;  %406 = vst [vmem:[%s12272_s19 + $0xa8] sm:$0xff] %v405_v21   ;;  %v417_v24 = vld [vmem:[%s12267_s18 + $0x240] sm:$0xff]  }
  0x26   : > { %410 = vst [vmem:[%s12272_s19 + $0xb0] sm:$0xff] %v409_v22   ;;  %414 = vst [vmem:[%s12272_s19 + $0xb8] sm:$0xff] %v413_v23   ;;  %v421_v25 = vld [vmem:[%s12267_s18 + $0x248] sm:$0xff]   ;;  %v425_v26 = vld [vmem:[%s12267_s18 + $0x250] sm:$0xff]  }
  0x27   : > { %418 = vst [vmem:[%s12272_s19 + $0xc0] sm:$0xff] %v417_v24   ;;  %422 = vst [vmem:[%s12272_s19 + $0xc8] sm:$0xff] %v421_v25   ;;  %v429_v27 = vld [vmem:[%s12267_s18 + $0x258] sm:$0xff]   ;;  %v433_v28 = vld [vmem:[%s12267_s18 + $0x260] sm:$0xff]  }
  0x28   : > { %426 = vst [vmem:[%s12272_s19 + $0xd0] sm:$0xff] %v425_v26   ;;  %v437_v29 = vld [vmem:[%s12267_s18 + $0x268] sm:$0xff]   ;;  %430 = vst [vmem:[%s12272_s19 + $0xd8] sm:$0xff] %v429_v27   ;;  %v441_v30 = vld [vmem:[%s12267_s18 + $0x270] sm:$0xff]  }
  0x29   : > { %434 = vst [vmem:[%s12272_s19 + $0xe0] sm:$0xff] %v433_v28   ;;  %438 = vst [vmem:[%s12272_s19 + $0xe8] sm:$0xff] %v437_v29   ;;  %v445_v31 = vld [vmem:[%s12267_s18 + $0x278] sm:$0xff]   ;;  %v449_v32 = vld [vmem:[%s12267_s18 + $0x400] sm:$0xff]  }
  0x2a   : > { %442 = vst [vmem:[%s12272_s19 + $0xf0] sm:$0xff] %v441_v30   ;;  %446 = vst [vmem:[%s12272_s19 + $0xf8] sm:$0xff] %v445_v31   ;;  %v453_v33 = vld [vmem:[%s12267_s18 + $0x408] sm:$0xff]   ;;  %v457_v34 = vld [vmem:[%s12267_s18 + $0x410] sm:$0xff]  }
  0x2b   : > { %450 = vst [vmem:[%s12272_s19 + $0x100] sm:$0xff] %v449_v32   ;;  %v461_v35 = vld [vmem:[%s12267_s18 + $0x418] sm:$0xff]   ;;  %454 = vst [vmem:[%s12272_s19 + $0x108] sm:$0xff] %v453_v33   ;;  %v465_v36 = vld [vmem:[%s12267_s18 + $0x420] sm:$0xff]  }
  0x2c   : > { %458 = vst [vmem:[%s12272_s19 + $0x110] sm:$0xff] %v457_v34   ;;  %462 = vst [vmem:[%s12272_s19 + $0x118] sm:$0xff] %v461_v35   ;;  %v469_v37 = vld [vmem:[%s12267_s18 + $0x428] sm:$0xff]   ;;  %v473_v38 = vld [vmem:[%s12267_s18 + $0x430] sm:$0xff]  }
  0x2d   : > { %466 = vst [vmem:[%s12272_s19 + $0x120] sm:$0xff] %v465_v36   ;;  %470 = vst [vmem:[%s12272_s19 + $0x128] sm:$0xff] %v469_v37   ;;  %v477_v39 = vld [vmem:[%s12267_s18 + $0x438] sm:$0xff]   ;;  %v481_v40 = vld [vmem:[%s12267_s18 + $0x440] sm:$0xff]  }
  0x2e   : > { %474 = vst [vmem:[%s12272_s19 + $0x130] sm:$0xff] %v473_v38   ;;  %v485_v41 = vld [vmem:[%s12267_s18 + $0x448] sm:$0xff]   ;;  %478 = vst [vmem:[%s12272_s19 + $0x138] sm:$0xff] %v477_v39   ;;  %v489_v42 = vld [vmem:[%s12267_s18 + $0x450] sm:$0xff]  }
  0x2f   : > { %482 = vst [vmem:[%s12272_s19 + $0x140] sm:$0xff] %v481_v40   ;;  %486 = vst [vmem:[%s12272_s19 + $0x148] sm:$0xff] %v485_v41   ;;  %v493_v43 = vld [vmem:[%s12267_s18 + $0x458] sm:$0xff]   ;;  %v497_v44 = vld [vmem:[%s12267_s18 + $0x460] sm:$0xff]  }
  0x30   : > { %490 = vst [vmem:[%s12272_s19 + $0x150] sm:$0xff] %v489_v42   ;;  %494 = vst [vmem:[%s12272_s19 + $0x158] sm:$0xff] %v493_v43   ;;  %v501_v45 = vld [vmem:[%s12267_s18 + $0x468] sm:$0xff]   ;;  %v505_v46 = vld [vmem:[%s12267_s18 + $0x470] sm:$0xff]  }
  0x31   : > { %498 = vst [vmem:[%s12272_s19 + $0x160] sm:$0xff] %v497_v44   ;;  %v509_v47 = vld [vmem:[%s12267_s18 + $0x478] sm:$0xff]   ;;  %502 = vst [vmem:[%s12272_s19 + $0x168] sm:$0xff] %v501_v45  }
  0x32   : > { %506 = vst [vmem:[%s12272_s19 + $0x170] sm:$0xff] %v505_v46   ;;  %510 = vst [vmem:[%s12272_s19 + $0x178] sm:$0xff] %v509_v47  }
  0x33 PF: > { %p9090_p7 = scmp.ge.s32.totalorder %s12154_s15, 1  ;;  %p726_p8 = scmp.lt.s32.totalorder %s12154_s15, 9 }
  0x35   : > { %p727_p9 = pnand %p9090_p7, %p726_p8 }
  0x37   : > { %730 = sbr.rel (%p727_p9) target bundleno = 3263 (0xcbf), region = 93 }
  0x3e   : > { %v11671_v48 = vld [vmem:[%s17245_s1 + $0x4] ss:$12 sps:$4 sm:$0xff]   ;;  %v11673_v49 = vld [vmem:[%s17245_s1] ss:$12 sps:$4 sm:$0xff]   ;;  %v12156_v50 = vmov 0   ;;  %s733_s24 = sand.u32 1, %s12130_s30   ;;  %v17255_v31 = vlaneseq }
  0x3f   : > { %1377 = vmatprep.mubr.bf16.mxu0 %v12156_v50  ;;  %1345 = vmatprep.subr.bf16.mxu0 %v11671_v48  ;;  %v11674_v51 = vld [vmem:[%s17245_s1 + $0x1c] ss:$12 sps:$4 sm:$0xff]   ;;  %v11676_v52 = vld [vmem:[%s17245_s1 + $0x18] ss:$12 sps:$4 sm:$0xff]   ;;  %v11677_v53 = vld [vmem:[%s17245_s1 + $0x34] ss:$12 sps:$4 sm:$0xff]  }
  0x40   : > { %1346 = vmatpush1.bf16.msra.mxu0 %v11673_v49  ;;  %s11613_s19 = smul.u32 384, %s733_s24  ;;  %v11679_v54 = vld [vmem:[%s17245_s1 + $0x30] ss:$12 sps:$4 sm:$0xff]   ;;  %v11680_v55 = vld [vmem:[%s17245_s1 + $0x4c] ss:$12 sps:$4 sm:$0xff]   ;;  %v11745_v26 = vld [vmem:[%s17247_s3] sm:$0xff]  }
  0x41   : > { %1347 = vmatprep.subr.bf16.mxu0 %v11674_v51  ;;  %v11682_v56 = vld [vmem:[%s17245_s1 + $0x48] ss:$12 sps:$4 sm:$0xff]   ;;  %v11683_v57 = vld [vmem:[%s17245_s1 + $0x64] ss:$12 sps:$4 sm:$0xff]   ;;  %v11697_v60 = vld [vmem:[%s17245_s1 + $0x20] ss:$12 sps:$4 sm:$0xff]  }
  0x42   : > { %s12398_s28 = scalar_lea.vmem [#allocation2], %s11613_s19  ;;  %v11696_v59 = vld [vmem:[%s17245_s1 + $0x8] ss:$12 sps:$4 sm:$0xff]   ;;  %v11685_v61 = vld [vmem:[%s17245_s1 + $0x60] ss:$12 sps:$4 sm:$0xff]   ;;  %v11750_v32 = vld [vmem:[%s17247_s3 + $0x18] sm:$0xff]  }
  0x43   : > { %v11695_v58 = vld [vmem:[%s12398_s28] sm:$0xff]   ;;  %9947 = vmatprep.subr.bf16.mxu1 %v11696_v59  ;;  %v11686_v62 = vld [vmem:[%s17245_s1 + $0x7c] ss:$12 sps:$4 sm:$0xff]   ;;  %v11692_v4 = vld [vmem:[%s17245_s1 + $0xac] ss:$12 sps:$4 sm:$0xff]   ;;  %v12505_v33 = vshrl.u32 %v17255_v31, 7 }
  0x44   : > { %1348 = vmatpush1.bf16.msra.mxu0 %v11676_v52  ;;  %9963 = vmatprep.mubr.bf16.mxu1 %v11695_v58  ;;  %v11699_v63 = vld [vmem:[%s17245_s1 + $0x38] ss:$12 sps:$4 sm:$0xff]   ;;  %v11689_v1 = vld [vmem:[%s17245_s1 + $0x94] ss:$12 sps:$4 sm:$0xff]   ;;  %v11700_v2 = vld [vmem:[%s17245_s1 + $0x50] ss:$12 sps:$4 sm:$0xff]  }
  0x45   : > { %1349 = vmatprep.subr.bf16.mxu0 %v11677_v53  ;;  %9948 = vmatpush3.bf16.msra.mxu1 %v11696_v59  ;;  %v11688_v0 = vld [vmem:[%s17245_s1 + $0x78] ss:$12 sps:$4 sm:$0xff]   ;;  %v11691_v3 = vld [vmem:[%s17245_s1 + $0x90] ss:$12 sps:$4 sm:$0xff]   ;;  %v11702_v5 = vld [vmem:[%s17245_s1 + $0x68] ss:$12 sps:$4 sm:$0xff]  }
  0x46   : > { %9949 = vmatprep.subr.bf16.mxu1 %v11697_v60  ;;  %v11694_v6 = vld [vmem:[%s17245_s1 + $0xa8] ss:$12 sps:$4 sm:$0xff]   ;;  %v11703_v7 = vld [vmem:[%s17245_s1 + $0x80] ss:$12 sps:$4 sm:$0xff]   ;;  %v11705_v8 = vld [vmem:[%s17245_s1 + $0x98] ss:$12 sps:$4 sm:$0xff]  }
  0x47   : > { %v11706_v9 = vld [vmem:[%s17245_s1 + $0xb0] ss:$12 sps:$4 sm:$0xff]   ;;  %v11698_v10 = vld [vmem:[%s12398_s28 + $0x8] sm:$0xff]   ;;  %v11707_v13 = vld [vmem:[%s12398_s28 + $0x20] sm:$0xff]   ;;  %v920_v37 = vsub.s32 1, %v12505_v33  ;;  %v924_v44 = vsub.s32 2, %v12505_v33 }
  0x48   : > { %1350 = vmatpush1.bf16.msra.mxu0 %v11679_v54  ;;  %v11701_v11 = vld [vmem:[%s12398_s28 + $0x10] sm:$0xff]   ;;  %v11704_v12 = vld [vmem:[%s12398_s28 + $0x18] sm:$0xff]   ;;  %v11708_v14 = vld [vmem:[%s12398_s28 + $0x28] sm:$0xff]   ;;  %s9091_s21 = sshll.u32 %s12138_s11, 5  ;;  %p774_p10 = scmp.lt.s32.totalorder %s12142_s12, 1 }
  0x49   : > { %1351 = vmatprep.subr.bf16.mxu0 %v11680_v55  ;;  %9950 = vmatpush3.bf16.msra.mxu1 %v11697_v60  ;;  %v11709_v15 = vld [vmem:[%s12398_s28 + $0x30] sm:$0xff]   ;;  %v11710_v16 = vld [vmem:[%s12398_s28 + $0x38] sm:$0xff]   ;;  %v11711_v17 = vld [vmem:[%s12398_s28 + $0x40] sm:$0xff]   ;;  %p16359_p11 = scmp.lt.s32.totalorder %s9091_s21, 127 }
  0x4a   : > { %9951 = vmatprep.subr.bf16.mxu1 %v11699_v63  ;;  %v11712_v18 = vld [vmem:[%s12398_s28 + $0x48] sm:$0xff]   ;;  %v11713_v19 = vld [vmem:[%s12398_s28 + $0x50] sm:$0xff]   ;;  %v11714_v20 = vld [vmem:[%s12398_s28 + $0x58] sm:$0xff]   ;;  %s18155_s12 = smov (!%p774_p10, %s12142_s12), 1 }
  0x4b   : > { %v11715_v21 = vld [vmem:[%s12398_s28 + $0x60] sm:$0xff]   ;;  %v12466_v22 = vld [vmem:[%s12398_s28 + $0x68] sm:$0xff]   ;;  %v12469_v23 = vld [vmem:[%s12398_s28 + $0x70] sm:$0xff]   ;;  %s18157_s21 = smov (!%p16359_p11, %s9091_s21), 127  ;;  %s9092_s25 = sshll.u32 %s18155_s12, 7 }
  0x4c   : > { %1352 = vmatpush1.bf16.msra.mxu0 %v11682_v56  ;;  %v12475_v24 = vld [vmem:[%s12398_s28 + $0x78] sm:$0xff]   ;;  %v12478_v25 = vld [vmem:[%s12398_s28 + $0x80] sm:$0xff]   ;;  %v11746_v27 = vld [vmem:[%s17247_s3 + $0x8] sm:$0xff]   ;;  %s16426_s11 = sadd.s32 %s9092_s25, %s18157_s21 }
  0x4d   : > { %1353 = vmatprep.subr.bf16.mxu0 %v11683_v57  ;;  %9952 = vmatpush3.bf16.msra.mxu1 %v11699_v63  ;;  %v12490_v28 = vld [vmem:[%s12398_s28 + $0x88] sm:$0xff]   ;;  %v12493_v29 = vld [vmem:[%s12398_s28 + $0x90] sm:$0xff]   ;;  %v12508_v34 = vld [vmem:[%s12398_s28 + $0x98] sm:$0xff]   ;;  %s9093_s12 = sshll.u32 %s16426_s11, 3 }
  0x4e   : > { %9953 = vmatprep.subr.bf16.mxu1 %v11700_v2  ;;  %v11749_v30 = vld [vmem:[%s17247_s3 + $0x10] sm:$0xff]   ;;  %v12513_v35 = vld [vmem:[%s17246_s2] sm:$0x7]  ;;  %v11754_v40 = vld [vmem:[%s17247_s3 + $0x28] sm:$0xff]   ;;  %s16458_s24 = scalar_lea.vmem %s17253_s9, %s9093_s12 }
  0x4f   : > { %v12517_v36 = vld [vmem:[%s12398_s28 + $0xa0] sm:$0xff]   ;;  %v12524_v39 = vrot.slane %v12513_v35, %v920_v37  ;;  %v12532_v41 = vld [vmem:[%s12398_s28 + $0xa8] sm:$0xff]   ;;  %v12536_v42 = vld [vmem:[%s12398_s28 + $0xb0] sm:$0xff]   ;;  %v12551_v47 = vrot.slane %v12513_v35, %v924_v44 }
  0x50   : > { %1354 = vmatpush1.bf16.msra.mxu0 %v11685_v61  ;;  %v11753_v38 = vld [vmem:[%s17247_s3 + $0x20] sm:$0xff]   ;;  %v11757_v43 = vld [vmem:[%s17247_s3 + $0x30] sm:$0xff]   ;;  %v11758_v45 = vld [vmem:[%s17247_s3 + $0x38] sm:$0xff]  }
  0x51   : > { %1355 = vmatprep.subr.bf16.mxu0 %v11686_v62  ;;  %9954 = vmatpush3.bf16.msra.mxu1 %v11700_v2  ;;  %v12548_v46 = vld [vmem:[%s12398_s28 + $0xb8] sm:$0xff]   ;;  %17502 = vst [vmem:[#allocation4_spill] sm:$0xff] %v12551_v47  ;;  %v12555_v48 = vld [vmem:[%s12398_s28 + $0xc0] sm:$0xff]   ;;  %v12561_v49 = vld [vmem:[%s12398_s28 + $0xc8] sm:$0xff]  }
  0x52   : > { %9955 = vmatprep.subr.bf16.mxu1 %v11702_v5  ;;  %v12565_v51 = vld [vmem:[%s12398_s28 + $0xd0] sm:$0xff]   ;;  %v12571_v52 = vld [vmem:[%s12398_s28 + $0xd8] sm:$0xff]   ;;  %v12575_v53 = vld [vmem:[%s12398_s28 + $0xe0] sm:$0xff]  }
  0x53   : > { %v12581_v54 = vld [vmem:[%s12398_s28 + $0xe8] sm:$0xff]   ;;  %v11759_v55 = vld [vmem:[%s17249_s5] sm:$0xff]   ;;  %v12588_v56 = vld [vmem:[%s12398_s28 + $0xf0] sm:$0xff]  }
  0x54   : > { %1356 = vmatpush1.bf16.msra.mxu0 %v11688_v0  ;;  %v12594_v57 = vld [vmem:[%s12398_s28 + $0xf8] sm:$0xff]   ;;  %v12604_v59 = vld [vmem:[%s12398_s28 + $0x108] sm:$0xff]   ;;  %v12608_v60 = vld [vmem:[%s12398_s28 + $0x110] sm:$0xff]  }
  0x55   : > { %1357 = vmatprep.subr.bf16.mxu0 %v11689_v1  ;;  %9956 = vmatpush3.bf16.msra.mxu1 %v11702_v5  ;;  %v12614_v61 = vld [vmem:[%s12398_s28 + $0x118] sm:$0xff]   ;;  %v12618_v62 = vld [vmem:[%s12398_s28 + $0x120] sm:$0xff]   ;;  %v12624_v63 = vld [vmem:[%s12398_s28 + $0x128] sm:$0xff]  }
  0x56   : > { %9957 = vmatprep.subr.bf16.mxu1 %v11703_v7  ;;  %v12628_v0 = vld [vmem:[%s12398_s28 + $0x130] sm:$0xff]   ;;  %v12634_v1 = vld [vmem:[%s12398_s28 + $0x138] sm:$0xff]   ;;  %v12638_v2 = vld [vmem:[%s12398_s28 + $0x140] sm:$0xff]  }
  0x57   : > { %v12651_v5 = vld [vmem:[%s12398_s28 + $0x150] sm:$0xff]  }
  0x58   : > { %1358 = vmatpush1.bf16.msra.mxu0 %v11691_v3  ;;  %v12644_v3 = vld [vmem:[%s12398_s28 + $0x148] sm:$0xff]  }
  0x59   : > { %1359 = vmatprep.subr.bf16.mxu0 %v11692_v4  ;;  %9958 = vmatpush3.bf16.msra.mxu1 %v11703_v7  ;;  %v11760_v4 = vld [vmem:[%s17249_s5 + $0x8] sm:$0xff]   ;;  %v12661_v7 = vld [vmem:[%s12398_s28 + $0x160] sm:$0xff]  }
  0x5a   : > { %9959 = vmatprep.subr.bf16.mxu1 %v11705_v8 }
  0x5c   : > { %1360 = vmatpush1.bf16.msra.mxu0 %v11694_v6  ;;  %v12657_v6 = vld [vmem:[%s12398_s28 + $0x158] sm:$0xff]  }
  0x5d   : > { %9960 = vmatpush3.bf16.msra.mxu1 %v11705_v8  ;;  %10171 = vmatprep.subr.bf16.mxu0 %v11759_v55  ;;  %v12667_v8 = vld [vmem:[%s12398_s28 + $0x168] sm:$0xff]  }
  0x5e   : > { %9961 = vmatprep.subr.bf16.mxu1 %v11706_v9 }
  0x5f   : > { %1378 = vmatmul.mubr.bf16.vlgmr.msra.gmra.mrb[0].mxu0 %v11695_v58  ;;  %v12598_v58 = vld [vmem:[%s12398_s28 + $0x100] sm:$0xff]  }
  0x60   : > { %1387 = vmatprep.mubr.bf16.mxu0 %v12156_v50  ;;  %10172 = vmatpush3.bf16.msra.mxu0 %v11759_v55 }
  0x61   : > { %9962 = vmatpush3.bf16.msra.mxu1 %v11706_v9  ;;  %10173 = vmatprep.subr.bf16.mxu0 %v11760_v4  ;;  %v12671_v9 = vld [vmem:[%s12398_s28 + $0x170] sm:$0xff]  }
  0x62   : > { %10059 = vmatprep.subr.bf16.mxu1 %v11745_v26 }
  0x64   : > { %9964 = vmatmul.mubr.bf16.vlgmr.msra.gmra.mrb[0].mxu1 %v11698_v10  ;;  %10174 = vmatpush3.bf16.msra.mxu0 %v11760_v4 }
  0x65   : > { %9967 = vmatprep.mubr.bf16.mxu1 %v11701_v11  ;;  %10060 = vmatpush3.bf16.msra.mxu1 %v11745_v26 }
  0x66   : > { %10061 = vmatprep.subr.bf16.mxu1 %v11746_v27 }
  0x67   : > { %1388 = vmatmul.mubr.bf16.gmra.mrb[4].mxu0 %v11698_v10  ;;  %v12677_v10 = vld [vmem:[%s12398_s28 + $0x178] sm:$0xff]  }
  0x68   : > { %1397 = vmatprep.mubr.bf16.mxu0 %v12156_v50 }
  0x69   : > { %10062 = vmatpush3.bf16.msra.mxu1 %v11746_v27 }
  0x6a   : > { %10063 = vmatprep.subr.bf16.mxu1 %v11749_v30 }
  0x6c   : > { %9968 = vmatmul.mubr.bf16.gmra.mrb[4].mxu1 %v11704_v12 }
  0x6d   : > { %9971 = vmatprep.mubr.bf16.mxu1 %v11707_v13  ;;  %10064 = vmatpush3.bf16.msra.mxu1 %v11749_v30 }
  0x6e   : > { %10065 = vmatprep.subr.bf16.mxu1 %v11750_v32 }
  0x6f   : > { %1398 = vmatmul.mubr.bf16.gmra.mrb[8].mxu0 %v11701_v11  ;;  %v916_v11 = vsub.s32 0, %v12505_v33 }
  0x70   : > { %1407 = vmatprep.mubr.bf16.mxu0 %v12156_v50 }
  0x71   : > { %10066 = vmatpush3.bf16.msra.mxu1 %v11750_v32 }
  0x72   : > { %10067 = vmatprep.subr.bf16.mxu1 %v11753_v38 }
  0x74   : > { %9972 = vmatmul.mubr.bf16.gmra.mrb[8].mxu1 %v11708_v14 }
  0x75   : > { %9975 = vmatprep.mubr.bf16.mxu1 %v11709_v15  ;;  %10068 = vmatpush3.bf16.msra.mxu1 %v11753_v38 }
  0x76   : > { %10069 = vmatprep.subr.bf16.mxu1 %v11754_v40 }
  0x77   : > { %1408 = vmatmul.mubr.bf16.gmra.mrb[12].mxu0 %v11704_v12  ;;  %v12686_v12 = vrot.slane %v12513_v35, %v916_v11 }
  0x78   : > { %1417 = vmatprep.mubr.bf16.mxu0 %v12156_v50 }
  0x79   : > { %10070 = vmatpush3.bf16.msra.mxu1 %v11754_v40 }
  0x7a   : > { %10071 = vmatprep.subr.bf16.mxu1 %v11757_v43 }
  0x7c   : > { %9976 = vmatmul.mubr.bf16.gmra.mrb[12].mxu1 %v11710_v16 }
  0x7d   : > { %9979 = vmatprep.mubr.bf16.mxu1 %v11711_v17  ;;  %10072 = vmatpush3.bf16.msra.mxu1 %v11757_v43 }
  0x7e   : > { %10073 = vmatprep.subr.bf16.mxu1 %v11758_v45 }
  0x7f   : > { %1418 = vmatmul.mubr.bf16.gmra.mrb[16].mxu0 %v11707_v13 }
  0x80   : > { %1427 = vmatprep.mubr.bf16.mxu0 %v12156_v50 }
  0x81   : > { %10074 = vmatpush3.bf16.msra.mxu1 %v11758_v45 }
  0x84   : > { %9980 = vmatmul.mubr.bf16.gmra.mrb[16].mxu1 %v11712_v18 }
  0x85   : > { %9983 = vmatprep.mubr.bf16.mxu1 %v11713_v19 }
  0x87   : > { %1428 = vmatmul.mubr.bf16.gmra.mrb[20].mxu0 %v11708_v14 }
  0x88   : > { %1437 = vmatprep.mubr.bf16.mxu0 %v12156_v50 }
  0x8c   : > { %9984 = vmatmul.mubr.bf16.gmra.mrb[20].mxu1 %v11714_v20 }
  0x8d   : > { %9987 = vmatprep.mubr.bf16.mxu1 %v11715_v21 }
  0x8f   : > { %1438 = vmatmul.mubr.bf16.gmra.mrb[24].mxu0 %v11709_v15 }
  0x90   : > { %1447 = vmatprep.mubr.bf16.mxu0 %v12156_v50 }
  0x94   : > { %9988 = vmatmul.mubr.bf16.gmra.mrb[24].mxu1 %v12466_v22 }
  0x95   : > { %9991 = vmatprep.mubr.bf16.mxu1 %v12469_v23 }
  0x97   : > { %1448 = vmatmul.mubr.bf16.gmra.mrb[28].mxu0 %v11710_v16 }
  0x98   : > { %1457 = vmatprep.mubr.bf16.mxu0 %v12156_v50 }
  0x9c   : > { %9992 = vmatmul.mubr.bf16.gmra.mrb[28].mxu1 %v12475_v24 }
  0x9d   : > { %9995 = vmatprep.mubr.bf16.mxu1 %v12478_v25 }
  0x9f   : > { %1458 = vmatmul.mubr.bf16.gmra.mrb[32].mxu0 %v11711_v17 }
  0xa0   : > { %1467 = vmatprep.mubr.bf16.mxu0 %v12156_v50 }
  0xa4   : > { %9996 = vmatmul.mubr.bf16.gmra.mrb[32].mxu1 %v12490_v28 }
  0xa5   : > { %9999 = vmatprep.mubr.bf16.mxu1 %v12493_v29 }
  0xa7   : > { %1468 = vmatmul.mubr.bf16.gmra.mrb[36].mxu0 %v11712_v18 }
  0xa8   : > { %1477 = vmatprep.mubr.bf16.mxu0 %v12156_v50 }
  0xac   : > { %10000 = vmatmul.mubr.bf16.gmra.mrb[36].mxu1 %v12508_v34 }
  0xad   : > { %10003 = vmatprep.mubr.bf16.mxu1 %v12517_v36 }
  0xaf   : > { %1478 = vmatmul.mubr.bf16.gmra.mrb[40].mxu0 %v11713_v19 }
  0xb0   : > { %1487 = vmatprep.mubr.bf16.mxu0 %v12156_v50 }
  0xb4   : > { %10004 = vmatmul.mubr.bf16.gmra.mrb[40].mxu1 %v12532_v41 }
  0xb5   : > { %10007 = vmatprep.mubr.bf16.mxu1 %v12536_v42 }
  0xb7   : > { %1488 = vmatmul.mubr.bf16.gmra.mrb[44].mxu0 %v11714_v20 }
  0xb8   : > { %1497 = vmatprep.mubr.bf16.mxu0 %v12156_v50 }
  0xbc   : > { %10008 = vmatmul.mubr.bf16.gmra.mrb[44].mxu1 %v12548_v46 }
  0xbd   : > { %10011 = vmatprep.mubr.bf16.mxu1 %v12555_v48 }
  0xbf   : > { %1498 = vmatmul.mubr.bf16.gmra.mrb[48].mxu0 %v11715_v21  ;;  %v11761_v21 = vld [vmem:[%s17249_s5 + $0x10] sm:$0xff]  }
  0xc0   : > { %1507 = vmatprep.mubr.bf16.mxu0 %v12156_v50  ;;  %10175 = vmatprep.subr.bf16.mxu0 %v11761_v21 }
  0xc1   : > { %10176 = vmatpush3.bf16.msra.mxu0 %v11761_v21 }
  0xc4   : > { %10012 = vmatmul.mubr.bf16.gmra.mrb[48].mxu1 %v12561_v49 }
  0xc5   : > { %10015 = vmatprep.mubr.bf16.mxu1 %v12565_v51 }
  0xc7   : > { %1508 = vmatmul.mubr.bf16.gmra.mrb[52].mxu0 %v12466_v22 }
  0xc8   : > { %1517 = vmatprep.mubr.bf16.mxu0 %v12156_v50 }
  0xcc   : > { %10016 = vmatmul.mubr.bf16.gmra.mrb[52].mxu1 %v12571_v52 }
  0xcd   : > { %10019 = vmatprep.mubr.bf16.mxu1 %v12575_v53 }
  0xcf   : > { %1518 = vmatmul.mubr.bf16.gmra.mrb[56].mxu0 %v12469_v23 }
  0xd0   : > { %1527 = vmatprep.mubr.bf16.mxu0 %v12156_v50 }
  0xd4   : > { %10020 = vmatmul.mubr.bf16.gmra.mrb[56].mxu1 %v12581_v54 }
  0xd5   : > { %10023 = vmatprep.mubr.bf16.mxu1 %v12588_v56 }
  0xd7   : > { %1528 = vmatmul.mubr.bf16.gmra.mrb[60].mxu0 %v12475_v24 }
  0xd8   : > { %1537 = vmatprep.mubr.bf16.mxu0 %v12156_v50 }
  0xdc   : > { %10024 = vmatmul.mubr.bf16.gmra.mrb[60].mxu1 %v12594_v57 }
  0xdd   : > { %10027 = vmatprep.mubr.bf16.mxu1 %v12598_v58 }
  0xdf   : > { %1538 = vmatmul.mubr.bf16.gmra.mrb[64].mxu0 %v12478_v25 }
  0xe0   : > { %1547 = vmatprep.mubr.bf16.mxu0 %v12156_v50 }
  0xe4   : > { %10028 = vmatmul.mubr.bf16.gmra.mrb[64].mxu1 %v12604_v59 }
  0xe5   : > { %10031 = vmatprep.mubr.bf16.mxu1 %v12608_v60 }
  0xe7   : > { %1548 = vmatmul.mubr.bf16.gmra.mrb[68].mxu0 %v12490_v28 }
  0xe8   : > { %1557 = vmatprep.mubr.bf16.mxu0 %v12156_v50 }
  0xec   : > { %10032 = vmatmul.mubr.bf16.gmra.mrb[68].mxu1 %v12614_v61 }
  0xed   : > { %10035 = vmatprep.mubr.bf16.mxu1 %v12618_v62 }
  0xef   : > { %1558 = vmatmul.mubr.bf16.gmra.mrb[72].mxu0 %v12493_v29 }
  0xf0   : > { %1567 = vmatprep.mubr.bf16.mxu0 %v12156_v50 }
  0xf4   : > { %10036 = vmatmul.mubr.bf16.gmra.mrb[72].mxu1 %v12624_v63 }
  0xf5   : > { %10039 = vmatprep.mubr.bf16.mxu1 %v12628_v0 }
  0xf7   : > { %1568 = vmatmul.mubr.bf16.gmra.mrb[76].mxu0 %v12508_v34 }
  0xf8   : > { %1577 = vmatprep.mubr.bf16.mxu0 %v12156_v50 }
  0xfc   : > { %10040 = vmatmul.mubr.bf16.gmra.mrb[76].mxu1 %v12634_v1 }
  0xfd   : > { %10043 = vmatprep.mubr.bf16.mxu1 %v12638_v2 }
  0xff   : > { %1578 = vmatmul.mubr.bf16.gmra.mrb[80].mxu0 %v12517_v36 }
 0x100   : > { %1587 = vmatprep.mubr.bf16.mxu0 %v12156_v50 }
 0x104   : > { %10044 = vmatmul.mubr.bf16.gmra.mrb[80].mxu1 %v12644_v3 }
 0x105   : > { %10047 = vmatprep.mubr.bf16.mxu1 %v12651_v5 }
 0x107   : > { %1588 = vmatmul.mubr.bf16.gmra.mrb[84].mxu0 %v12532_v41 }
 0x108   : > { %1597 = vmatprep.mubr.bf16.mxu0 %v12156_v50 }
 0x10c   : > { %10048 = vmatmul.mubr.bf16.gmra.mrb[84].mxu1 %v12657_v6 }
 0x10d   : > { %10051 = vmatprep.mubr.bf16.mxu1 %v12661_v7 }
 0x10f   : > { %1598 = vmatmul.mubr.bf16.gmra.mrb[88].mxu0 %v12536_v42 }
 0x110   : > { %1607 = vmatprep.mubr.bf16.mxu0 %v12156_v50 }
 0x114   : > { %10052 = vmatmul.mubr.bf16.gmra.mrb[88].mxu1 %v12667_v8 }
 0x115   : > { %10055 = vmatprep.mubr.bf16.mxu1 %v12671_v9 }
 0x117   : > { %1608 = vmatmul.mubr.bf16.gmra.mrb[92].mxu0 %v12548_v46 }
 0x118   : > { %1617 = vmatprep.mubr.bf16.mxu0 %v12156_v50 }
 0x11c   : > { %10056 = vmatmul.mubr.bf16.gmra.mrb[92].mxu1 %v12677_v10 }
 0x11f   : > { %1618 = vmatmul.mubr.bf16.gmra.mrb[96].mxu0 %v12555_v48 }
 0x120   : > { %1627 = vmatprep.mubr.bf16.mxu0 %v12156_v50 }
 0x127   : > { %1628 = vmatmul.mubr.bf16.gmra.mrb[100].mxu0 %v12561_v49 }
 0x128   : > { %1637 = vmatprep.mubr.bf16.mxu0 %v12156_v50 }
 0x12f   : > { %1638 = vmatmul.mubr.bf16.gmra.mrb[104].mxu0 %v12565_v51 }
 0x130   : > { %1647 = vmatprep.mubr.bf16.mxu0 %v12156_v50 }
 0x132   : > { %v1379_v13 = vpop.f32.mrb[0].mxu0 }
 0x133   : > { %v12690_v14 = vadd.f32 %v1379_v13, %v12686_v12  ;;  %v12692_v15 = vpop.f32.mrb[1].mxu0 }
 0x134   : > { %v1383_v16 = vpop.f32.mrb[2].mxu0 }
 0x135   : > { %v12695_v17 = vadd.f32 %v1383_v16, %v12686_v12  ;;  %v12697_v18 = vpop.f32.mrb[3].mxu0  ;;  %v2309_v19 = vmax.f32 %v12690_v14, 0.0 }
 0x137   : > { %v2310_v20 = vmax.f32 %v12695_v17, 0.0  ;;  %1648 = vmatmul.mubr.bf16.gmra.mrb[108].mxu0 %v12571_v52 }
 0x138   : > { %1657 = vmatprep.mubr.bf16.mxu0 %v12156_v50 }
 0x139   : > { %v2405_v22 = vpack.c.bf16 %v2310_v20, %v2309_v19 }
 0x13a   : > { %v1389_v23 = vpop.f32.mrb[4].mxu0 }
 0x13b   : > { %v12707_v24 = vadd.f32 %v1389_v23, %v12686_v12  ;;  %v12709_v25 = vpop.f32.mrb[5].mxu0  ;;  %10075 = vmatprep.mubr.bf16.mxu1 %v2405_v22 }
 0x13c   : > { %v1393_v26 = vpop.f32.mrb[6].mxu0 }
 0x13d   : > { %v12712_v27 = vadd.f32 %v1393_v26, %v12686_v12  ;;  %v12714_v28 = vpop.f32.mrb[7].mxu0  ;;  %v2311_v29 = vmax.f32 %v12707_v24, 0.0 }
 0x13f   : > { %v2312_v30 = vmax.f32 %v12712_v27, 0.0  ;;  %1658 = vmatmul.mubr.bf16.gmra.mrb[112].mxu0 %v12575_v53 }
 0x140   : > { %1667 = vmatprep.mubr.bf16.mxu0 %v12156_v50 }
 0x141   : > { %v2406_v32 = vpack.c.bf16 %v2312_v30, %v2311_v29 }
 0x142   : > { %v1399_v33 = vpop.f32.mrb[8].mxu0 }
 0x143   : > { %v12721_v34 = vadd.f32 %v1399_v33, %v12686_v12  ;;  %v12723_v35 = vpop.f32.mrb[9].mxu0  ;;  %10076 = vmatmul.mubr.bf16.vlgmr.msra.gmra.mrb[96].mxu1 %v2406_v32 }
 0x144   : > { %v1403_v36 = vpop.f32.mrb[10].mxu0 }
 0x145   : > { %v12726_v37 = vadd.f32 %v1403_v36, %v12686_v12  ;;  %v12728_v38 = vpop.f32.mrb[11].mxu0  ;;  %v2313_v40 = vmax.f32 %v12721_v34, 0.0 }
 0x147   : > { %v2314_v41 = vmax.f32 %v12726_v37, 0.0  ;;  %1668 = vmatmul.mubr.bf16.gmra.mrb[116].mxu0 %v12581_v54 }
 0x148   : > { %1677 = vmatprep.mubr.bf16.mxu0 %v12156_v50 }
 0x149   : > { %v2407_v42 = vpack.c.bf16 %v2314_v41, %v2313_v40 }
 0x14a   : > { %v1409_v43 = vpop.f32.mrb[12].mxu0 }
 0x14b   : > { %v12735_v44 = vadd.f32 %v1409_v43, %v12686_v12  ;;  %v12737_v45 = vpop.f32.mrb[13].mxu0  ;;  %10079 = vmatprep.mubr.bf16.mxu1 %v2407_v42 }
 0x14c   : > { %v1413_v46 = vpop.f32.mrb[14].mxu0 }
 0x14d   : > { %v12740_v48 = vadd.f32 %v1413_v46, %v12686_v12  ;;  %v12742_v49 = vpop.f32.mrb[15].mxu0  ;;  %v2315_v51 = vmax.f32 %v12735_v44, 0.0 }
 0x14f   : > { %v2316_v52 = vmax.f32 %v12740_v48, 0.0  ;;  %1678 = vmatmul.mubr.bf16.gmra.mrb[120].mxu0 %v12588_v56 }
 0x150   : > { %1687 = vmatprep.mubr.bf16.mxu0 %v12156_v50 }
 0x151   : > { %v2408_v53 = vpack.c.bf16 %v2316_v52, %v2315_v51  ;;  %v11762_v52 = vld [vmem:[%s17249_s5 + $0x18] sm:$0xff]  }
 0x152   : > { %v1419_v54 = vpop.f32.mrb[16].mxu0  ;;  %10177 = vmatprep.subr.bf16.mxu0 %v11762_v52 }
 0x153   : > { %v12749_v55 = vadd.f32 %v1419_v54, %v12686_v12  ;;  %v12751_v4 = vpop.f32.mrb[17].mxu0  ;;  %10080 = vmatmul.mubr.bf16.gmra.mrb[100].mxu1 %v2408_v53  ;;  %10178 = vmatpush3.bf16.msra.mxu0 %v11762_v52 }
 0x154   : > { %v1423_v11 = vpop.f32.mrb[18].mxu0 }
 0x155   : > { %v12754_v13 = vadd.f32 %v1423_v11, %v12686_v12  ;;  %v12756_v16 = vpop.f32.mrb[19].mxu0  ;;  %v2317_v19 = vmax.f32 %v12749_v55, 0.0 }
 0x157   : > { %v2318_v56 = vmax.f32 %v12754_v13, 0.0  ;;  %1688 = vmatmul.mubr.bf16.gmra.mrb[124].mxu0 %v12594_v57 }
 0x158   : > { %1697 = vmatprep.mubr.bf16.mxu0 %v12156_v50 }
 0x159   : > { %v2409_v20 = vpack.c.bf16 %v2318_v56, %v2317_v19 }
 0x15a   : > { %v1429_v21 = vpop.f32.mrb[20].mxu0 }
 0x15b   : > { %v12763_v22 = vadd.f32 %v1429_v21, %v12686_v12  ;;  %v12765_v23 = vpop.f32.mrb[21].mxu0  ;;  %10083 = vmatprep.mubr.bf16.mxu1 %v2409_v20 }
 0x15c   : > { %v1433_v26 = vpop.f32.mrb[22].mxu0 }
 0x15d   : > { %v12768_v29 = vadd.f32 %v1433_v26, %v12686_v12  ;;  %v12770_v30 = vpop.f32.mrb[23].mxu0  ;;  %v2319_v32 = vmax.f32 %v12763_v22, 0.0 }
 0x15f   : > { %v2320_v57 = vmax.f32 %v12768_v29, 0.0  ;;  %1698 = vmatmul.mubr.bf16.gmra.mrb[128].mxu0 %v12598_v58 }
 0x160   : > { %1707 = vmatprep.mubr.bf16.mxu0 %v12156_v50 }
 0x161   : > { %v2410_v33 = vpack.c.bf16 %v2320_v57, %v2319_v32 }
 0x162   : > { %v1439_v36 = vpop.f32.mrb[24].mxu0 }
 0x163   : > { %v12777_v40 = vadd.f32 %v1439_v36, %v12686_v12  ;;  %v12779_v41 = vpop.f32.mrb[25].mxu0  ;;  %10084 = vmatmul.mubr.bf16.gmra.mrb[104].mxu1 %v2410_v33 }
 0x164   : > { %v1443_v42 = vpop.f32.mrb[26].mxu0 }
 0x165   : > { %v12782_v43 = vadd.f32 %v1443_v42, %v12686_v12  ;;  %v12784_v46 = vpop.f32.mrb[27].mxu0  ;;  %v2321_v51 = vmax.f32 %v12777_v40, 0.0 }
 0x167   : > { %v2322_v58 = vmax.f32 %v12782_v43, 0.0  ;;  %1708 = vmatmul.mubr.bf16.gmra.mrb[132].mxu0 %v12604_v59 }
 0x168   : > { %1717 = vmatprep.mubr.bf16.mxu0 %v12156_v50 }
 0x169   : > { %v2411_v53 = vpack.c.bf16 %v2322_v58, %v2321_v51 }
 0x16a   : > { %v1449_v54 = vpop.f32.mrb[28].mxu0 }
 0x16b   : > { %v12794_v11 = vadd.f32 %v1449_v54, %v12686_v12  ;;  %v12796_v19 = vpop.f32.mrb[29].mxu0  ;;  %10087 = vmatprep.mubr.bf16.mxu1 %v2411_v53 }
 0x16c   : > { %v1453_v56 = vpop.f32.mrb[30].mxu0 }
 0x16d   : > { %v12799_v20 = vadd.f32 %v1453_v56, %v12686_v12  ;;  %v12801_v59 = vpop.f32.mrb[31].mxu0  ;;  %v2323_v21 = vmax.f32 %v12794_v11, 0.0 }
 0x16f   : > { %v2324_v26 = vmax.f32 %v12799_v20, 0.0  ;;  %1718 = vmatmul.mubr.bf16.gmra.mrb[136].mxu0 %v12608_v60 }
 0x170   : > { %1727 = vmatprep.mubr.bf16.mxu0 %v12156_v50 }
 0x171   : > { %v2412_v32 = vpack.c.bf16 %v2324_v26, %v2323_v21 }
 0x172   : > { %v1459_v57 = vpop.f32.mrb[32].mxu0 }
 0x173   : > { %v12808_v33 = vadd.f32 %v1459_v57, %v12686_v12  ;;  %v12810_v36 = vpop.f32.mrb[33].mxu0  ;;  %10088 = vmatmul.mubr.bf16.gmra.mrb[108].mxu1 %v2412_v32 }
 0x174   : > { %v1463_v42 = vpop.f32.mrb[34].mxu0 }
 0x175   : > { %v12813_v51 = vadd.f32 %v1463_v42, %v12686_v12  ;;  %v12815_v58 = vpop.f32.mrb[35].mxu0  ;;  %v2325_v52 = vmax.f32 %v12808_v33, 0.0 }
 0x177   : > { %17503 = vst [vmem:[#allocation5_spill] sm:$0xff] %v12813_v51  ;;  %v2326_v60 = vmax.f32 %v12813_v51, 0.0  ;;  %1728 = vmatmul.mubr.bf16.gmra.mrb[140].mxu0 %v12614_v61 }
 0x178   : > { %1737 = vmatprep.mubr.bf16.mxu0 %v12156_v50 }
 0x179   : > { %v2413_v53 = vpack.c.bf16 %v2326_v60, %v2325_v52 }
 0x17a   : > { %v1469_v54 = vpop.f32.mrb[36].mxu0 }
 0x17b   : > { %v12822_v56 = vadd.f32 %v1469_v54, %v12686_v12  ;;  %v12824_v21 = vpop.f32.mrb[37].mxu0  ;;  %10091 = vmatprep.mubr.bf16.mxu1 %v2413_v53 }
 0x17c   : > { %v1473_v26 = vpop.f32.mrb[38].mxu0 }
 0x17d   : > { %v12827_v32 = vadd.f32 %v1473_v26, %v12686_v12  ;;  %v12829_v57 = vpop.f32.mrb[39].mxu0  ;;  %v2327_v42 = vmax.f32 %v12822_v56, 0.0 }
 0x17f   : > { %v2328_v61 = vmax.f32 %v12827_v32, 0.0  ;;  %1738 = vmatmul.mubr.bf16.gmra.mrb[144].mxu0 %v12618_v62 }
 0x180   : > { %1747 = vmatprep.mubr.bf16.mxu0 %v12156_v50 }
 0x181   : > { %v2414_v52 = vpack.c.bf16 %v2328_v61, %v2327_v42 }
 0x182   : > { %v1479_v60 = vpop.f32.mrb[40].mxu0 }
 0x183   : > { %v12836_v54 = vadd.f32 %v1479_v60, %v12686_v12  ;;  %v12838_v53 = vpop.f32.mrb[41].mxu0  ;;  %10092 = vmatmul.mubr.bf16.gmra.mrb[112].mxu1 %v2414_v52 }
 0x184   : > { %17505 = vst [vmem:[#allocation7_spill] sm:$0xff] %v12838_v53  ;;  %v1483_v26 = vpop.f32.mrb[42].mxu0 }
 0x185   : > { %17504 = vst [vmem:[#allocation6_spill] sm:$0xff] %v12836_v54  ;;  %v12841_v31 = vadd.f32 %v1483_v26, %v12686_v12  ;;  %v12843_v47 = vpop.f32.mrb[43].mxu0  ;;  %v2329_v51 = vmax.f32 %v12836_v54, 0.0 }
 0x186   : > { %17507 = vst [vmem:[#allocation9_spill] sm:$0xff] %v12843_v47 }
 0x187   : > { %17506 = vst [vmem:[#allocation8_spill] sm:$0xff] %v12841_v31  ;;  %v2330_v62 = vmax.f32 %v12841_v31, 0.0  ;;  %1748 = vmatmul.mubr.bf16.gmra.mrb[148].mxu0 %v12624_v63 }
 0x188   : > { %1757 = vmatprep.mubr.bf16.mxu0 %v12156_v50 }
 0x189   : > { %v2415_v42 = vpack.c.bf16 %v2330_v62, %v2329_v51  ;;  %v11763_v51 = vld [vmem:[%s17249_s5 + $0x20] sm:$0xff]  }
 0x18a   : > { %v1489_v61 = vpop.f32.mrb[44].mxu0  ;;  %10179 = vmatprep.subr.bf16.mxu0 %v11763_v51 }
 0x18b   : > { %v12850_v60 = vadd.f32 %v1489_v61, %v12686_v12  ;;  %v12852_v52 = vpop.f32.mrb[45].mxu0  ;;  %10095 = vmatprep.mubr.bf16.mxu1 %v2415_v42  ;;  %10180 = vmatpush3.bf16.msra.mxu0 %v11763_v51  ;;  %v11765_v51 = vld [vmem:[%s17249_s5 + $0x30] sm:$0xff]  }
 0x18c   : > { %v1493_v26 = vpop.f32.mrb[46].mxu0 }
 0x18d   : > { %v12855_v53 = vadd.f32 %v1493_v26, %v12686_v12  ;;  %v12857_v47 = vpop.f32.mrb[47].mxu0  ;;  %v2331_v31 = vmax.f32 %v12850_v60, 0.0 }
 0x18e   : > { %17509 = vst [vmem:[#allocation11_spill] sm:$0xff] %v12857_v47 }
 0x18f   : > { %17508 = vst [vmem:[#allocation10_spill] sm:$0xff] %v12855_v53  ;;  %v2332_v63 = vmax.f32 %v12855_v53, 0.0  ;;  %1758 = vmatmul.mubr.bf16.gmra.mrb[152].mxu0 %v12628_v0  ;;  %v11764_v0 = vld [vmem:[%s17249_s5 + $0x28] sm:$0xff]  }
 0x190   : > { %1767 = vmatprep.mubr.bf16.mxu0 %v12156_v50  ;;  %10181 = vmatprep.subr.bf16.mxu0 %v11764_v0 }
 0x191   : > { %v2416_v62 = vpack.c.bf16 %v2332_v63, %v2331_v31  ;;  %10182 = vmatpush3.bf16.msra.mxu0 %v11764_v0 }
 0x192   : > { %v1499_v42 = vpop.f32.mrb[48].mxu0  ;;  %10183 = vmatprep.subr.bf16.mxu0 %v11765_v51 }
 0x193   : > { %v12867_v61 = vadd.f32 %v1499_v42, %v12686_v12  ;;  %v12869_v26 = vpop.f32.mrb[49].mxu0  ;;  %10096 = vmatmul.mubr.bf16.gmra.mrb[116].mxu1 %v2416_v62 }
 0x194   : > { %17511 = vst [vmem:[#allocation13_spill] sm:$0xff] %v12869_v26  ;;  %v1503_v53 = vpop.f32.mrb[50].mxu0 }
 0x195   : > { %17510 = vst [vmem:[#allocation12_spill] sm:$0xff] %v12867_v61  ;;  %v12875_v47 = vadd.f32 %v1503_v53, %v12686_v12  ;;  %v12877_v54 = vpop.f32.mrb[51].mxu0  ;;  %v2333_v31 = vmax.f32 %v12867_v61, 0.0  ;;  %10184 = vmatpush3.bf16.msra.mxu0 %v11765_v51 }
 0x196   : > { %17513 = vst [vmem:[#allocation15_spill] sm:$0xff] %v12877_v54 }
 0x197   : > { %17512 = vst [vmem:[#allocation14_spill] sm:$0xff] %v12875_v47  ;;  %v2334_v63 = vmax.f32 %v12875_v47, 0.0  ;;  %1768 = vmatmul.mubr.bf16.gmra.mrb[156].mxu0 %v12634_v1  ;;  %v11766_v1 = vld [vmem:[%s17249_s5 + $0x38] sm:$0xff]  }
 0x198   : > { %1777 = vmatprep.mubr.bf16.mxu0 %v12156_v50  ;;  %10185 = vmatprep.subr.bf16.mxu0 %v11766_v1 }
 0x199   : > { %v2417_v62 = vpack.c.bf16 %v2334_v63, %v2333_v31  ;;  %10186 = vmatpush3.bf16.msra.mxu0 %v11766_v1 }
 0x19a   : > { %v1509_v53 = vpop.f32.mrb[52].mxu0 }
 0x19b   : > { %v12887_v42 = vadd.f32 %v1509_v53, %v12686_v12  ;;  %v12889_v0 = vpop.f32.mrb[53].mxu0  ;;  %10099 = vmatprep.mubr.bf16.mxu1 %v2417_v62 }
 0x19c   : > { %v1513_v47 = vpop.f32.mrb[54].mxu0 }
 0x19d   : > { %17514 = vst [vmem:[#allocation16_spill] sm:$0xff] %v12887_v42  ;;  %v12895_v54 = vadd.f32 %v1513_v47, %v12686_v12  ;;  %v12897_v61 = vpop.f32.mrb[55].mxu0  ;;  %v2335_v31 = vmax.f32 %v12887_v42, 0.0 }
 0x19e   : > { %17516 = vst [vmem:[#allocation18_spill] sm:$0xff] %v12897_v61 }
 0x19f   : > { %17515 = vst [vmem:[#allocation17_spill] sm:$0xff] %v12895_v54  ;;  %v2336_v63 = vmax.f32 %v12895_v54, 0.0  ;;  %1778 = vmatmul.mubr.bf16.gmra.mrb[160].mxu0 %v12638_v2 }
 0x1a0   : > { %1787 = vmatprep.mubr.bf16.mxu0 %v12156_v50 }
 0x1a1   : > { %v2418_v51 = vpack.c.bf16 %v2336_v63, %v2335_v31 }
 0x1a2   : > { %v1519_v62 = vpop.f32.mrb[56].mxu0 }
 0x1a3   : > { %v12904_v53 = vadd.f32 %v1519_v62, %v12686_v12  ;;  %v12906_v26 = vpop.f32.mrb[57].mxu0  ;;  %10100 = vmatmul.mubr.bf16.gmra.mrb[120].mxu1 %v2418_v51 }
 0x1a4   : > { %17518 = vst [vmem:[#allocation20_spill] sm:$0xff] %v12906_v26  ;;  %v1523_v47 = vpop.f32.mrb[58].mxu0 }
 0x1a5   : > { %17517 = vst [vmem:[#allocation19_spill] sm:$0xff] %v12904_v53  ;;  %v12909_v61 = vadd.f32 %v1523_v47, %v12686_v12  ;;  %v12911_v1 = vpop.f32.mrb[59].mxu0  ;;  %v2337_v54 = vmax.f32 %v12904_v53, 0.0 }
 0x1a6   : > { %17520 = vst [vmem:[#allocation22_spill] sm:$0xff] %v12911_v1 }
 0x1a7   : > { %17519 = vst [vmem:[#allocation21_spill] sm:$0xff] %v12909_v61  ;;  %v2338_v2 = vmax.f32 %v12909_v61, 0.0  ;;  %1788 = vmatmul.mubr.bf16.gmra.mrb[164].mxu0 %v12644_v3 }
 0x1a8   : > { %1797 = vmatprep.mubr.bf16.mxu0 %v12156_v50 }
 0x1a9   : > { %v2419_v31 = vpack.c.bf16 %v2338_v2, %v2337_v54 }
 0x1aa   : > { %v1529_v63 = vpop.f32.mrb[60].mxu0 }
 0x1ab   : > { %v12918_v62 = vadd.f32 %v1529_v63, %v12686_v12  ;;  %v12920_v51 = vpop.f32.mrb[61].mxu0  ;;  %10103 = vmatprep.mubr.bf16.mxu1 %v2419_v31 }
 0x1ac   : > { %17522 = vst [vmem:[#allocation24_spill] sm:$0xff] %v12920_v51  ;;  %v1533_v47 = vpop.f32.mrb[62].mxu0 }
 0x1ad   : > { %17521 = vst [vmem:[#allocation23_spill] sm:$0xff] %v12918_v62  ;;  %v12923_v26 = vadd.f32 %v1533_v47, %v12686_v12  ;;  %v12925_v1 = vpop.f32.mrb[63].mxu0  ;;  %v2339_v61 = vmax.f32 %v12918_v62, 0.0 }
 0x1ae   : > { %17524 = vst [vmem:[#allocation26_spill] sm:$0xff] %v12925_v1 }
 0x1af   : > { %17523 = vst [vmem:[#allocation25_spill] sm:$0xff] %v12923_v26  ;;  %v2340_v3 = vmax.f32 %v12923_v26, 0.0  ;;  %1798 = vmatmul.mubr.bf16.gmra.mrb[168].mxu0 %v12651_v5 }
 0x1b0   : > { %1807 = vmatprep.mubr.bf16.mxu0 %v12156_v50 }
 0x1b1   : > { %v2420_v54 = vpack.c.bf16 %v2340_v3, %v2339_v61 }
 0x1b2   : > { %v1539_v2 = vpop.f32.mrb[64].mxu0 }
 0x1b3   : > { %v12932_v63 = vadd.f32 %v1539_v2, %v12686_v12  ;;  %v12934_v31 = vpop.f32.mrb[65].mxu0  ;;  %10104 = vmatmul.mubr.bf16.gmra.mrb[124].mxu1 %v2420_v54 }
 0x1b4   : > { %17526 = vst [vmem:[#allocation28_spill] sm:$0xff] %v12934_v31  ;;  %v1543_v47 = vpop.f32.mrb[66].mxu0 }
 0x1b5   : > { %17525 = vst [vmem:[#allocation27_spill] sm:$0xff] %v12932_v63  ;;  %v12937_v53 = vadd.f32 %v1543_v47, %v12686_v12  ;;  %v12939_v1 = vpop.f32.mrb[67].mxu0  ;;  %v2341_v26 = vmax.f32 %v12932_v63, 0.0 }
 0x1b6   : > { %17528 = vst [vmem:[#allocation30_spill] sm:$0xff] %v12939_v1 }
 0x1b7   : > { %17527 = vst [vmem:[#allocation29_spill] sm:$0xff] %v12937_v53  ;;  %v2342_v5 = vmax.f32 %v12937_v53, 0.0  ;;  %1808 = vmatmul.mubr.bf16.gmra.mrb[172].mxu0 %v12657_v6 }
 0x1b8   : > { %1817 = vmatprep.mubr.bf16.mxu0 %v12156_v50 }
 0x1b9   : > { %v2421_v61 = vpack.c.bf16 %v2342_v5, %v2341_v26 }
 0x1ba   : > { %v1549_v3 = vpop.f32.mrb[68].mxu0 }
 0x1bb   : > { %v12946_v2 = vadd.f32 %v1549_v3, %v12686_v12  ;;  %v12948_v54 = vpop.f32.mrb[69].mxu0  ;;  %10107 = vmatprep.mubr.bf16.mxu1 %v2421_v61 }
 0x1bc   : > { %17530 = vst [vmem:[#allocation32_spill] sm:$0xff] %v12948_v54  ;;  %v1553_v47 = vpop.f32.mrb[70].mxu0 }
 0x1bd   : > { %17529 = vst [vmem:[#allocation31_spill] sm:$0xff] %v12946_v2  ;;  %v12951_v31 = vadd.f32 %v1553_v47, %v12686_v12  ;;  %v12953_v1 = vpop.f32.mrb[71].mxu0  ;;  %v2343_v53 = vmax.f32 %v12946_v2, 0.0 }
 0x1be   : > { %17532 = vst [vmem:[#allocation34_spill] sm:$0xff] %v12953_v1 }
 0x1bf   : > { %17531 = vst [vmem:[#allocation33_spill] sm:$0xff] %v12951_v31  ;;  %v2344_v6 = vmax.f32 %v12951_v31, 0.0  ;;  %1818 = vmatmul.mubr.bf16.gmra.mrb[176].mxu0 %v12661_v7 }
 0x1c0   : > { %1827 = vmatprep.mubr.bf16.mxu0 %v12156_v50 }
 0x1c1   : > { %v2422_v26 = vpack.c.bf16 %v2344_v6, %v2343_v53 }
 0x1c2   : > { %v1559_v5 = vpop.f32.mrb[72].mxu0 }
 0x1c3   : > { %v12960_v3 = vadd.f32 %v1559_v5, %v12686_v12  ;;  %v12962_v61 = vpop.f32.mrb[73].mxu0  ;;  %10108 = vmatmul.mubr.bf16.gmra.mrb[128].mxu1 %v2422_v26 }
 0x1c4   : > { %17534 = vst [vmem:[#allocation36_spill] sm:$0xff] %v12962_v61  ;;  %v1563_v47 = vpop.f32.mrb[74].mxu0 }
 0x1c5   : > { %17533 = vst [vmem:[#allocation35_spill] sm:$0xff] %v12960_v3  ;;  %v12965_v63 = vadd.f32 %v1563_v47, %v12686_v12  ;;  %v12967_v1 = vpop.f32.mrb[75].mxu0  ;;  %v2345_v31 = vmax.f32 %v12960_v3, 0.0 }
 0x1c6   : > { %17536 = vst [vmem:[#allocation38_spill] sm:$0xff] %v12967_v1 }
 0x1c7   : > { %17535 = vst [vmem:[#allocation37_spill] sm:$0xff] %v12965_v63  ;;  %v2346_v7 = vmax.f32 %v12965_v63, 0.0  ;;  %1828 = vmatmul.mubr.bf16.gmra.mrb[180].mxu0 %v12667_v8 }
 0x1c8   : > { %1837 = vmatprep.mubr.bf16.mxu0 %v12156_v50 }
 0x1c9   : > { %v2423_v53 = vpack.c.bf16 %v2346_v7, %v2345_v31 }
 0x1ca   : > { %v1569_v6 = vpop.f32.mrb[76].mxu0 }
 0x1cb   : > { %v12974_v5 = vadd.f32 %v1569_v6, %v12686_v12  ;;  %v12976_v26 = vpop.f32.mrb[77].mxu0  ;;  %10111 = vmatprep.mubr.bf16.mxu1 %v2423_v53 }
 0x1cc   : > { %17538 = vst [vmem:[#allocation40_spill] sm:$0xff] %v12976_v26  ;;  %v1573_v47 = vpop.f32.mrb[78].mxu0 }
 0x1cd   : > { %17537 = vst [vmem:[#allocation39_spill] sm:$0xff] %v12974_v5  ;;  %v12979_v61 = vadd.f32 %v1573_v47, %v12686_v12  ;;  %v12981_v1 = vpop.f32.mrb[79].mxu0  ;;  %v2347_v63 = vmax.f32 %v12974_v5, 0.0 }
 0x1ce   : > { %17540 = vst [vmem:[#allocation42_spill] sm:$0xff] %v12981_v1 }
 0x1cf   : > { %17539 = vst [vmem:[#allocation41_spill] sm:$0xff] %v12979_v61  ;;  %v2348_v8 = vmax.f32 %v12979_v61, 0.0  ;;  %1838 = vmatmul.mubr.bf16.gmra.mrb[184].mxu0 %v12671_v9 }
 0x1d0   : > { %1847 = vmatprep.mubr.bf16.mxu0 %v12156_v50 }
 0x1d1   : > { %v2424_v31 = vpack.c.bf16 %v2348_v8, %v2347_v63 }
 0x1d2   : > { %v1579_v7 = vpop.f32.mrb[80].mxu0 }
 0x1d3   : > { %v12988_v6 = vadd.f32 %v1579_v7, %v12686_v12  ;;  %v12990_v53 = vpop.f32.mrb[81].mxu0  ;;  %10112 = vmatmul.mubr.bf16.gmra.mrb[132].mxu1 %v2424_v31 }
 0x1d4   : > { %17542 = vst [vmem:[#allocation44_spill] sm:$0xff] %v12990_v53  ;;  %v1583_v47 = vpop.f32.mrb[82].mxu0 }
 0x1d5   : > { %17541 = vst [vmem:[#allocation43_spill] sm:$0xff] %v12988_v6  ;;  %v12993_v3 = vadd.f32 %v1583_v47, %v12686_v12  ;;  %v12995_v1 = vpop.f32.mrb[83].mxu0  ;;  %v2349_v61 = vmax.f32 %v12988_v6, 0.0 }
 0x1d6   : > { %17544 = vst [vmem:[#allocation46_spill] sm:$0xff] %v12995_v1 }
 0x1d7   : > { %17543 = vst [vmem:[#allocation45_spill] sm:$0xff] %v12993_v3  ;;  %v2350_v9 = vmax.f32 %v12993_v3, 0.0  ;;  %1848 = vmatmul.mubr.bf16.gmra.mrb[188].mxu0 %v12677_v10 }
 0x1d9   : > { %v2425_v50 = vpack.c.bf16 %v2350_v9, %v2349_v61 }
 0x1da   : > { %v1589_v63 = vpop.f32.mrb[84].mxu0 }
 0x1db   : > { %v13001_v8 = vadd.f32 %v1589_v63, %v12686_v12  ;;  %v13003_v7 = vpop.f32.mrb[85].mxu0  ;;  %10115 = vmatprep.mubr.bf16.mxu1 %v2425_v50 }
 0x1dc   : > { %17546 = vst [vmem:[#allocation48_spill] sm:$0xff] %v13003_v7  ;;  %v1593_v31 = vpop.f32.mrb[86].mxu0 }
 0x1dd   : > { %17545 = vst [vmem:[#allocation47_spill] sm:$0xff] %v13001_v8  ;;  %v13006_v47 = vadd.f32 %v1593_v31, %v12686_v12  ;;  %v13008_v53 = vpop.f32.mrb[87].mxu0  ;;  %v2351_v1 = vmax.f32 %v13001_v8, 0.0 }
 0x1de   : > { %17548 = vst [vmem:[#allocation50_spill] sm:$0xff] %v13008_v53 }
 0x1df   : > { %17547 = vst [vmem:[#allocation49_spill] sm:$0xff] %v13006_v47  ;;  %v2352_v3 = vmax.f32 %v13006_v47, 0.0 }
 0x1e1   : > { %v2426_v6 = vpack.c.bf16 %v2352_v3, %v2351_v1 }
 0x1e2   : > { %v1599_v10 = vpop.f32.mrb[88].mxu0 }
 0x1e3   : > { %v13013_v61 = vadd.f32 %v1599_v10, %v12686_v12  ;;  %v13015_v9 = vpop.f32.mrb[89].mxu0  ;;  %10116 = vmatmul.mubr.bf16.gmra.mrb[136].mxu1 %v2426_v6 }
 0x1e4   : > { %17550 = vst [vmem:[#allocation52_spill] sm:$0xff] %v13015_v9  ;;  %v1603_v63 = vpop.f32.mrb[90].mxu0 }
 0x1e5   : > { %17549 = vst [vmem:[#allocation51_spill] sm:$0xff] %v13013_v61  ;;  %v13018_v50 = vadd.f32 %v1603_v63, %v12686_v12  ;;  %v13020_v31 = vpop.f32.mrb[91].mxu0  ;;  %v2353_v53 = vmax.f32 %v13013_v61, 0.0 }
 0x1e6   : > { %17552 = vst [vmem:[#allocation54_spill] sm:$0xff] %v13020_v31 }
 0x1e7   : > { %17551 = vst [vmem:[#allocation53_spill] sm:$0xff] %v13018_v50  ;;  %v2354_v8 = vmax.f32 %v13018_v50, 0.0 }
 0x1e9   : > { %v2427_v7 = vpack.c.bf16 %v2354_v8, %v2353_v53 }
 0x1ea   : > { %v1609_v47 = vpop.f32.mrb[92].mxu0 }
 0x1eb   : > { %v13025_v1 = vadd.f32 %v1609_v47, %v12686_v12  ;;  %v13027_v3 = vpop.f32.mrb[93].mxu0  ;;  %10119 = vmatprep.mubr.bf16.mxu1 %v2427_v7 }
 0x1ec   : > { %17554 = vst [vmem:[#allocation56_spill] sm:$0xff] %v13027_v3  ;;  %v1613_v10 = vpop.f32.mrb[94].mxu0 }
 0x1ed   : > { %17553 = vst [vmem:[#allocation55_spill] sm:$0xff] %v13025_v1  ;;  %v13030_v6 = vadd.f32 %v1613_v10, %v12686_v12  ;;  %v13032_v63 = vpop.f32.mrb[95].mxu0  ;;  %v2355_v31 = vmax.f32 %v13025_v1, 0.0 }
 0x1ee   : > { %17556 = vst [vmem:[#allocation58_spill] sm:$0xff] %v13032_v63 }
 0x1ef   : > { %17555 = vst [vmem:[#allocation57_spill] sm:$0xff] %v13030_v6  ;;  %v2356_v61 = vmax.f32 %v13030_v6, 0.0 }
 0x1f1   : > { %v2428_v9 = vpack.c.bf16 %v2356_v61, %v2355_v31 }
 0x1f2   : > { %v1619_v50 = vpop.f32.mrb[96].mxu0 }
 0x1f3   : > { %v13037_v53 = vadd.f32 %v1619_v50, %v12686_v12  ;;  %v13039_v8 = vpop.f32.mrb[97].mxu0  ;;  %10120 = vmatmul.mubr.bf16.gmra.mrb[140].mxu1 %v2428_v9 }
 0x1f4   : > { %17558 = vst [vmem:[#allocation60_spill] sm:$0xff] %v13039_v8  ;;  %v1623_v47 = vpop.f32.mrb[98].mxu0 }
 0x1f5   : > { %17557 = vst [vmem:[#allocation59_spill] sm:$0xff] %v13037_v53  ;;  %v13042_v7 = vadd.f32 %v1623_v47, %v12686_v12  ;;  %v13044_v10 = vpop.f32.mrb[99].mxu0  ;;  %v2357_v63 = vmax.f32 %v13037_v53, 0.0 }
 0x1f6   : > { %17560 = vst [vmem:[#allocation62_spill] sm:$0xff] %v13044_v10 }
 0x1f7   : > { %17559 = vst [vmem:[#allocation61_spill] sm:$0xff] %v13042_v7  ;;  %v2358_v1 = vmax.f32 %v13042_v7, 0.0 }
 0x1f9   : > { %v2429_v3 = vpack.c.bf16 %v2358_v1, %v2357_v63 }
 0x1fa   : > { %v1629_v6 = vpop.f32.mrb[100].mxu0 }
 0x1fb   : > { %v13049_v61 = vadd.f32 %v1629_v6, %v12686_v12  ;;  %v13051_v50 = vpop.f32.mrb[101].mxu0  ;;  %10123 = vmatprep.mubr.bf16.mxu1 %v2429_v3 }
 0x1fc   : > { %17562 = vst [vmem:[#allocation64_spill] sm:$0xff] %v13051_v50  ;;  %v1633_v31 = vpop.f32.mrb[102].mxu0 }
 0x1fd   : > { %17561 = vst [vmem:[#allocation63_spill] sm:$0xff] %v13049_v61  ;;  %v13054_v9 = vadd.f32 %v1633_v31, %v12686_v12  ;;  %v13056_v47 = vpop.f32.mrb[103].mxu0  ;;  %v2359_v10 = vmax.f32 %v13049_v61, 0.0 }
 0x1fe   : > { %17564 = vst [vmem:[#allocation66_spill] sm:$0xff] %v13056_v47 }
 0x1ff   : > { %17563 = vst [vmem:[#allocation65_spill] sm:$0xff] %v13054_v9  ;;  %v2360_v53 = vmax.f32 %v13054_v9, 0.0 }
 0x201   : > { %v2430_v8 = vpack.c.bf16 %v2360_v53, %v2359_v10 }
 0x202   : > { %v1639_v7 = vpop.f32.mrb[104].mxu0 }
 0x203   : > { %v13061_v1 = vadd.f32 %v1639_v7, %v12686_v12  ;;  %v13063_v6 = vpop.f32.mrb[105].mxu0  ;;  %10124 = vmatmul.mubr.bf16.gmra.mrb[144].mxu1 %v2430_v8 }
 0x204   : > { %17566 = vst [vmem:[#allocation68_spill] sm:$0xff] %v13063_v6  ;;  %v1643_v63 = vpop.f32.mrb[106].mxu0 }
 0x205   : > { %17565 = vst [vmem:[#allocation67_spill] sm:$0xff] %v13061_v1  ;;  %v13066_v3 = vadd.f32 %v1643_v63, %v12686_v12  ;;  %v13068_v31 = vpop.f32.mrb[107].mxu0  ;;  %v2361_v47 = vmax.f32 %v13061_v1, 0.0 }
 0x206   : > { %17568 = vst [vmem:[#allocation70_spill] sm:$0xff] %v13068_v31 }
 0x207   : > { %17567 = vst [vmem:[#allocation69_spill] sm:$0xff] %v13066_v3  ;;  %v2362_v61 = vmax.f32 %v13066_v3, 0.0 }
 0x209   : > { %v2431_v50 = vpack.c.bf16 %v2362_v61, %v2361_v47 }
 0x20a   : > { %v1649_v9 = vpop.f32.mrb[108].mxu0 }
 0x20b   : > { %v13073_v53 = vadd.f32 %v1649_v9, %v12686_v12  ;;  %v13075_v7 = vpop.f32.mrb[109].mxu0  ;;  %10127 = vmatprep.mubr.bf16.mxu1 %v2431_v50  ;;  %v13092_v50 = vld [vmem:[%s17248_s4] ss:$0 sm:$0xff] }
 0x20c   : > { %17570 = vst [vmem:[#allocation72_spill] sm:$0xff] %v13075_v7  ;;  %v1653_v10 = vpop.f32.mrb[110].mxu0 }
 0x20d   : > { %17569 = vst [vmem:[#allocation71_spill] sm:$0xff] %v13073_v53  ;;  %v13078_v8 = vadd.f32 %v1653_v10, %v12686_v12  ;;  %v13080_v63 = vpop.f32.mrb[111].mxu0  ;;  %v2363_v31 = vmax.f32 %v13073_v53, 0.0 }
 0x20e   : > { %17572 = vst [vmem:[#allocation74_spill] sm:$0xff] %v13080_v63 }
 0x20f   : > { %17571 = vst [vmem:[#allocation73_spill] sm:$0xff] %v13078_v8  ;;  %v2364_v1 = vmax.f32 %v13078_v8, 0.0 }
 0x211   : > { %v2432_v6 = vpack.c.bf16 %v2364_v1, %v2363_v31 }
 0x212   : > { %v1659_v3 = vpop.f32.mrb[112].mxu0 }
 0x213   : > { %v13085_v61 = vadd.f32 %v1659_v3, %v12686_v12  ;;  %v13087_v9 = vpop.f32.mrb[113].mxu0  ;;  %10128 = vmatmul.mubr.bf16.gmra.mrb[148].mxu1 %v2432_v6 }
 0x214   : > { %17574 = vst [vmem:[#allocation76_spill] sm:$0xff] %v13087_v9  ;;  %v1663_v47 = vpop.f32.mrb[114].mxu0 }
 0x215   : > { %17573 = vst [vmem:[#allocation75_spill] sm:$0xff] %v13085_v61  ;;  %v13095_v10 = vadd.f32 %v1663_v47, %v12686_v12  ;;  %v13097_v63 = vpop.f32.mrb[115].mxu0  ;;  %v2365_v1 = vmax.f32 %v13085_v61, 0.0 }
 0x216   : > { %17576 = vst [vmem:[#allocation78_spill] sm:$0xff] %v13097_v63  ;;  %v10077_v8 = vpop.f32.mrb[96].mxu1 }
 0x217   : > { %17575 = vst [vmem:[#allocation77_spill] sm:$0xff] %v13095_v10  ;;  %v2366_v3 = vmax.f32 %v13095_v10, 0.0  ;;  %v2550_v31 = vadd.f32 %v10077_v8, %v13092_v50  ;;  %v2541_v9 = vpop.f32.mrb[97].mxu1 }
 0x218   : > { %v2542_v6 = vadd.f32 %v13092_v50, %v2541_v9  ;;  %v10078_v53 = vpop.f32.mrb[98].mxu1 }
 0x219   : > { %v2553_v7 = vadd.f32 %v10078_v53, %v13092_v50  ;;  %v2544_v5 = vpop.f32.mrb[99].mxu1  ;;  %v2433_v26 = vpack.c.bf16 %v2366_v3, %v2365_v1  ;;  %v2926_v54 = vmax.f32 %v2550_v31, 0.0 }
 0x21a   : > { %v2545_v47 = vadd.f32 %v13092_v50, %v2544_v5  ;;  %v1669_v2 = vpop.f32.mrb[116].mxu0  ;;  %v2924_v8 = vmax.f32 %v2542_v6, 0.0 }
 0x21b   : > { %v2927_v63 = vmax.f32 %v2553_v7, 0.0  ;;  %v13106_v62 = vadd.f32 %v1669_v2, %v12686_v12  ;;  %v13108_v61 = vpop.f32.mrb[117].mxu0  ;;  %10131 = vmatprep.mubr.bf16.mxu1 %v2433_v26 }
 0x21c   : > { %17578 = vst [vmem:[#allocation80_spill] sm:$0xff] %v13108_v61  ;;  %v2925_v10 = vmax.f32 %v2545_v47, 0.0  ;;  %v1673_v51 = vpop.f32.mrb[118].mxu0 }
 0x21d   : > { %17577 = vst [vmem:[#allocation79_spill] sm:$0xff] %v13106_v62  ;;  %v3021_v9 = vpack.c.bf16 %v2927_v63, %v2926_v54  ;;  %v13111_v42 = vadd.f32 %v1673_v51, %v12686_v12  ;;  %v13113_v53 = vpop.f32.mrb[119].mxu0  ;;  %v2367_v5 = vmax.f32 %v13106_v62, 0.0 }
 0x21e   : > { %17580 = vst [vmem:[#allocation82_spill] sm:$0xff] %v13113_v53  ;;  %v3020_v1 = vpack.c.bf16 %v2925_v10, %v2924_v8 }
 0x21f   : > { %17579 = vst [vmem:[#allocation81_spill] sm:$0xff] %v13111_v42  ;;  %v2368_v7 = vmax.f32 %v13111_v42, 0.0 }
 0x220   : > { %10187 = vmatprep.mubr.bf16.mxu0 %v3020_v1 }
 0x221   : > { %10188 = vmatmul.mubr.bf16.vlgmr.msra.gmra.mrb[192].mxu0 %v3021_v9  ;;  %v2434_v2 = vpack.c.bf16 %v2368_v7, %v2367_v5 }
 0x222   : > { %v1679_v3 = vpop.f32.mrb[120].mxu0 }
 0x223   : > { %v13118_v26 = vadd.f32 %v1679_v3, %v12686_v12  ;;  %v13120_v31 = vpop.f32.mrb[121].mxu0  ;;  %10132 = vmatmul.mubr.bf16.gmra.mrb[152].mxu1 %v2434_v2 }
 0x224   : > { %17582 = vst [vmem:[#allocation84_spill] sm:$0xff] %v13120_v31  ;;  %v1683_v54 = vpop.f32.mrb[122].mxu0 }
 0x225   : > { %17581 = vst [vmem:[#allocation83_spill] sm:$0xff] %v13118_v26  ;;  %v13123_v51 = vadd.f32 %v1683_v54, %v12686_v12  ;;  %v13125_v63 = vpop.f32.mrb[123].mxu0  ;;  %v2369_v6 = vmax.f32 %v13118_v26, 0.0 }
 0x226   : > { %17584 = vst [vmem:[#allocation86_spill] sm:$0xff] %v13125_v63  ;;  %v10081_v10 = vpop.f32.mrb[100].mxu1 }
 0x227   : > { %17583 = vst [vmem:[#allocation85_spill] sm:$0xff] %v13123_v51  ;;  %v2370_v47 = vmax.f32 %v13123_v51, 0.0  ;;  %v2566_v8 = vadd.f32 %v10081_v10, %v13092_v50  ;;  %v2557_v9 = vpop.f32.mrb[101].mxu1 }
 0x228   : > { %v2558_v1 = vadd.f32 %v13092_v50, %v2557_v9  ;;  %v10082_v5 = vpop.f32.mrb[102].mxu1 }
 0x229   : > { %v2569_v7 = vadd.f32 %v10082_v5, %v13092_v50  ;;  %v2560_v2 = vpop.f32.mrb[103].mxu1  ;;  %v2435_v3 = vpack.c.bf16 %v2370_v47, %v2369_v6  ;;  %v2930_v42 = vmax.f32 %v2566_v8, 0.0 }
 0x22a   : > { %v2561_v54 = vadd.f32 %v13092_v50, %v2560_v2  ;;  %v1689_v31 = vpop.f32.mrb[124].mxu0  ;;  %v2928_v10 = vmax.f32 %v2558_v1, 0.0 }
 0x22b   : > { %v2931_v63 = vmax.f32 %v2569_v7, 0.0  ;;  %v13134_v53 = vadd.f32 %v1689_v31, %v12686_v12  ;;  %v13136_v26 = vpop.f32.mrb[125].mxu0  ;;  %10135 = vmatprep.mubr.bf16.mxu1 %v2435_v3 }
 0x22c   : > { %17586 = vst [vmem:[#allocation88_spill] sm:$0xff] %v13136_v26  ;;  %v2929_v51 = vmax.f32 %v2561_v54, 0.0  ;;  %v1693_v62 = vpop.f32.mrb[126].mxu0 }
 0x22d   : > { %17585 = vst [vmem:[#allocation87_spill] sm:$0xff] %v13134_v53  ;;  %v13139_v9 = vadd.f32 %v1693_v62, %v12686_v12  ;;  %v13141_v5 = vpop.f32.mrb[127].mxu0  ;;  %v3023_v6 = vpack.c.bf16 %v2931_v63, %v2930_v42  ;;  %v2371_v2 = vmax.f32 %v13134_v53, 0.0 }
 0x22e   : > { %17588 = vst [vmem:[#allocation90_spill] sm:$0xff] %v13141_v5  ;;  %v3022_v47 = vpack.c.bf16 %v2929_v51, %v2928_v10 }
 0x22f   : > { %17587 = vst [vmem:[#allocation89_spill] sm:$0xff] %v13139_v9  ;;  %v2372_v8 = vmax.f32 %v13139_v9, 0.0 }
 0x230   : > { %10191 = vmatprep.mubr.bf16.mxu0 %v3022_v47 }
 0x231   : > { %10192 = vmatmul.mubr.bf16.gmra.mrb[196].mxu0 %v3023_v6  ;;  %v2436_v31 = vpack.c.bf16 %v2372_v8, %v2371_v2 }
 0x232   : > { %v1699_v7 = vpop.f32.mrb[128].mxu0 }
 0x233   : > { %v13145_v26 = vpop.f32.mrb[129].mxu0  ;;  %10136 = vmatmul.mubr.bf16.gmra.mrb[156].mxu1 %v2436_v31  ;;  %v13148_v1 = vadd.f32 %v1699_v7, %v12686_v12 }
 0x234   : > { %17589 = vst [vmem:[#allocation91_spill] sm:$0xff] %v13145_v26  ;;  %v1703_v62 = vpop.f32.mrb[130].mxu0 }
 0x235   : > { %17590 = vst [vmem:[#allocation92_spill] sm:$0xff] %v13148_v1  ;;  %v13150_v3 = vpop.f32.mrb[131].mxu0  ;;  %v13153_v42 = vadd.f32 %v1703_v62, %v12686_v12  ;;  %v2373_v10 = vmax.f32 %v13148_v1, 0.0 }
 0x236   : > { %17591 = vst [vmem:[#allocation93_spill] sm:$0xff] %v13150_v3  ;;  %v10085_v51 = vpop.f32.mrb[104].mxu1 }
 0x237   : > { %17592 = vst [vmem:[#allocation94_spill] sm:$0xff] %v13153_v42  ;;  %v2582_v63 = vadd.f32 %v10085_v51, %v13092_v50  ;;  %v2573_v54 = vpop.f32.mrb[105].mxu1  ;;  %v2374_v6 = vmax.f32 %v13153_v42, 0.0 }
 0x238   : > { %v2574_v47 = vadd.f32 %v13092_v50, %v2573_v54  ;;  %v10086_v2 = vpop.f32.mrb[106].mxu1 }
 0x239   : > { %v2585_v8 = vadd.f32 %v10086_v2, %v13092_v50  ;;  %v2576_v31 = vpop.f32.mrb[107].mxu1  ;;  %v2437_v7 = vpack.c.bf16 %v2374_v6, %v2373_v10  ;;  %v2934_v62 = vmax.f32 %v2582_v63, 0.0 }
 0x23a   : > { %v2577_v3 = vadd.f32 %v13092_v50, %v2576_v31  ;;  %v1709_v26 = vpop.f32.mrb[132].mxu0  ;;  %v2932_v1 = vmax.f32 %v2574_v47, 0.0 }
 0x23b   : > { %v2935_v9 = vmax.f32 %v2585_v8, 0.0  ;;  %v13161_v5 = vpop.f32.mrb[133].mxu0  ;;  %10139 = vmatprep.mubr.bf16.mxu1 %v2437_v7  ;;  %v13164_v51 = vadd.f32 %v1709_v26, %v12686_v12 }
 0x23c   : > { %17593 = vst [vmem:[#allocation95_spill] sm:$0xff] %v13161_v5  ;;  %v2933_v42 = vmax.f32 %v2577_v3, 0.0  ;;  %v1713_v53 = vpop.f32.mrb[134].mxu0 }
 0x23d   : > { %17594 = vst [vmem:[#allocation96_spill] sm:$0xff] %v13164_v51  ;;  %v13166_v54 = vpop.f32.mrb[135].mxu0  ;;  %v3025_v61 = vpack.c.bf16 %v2935_v9, %v2934_v62  ;;  %v13169_v2 = vadd.f32 %v1713_v53, %v12686_v12  ;;  %v2375_v6 = vmax.f32 %v13164_v51, 0.0 }
 0x23e   : > { %17595 = vst [vmem:[#allocation97_spill] sm:$0xff] %v13166_v54  ;;  %v3024_v10 = vpack.c.bf16 %v2933_v42, %v2932_v1 }
 0x23f   : > { %17596 = vst [vmem:[#allocation98_spill] sm:$0xff] %v13169_v2  ;;  %v2376_v63 = vmax.f32 %v13169_v2, 0.0 }
 0x240   : > { %10195 = vmatprep.mubr.bf16.mxu0 %v3024_v10 }
 0x241   : > { %10196 = vmatmul.mubr.bf16.gmra.mrb[200].mxu0 %v3025_v61  ;;  %v2438_v8 = vpack.c.bf16 %v2376_v63, %v2375_v6 }
 0x242   : > { %v1719_v31 = vpop.f32.mrb[136].mxu0 }
 0x243   : > { %v13173_v26 = vpop.f32.mrb[137].mxu0  ;;  %10140 = vmatmul.mubr.bf16.gmra.mrb[160].mxu1 %v2438_v8  ;;  %v13176_v3 = vadd.f32 %v1719_v31, %v12686_v12 }
 0x244   : > { %17597 = vst [vmem:[#allocation99_spill] sm:$0xff] %v13173_v26  ;;  %v1723_v47 = vpop.f32.mrb[138].mxu0 }
 0x245   : > { %17598 = vst [vmem:[#allocation100_spill] sm:$0xff] %v13176_v3  ;;  %v13178_v9 = vpop.f32.mrb[139].mxu0  ;;  %v13181_v53 = vadd.f32 %v1723_v47, %v12686_v12  ;;  %v2377_v61 = vmax.f32 %v13176_v3, 0.0 }
 0x246   : > { %17599 = vst [vmem:[#allocation101_spill] sm:$0xff] %v13178_v9  ;;  %v10089_v1 = vpop.f32.mrb[108].mxu1 }
 0x247   : > { %17600 = vst [vmem:[#allocation102_spill] sm:$0xff] %v13181_v53  ;;  %v2598_v42 = vadd.f32 %v10089_v1, %v13092_v50  ;;  %v2589_v7 = vpop.f32.mrb[109].mxu1  ;;  %v2378_v62 = vmax.f32 %v13181_v53, 0.0 }
 0x248   : > { %v2590_v10 = vadd.f32 %v13092_v50, %v2589_v7  ;;  %v10090_v6 = vpop.f32.mrb[110].mxu1 }
 0x249   : > { %v2601_v63 = vadd.f32 %v10090_v6, %v13092_v50  ;;  %v2592_v8 = vpop.f32.mrb[111].mxu1  ;;  %v2439_v31 = vpack.c.bf16 %v2378_v62, %v2377_v61  ;;  %v2938_v47 = vmax.f32 %v2598_v42, 0.0 }
 0x24a   : > { %v2593_v9 = vadd.f32 %v13092_v50, %v2592_v8  ;;  %v1729_v26 = vpop.f32.mrb[140].mxu0  ;;  %v2936_v3 = vmax.f32 %v2590_v10, 0.0 }
 0x24b   : > { %v2939_v2 = vmax.f32 %v2601_v63, 0.0  ;;  %v13189_v54 = vpop.f32.mrb[141].mxu0  ;;  %10143 = vmatprep.mubr.bf16.mxu1 %v2439_v31  ;;  %v13192_v1 = vadd.f32 %v1729_v26, %v12686_v12 }
 0x24c   : > { %17601 = vst [vmem:[#allocation103_spill] sm:$0xff] %v13189_v54  ;;  %v2937_v53 = vmax.f32 %v2593_v9, 0.0  ;;  %v1733_v51 = vpop.f32.mrb[142].mxu0 }
 0x24d   : > { %17602 = vst [vmem:[#allocation104_spill] sm:$0xff] %v13192_v1  ;;  %v13194_v7 = vpop.f32.mrb[143].mxu0  ;;  %v3027_v5 = vpack.c.bf16 %v2939_v2, %v2938_v47  ;;  %v13197_v6 = vadd.f32 %v1733_v51, %v12686_v12  ;;  %v2379_v62 = vmax.f32 %v13192_v1, 0.0 }
 0x24e   : > { %17603 = vst [vmem:[#allocation105_spill] sm:$0xff] %v13194_v7  ;;  %v3026_v61 = vpack.c.bf16 %v2937_v53, %v2936_v3 }
 0x24f   : > { %17604 = vst [vmem:[#allocation106_spill] sm:$0xff] %v13197_v6  ;;  %v2380_v42 = vmax.f32 %v13197_v6, 0.0 }
 0x250   : > { %10199 = vmatprep.mubr.bf16.mxu0 %v3026_v61 }
 0x251   : > { %10200 = vmatmul.mubr.bf16.gmra.mrb[204].mxu0 %v3027_v5  ;;  %v2440_v63 = vpack.c.bf16 %v2380_v42, %v2379_v62 }
 0x252   : > { %v1739_v8 = vpop.f32.mrb[144].mxu0 }
 0x253   : > { %v13201_v26 = vpop.f32.mrb[145].mxu0  ;;  %10144 = vmatmul.mubr.bf16.gmra.mrb[164].mxu1 %v2440_v63  ;;  %v13204_v9 = vadd.f32 %v1739_v8, %v12686_v12 }
 0x254   : > { %17605 = vst [vmem:[#allocation107_spill] sm:$0xff] %v13201_v26  ;;  %v1743_v10 = vpop.f32.mrb[146].mxu0 }
 0x255   : > { %17606 = vst [vmem:[#allocation108_spill] sm:$0xff] %v13204_v9  ;;  %v13206_v2 = vpop.f32.mrb[147].mxu0  ;;  %v13209_v51 = vadd.f32 %v1743_v10, %v12686_v12  ;;  %v2381_v5 = vmax.f32 %v13204_v9, 0.0 }
 0x256   : > { %17607 = vst [vmem:[#allocation109_spill] sm:$0xff] %v13206_v2  ;;  %v10093_v3 = vpop.f32.mrb[112].mxu1 }
 0x257   : > { %17608 = vst [vmem:[#allocation110_spill] sm:$0xff] %v13209_v51  ;;  %v2614_v53 = vadd.f32 %v10093_v3, %v13092_v50  ;;  %v2605_v31 = vpop.f32.mrb[113].mxu1  ;;  %v2382_v47 = vmax.f32 %v13209_v51, 0.0 }
 0x258   : > { %v2606_v61 = vadd.f32 %v13092_v50, %v2605_v31  ;;  %v10094_v62 = vpop.f32.mrb[114].mxu1 }
 0x259   : > { %v2617_v42 = vadd.f32 %v10094_v62, %v13092_v50  ;;  %v2608_v63 = vpop.f32.mrb[115].mxu1  ;;  %v2441_v8 = vpack.c.bf16 %v2382_v47, %v2381_v5  ;;  %v2942_v10 = vmax.f32 %v2614_v53, 0.0 }
 0x25a   : > { %v2609_v2 = vadd.f32 %v13092_v50, %v2608_v63  ;;  %v1749_v26 = vpop.f32.mrb[148].mxu0  ;;  %v2940_v9 = vmax.f32 %v2606_v61, 0.0 }
 0x25b   : > { %v2943_v6 = vmax.f32 %v2617_v42, 0.0  ;;  %v13217_v7 = vpop.f32.mrb[149].mxu0  ;;  %10147 = vmatprep.mubr.bf16.mxu1 %v2441_v8  ;;  %v13220_v3 = vadd.f32 %v1749_v26, %v12686_v12  ;;  %v11767_v26 = vld [vmem:[%s17247_s3 + $0x40] sm:$0xff]  }
 0x25c   : > { %v2941_v51 = vmax.f32 %v2609_v2, 0.0  ;;  %v1753_v1 = vpop.f32.mrb[150].mxu0  ;;  %10283 = vmatprep.subr.bf16.mxu1 %v11767_v26 }
 0x25d   : > { %17609 = vst [vmem:[#allocation111_spill] sm:$0xff] %v13220_v3  ;;  %v13222_v31 = vpop.f32.mrb[151].mxu0  ;;  %v3029_v54 = vpack.c.bf16 %v2943_v6, %v2942_v10  ;;  %v13225_v62 = vadd.f32 %v1753_v1, %v12686_v12  ;;  %v2383_v47 = vmax.f32 %v13220_v3, 0.0  ;;  %10284 = vmatpush3.bf16.msra.mxu1 %v11767_v26 }
 0x25e   : > { %17610 = vst [vmem:[#allocation112_spill] sm:$0xff] %v13222_v31  ;;  %v3028_v5 = vpack.c.bf16 %v2941_v51, %v2940_v9 }
 0x25f   : > { %17611 = vst [vmem:[#allocation113_spill] sm:$0xff] %v13225_v62  ;;  %v2384_v53 = vmax.f32 %v13225_v62, 0.0 }
 0x260   : > { %10203 = vmatprep.mubr.bf16.mxu0 %v3028_v5 }
 0x261   : > { %10204 = vmatmul.mubr.bf16.gmra.mrb[208].mxu0 %v3029_v54  ;;  %v2442_v42 = vpack.c.bf16 %v2384_v53, %v2383_v47  ;;  %v11768_v54 = vld [vmem:[%s17247_s3 + $0x48] sm:$0xff]  }
 0x262   : > { %v1759_v2 = vpop.f32.mrb[152].mxu0  ;;  %10285 = vmatprep.subr.bf16.mxu1 %v11768_v54 }
 0x263   : > { %v13232_v61 = vpop.f32.mrb[153].mxu0  ;;  %10148 = vmatmul.mubr.bf16.gmra.mrb[168].mxu1 %v2442_v42  ;;  %v13235_v6 = vadd.f32 %v1759_v2, %v12686_v12 }
 0x264   : > { %17612 = vst [vmem:[#allocation114_spill] sm:$0xff] %v13232_v61  ;;  %v1763_v1 = vpop.f32.mrb[154].mxu0  ;;  %10286 = vmatpush3.bf16.msra.mxu1 %v11768_v54 }
 0x265   : > { %17613 = vst [vmem:[#allocation115_spill] sm:$0xff] %v13235_v6  ;;  %v13237_v9 = vpop.f32.mrb[155].mxu0  ;;  %v13240_v51 = vadd.f32 %v1763_v1, %v12686_v12  ;;  %v2385_v5 = vmax.f32 %v13235_v6, 0.0 }
 0x266   : > { %17614 = vst [vmem:[#allocation116_spill] sm:$0xff] %v13237_v9  ;;  %v10097_v63 = vpop.f32.mrb[116].mxu1  ;;  %v11769_v9 = vld [vmem:[%s17247_s3 + $0x50] sm:$0xff]  }
 0x267   : > { %17615 = vst [vmem:[#allocation117_spill] sm:$0xff] %v13240_v51  ;;  %v2630_v8 = vadd.f32 %v10097_v63, %v13092_v50  ;;  %v2621_v10 = vpop.f32.mrb[117].mxu1  ;;  %v2386_v47 = vmax.f32 %v13240_v51, 0.0  ;;  %10287 = vmatprep.subr.bf16.mxu1 %v11769_v9 }
 0x268   : > { %v2622_v53 = vadd.f32 %v13092_v50, %v2621_v10  ;;  %v10098_v42 = vpop.f32.mrb[118].mxu1  ;;  %10288 = vmatpush3.bf16.msra.mxu1 %v11769_v9 }
 0x269   : > { %v2633_v26 = vadd.f32 %v10098_v42, %v13092_v50  ;;  %v2624_v2 = vpop.f32.mrb[119].mxu1  ;;  %v2443_v1 = vpack.c.bf16 %v2386_v47, %v2385_v5  ;;  %v2946_v62 = vmax.f32 %v2630_v8, 0.0  ;;  %v11770_v5 = vld [vmem:[%s17247_s3 + $0x58] sm:$0xff]  }
 0x26a   : > { %v2625_v63 = vadd.f32 %v13092_v50, %v2624_v2  ;;  %v1769_v61 = vpop.f32.mrb[156].mxu0  ;;  %v2944_v54 = vmax.f32 %v2622_v53, 0.0  ;;  %10289 = vmatprep.subr.bf16.mxu1 %v11770_v5  ;;  %v11771_v53 = vld [vmem:[%s17247_s3 + $0x60] sm:$0xff]  }
 0x26b   : > { %v2947_v6 = vmax.f32 %v2633_v26, 0.0  ;;  %v13254_v31 = vpop.f32.mrb[157].mxu0  ;;  %10151 = vmatprep.mubr.bf16.mxu1 %v2443_v1  ;;  %v13257_v10 = vadd.f32 %v1769_v61, %v12686_v12 }
 0x26c   : > { %17616 = vst [vmem:[#allocation118_spill] sm:$0xff] %v13254_v31  ;;  %v2945_v42 = vmax.f32 %v2625_v63, 0.0  ;;  %v1773_v51 = vpop.f32.mrb[158].mxu0  ;;  %10290 = vmatpush3.bf16.msra.mxu1 %v11770_v5  ;;  %v11772_v5 = vld [vmem:[%s17247_s3 + $0x68] sm:$0xff]  }
 0x26d   : > { %17617 = vst [vmem:[#allocation119_spill] sm:$0xff] %v13257_v10  ;;  %v13262_v47 = vpop.f32.mrb[159].mxu0  ;;  %v3031_v2 = vpack.c.bf16 %v2947_v6, %v2946_v62  ;;  %v13265_v8 = vadd.f32 %v1773_v51, %v12686_v12  ;;  %v2387_v61 = vmax.f32 %v13257_v10, 0.0  ;;  %10291 = vmatprep.subr.bf16.mxu1 %v11771_v53 }
 0x26e   : > { %17618 = vst [vmem:[#allocation120_spill] sm:$0xff] %v13262_v47  ;;  %v3030_v26 = vpack.c.bf16 %v2945_v42, %v2944_v54 }
 0x26f   : > { %17619 = vst [vmem:[#allocation121_spill] sm:$0xff] %v13265_v8  ;;  %v2388_v1 = vmax.f32 %v13265_v8, 0.0  ;;  %v11773_v8 = vld [vmem:[%s17247_s3 + $0x70] sm:$0xff]  }
 0x270   : > { %10207 = vmatprep.mubr.bf16.mxu0 %v3030_v26  ;;  %10292 = vmatpush3.bf16.msra.mxu1 %v11771_v53 }
 0x271   : > { %10208 = vmatmul.mubr.bf16.gmra.mrb[212].mxu0 %v3031_v2  ;;  %v2444_v9 = vpack.c.bf16 %v2388_v1, %v2387_v61  ;;  %10293 = vmatprep.subr.bf16.mxu1 %v11772_v5 }
 0x272   : > { %v1779_v63 = vpop.f32.mrb[160].mxu0 }
 0x273   : > { %v13273_v62 = vadd.f32 %v1779_v63, %v12686_v12  ;;  %v13275_v6 = vpop.f32.mrb[161].mxu0  ;;  %10152 = vmatmul.mubr.bf16.gmra.mrb[172].mxu1 %v2444_v9 }
 0x274   : > { %17621 = vst [vmem:[#allocation123_spill] sm:$0xff] %v13275_v6  ;;  %v1783_v51 = vpop.f32.mrb[162].mxu0  ;;  %10294 = vmatpush3.bf16.msra.mxu1 %v11772_v5 }
 0x275   : > { %17620 = vst [vmem:[#allocation122_spill] sm:$0xff] %v13273_v62  ;;  %v13278_v54 = vadd.f32 %v1783_v51, %v12686_v12  ;;  %v13280_v42 = vpop.f32.mrb[163].mxu0  ;;  %v2389_v26 = vmax.f32 %v13273_v62, 0.0  ;;  %10295 = vmatprep.subr.bf16.mxu1 %v11773_v8 }
 0x276   : > { %17623 = vst [vmem:[#allocation125_spill] sm:$0xff] %v13280_v42  ;;  %v10101_v2 = vpop.f32.mrb[120].mxu1 }
 0x277   : > { %17622 = vst [vmem:[#allocation124_spill] sm:$0xff] %v13278_v54  ;;  %v2390_v61 = vmax.f32 %v13278_v54, 0.0  ;;  %v2646_v1 = vadd.f32 %v10101_v2, %v13092_v50  ;;  %v2637_v9 = vpop.f32.mrb[121].mxu1 }
 0x278   : > { %v2638_v53 = vadd.f32 %v13092_v50, %v2637_v9  ;;  %v10102_v63 = vpop.f32.mrb[122].mxu1  ;;  %10296 = vmatpush3.bf16.msra.mxu1 %v11773_v8 }
 0x279   : > { %v2649_v51 = vadd.f32 %v10102_v63, %v13092_v50  ;;  %v2640_v42 = vpop.f32.mrb[123].mxu1  ;;  %v2445_v6 = vpack.c.bf16 %v2390_v61, %v2389_v26  ;;  %v2950_v54 = vmax.f32 %v2646_v1, 0.0  ;;  %v11774_v1 = vld [vmem:[%s17247_s3 + $0x78] sm:$0xff]  }
 0x27a   : > { %v2641_v62 = vadd.f32 %v13092_v50, %v2640_v42  ;;  %v1789_v47 = vpop.f32.mrb[164].mxu0  ;;  %v2948_v5 = vmax.f32 %v2638_v53, 0.0  ;;  %10297 = vmatprep.subr.bf16.mxu1 %v11774_v1 }
 0x27b   : > { %v2951_v10 = vmax.f32 %v2649_v51, 0.0  ;;  %v13295_v2 = vadd.f32 %v1789_v47, %v12686_v12  ;;  %v13297_v31 = vpop.f32.mrb[165].mxu0  ;;  %10155 = vmatprep.mubr.bf16.mxu1 %v2445_v6 }
 0x27c   : > { %17625 = vst [vmem:[#allocation127_spill] sm:$0xff] %v13297_v31  ;;  %v2949_v9 = vmax.f32 %v2641_v62, 0.0  ;;  %v1793_v63 = vpop.f32.mrb[166].mxu0  ;;  %10298 = vmatpush3.bf16.msra.mxu1 %v11774_v1 }
 0x27d   : > { %17624 = vst [vmem:[#allocation126_spill] sm:$0xff] %v13295_v2  ;;  %v13300_v26 = vadd.f32 %v1793_v63, %v12686_v12  ;;  %v13302_v61 = vpop.f32.mrb[167].mxu0  ;;  %v3033_v42 = vpack.c.bf16 %v2951_v10, %v2950_v54  ;;  %v2391_v51 = vmax.f32 %v13295_v2, 0.0 }
 0x27e   : > { %17627 = vst [vmem:[#allocation129_spill] sm:$0xff] %v13302_v61  ;;  %v3032_v47 = vpack.c.bf16 %v2949_v9, %v2948_v5 }
 0x27f   : > { %17626 = vst [vmem:[#allocation128_spill] sm:$0xff] %v13300_v26  ;;  %v2392_v6 = vmax.f32 %v13300_v26, 0.0 }
 0x280   : > { %10211 = vmatprep.mubr.bf16.mxu0 %v3032_v47 }
 0x281   : > { %10212 = vmatmul.mubr.bf16.gmra.mrb[216].mxu0 %v3033_v42  ;;  %v2446_v8 = vpack.c.bf16 %v2392_v6, %v2391_v51 }
 0x282   : > { %v1799_v62 = vpop.f32.mrb[168].mxu0 }
 0x283   : > { %v13310_v53 = vadd.f32 %v1799_v62, %v12686_v12  ;;  %v13312_v63 = vpop.f32.mrb[169].mxu0  ;;  %10156 = vmatmul.mubr.bf16.gmra.mrb[176].mxu1 %v2446_v8 }
 0x284   : > { %17629 = vst [vmem:[#allocation131_spill] sm:$0xff] %v13312_v63  ;;  %v1803_v10 = vpop.f32.mrb[170].mxu0 }
 0x285   : > { %17628 = vst [vmem:[#allocation130_spill] sm:$0xff] %v13310_v53  ;;  %v13315_v54 = vadd.f32 %v1803_v10, %v12686_v12  ;;  %v13317_v5 = vpop.f32.mrb[171].mxu0  ;;  %v2393_v26 = vmax.f32 %v13310_v53, 0.0 }
 0x286   : > { %17631 = vst [vmem:[#allocation133_spill] sm:$0xff] %v13317_v5  ;;  %v10105_v9 = vpop.f32.mrb[124].mxu1 }
 0x287   : > { %17630 = vst [vmem:[#allocation132_spill] sm:$0xff] %v13315_v54  ;;  %v2394_v1 = vmax.f32 %v13315_v54, 0.0  ;;  %v2662_v42 = vadd.f32 %v10105_v9, %v13092_v50  ;;  %v2653_v47 = vpop.f32.mrb[125].mxu1 }
 0x288   : > { %v2654_v51 = vadd.f32 %v13092_v50, %v2653_v47  ;;  %v10106_v6 = vpop.f32.mrb[126].mxu1 }
 0x289   : > { %v2665_v62 = vadd.f32 %v10106_v6, %v13092_v50  ;;  %v2656_v8 = vpop.f32.mrb[127].mxu1  ;;  %v2447_v63 = vpack.c.bf16 %v2394_v1, %v2393_v26  ;;  %v2954_v2 = vmax.f32 %v2662_v42, 0.0 }
 0x28a   : > { %v2657_v10 = vadd.f32 %v13092_v50, %v2656_v8  ;;  %v1809_v61 = vpop.f32.mrb[172].mxu0  ;;  %v2952_v9 = vmax.f32 %v2654_v51, 0.0 }
 0x28b   : > { %v2955_v5 = vmax.f32 %v2665_v62, 0.0  ;;  %v13326_v31 = vadd.f32 %v1809_v61, %v12686_v12  ;;  %v13328_v53 = vpop.f32.mrb[173].mxu0  ;;  %10159 = vmatprep.mubr.bf16.mxu1 %v2447_v63 }
 0x28c   : > { %17633 = vst [vmem:[#allocation135_spill] sm:$0xff] %v13328_v53  ;;  %v2953_v54 = vmax.f32 %v2657_v10, 0.0  ;;  %v1813_v3 = vpop.f32.mrb[174].mxu0 }
 0x28d   : > { %17632 = vst [vmem:[#allocation134_spill] sm:$0xff] %v13326_v31  ;;  %v13331_v47 = vadd.f32 %v1813_v3, %v12686_v12  ;;  %v13333_v6 = vpop.f32.mrb[175].mxu0  ;;  %v3035_v26 = vpack.c.bf16 %v2955_v5, %v2954_v2  ;;  %v2395_v8 = vmax.f32 %v13326_v31, 0.0 }
 0x28e   : > { %17635 = vst [vmem:[#allocation137_spill] sm:$0xff] %v13333_v6  ;;  %v3034_v1 = vpack.c.bf16 %v2953_v54, %v2952_v9 }
 0x28f   : > { %17634 = vst [vmem:[#allocation136_spill] sm:$0xff] %v13331_v47  ;;  %v2396_v42 = vmax.f32 %v13331_v47, 0.0 }
 0x290   : > { %10215 = vmatprep.mubr.bf16.mxu0 %v3034_v1 }
 0x291   : > { %10216 = vmatmul.mubr.bf16.gmra.mrb[220].mxu0 %v3035_v26  ;;  %v2448_v61 = vpack.c.bf16 %v2396_v42, %v2395_v8 }
 0x292   : > { %v1819_v62 = vpop.f32.mrb[176].mxu0 }
 0x293   : > { %v13338_v63 = vadd.f32 %v1819_v62, %v12686_v12  ;;  %v13340_v51 = vpop.f32.mrb[177].mxu0  ;;  %10160 = vmatmul.mubr.bf16.gmra.mrb[180].mxu1 %v2448_v61 }
 0x294   : > { %17637 = vst [vmem:[#allocation139_spill] sm:$0xff] %v13340_v51  ;;  %v1823_v3 = vpop.f32.mrb[178].mxu0 }
 0x295   : > { %17636 = vst [vmem:[#allocation138_spill] sm:$0xff] %v13338_v63  ;;  %v13343_v10 = vadd.f32 %v1823_v3, %v12686_v12  ;;  %v13345_v2 = vpop.f32.mrb[179].mxu0  ;;  %v2397_v5 = vmax.f32 %v13338_v63, 0.0 }
 0x296   : > { %17639 = vst [vmem:[#allocation141_spill] sm:$0xff] %v13345_v2  ;;  %v10109_v54 = vpop.f32.mrb[128].mxu1 }
 0x297   : > { %17638 = vst [vmem:[#allocation140_spill] sm:$0xff] %v13343_v10  ;;  %v2398_v9 = vmax.f32 %v13343_v10, 0.0  ;;  %v2678_v26 = vadd.f32 %v10109_v54, %v13092_v50  ;;  %v2669_v1 = vpop.f32.mrb[129].mxu1 }
 0x298   : > { %v2670_v8 = vadd.f32 %v13092_v50, %v2669_v1  ;;  %v10110_v42 = vpop.f32.mrb[130].mxu1 }
 0x299   : > { %v2681_v62 = vadd.f32 %v10110_v42, %v13092_v50  ;;  %v2672_v61 = vpop.f32.mrb[131].mxu1  ;;  %v2449_v51 = vpack.c.bf16 %v2398_v9, %v2397_v5  ;;  %v2958_v6 = vmax.f32 %v2678_v26, 0.0 }
 0x29a   : > { %v2673_v3 = vadd.f32 %v13092_v50, %v2672_v61  ;;  %v1829_v47 = vpop.f32.mrb[180].mxu0  ;;  %v2956_v54 = vmax.f32 %v2670_v8, 0.0 }
 0x29b   : > { %v2959_v2 = vmax.f32 %v2681_v62, 0.0  ;;  %v13354_v31 = vadd.f32 %v1829_v47, %v12686_v12  ;;  %v13356_v63 = vpop.f32.mrb[181].mxu0  ;;  %10163 = vmatprep.mubr.bf16.mxu1 %v2449_v51 }
 0x29c   : > { %17641 = vst [vmem:[#allocation143_spill] sm:$0xff] %v13356_v63  ;;  %v2957_v10 = vmax.f32 %v2673_v3, 0.0  ;;  %v1833_v53 = vpop.f32.mrb[182].mxu0 }
 0x29d   : > { %17640 = vst [vmem:[#allocation142_spill] sm:$0xff] %v13354_v31  ;;  %v13359_v1 = vadd.f32 %v1833_v53, %v12686_v12  ;;  %v13361_v42 = vpop.f32.mrb[183].mxu0  ;;  %v3037_v5 = vpack.c.bf16 %v2959_v2, %v2958_v6  ;;  %v2399_v61 = vmax.f32 %v13354_v31, 0.0 }
 0x29e   : > { %17643 = vst [vmem:[#allocation145_spill] sm:$0xff] %v13361_v42  ;;  %v3036_v9 = vpack.c.bf16 %v2957_v10, %v2956_v54 }
 0x29f   : > { %17642 = vst [vmem:[#allocation144_spill] sm:$0xff] %v13359_v1  ;;  %v2400_v26 = vmax.f32 %v13359_v1, 0.0 }
 0x2a0   : > { %10219 = vmatprep.mubr.bf16.mxu0 %v3036_v9 }
 0x2a1   : > { %10220 = vmatmul.mubr.bf16.gmra.mrb[224].mxu0 %v3037_v5  ;;  %v2450_v47 = vpack.c.bf16 %v2400_v26, %v2399_v61 }
 0x2a2   : > { %v1839_v62 = vpop.f32.mrb[184].mxu0 }
 0x2a3   : > { %v13366_v51 = vadd.f32 %v1839_v62, %v12686_v12  ;;  %v13368_v8 = vpop.f32.mrb[185].mxu0  ;;  %10164 = vmatmul.mubr.bf16.gmra.mrb[184].mxu1 %v2450_v47 }
 0x2a4   : > { %17645 = vst [vmem:[#allocation147_spill] sm:$0xff] %v13368_v8  ;;  %v1843_v53 = vpop.f32.mrb[186].mxu0 }
 0x2a5   : > { %17644 = vst [vmem:[#allocation146_spill] sm:$0xff] %v13366_v51  ;;  %v13371_v3 = vadd.f32 %v1843_v53, %v12686_v12  ;;  %v13373_v6 = vpop.f32.mrb[187].mxu0  ;;  %v2401_v2 = vmax.f32 %v13366_v51, 0.0 }
 0x2a6   : > { %17647 = vst [vmem:[#allocation149_spill] sm:$0xff] %v13373_v6  ;;  %v10113_v10 = vpop.f32.mrb[132].mxu1 }
 0x2a7   : > { %17646 = vst [vmem:[#allocation148_spill] sm:$0xff] %v13371_v3  ;;  %v2402_v54 = vmax.f32 %v13371_v3, 0.0  ;;  %v2694_v5 = vadd.f32 %v10113_v10, %v13092_v50  ;;  %v2685_v9 = vpop.f32.mrb[133].mxu1 }
 0x2a8   : > { %v2686_v61 = vadd.f32 %v13092_v50, %v2685_v9  ;;  %v10114_v26 = vpop.f32.mrb[134].mxu1 }
 0x2a9   : > { %v2697_v62 = vadd.f32 %v10114_v26, %v13092_v50  ;;  %v2688_v47 = vpop.f32.mrb[135].mxu1  ;;  %v2451_v8 = vpack.c.bf16 %v2402_v54, %v2401_v2  ;;  %v2962_v42 = vmax.f32 %v2694_v5, 0.0 }
 0x2aa   : > { %v2689_v53 = vadd.f32 %v13092_v50, %v2688_v47  ;;  %v1849_v1 = vpop.f32.mrb[188].mxu0  ;;  %v2960_v10 = vmax.f32 %v2686_v61, 0.0 }
 0x2ab   : > { %v2963_v6 = vmax.f32 %v2697_v62, 0.0  ;;  %v13382_v31 = vadd.f32 %v1849_v1, %v12686_v12  ;;  %v13384_v51 = vpop.f32.mrb[189].mxu0  ;;  %10167 = vmatprep.mubr.bf16.mxu1 %v2451_v8 }
 0x2ac   : > { %v2961_v3 = vmax.f32 %v2689_v53, 0.0  ;;  %v1853_v63 = vpop.f32.mrb[190].mxu0 }
 0x2ad   : > { %17648 = vst [vmem:[#allocation150_spill] sm:$0xff] %v13382_v31  ;;  %v13387_v9 = vadd.f32 %v1853_v63, %v12686_v12  ;;  %v13389_v26 = vpop.f32.mrb[191].mxu0  ;;  %v3039_v2 = vpack.c.bf16 %v2963_v6, %v2962_v42  ;;  %v2403_v47 = vmax.f32 %v13382_v31, 0.0 }
 0x2ae   : > { %17650 = vst [vmem:[#allocation152_spill] sm:$0xff] %v13389_v26  ;;  %v3038_v54 = vpack.c.bf16 %v2961_v3, %v2960_v10 }
 0x2af   : > { %17649 = vst [vmem:[#allocation151_spill] sm:$0xff] %v13387_v9  ;;  %v2404_v5 = vmax.f32 %v13387_v9, 0.0 }
 0x2b0   : > { %10223 = vmatprep.mubr.bf16.mxu0 %v3038_v54 }
 0x2b1   : > { %10224 = vmatmul.mubr.bf16.gmra.mrb[228].mxu0 %v3039_v2  ;;  %v2452_v1 = vpack.c.bf16 %v2404_v5, %v2403_v47 }
 0x2b3   : > { %10168 = vmatmul.mubr.bf16.gmra.mrb[188].mxu1 %v2452_v1 }
 0x2b6   : > { %v10117_v62 = vpop.f32.mrb[136].mxu1 }
 0x2b7   : > { %v2710_v8 = vadd.f32 %v10117_v62, %v13092_v50  ;;  %v2701_v61 = vpop.f32.mrb[137].mxu1 }
 0x2b8   : > { %v2702_v53 = vadd.f32 %v13092_v50, %v2701_v61  ;;  %v10118_v12 = vpop.f32.mrb[138].mxu1 }
 0x2b9   : > { %v2713_v63 = vadd.f32 %v10118_v12, %v13092_v50  ;;  %v2704_v26 = vpop.f32.mrb[139].mxu1  ;;  %v2966_v3 = vmax.f32 %v2710_v8, 0.0 }
 0x2ba   : > { %v2705_v42 = vadd.f32 %v13092_v50, %v2704_v26  ;;  %v2964_v10 = vmax.f32 %v2702_v53, 0.0 }
 0x2bb   : > { %v2967_v6 = vmax.f32 %v2713_v63, 0.0 }
 0x2bc   : > { %v2965_v9 = vmax.f32 %v2705_v42, 0.0 }
 0x2bd   : > { %v3041_v54 = vpack.c.bf16 %v2967_v6, %v2966_v3 }
 0x2be   : > { %v3040_v2 = vpack.c.bf16 %v2965_v9, %v2964_v10 }
 0x2c0   : > { %10227 = vmatprep.mubr.bf16.mxu0 %v3040_v2 }
 0x2c1   : > { %10228 = vmatmul.mubr.bf16.gmra.mrb[232].mxu0 %v3041_v54 }
 0x2c6   : > { %v10121_v47 = vpop.f32.mrb[140].mxu1 }
 0x2c7   : > { %v2726_v5 = vadd.f32 %v10121_v47, %v13092_v50  ;;  %v2717_v1 = vpop.f32.mrb[141].mxu1 }
 0x2c8   : > { %v2718_v62 = vadd.f32 %v13092_v50, %v2717_v1  ;;  %v10122_v61 = vpop.f32.mrb[142].mxu1 }
 0x2c9   : > { %v2729_v12 = vadd.f32 %v10122_v61, %v13092_v50  ;;  %v2720_v31 = vpop.f32.mrb[143].mxu1  ;;  %v2970_v8 = vmax.f32 %v2726_v5, 0.0 }
 0x2ca   : > { %v2721_v26 = vadd.f32 %v13092_v50, %v2720_v31  ;;  %v2968_v53 = vmax.f32 %v2718_v62, 0.0 }
 0x2cb   : > { %v2971_v63 = vmax.f32 %v2729_v12, 0.0 }
 0x2cc   : > { %v2969_v42 = vmax.f32 %v2721_v26, 0.0 }
 0x2cd   : > { %v3043_v3 = vpack.c.bf16 %v2971_v63, %v2970_v8 }
 0x2ce   : > { %v3042_v9 = vpack.c.bf16 %v2969_v42, %v2968_v53 }
 0x2d0   : > { %10231 = vmatprep.mubr.bf16.mxu0 %v3042_v9 }
 0x2d1   : > { %10232 = vmatmul.mubr.bf16.gmra.mrb[236].mxu0 %v3043_v3 }
 0x2d6   : > { %v10125_v6 = vpop.f32.mrb[144].mxu1 }
 0x2d7   : > { %v2742_v10 = vadd.f32 %v10125_v6, %v13092_v50  ;;  %v2733_v54 = vpop.f32.mrb[145].mxu1 }
 0x2d8   : > { %v2734_v2 = vadd.f32 %v13092_v50, %v2733_v54  ;;  %v10126_v47 = vpop.f32.mrb[146].mxu1 }
 0x2d9   : > { %v2745_v1 = vadd.f32 %v10126_v47, %v13092_v50  ;;  %v2736_v61 = vpop.f32.mrb[147].mxu1  ;;  %v2974_v5 = vmax.f32 %v2742_v10, 0.0 }
 0x2da   : > { %v2737_v31 = vadd.f32 %v13092_v50, %v2736_v61  ;;  %v2972_v62 = vmax.f32 %v2734_v2, 0.0 }
 0x2db   : > { %v2975_v12 = vmax.f32 %v2745_v1, 0.0 }
 0x2dc   : > { %v2973_v26 = vmax.f32 %v2737_v31, 0.0 }
 0x2dd   : > { %v3045_v8 = vpack.c.bf16 %v2975_v12, %v2974_v5 }
 0x2de   : > { %v3044_v63 = vpack.c.bf16 %v2973_v26, %v2972_v62  ;;  %v13412_v62 = vld [vmem:[%s17250_s6] ss:$0 sm:$0xff] }
 0x2e0   : > { %10235 = vmatprep.mubr.bf16.mxu0 %v3044_v63 }
 0x2e1   : > { %10236 = vmatmul.mubr.bf16.gmra.mrb[240].mxu0 %v3045_v8 }
 0x2e6   : > { %v10129_v53 = vpop.f32.mrb[148].mxu1 }
 0x2e7   : > { %v2758_v42 = vadd.f32 %v10129_v53, %v13092_v50  ;;  %v2749_v3 = vpop.f32.mrb[149].mxu1 }
 0x2e8   : > { %v2750_v9 = vadd.f32 %v13092_v50, %v2749_v3  ;;  %v10130_v6 = vpop.f32.mrb[150].mxu1 }
 0x2e9   : > { %v2761_v54 = vadd.f32 %v10130_v6, %v13092_v50  ;;  %v2752_v47 = vpop.f32.mrb[151].mxu1  ;;  %v2978_v10 = vmax.f32 %v2758_v42, 0.0 }
 0x2ea   : > { %v2753_v61 = vadd.f32 %v13092_v50, %v2752_v47  ;;  %v2976_v2 = vmax.f32 %v2750_v9, 0.0  ;;  %v1392_v9 = vadd.f32 %v12709_v25, %v12524_v39  ;;  %v1396_v25 = vadd.f32 %v12714_v28, %v12524_v39 }
 0x2eb   : > { %v2979_v1 = vmax.f32 %v2761_v54, 0.0 }
 0x2ec   : > { %v2977_v31 = vmax.f32 %v2753_v61, 0.0 }
 0x2ed   : > { %v3047_v5 = vpack.c.bf16 %v2979_v1, %v2978_v10  ;;  %v1382_v1 = vadd.f32 %v12692_v15, %v12524_v39  ;;  %v1386_v15 = vadd.f32 %v12697_v18, %v12524_v39 }
 0x2ee   : > { %v3046_v12 = vpack.c.bf16 %v2977_v31, %v2976_v2 }
 0x2f0   : > { %10239 = vmatprep.mubr.bf16.mxu0 %v3046_v12 }
 0x2f1   : > { %10240 = vmatmul.mubr.bf16.gmra.mrb[244].mxu0 %v3047_v5 }
 0x2f4   : > { %v10189_v26 = vpop.f32.mrb[192].mxu0 }
 0x2f5   : > { %v3165_v8 = vadd.f32 %v10189_v26, %v13412_v62  ;;  %v3156_v63 = vpop.f32.mrb[193].mxu0 }
 0x2f6   : > { %v3157_v53 = vadd.f32 %v13412_v62, %v3156_v63  ;;  %v10133_v3 = vpop.f32.mrb[152].mxu1  ;;  %v10190_v42 = vpop.f32.mrb[194].mxu0 }
 0x2f7   : > { %v3541_v6 = vadd.f32 %v3165_v8, %v12707_v24  ;;  %v2774_v54 = vadd.f32 %v10133_v3, %v13092_v50  ;;  %v3168_v47 = vadd.f32 %v10190_v42, %v13412_v62  ;;  %v2765_v61 = vpop.f32.mrb[153].mxu1  ;;  %v3159_v10 = vpop.f32.mrb[195].mxu0 }
 0x2f8   : > { %v3539_v2 = vadd.f32 %v3157_v53, %v12690_v14  ;;  %v2766_v31 = vadd.f32 %v13092_v50, %v2765_v61  ;;  %v3160_v5 = vadd.f32 %v13412_v62, %v3159_v10  ;;  %v10134_v12 = vpop.f32.mrb[154].mxu1 }
 0x2f9   : > { %v13428_v24 = vadd.f32 %v3541_v6, %v1392_v9  ;;  %v3542_v26 = vadd.f32 %v3168_v47, %v12712_v27  ;;  %v2777_v8 = vadd.f32 %v10134_v12, %v13092_v50  ;;  %v2768_v63 = vpop.f32.mrb[155].mxu1  ;;  %v2982_v42 = vmax.f32 %v2774_v54, 0.0 }
 0x2fa   : > { %v13434_v3 = vadd.f32 %v3539_v2, %v1382_v1  ;;  %v3540_v14 = vadd.f32 %v3160_v5, %v12695_v17  ;;  %v2769_v53 = vadd.f32 %v13092_v50, %v2768_v63  ;;  %v2980_v9 = vmax.f32 %v2766_v31, 0.0 }
 0x2fb   : > { %v13438_v61 = vadd.f32 %v3542_v26, %v1396_v25  ;;  %v2983_v28 = vmax.f32 %v2777_v8, 0.0  ;;  %v3771_v17 = vmax.f32 %v13428_v24, 0.0 }
 0x2fc   : > { %v13440_v6 = vadd.f32 %v3540_v14, %v1386_v15  ;;  %v2981_v27 = vmax.f32 %v2769_v53, 0.0  ;;  %v3769_v18 = vmax.f32 %v13434_v3, 0.0  ;;  %v1412_v15 = vadd.f32 %v12737_v45, %v12524_v39 }
 0x2fd   : > { %v3772_v47 = vmax.f32 %v13438_v61, 0.0  ;;  %v3049_v10 = vpack.c.bf16 %v2983_v28, %v2982_v42  ;;  %v1416_v45 = vadd.f32 %v12742_v49, %v12524_v39 }
 0x2fe   : > { %v3048_v12 = vpack.c.bf16 %v2981_v27, %v2980_v9  ;;  %v3770_v1 = vmax.f32 %v13440_v6, 0.0  ;;  %v1402_v27 = vadd.f32 %v12723_v35, %v12524_v39  ;;  %v1406_v35 = vadd.f32 %v12728_v38, %v12524_v39 }
 0x2ff   : > { %v3866_v54 = vpack.c.bf16 %v3772_v47, %v3771_v17 }
 0x300   : > { %10243 = vmatprep.mubr.bf16.mxu0 %v3048_v12  ;;  %v3865_v2 = vpack.c.bf16 %v3770_v1, %v3769_v18 }
 0x301   : > { %10244 = vmatmul.mubr.bf16.gmra.mrb[248].mxu0 %v3049_v10 }
 0x302   : > { %10299 = vmatprep.mubr.bf16.mxu1 %v3865_v2 }
 0x303   : > { %10300 = vmatmul.mubr.bf16.vlgmr.msra.gmra.mrb[192].mxu1 %v3866_v54 }
 0x304   : > { %v10193_v31 = vpop.f32.mrb[196].mxu0 }
 0x305   : > { %v3181_v5 = vadd.f32 %v10193_v31, %v13412_v62  ;;  %v3172_v25 = vpop.f32.mrb[197].mxu0  ;;  %v13472_v31 = vld [vmem:[%s17248_s4] ss:$0 sm:$0xff] }
 0x306   : > { %v3173_v26 = vadd.f32 %v13412_v62, %v3172_v25  ;;  %v10137_v8 = vpop.f32.mrb[156].mxu1  ;;  %v10194_v63 = vpop.f32.mrb[198].mxu0 }
 0x307   : > { %v3545_v14 = vadd.f32 %v3181_v5, %v12735_v44  ;;  %v2790_v53 = vadd.f32 %v10137_v8, %v13092_v50  ;;  %v3184_v42 = vadd.f32 %v10194_v63, %v13412_v62  ;;  %v2781_v28 = vpop.f32.mrb[157].mxu1  ;;  %v3175_v9 = vpop.f32.mrb[199].mxu0 }
 0x308   : > { %v3543_v47 = vadd.f32 %v3173_v26, %v12721_v34  ;;  %v2782_v10 = vadd.f32 %v13092_v50, %v2781_v28  ;;  %v3176_v12 = vadd.f32 %v13412_v62, %v3175_v9  ;;  %v10138_v18 = vpop.f32.mrb[158].mxu1 }
 0x309   : > { %v13460_v44 = vadd.f32 %v3545_v14, %v1412_v15  ;;  %v3546_v1 = vadd.f32 %v3184_v42, %v12740_v48  ;;  %v2793_v17 = vadd.f32 %v10138_v18, %v13092_v50  ;;  %v2784_v2 = vpop.f32.mrb[159].mxu1  ;;  %v2986_v5 = vmax.f32 %v2790_v53, 0.0 }
 0x30a   : > { %v13466_v54 = vadd.f32 %v3543_v47, %v1402_v27  ;;  %v3544_v34 = vadd.f32 %v3176_v12, %v12726_v37  ;;  %v2785_v49 = vadd.f32 %v13472_v31, %v2784_v2  ;;  %v2984_v50 = vmax.f32 %v2782_v10, 0.0 }
 0x30b   : > { %v13475_v25 = vadd.f32 %v3546_v1, %v1416_v45  ;;  %v2987_v48 = vmax.f32 %v2793_v17, 0.0  ;;  %v3775_v42 = vmax.f32 %v13460_v44, 0.0  ;;  %v1432_v45 = vadd.f32 %v12765_v23, %v12524_v39 }
 0x30c   : > { %v13477_v26 = vadd.f32 %v3544_v34, %v1406_v35  ;;  %v2985_v8 = vmax.f32 %v2785_v49, 0.0  ;;  %v3773_v37 = vmax.f32 %v13466_v54, 0.0  ;;  %v1422_v49 = vadd.f32 %v12751_v4, %v12524_v39 }
 0x30d   : > { %v3051_v38 = vpack.c.bf16 %v2987_v48, %v2986_v5  ;;  %v3776_v63 = vmax.f32 %v13475_v25, 0.0  ;;  %v1436_v23 = vadd.f32 %v12770_v30, %v12524_v39  ;;  %v1426_v4 = vadd.f32 %v12756_v16, %v12524_v39 }
 0x30e   : > { %17651 = vst [vmem:[#allocation153_spill] sm:$0xff] %v13477_v26  ;;  %v3050_v15 = vpack.c.bf16 %v2985_v8, %v2984_v50  ;;  %v3774_v14 = vmax.f32 %v13477_v26, 0.0 }
 0x30f   : > { %v3868_v53 = vpack.c.bf16 %v3776_v63, %v3775_v42 }
 0x310   : > { %10247 = vmatprep.mubr.bf16.mxu0 %v3050_v15  ;;  %v3867_v28 = vpack.c.bf16 %v3774_v14, %v3773_v37 }
 0x311   : > { %10248 = vmatmul.mubr.bf16.gmra.mrb[252].mxu0 %v3051_v38 }
 0x312   : > { %10303 = vmatprep.mubr.bf16.mxu1 %v3867_v28 }
 0x313   : > { %10304 = vmatmul.mubr.bf16.gmra.mrb[196].mxu1 %v3868_v53 }
 0x314   : > { %v10197_v9 = vpop.f32.mrb[200].mxu0 }
 0x315   : > { %v3197_v27 = vadd.f32 %v10197_v9, %v13412_v62  ;;  %v3188_v47 = vpop.f32.mrb[201].mxu0 }
 0x316   : > { %v3189_v10 = vadd.f32 %v13412_v62, %v3188_v47  ;;  %v10141_v12 = vpop.f32.mrb[160].mxu1  ;;  %v10198_v18 = vpop.f32.mrb[202].mxu0 }
 0x317   : > { %v3549_v1 = vadd.f32 %v3197_v27, %v12763_v22  ;;  %v2806_v17 = vadd.f32 %v13472_v31, %v10141_v12  ;;  %v3200_v2 = vadd.f32 %v10198_v18, %v13412_v62  ;;  %v2797_v35 = vpop.f32.mrb[161].mxu1  ;;  %v3191_v34 = vpop.f32.mrb[203].mxu0 }
 0x318   : > { %v3547_v5 = vadd.f32 %v3189_v10, %v12749_v55  ;;  %v2798_v48 = vadd.f32 %v13472_v31, %v2797_v35  ;;  %v3192_v50 = vadd.f32 %v13412_v62, %v3191_v34  ;;  %v10142_v8 = vpop.f32.mrb[162].mxu1 }
 0x319   : > { %v13497_v22 = vadd.f32 %v3549_v1, %v1432_v45  ;;  %v3550_v38 = vadd.f32 %v3200_v2, %v12768_v29  ;;  %v2809_v63 = vadd.f32 %v13472_v31, %v10142_v8  ;;  %v2800_v15 = vpop.f32.mrb[163].mxu1  ;;  %v2990_v42 = vmax.f32 %v2806_v17, 0.0 }
 0x31a   : > { %v13503_v37 = vadd.f32 %v3547_v5, %v1422_v49  ;;  %v3548_v55 = vadd.f32 %v3192_v50, %v12754_v13  ;;  %v2801_v14 = vadd.f32 %v13472_v31, %v2800_v15  ;;  %v2988_v53 = vmax.f32 %v2798_v48, 0.0 }
 0x31b   : > { %17652 = vst [vmem:[#allocation154_spill] sm:$0xff] %v13497_v22  ;;  %v13507_v28 = vadd.f32 %v3550_v38, %v1436_v23  ;;  %v2991_v30 = vmax.f32 %v2809_v63, 0.0  ;;  %v3779_v13 = vmax.f32 %v13497_v22, 0.0  ;;  %v1452_v5 = vadd.f32 %v12796_v19, %v12524_v39 }
 0x31c   : > { %17653 = vst [vmem:[#allocation155_spill] sm:$0xff] %v13503_v37  ;;  %v13509_v9 = vadd.f32 %v3548_v55, %v1426_v4  ;;  %v2989_v29 = vmax.f32 %v2801_v14, 0.0  ;;  %v3777_v16 = vmax.f32 %v13503_v37, 0.0  ;;  %v1442_v63 = vadd.f32 %v12779_v41, %v12524_v39 }
 0x31d   : > { %17654 = vst [vmem:[#allocation156_spill] sm:$0xff] %v13507_v28  ;;  %v3053_v27 = vpack.c.bf16 %v2991_v30, %v2990_v42  ;;  %v3780_v47 = vmax.f32 %v13507_v28, 0.0  ;;  %v1456_v19 = vadd.f32 %v12801_v59, %v12524_v39  ;;  %v1446_v41 = vadd.f32 %v12784_v46, %v12524_v39 }
 0x31e   : > { %17655 = vst [vmem:[#allocation157_spill] sm:$0xff] %v13509_v9  ;;  %v3052_v10 = vpack.c.bf16 %v2989_v29, %v2988_v53  ;;  %v3778_v12 = vmax.f32 %v13509_v9, 0.0 }
 0x31f   : > { %v3870_v45 = vpack.c.bf16 %v3780_v47, %v3779_v13 }
 0x320   : > { %10251 = vmatprep.mubr.bf16.mxu0 %v3052_v10  ;;  %v3869_v18 = vpack.c.bf16 %v3778_v12, %v3777_v16 }
 0x321   : > { %10252 = vmatmul.mubr.bf16.gmra.mrb[0].mxu0 %v3053_v27 }
 0x322   : > { %10307 = vmatprep.mubr.bf16.mxu1 %v3869_v18 }
 0x323   : > { %10308 = vmatmul.mubr.bf16.gmra.mrb[200].mxu1 %v3870_v45 }
 0x324   : > { %v10201_v1 = vpop.f32.mrb[204].mxu0 }
 0x325   : > { %v3213_v17 = vadd.f32 %v10201_v1, %v13412_v62  ;;  %v3204_v2 = vpop.f32.mrb[205].mxu0 }
 0x326   : > { %v3205_v35 = vadd.f32 %v13412_v62, %v3204_v2  ;;  %v10145_v34 = vpop.f32.mrb[164].mxu1  ;;  %v10202_v49 = vpop.f32.mrb[206].mxu0 }
 0x327   : > { %v3553_v48 = vadd.f32 %v3213_v17, %v12794_v11  ;;  %v2822_v50 = vadd.f32 %v13472_v31, %v10145_v34  ;;  %v3216_v8 = vadd.f32 %v10202_v49, %v13412_v62  ;;  %v2813_v23 = vpop.f32.mrb[165].mxu1  ;;  %v3207_v38 = vpop.f32.mrb[207].mxu0 }
 0x328   : > { %v3551_v15 = vadd.f32 %v3205_v35, %v12777_v40  ;;  %v2814_v4 = vadd.f32 %v13472_v31, %v2813_v23  ;;  %v3208_v55 = vadd.f32 %v13412_v62, %v3207_v38  ;;  %v10146_v14 = vpop.f32.mrb[166].mxu1 }
 0x329   : > { %v13529_v11 = vadd.f32 %v3553_v48, %v1452_v5  ;;  %v3554_v42 = vadd.f32 %v3216_v8, %v12799_v20  ;;  %v2825_v30 = vadd.f32 %v13472_v31, %v10146_v14  ;;  %v2816_v53 = vpop.f32.mrb[167].mxu1  ;;  %v2994_v47 = vmax.f32 %v2822_v50, 0.0 }
 0x32a   : > { %v13535_v29 = vadd.f32 %v3551_v15, %v1442_v63  ;;  %v3552_v40 = vadd.f32 %v3208_v55, %v12782_v43  ;;  %v2817_v27 = vadd.f32 %v13472_v31, %v2816_v53  ;;  %v2992_v16 = vmax.f32 %v2814_v4, 0.0 }
 0x32b   : > { %17656 = vst [vmem:[#allocation158_spill] sm:$0xff] %v13529_v11  ;;  %v13539_v10 = vadd.f32 %v3554_v42, %v1456_v19  ;;  %v2995_v59 = vmax.f32 %v2825_v30, 0.0  ;;  %v3783_v43 = vmax.f32 %v13529_v11, 0.0  ;;  %v1472_v8 = vadd.f32 %v12824_v21, %v12524_v39 }
 0x32c   : > { %17657 = vst [vmem:[#allocation159_spill] sm:$0xff] %v13535_v29  ;;  %v13541_v12 = vadd.f32 %v3552_v40, %v1446_v41  ;;  %v2993_v20 = vmax.f32 %v2817_v27, 0.0  ;;  %v3781_v46 = vmax.f32 %v13535_v29, 0.0  ;;  %v1462_v55 = vadd.f32 %v12810_v36, %v12524_v39 }
 0x32d   : > { %17658 = vst [vmem:[#allocation160_spill] sm:$0xff] %v13539_v10  ;;  %v3055_v13 = vpack.c.bf16 %v2995_v59, %v2994_v47  ;;  %v3784_v18 = vmax.f32 %v13539_v10, 0.0  ;;  %v1476_v21 = vadd.f32 %v12829_v57, %v12524_v39  ;;  %v1466_v36 = vadd.f32 %v12815_v58, %v12524_v39 }
 0x32e   : > { %17659 = vst [vmem:[#allocation161_spill] sm:$0xff] %v13541_v12  ;;  %v3054_v45 = vpack.c.bf16 %v2993_v20, %v2992_v16  ;;  %v3782_v1 = vmax.f32 %v13541_v12, 0.0 }
 0x32f   : > { %v3872_v2 = vpack.c.bf16 %v3784_v18, %v3783_v43 }
 0x330   : > { %10255 = vmatprep.mubr.bf16.mxu0 %v3054_v45  ;;  %v3871_v17 = vpack.c.bf16 %v3782_v1, %v3781_v46 }
 0x331   : > { %10256 = vmatmul.mubr.bf16.gmra.mrb[4].mxu0 %v3055_v13 }
 0x332   : > { %10311 = vmatprep.mubr.bf16.mxu1 %v3871_v17 }
 0x333   : > { %10312 = vmatmul.mubr.bf16.gmra.mrb[204].mxu1 %v3872_v2 }
 0x334   : > { %v10205_v35 = vpop.f32.mrb[208].mxu0 }
 0x335   : > { %v3229_v34 = vadd.f32 %v10205_v35, %v13412_v62  ;;  %v3220_v49 = vpop.f32.mrb[209].mxu0 }
 0x336   : > { %v3221_v5 = vadd.f32 %v13412_v62, %v3220_v49  ;;  %v10149_v48 = vpop.f32.mrb[168].mxu1  ;;  %v10206_v50 = vpop.f32.mrb[210].mxu0 }
 0x337   : > { %v3557_v23 = vadd.f32 %v3229_v34, %v12822_v56  ;;  %v2838_v38 = vadd.f32 %v13472_v31, %v10149_v48  ;;  %v3232_v63 = vadd.f32 %v10206_v50, %v13412_v62  ;;  %v2829_v15 = vpop.f32.mrb[169].mxu1  ;;  %v3223_v4 = vpop.f32.mrb[211].mxu0 }
 0x338   : > { %v3555_v14 = vadd.f32 %v3221_v5, %v12808_v33  ;;  %v2830_v19 = vadd.f32 %v13472_v31, %v2829_v15  ;;  %v3224_v42 = vadd.f32 %v13412_v62, %v3223_v4  ;;  %v10150_v30 = vpop.f32.mrb[170].mxu1  ;;  %v17662_v33 = vld [vmem:[#allocation5_spill] sm:$0xff] }
 0x339   : > { %v13561_v56 = vadd.f32 %v3557_v23, %v1472_v8  ;;  %v3558_v53 = vadd.f32 %v3232_v63, %v12827_v32  ;;  %v2841_v41 = vadd.f32 %v13472_v31, %v10150_v30  ;;  %v2832_v40 = vpop.f32.mrb[171].mxu1  ;;  %v2998_v16 = vmax.f32 %v2838_v38, 0.0 }
 0x33a   : > { %v13567_v27 = vadd.f32 %v3555_v14, %v1462_v55  ;;  %v3556_v47 = vadd.f32 %v3224_v42, %v17662_v33  ;;  %v2833_v59 = vadd.f32 %v13472_v31, %v2832_v40  ;;  %v2996_v13 = vmax.f32 %v2830_v19, 0.0  ;;  %v17665_v14 = vld [vmem:[#allocation7_spill] sm:$0xff]  ;;  %v17666_v42 = vld [vmem:[#allocation6_spill] sm:$0xff] }
 0x33b   : > { %17660 = vst [vmem:[#allocation162_spill] sm:$0xff] %v13561_v56  ;;  %v13571_v20 = vadd.f32 %v3558_v53, %v1476_v21  ;;  %v2999_v57 = vmax.f32 %v2841_v41, 0.0  ;;  %v3787_v17 = vmax.f32 %v13561_v56, 0.0  ;;  %v1492_v23 = vadd.f32 %v12852_v52, %v12524_v39  ;;  %v17667_v52 = vld [vmem:[#allocation11_spill] sm:$0xff] }
 0x33c   : > { %17661 = vst [vmem:[#allocation163_spill] sm:$0xff] %v13567_v27  ;;  %v13573_v18 = vadd.f32 %v3556_v47, %v1466_v36  ;;  %v2997_v32 = vmax.f32 %v2833_v59, 0.0  ;;  %v3785_v58 = vmax.f32 %v13567_v27, 0.0  ;;  %v1482_v19 = vadd.f32 %v17665_v14, %v12524_v39  ;;  %v17669_v36 = vld [vmem:[#allocation10_spill] sm:$0xff] }
 0x33d   : > { %17663 = vst [vmem:[#allocation5_spill] sm:$0xff] %v13571_v20  ;;  %v3057_v45 = vpack.c.bf16 %v2999_v57, %v2998_v16  ;;  %v3788_v46 = vmax.f32 %v13571_v20, 0.0  ;;  %v1496_v40 = vadd.f32 %v17667_v52, %v12524_v39  ;;  %v17670_v16 = vld [vmem:[#allocation9_spill] sm:$0xff] }
 0x33e   : > { %17664 = vst [vmem:[#allocation164_spill] sm:$0xff] %v13573_v18  ;;  %v3056_v1 = vpack.c.bf16 %v2997_v32, %v2996_v13  ;;  %v3786_v43 = vmax.f32 %v13573_v18, 0.0  ;;  %v1486_v57 = vadd.f32 %v17670_v16, %v12524_v39  ;;  %v17672_v32 = vld [vmem:[#allocation8_spill] sm:$0xff] }
 0x33f   : > { %v3874_v35 = vpack.c.bf16 %v3788_v46, %v3787_v17 }
 0x340   : > { %10259 = vmatprep.mubr.bf16.mxu0 %v3056_v1  ;;  %v3873_v2 = vpack.c.bf16 %v3786_v43, %v3785_v58 }
 0x341   : > { %10260 = vmatmul.mubr.bf16.gmra.mrb[8].mxu0 %v3057_v45 }
 0x342   : > { %10315 = vmatprep.mubr.bf16.mxu1 %v3873_v2 }
 0x343   : > { %10316 = vmatmul.mubr.bf16.gmra.mrb[208].mxu1 %v3874_v35 }
 0x344   : > { %v10209_v34 = vpop.f32.mrb[212].mxu0 }
 0x345   : > { %v3245_v49 = vadd.f32 %v10209_v34, %v13412_v62  ;;  %v3236_v5 = vpop.f32.mrb[213].mxu0 }
 0x346   : > { %v3237_v48 = vadd.f32 %v13412_v62, %v3236_v5  ;;  %v10153_v50 = vpop.f32.mrb[172].mxu1  ;;  %v10210_v8 = vpop.f32.mrb[214].mxu0 }
 0x347   : > { %v3561_v38 = vadd.f32 %v3245_v49, %v12850_v60  ;;  %v2854_v63 = vadd.f32 %v13472_v31, %v10153_v50  ;;  %v3248_v15 = vadd.f32 %v10210_v8, %v13412_v62  ;;  %v2845_v4 = vpop.f32.mrb[173].mxu1  ;;  %v3239_v55 = vpop.f32.mrb[215].mxu0 }
 0x348   : > { %v3559_v30 = vadd.f32 %v3237_v48, %v17666_v42  ;;  %v2846_v21 = vadd.f32 %v13472_v31, %v2845_v4  ;;  %v3240_v53 = vadd.f32 %v13412_v62, %v3239_v55  ;;  %v10154_v41 = vpop.f32.mrb[174].mxu1  ;;  %v1512_v42 = vadd.f32 %v12889_v0, %v12524_v39  ;;  %v17678_v0 = vld [vmem:[#allocation18_spill] sm:$0xff] }
 0x349   : > { %v13593_v60 = vadd.f32 %v3561_v38, %v1492_v23  ;;  %v3562_v33 = vadd.f32 %v3248_v15, %v17669_v36  ;;  %v2857_v47 = vadd.f32 %v13472_v31, %v10154_v41  ;;  %v2848_v59 = vpop.f32.mrb[175].mxu1  ;;  %v3002_v1 = vmax.f32 %v2854_v63, 0.0  ;;  %v17676_v36 = vld [vmem:[#allocation13_spill] sm:$0xff] }
 0x34a   : > { %v13599_v13 = vadd.f32 %v3559_v30, %v1482_v19  ;;  %v3560_v45 = vadd.f32 %v3240_v53, %v17672_v32  ;;  %v2849_v46 = vadd.f32 %v13472_v31, %v2848_v59  ;;  %v3000_v17 = vmax.f32 %v2846_v21, 0.0  ;;  %v17675_v30 = vld [vmem:[#allocation16_spill] sm:$0xff] }
 0x34b   : > { %17668 = vst [vmem:[#allocation7_spill] sm:$0xff] %v13593_v60  ;;  %v13603_v58 = vadd.f32 %v3562_v33, %v1496_v40  ;;  %v3003_v43 = vmax.f32 %v2857_v47, 0.0  ;;  %v3791_v8 = vmax.f32 %v13593_v60, 0.0  ;;  %v1502_v33 = vadd.f32 %v17676_v36, %v12524_v39  ;;  %v17677_v47 = vld [vmem:[#allocation12_spill] sm:$0xff] }
 0x34c   : > { %17671 = vst [vmem:[#allocation6_spill] sm:$0xff] %v13599_v13  ;;  %v13605_v2 = vadd.f32 %v3560_v45, %v1486_v57  ;;  %v3001_v35 = vmax.f32 %v2849_v46, 0.0  ;;  %v3789_v48 = vmax.f32 %v13599_v13, 0.0  ;;  %v1516_v45 = vadd.f32 %v17678_v0, %v12524_v39 }
 0x34d   : > { %17673 = vst [vmem:[#allocation11_spill] sm:$0xff] %v13603_v58  ;;  %v3059_v34 = vpack.c.bf16 %v3003_v43, %v3002_v1  ;;  %v3792_v49 = vmax.f32 %v13603_v58, 0.0  ;;  %v17680_v1 = vld [vmem:[#allocation17_spill] sm:$0xff] }
 0x34e   : > { %17674 = vst [vmem:[#allocation10_spill] sm:$0xff] %v13605_v2  ;;  %v3058_v5 = vpack.c.bf16 %v3001_v35, %v3000_v17  ;;  %v3790_v50 = vmax.f32 %v13605_v2, 0.0 }
 0x34f   : > { %v3876_v38 = vpack.c.bf16 %v3792_v49, %v3791_v8 }
 0x350   : > { %10263 = vmatprep.mubr.bf16.mxu0 %v3058_v5  ;;  %v3875_v23 = vpack.c.bf16 %v3790_v50, %v3789_v48  ;;  %v17683_v48 = vld [vmem:[#allocation14_spill] sm:$0xff] }
 0x351   : > { %10264 = vmatmul.mubr.bf16.gmra.mrb[12].mxu0 %v3059_v34  ;;  %v17681_v34 = vld [vmem:[#allocation15_spill] sm:$0xff] }
 0x352   : > { %10319 = vmatprep.mubr.bf16.mxu1 %v3875_v23  ;;  %v1506_v49 = vadd.f32 %v17681_v34, %v12524_v39 }
 0x353   : > { %10320 = vmatmul.mubr.bf16.gmra.mrb[212].mxu1 %v3876_v38 }
 0x354   : > { %v10213_v63 = vpop.f32.mrb[216].mxu0 }
 0x355   : > { %v3261_v15 = vadd.f32 %v10213_v63, %v13412_v62  ;;  %v3252_v4 = vpop.f32.mrb[217].mxu0 }
 0x356   : > { %v3253_v55 = vadd.f32 %v13412_v62, %v3252_v4  ;;  %v10157_v14 = vpop.f32.mrb[176].mxu1  ;;  %v10214_v19 = vpop.f32.mrb[218].mxu0 }
 0x357   : > { %v3565_v21 = vadd.f32 %v3261_v15, %v17675_v30  ;;  %v2870_v53 = vadd.f32 %v13472_v31, %v10157_v14  ;;  %v3264_v41 = vadd.f32 %v10214_v19, %v13412_v62  ;;  %v2861_v52 = vpop.f32.mrb[177].mxu1  ;;  %v3255_v40 = vpop.f32.mrb[219].mxu0 }
 0x358   : > { %v3563_v59 = vadd.f32 %v3253_v55, %v17677_v47  ;;  %v2862_v16 = vadd.f32 %v13472_v31, %v2861_v52  ;;  %v3256_v57 = vadd.f32 %v13412_v62, %v3255_v40  ;;  %v10158_v32 = vpop.f32.mrb[178].mxu1 }
 0x359   : > { %v13625_v46 = vadd.f32 %v3565_v21, %v1512_v42  ;;  %v3566_v43 = vadd.f32 %v3264_v41, %v17680_v1  ;;  %v2873_v17 = vadd.f32 %v13472_v31, %v10158_v32  ;;  %v2864_v35 = vpop.f32.mrb[179].mxu1  ;;  %v3006_v23 = vmax.f32 %v2870_v53, 0.0  ;;  %v11775_v42 = vld [vmem:[%s17249_s5 + $0x40] sm:$0xff]  }
 0x35a   : > { %v13631_v5 = vadd.f32 %v3563_v59, %v1502_v33  ;;  %v3564_v50 = vadd.f32 %v3256_v57, %v17683_v48  ;;  %v2865_v8 = vadd.f32 %v13472_v31, %v2864_v35  ;;  %v3004_v15 = vmax.f32 %v2862_v16, 0.0  ;;  %10395 = vmatprep.subr.bf16.mxu1 %v11775_v42  ;;  %v17686_v32 = vld [vmem:[#allocation24_spill] sm:$0xff] }
 0x35b   : > { %17679 = vst [vmem:[#allocation9_spill] sm:$0xff] %v13625_v46  ;;  %v13635_v38 = vadd.f32 %v3566_v43, %v1516_v45  ;;  %v3007_v63 = vmax.f32 %v2873_v17, 0.0  ;;  %v3795_v53 = vmax.f32 %v13625_v46, 0.0  ;;  %10396 = vmatpush3.bf16.msra.mxu1 %v11775_v42  ;;  %v1532_v0 = vadd.f32 %v17686_v32, %v12524_v39  ;;  %v17687_v45 = vld [vmem:[#allocation23_spill] sm:$0xff]  ;;  %v17692_v42 = vld [vmem:[#allocation25_spill] sm:$0xff] }
 0x35c   : > { %17682 = vst [vmem:[#allocation8_spill] sm:$0xff] %v13631_v5  ;;  %v13637_v4 = vadd.f32 %v3564_v50, %v1506_v49  ;;  %v3005_v55 = vmax.f32 %v2865_v8, 0.0  ;;  %v3793_v21 = vmax.f32 %v13631_v5, 0.0  ;;  %v17688_v49 = vld [vmem:[#allocation20_spill] sm:$0xff]  ;;  %v17689_v50 = vld [vmem:[#allocation19_spill] sm:$0xff] }
 0x35d   : > { %17684 = vst [vmem:[#allocation16_spill] sm:$0xff] %v13635_v38  ;;  %v3061_v14 = vpack.c.bf16 %v3007_v63, %v3006_v23  ;;  %v3796_v19 = vmax.f32 %v13635_v38, 0.0  ;;  %v1522_v48 = vadd.f32 %v17688_v49, %v12524_v39 }
 0x35e   : > { %17685 = vst [vmem:[#allocation13_spill] sm:$0xff] %v13637_v4  ;;  %v3060_v30 = vpack.c.bf16 %v3005_v55, %v3004_v15  ;;  %v3794_v41 = vmax.f32 %v13637_v4, 0.0  ;;  %v17690_v55 = vld [vmem:[#allocation26_spill] sm:$0xff] }
 0x35f   : > { %v3878_v40 = vpack.c.bf16 %v3796_v19, %v3795_v53  ;;  %v17693_v53 = vld [vmem:[#allocation22_spill] sm:$0xff] }
 0x360   : > { %10267 = vmatprep.mubr.bf16.mxu0 %v3060_v30  ;;  %v3877_v52 = vpack.c.bf16 %v3794_v41, %v3793_v21 }
 0x361   : > { %10268 = vmatmul.mubr.bf16.gmra.mrb[16].mxu0 %v3061_v14  ;;  %v1536_v14 = vadd.f32 %v17690_v55, %v12524_v39 }
 0x362   : > { %10323 = vmatprep.mubr.bf16.mxu1 %v3877_v52  ;;  %v1526_v52 = vadd.f32 %v17693_v53, %v12524_v39 }
 0x363   : > { %10324 = vmatmul.mubr.bf16.gmra.mrb[216].mxu1 %v3878_v40 }
 0x364   : > { %v10217_v36 = vpop.f32.mrb[220].mxu0 }
 0x365   : > { %v3277_v33 = vadd.f32 %v10217_v36, %v13412_v62  ;;  %v3268_v47 = vpop.f32.mrb[221].mxu0  ;;  %v17695_v36 = vld [vmem:[#allocation21_spill] sm:$0xff] }
 0x366   : > { %v3269_v59 = vadd.f32 %v13412_v62, %v3268_v47  ;;  %v10161_v16 = vpop.f32.mrb[180].mxu1  ;;  %v10218_v57 = vpop.f32.mrb[222].mxu0 }
 0x367   : > { %v3569_v1 = vadd.f32 %v3277_v33, %v17687_v45  ;;  %v2886_v43 = vadd.f32 %v13472_v31, %v10161_v16  ;;  %v3280_v17 = vadd.f32 %v10218_v57, %v13412_v62  ;;  %v2877_v35 = vpop.f32.mrb[181].mxu1  ;;  %v3271_v34 = vpop.f32.mrb[223].mxu0 }
 0x368   : > { %v3567_v8 = vadd.f32 %v3269_v59, %v17689_v50  ;;  %v2878_v23 = vadd.f32 %v13472_v31, %v2877_v35  ;;  %v3272_v63 = vadd.f32 %v13412_v62, %v3271_v34  ;;  %v10162_v15 = vpop.f32.mrb[182].mxu1 }
 0x369   : > { %v13660_v19 = vadd.f32 %v3569_v1, %v1532_v0  ;;  %v3570_v30 = vadd.f32 %v3280_v17, %v17692_v42  ;;  %v2889_v21 = vadd.f32 %v13472_v31, %v10162_v15  ;;  %v2880_v41 = vpop.f32.mrb[183].mxu1  ;;  %v3010_v59 = vmax.f32 %v2886_v43, 0.0  ;;  %v11776_v1 = vld [vmem:[%s17249_s5 + $0x48] sm:$0xff]  }
 0x36a   : > { %v13666_v40 = vadd.f32 %v3567_v8, %v1522_v48  ;;  %v3568_v33 = vadd.f32 %v3272_v63, %v17695_v36  ;;  %v2881_v47 = vadd.f32 %v13472_v31, %v2880_v41  ;;  %v3008_v32 = vmax.f32 %v2878_v23, 0.0  ;;  %10397 = vmatprep.subr.bf16.mxu1 %v11776_v1  ;;  %v17699_v41 = vld [vmem:[#allocation31_spill] sm:$0xff] }
 0x36b   : > { %17691 = vst [vmem:[#allocation12_spill] sm:$0xff] %v13660_v19  ;;  %v13670_v16 = vadd.f32 %v3570_v30, %v1536_v14  ;;  %v3011_v57 = vmax.f32 %v2889_v21, 0.0  ;;  %v3799_v43 = vmax.f32 %v13660_v19, 0.0  ;;  %10398 = vmatpush3.bf16.msra.mxu1 %v11776_v1  ;;  %v17698_v30 = vld [vmem:[#allocation32_spill] sm:$0xff] }
 0x36c   : > { %17694 = vst [vmem:[#allocation18_spill] sm:$0xff] %v13666_v40  ;;  %v13672_v0 = vadd.f32 %v3568_v33, %v1526_v52  ;;  %v3009_v45 = vmax.f32 %v2881_v47, 0.0  ;;  %v3797_v49 = vmax.f32 %v13666_v40, 0.0  ;;  %v1552_v21 = vadd.f32 %v17698_v30, %v12524_v39 }
 0x36d   : > { %17696 = vst [vmem:[#allocation17_spill] sm:$0xff] %v13670_v16  ;;  %v3063_v17 = vpack.c.bf16 %v3011_v57, %v3010_v59  ;;  %v3800_v35 = vmax.f32 %v13670_v16, 0.0  ;;  %v17700_v59 = vld [vmem:[#allocation28_spill] sm:$0xff] }
 0x36e   : > { %17697 = vst [vmem:[#allocation15_spill] sm:$0xff] %v13672_v0  ;;  %v3062_v34 = vpack.c.bf16 %v3009_v45, %v3008_v32  ;;  %v3798_v48 = vmax.f32 %v13672_v0, 0.0  ;;  %v1542_v57 = vadd.f32 %v17700_v59, %v12524_v39  ;;  %v17701_v32 = vld [vmem:[#allocation27_spill] sm:$0xff] }
 0x36f   : > { %v3880_v8 = vpack.c.bf16 %v3800_v35, %v3799_v43  ;;  %v17704_v43 = vld [vmem:[#allocation33_spill] sm:$0xff] }
 0x370   : > { %10271 = vmatprep.mubr.bf16.mxu0 %v3062_v34  ;;  %v3879_v50 = vpack.c.bf16 %v3798_v48, %v3797_v49  ;;  %v17702_v34 = vld [vmem:[#allocation34_spill] sm:$0xff] }
 0x371   : > { %10272 = vmatmul.mubr.bf16.gmra.mrb[20].mxu0 %v3063_v17  ;;  %v1556_v49 = vadd.f32 %v17702_v34, %v12524_v39 }
 0x372   : > { %10327 = vmatprep.mubr.bf16.mxu1 %v3879_v50 }
 0x373   : > { %10328 = vmatmul.mubr.bf16.gmra.mrb[220].mxu1 %v3880_v8 }
 0x374   : > { %v10221_v23 = vpop.f32.mrb[224].mxu0 }
 0x375   : > { %v3293_v63 = vadd.f32 %v10221_v23, %v13412_v62  ;;  %v3284_v15 = vpop.f32.mrb[225].mxu0 }
 0x376   : > { %v3285_v55 = vadd.f32 %v13412_v62, %v3284_v15  ;;  %v10165_v14 = vpop.f32.mrb[184].mxu1  ;;  %v10222_v42 = vpop.f32.mrb[226].mxu0 }
 0x377   : > { %v3573_v53 = vadd.f32 %v3293_v63, %v17699_v41  ;;  %v2902_v52 = vadd.f32 %v13472_v31, %v10165_v14  ;;  %v3296_v36 = vadd.f32 %v10222_v42, %v13412_v62  ;;  %v2893_v33 = vpop.f32.mrb[185].mxu1  ;;  %v3287_v47 = vpop.f32.mrb[227].mxu0  ;;  %v17705_v63 = vld [vmem:[#allocation30_spill] sm:$0xff] }
 0x378   : > { %v3571_v45 = vadd.f32 %v3285_v55, %v17701_v32  ;;  %v2894_v1 = vadd.f32 %v13472_v31, %v2893_v33  ;;  %v3288_v17 = vadd.f32 %v13412_v62, %v3287_v47  ;;  %v10166_v35 = vpop.f32.mrb[186].mxu1  ;;  %v1546_v15 = vadd.f32 %v17705_v63, %v12524_v39  ;;  %v17707_v55 = vld [vmem:[#allocation29_spill] sm:$0xff]  ;;  %v17710_v63 = vld [vmem:[#allocation40_spill] sm:$0xff] }
 0x379   : > { %v13695_v48 = vadd.f32 %v3573_v53, %v1552_v21  ;;  %v3574_v50 = vadd.f32 %v3296_v36, %v17704_v43  ;;  %v2905_v8 = vadd.f32 %v13472_v31, %v10166_v35  ;;  %v2896_v23 = vpop.f32.mrb[187].mxu1  ;;  %v3014_v41 = vmax.f32 %v2902_v52, 0.0 }
 0x37a   : > { %v13701_v14 = vadd.f32 %v3571_v45, %v1542_v57  ;;  %v3572_v42 = vadd.f32 %v3288_v17, %v17707_v55  ;;  %v2897_v30 = vadd.f32 %v13472_v31, %v2896_v23  ;;  %v3012_v21 = vmax.f32 %v2894_v1, 0.0  ;;  %v17711_v55 = vld [vmem:[#allocation39_spill] sm:$0xff] }
 0x37b   : > { %17703 = vst [vmem:[#allocation14_spill] sm:$0xff] %v13695_v48  ;;  %v13705_v33 = vadd.f32 %v3574_v50, %v1556_v49  ;;  %v3015_v47 = vmax.f32 %v2905_v8, 0.0  ;;  %v3803_v45 = vmax.f32 %v13695_v48, 0.0 }
 0x37c   : > { %17706 = vst [vmem:[#allocation24_spill] sm:$0xff] %v13701_v14  ;;  %v13707_v53 = vadd.f32 %v3572_v42, %v1546_v15  ;;  %v3013_v36 = vmax.f32 %v2897_v30, 0.0  ;;  %v3801_v34 = vmax.f32 %v13701_v14, 0.0  ;;  %v1572_v15 = vadd.f32 %v17710_v63, %v12524_v39  ;;  %v17717_v63 = vld [vmem:[#allocation38_spill] sm:$0xff] }
 0x37d   : > { %17708 = vst [vmem:[#allocation23_spill] sm:$0xff] %v13705_v33  ;;  %v3065_v59 = vpack.c.bf16 %v3015_v47, %v3014_v41  ;;  %v3804_v32 = vmax.f32 %v13705_v33, 0.0 }
 0x37e   : > { %17709 = vst [vmem:[#allocation20_spill] sm:$0xff] %v13707_v53  ;;  %v3064_v35 = vpack.c.bf16 %v3013_v36, %v3012_v21  ;;  %v3802_v57 = vmax.f32 %v13707_v53, 0.0  ;;  %v17712_v36 = vld [vmem:[#allocation36_spill] sm:$0xff] }
 0x37f   : > { %v3882_v52 = vpack.c.bf16 %v3804_v32, %v3803_v45  ;;  %v17713_v32 = vld [vmem:[#allocation35_spill] sm:$0xff] }
 0x380   : > { %10275 = vmatprep.mubr.bf16.mxu0 %v3064_v35  ;;  %v3881_v17 = vpack.c.bf16 %v3802_v57, %v3801_v34 }
 0x381   : > { %10276 = vmatmul.mubr.bf16.gmra.mrb[24].mxu0 %v3065_v59  ;;  %v1562_v59 = vadd.f32 %v17712_v36, %v12524_v39 }
 0x382   : > { %10331 = vmatprep.mubr.bf16.mxu1 %v3881_v17  ;;  %v17714_v17 = vld [vmem:[#allocation42_spill] sm:$0xff] }
 0x383   : > { %10332 = vmatmul.mubr.bf16.gmra.mrb[224].mxu1 %v3882_v52  ;;  %v1576_v52 = vadd.f32 %v17714_v17, %v12524_v39 }
 0x384   : > { %v10225_v1 = vpop.f32.mrb[228].mxu0 }
 0x385   : > { %v3309_v49 = vadd.f32 %v10225_v1, %v13412_v62  ;;  %v3300_v43 = vpop.f32.mrb[229].mxu0 }
 0x386   : > { %v3301_v50 = vadd.f32 %v13412_v62, %v3300_v43  ;;  %v10169_v8 = vpop.f32.mrb[188].mxu1  ;;  %v10226_v23 = vpop.f32.mrb[230].mxu0 }
 0x387   : > { %v3577_v42 = vadd.f32 %v3309_v49, %v17711_v55  ;;  %v2918_v30 = vadd.f32 %v13472_v31, %v10169_v8  ;;  %v3312_v41 = vadd.f32 %v10226_v23, %v13412_v62  ;;  %v2909_v47 = vpop.f32.mrb[189].mxu1  ;;  %v3303_v21 = vpop.f32.mrb[231].mxu0  ;;  %v17716_v49 = vld [vmem:[#allocation41_spill] sm:$0xff]  ;;  %v1566_v55 = vadd.f32 %v17717_v63, %v12524_v39 }
 0x388   : > { %v3575_v35 = vadd.f32 %v3301_v50, %v17713_v32  ;;  %v2910_v34 = vadd.f32 %v13472_v31, %v2909_v47  ;;  %v3304_v57 = vadd.f32 %v13412_v62, %v3303_v21  ;;  %v10170_v45 = vpop.f32.mrb[190].mxu1  ;;  %v17719_v50 = vld [vmem:[#allocation37_spill] sm:$0xff] }
 0x389   : > { %v13727_v1 = vadd.f32 %v3577_v42, %v1572_v15  ;;  %v3578_v43 = vadd.f32 %v3312_v41, %v17716_v49  ;;  %v2921_v8 = vadd.f32 %v13472_v31, %v10170_v45  ;;  %v2912_v23 = vpop.f32.mrb[191].mxu1  ;;  %v3018_v32 = vmax.f32 %v2918_v30, 0.0 }
 0x38a   : > { %v13733_v36 = vadd.f32 %v3575_v35, %v1562_v59  ;;  %v3576_v47 = vadd.f32 %v3304_v57, %v17719_v50  ;;  %v2913_v21 = vadd.f32 %v13472_v31, %v2912_v23  ;;  %v3016_v15 = vmax.f32 %v2910_v34, 0.0  ;;  %v11777_v31 = vld [vmem:[%s17249_s5 + $0x50] sm:$0xff]  }
 0x38b   : > { %17715 = vst [vmem:[#allocation19_spill] sm:$0xff] %v13727_v1  ;;  %v13737_v53 = vadd.f32 %v3578_v43, %v1576_v52  ;;  %v3019_v17 = vmax.f32 %v2921_v8, 0.0  ;;  %v3807_v35 = vmax.f32 %v13727_v1, 0.0  ;;  %10399 = vmatprep.subr.bf16.mxu1 %v11777_v31 }
 0x38c   : > { %17718 = vst [vmem:[#allocation26_spill] sm:$0xff] %v13733_v36  ;;  %v13739_v42 = vadd.f32 %v3576_v47, %v1566_v55  ;;  %v3017_v41 = vmax.f32 %v2913_v21, 0.0  ;;  %v3805_v63 = vmax.f32 %v13733_v36, 0.0  ;;  %10400 = vmatpush3.bf16.msra.mxu1 %v11777_v31  ;;  %v17722_v55 = vld [vmem:[#allocation48_spill] sm:$0xff]  ;;  %v17723_v47 = vld [vmem:[#allocation47_spill] sm:$0xff]  ;;  %v17728_v31 = vld [vmem:[#allocation49_spill] sm:$0xff] }
 0x38d   : > { %17720 = vst [vmem:[#allocation25_spill] sm:$0xff] %v13737_v53  ;;  %v3067_v49 = vpack.c.bf16 %v3019_v17, %v3018_v32  ;;  %v3808_v45 = vmax.f32 %v13737_v53, 0.0  ;;  %v1592_v50 = vadd.f32 %v17722_v55, %v12524_v39  ;;  %v17724_v17 = vld [vmem:[#allocation44_spill] sm:$0xff] }
 0x38e   : > { %17721 = vst [vmem:[#allocation22_spill] sm:$0xff] %v13739_v42  ;;  %v3066_v33 = vpack.c.bf16 %v3017_v41, %v3016_v15  ;;  %v3806_v59 = vmax.f32 %v13739_v42, 0.0  ;;  %v1582_v15 = vadd.f32 %v17724_v17, %v12524_v39  ;;  %v17725_v41 = vld [vmem:[#allocation43_spill] sm:$0xff]  ;;  %v17777_v42 = vld [vmem:[#allocation78_spill] sm:$0xff] }
 0x38f   : > { %v3884_v34 = vpack.c.bf16 %v3808_v45, %v3807_v35 }
 0x390   : > { %10279 = vmatprep.mubr.bf16.mxu0 %v3066_v33  ;;  %v3883_v30 = vpack.c.bf16 %v3806_v59, %v3805_v63  ;;  %v17726_v63 = vld [vmem:[#allocation50_spill] sm:$0xff] }
 0x391   : > { %10280 = vmatmul.mubr.bf16.gmra.mrb[28].mxu0 %v3067_v49  ;;  %v1596_v59 = vadd.f32 %v17726_v63, %v12524_v39 }
 0x392   : > { %10335 = vmatprep.mubr.bf16.mxu1 %v3883_v30 }
 0x393   : > { %10336 = vmatmul.mubr.bf16.gmra.mrb[228].mxu1 %v3884_v34  ;;  %v17729_v34 = vld [vmem:[#allocation46_spill] sm:$0xff] }
 0x394   : > { %v10229_v57 = vpop.f32.mrb[232].mxu0 }
 0x395   : > { %v3325_v52 = vadd.f32 %v10229_v57, %v13412_v62  ;;  %v3316_v43 = vpop.f32.mrb[233].mxu0  ;;  %v1586_v57 = vadd.f32 %v17729_v34, %v12524_v39  ;;  %v17735_v34 = vld [vmem:[#allocation55_spill] sm:$0xff] }
 0x396   : > { %v3317_v8 = vadd.f32 %v13412_v62, %v3316_v43  ;;  %v10230_v23 = vpop.f32.mrb[234].mxu0  ;;  %v17731_v43 = vld [vmem:[#allocation45_spill] sm:$0xff] }
 0x397   : > { %v3581_v21 = vadd.f32 %v3325_v52, %v17723_v47  ;;  %v3328_v33 = vadd.f32 %v10230_v23, %v13412_v62  ;;  %v3319_v32 = vpop.f32.mrb[235].mxu0 }
 0x398   : > { %v3579_v49 = vadd.f32 %v3317_v8, %v17725_v41  ;;  %v3320_v45 = vadd.f32 %v13412_v62, %v3319_v32 }
 0x399   : > { %v13760_v35 = vadd.f32 %v3581_v21, %v1592_v50  ;;  %v3582_v30 = vadd.f32 %v3328_v33, %v17728_v31  ;;  %v11778_v33 = vld [vmem:[%s17249_s5 + $0x58] sm:$0xff]   ;;  %v17734_v31 = vld [vmem:[#allocation56_spill] sm:$0xff] }
 0x39a   : > { %v13765_v52 = vadd.f32 %v3579_v49, %v1582_v15  ;;  %v3580_v23 = vadd.f32 %v3320_v45, %v17731_v43  ;;  %10401 = vmatprep.subr.bf16.mxu1 %v11778_v33 }
 0x39b   : > { %17727 = vst [vmem:[#allocation21_spill] sm:$0xff] %v13760_v35  ;;  %v13768_v55 = vadd.f32 %v3582_v30, %v1596_v59  ;;  %v3811_v21 = vmax.f32 %v13760_v35, 0.0  ;;  %10402 = vmatpush3.bf16.msra.mxu1 %v11778_v33  ;;  %v1612_v30 = vadd.f32 %v17734_v31, %v12524_v39  ;;  %v17741_v31 = vld [vmem:[#allocation54_spill] sm:$0xff] }
 0x39c   : > { %17730 = vst [vmem:[#allocation32_spill] sm:$0xff] %v13765_v52  ;;  %v13770_v47 = vadd.f32 %v3580_v23, %v1586_v57  ;;  %v3809_v32 = vmax.f32 %v13765_v52, 0.0 }
 0x39d   : > { %17732 = vst [vmem:[#allocation31_spill] sm:$0xff] %v13768_v55  ;;  %v3812_v8 = vmax.f32 %v13768_v55, 0.0 }
 0x39e   : > { %17733 = vst [vmem:[#allocation28_spill] sm:$0xff] %v13770_v47  ;;  %v3810_v50 = vmax.f32 %v13770_v47, 0.0 }
 0x39f   : > { %v3886_v15 = vpack.c.bf16 %v3812_v8, %v3811_v21  ;;  %v17736_v8 = vld [vmem:[#allocation52_spill] sm:$0xff] }
 0x3a0   : > { %v3885_v17 = vpack.c.bf16 %v3810_v50, %v3809_v32  ;;  %v1602_v32 = vadd.f32 %v17736_v8, %v12524_v39  ;;  %v17737_v50 = vld [vmem:[#allocation51_spill] sm:$0xff] }
 0x3a2   : > { %10339 = vmatprep.mubr.bf16.mxu1 %v3885_v17  ;;  %v17738_v17 = vld [vmem:[#allocation58_spill] sm:$0xff] }
 0x3a3   : > { %10340 = vmatmul.mubr.bf16.gmra.mrb[232].mxu1 %v3886_v15  ;;  %v1616_v15 = vadd.f32 %v17738_v17, %v12524_v39 }
 0x3a4   : > { %v10233_v41 = vpop.f32.mrb[236].mxu0 }
 0x3a5   : > { %v3341_v49 = vadd.f32 %v10233_v41, %v13412_v62  ;;  %v3332_v45 = vpop.f32.mrb[237].mxu0 }
 0x3a6   : > { %v3333_v63 = vadd.f32 %v13412_v62, %v3332_v45  ;;  %v10234_v59 = vpop.f32.mrb[238].mxu0  ;;  %v17740_v45 = vld [vmem:[#allocation57_spill] sm:$0xff] }
 0x3a7   : > { %v3585_v57 = vadd.f32 %v3341_v49, %v17735_v34  ;;  %v3344_v43 = vadd.f32 %v10234_v59, %v13412_v62  ;;  %v3335_v23 = vpop.f32.mrb[239].mxu0  ;;  %v1606_v49 = vadd.f32 %v17741_v31, %v12524_v39  ;;  %v17743_v59 = vld [vmem:[#allocation53_spill] sm:$0xff]  ;;  %v17747_v31 = vld [vmem:[#allocation63_spill] sm:$0xff] }
 0x3a8   : > { %v3583_v21 = vadd.f32 %v3333_v63, %v17737_v50  ;;  %v3336_v33 = vadd.f32 %v13412_v62, %v3335_v23 }
 0x3a9   : > { %v13791_v41 = vadd.f32 %v3585_v57, %v1612_v30  ;;  %v3586_v47 = vadd.f32 %v3344_v43, %v17740_v45 }
 0x3aa   : > { %v13796_v34 = vadd.f32 %v3583_v21, %v1602_v32  ;;  %v3584_v55 = vadd.f32 %v3336_v33, %v17743_v59 }
 0x3ab   : > { %17739 = vst [vmem:[#allocation27_spill] sm:$0xff] %v13791_v41  ;;  %v13799_v52 = vadd.f32 %v3586_v47, %v1616_v15  ;;  %v3815_v57 = vmax.f32 %v13791_v41, 0.0  ;;  %v17746_v15 = vld [vmem:[#allocation64_spill] sm:$0xff] }
 0x3ac   : > { %17742 = vst [vmem:[#allocation34_spill] sm:$0xff] %v13796_v34  ;;  %v13801_v8 = vadd.f32 %v3584_v55, %v1606_v49  ;;  %v3813_v23 = vmax.f32 %v13796_v34, 0.0  ;;  %v13811_v55 = vld [vmem:[%s17250_s6] ss:$0 sm:$0xff]  ;;  %v1632_v45 = vadd.f32 %v17746_v15, %v12524_v39  ;;  %v17753_v15 = vld [vmem:[#allocation62_spill] sm:$0xff] }
 0x3ad   : > { %17744 = vst [vmem:[#allocation33_spill] sm:$0xff] %v13799_v52  ;;  %v3816_v63 = vmax.f32 %v13799_v52, 0.0 }
 0x3ae   : > { %17745 = vst [vmem:[#allocation30_spill] sm:$0xff] %v13801_v8  ;;  %v3814_v30 = vmax.f32 %v13801_v8, 0.0  ;;  %v17752_v8 = vld [vmem:[#allocation65_spill] sm:$0xff] }
 0x3af   : > { %v3888_v50 = vpack.c.bf16 %v3816_v63, %v3815_v57 }
 0x3b0   : > { %v3887_v43 = vpack.c.bf16 %v3814_v30, %v3813_v23  ;;  %v17748_v23 = vld [vmem:[#allocation60_spill] sm:$0xff]  ;;  %v17749_v30 = vld [vmem:[#allocation59_spill] sm:$0xff] }
 0x3b2   : > { %10343 = vmatprep.mubr.bf16.mxu1 %v3887_v43 }
 0x3b3   : > { %10344 = vmatmul.mubr.bf16.gmra.mrb[236].mxu1 %v3888_v50  ;;  %v17750_v50 = vld [vmem:[#allocation66_spill] sm:$0xff] }
 0x3b4   : > { %v10237_v32 = vpop.f32.mrb[240].mxu0 }
 0x3b5   : > { %v3357_v21 = vadd.f32 %v10237_v32, %v13412_v62  ;;  %v3348_v33 = vpop.f32.mrb[241].mxu0  ;;  %v1622_v62 = vadd.f32 %v17748_v23, %v12524_v39  ;;  %v1636_v32 = vadd.f32 %v17750_v50, %v12524_v39  ;;  %v17758_v50 = vld [vmem:[#allocation72_spill] sm:$0xff] }
 0x3b6   : > { %v3349_v47 = vadd.f32 %v13811_v55, %v3348_v33  ;;  %v10238_v17 = vpop.f32.mrb[242].mxu0 }
 0x3b7   : > { %v3589_v49 = vadd.f32 %v3357_v21, %v17747_v31  ;;  %v3360_v59 = vadd.f32 %v13811_v55, %v10238_v17  ;;  %v3351_v63 = vpop.f32.mrb[243].mxu0  ;;  %v1626_v21 = vadd.f32 %v17753_v15, %v12524_v39  ;;  %v17755_v17 = vld [vmem:[#allocation61_spill] sm:$0xff]  ;;  %v17759_v15 = vld [vmem:[#allocation71_spill] sm:$0xff] }
 0x3b8   : > { %v3587_v57 = vadd.f32 %v3349_v47, %v17749_v30  ;;  %v3352_v43 = vadd.f32 %v13811_v55, %v3351_v63 }
 0x3b9   : > { %v13824_v33 = vadd.f32 %v3589_v49, %v1632_v45  ;;  %v3590_v52 = vadd.f32 %v3360_v59, %v17752_v8  ;;  %v11779_v8 = vld [vmem:[%s17249_s5 + $0x60] sm:$0xff]  }
 0x3ba   : > { %v13829_v31 = vadd.f32 %v3587_v57, %v1622_v62  ;;  %v3588_v34 = vadd.f32 %v3352_v43, %v17755_v17  ;;  %10403 = vmatprep.subr.bf16.mxu1 %v11779_v8 }
 0x3bb   : > { %17751 = vst [vmem:[#allocation29_spill] sm:$0xff] %v13824_v33  ;;  %v13832_v41 = vadd.f32 %v3590_v52, %v1636_v32  ;;  %v3819_v49 = vmax.f32 %v13824_v33, 0.0  ;;  %10404 = vmatpush3.bf16.msra.mxu1 %v11779_v8  ;;  %v1652_v32 = vadd.f32 %v17758_v50, %v12524_v39  ;;  %v17765_v50 = vld [vmem:[#allocation70_spill] sm:$0xff] }
 0x3bc   : > { %17754 = vst [vmem:[#allocation40_spill] sm:$0xff] %v13829_v31  ;;  %v13834_v23 = vadd.f32 %v3588_v34, %v1626_v21  ;;  %v3817_v63 = vmax.f32 %v13829_v31, 0.0 }
 0x3bd   : > { %17756 = vst [vmem:[#allocation39_spill] sm:$0xff] %v13832_v41  ;;  %v3820_v47 = vmax.f32 %v13832_v41, 0.0 }
 0x3be   : > { %17757 = vst [vmem:[#allocation36_spill] sm:$0xff] %v13834_v23  ;;  %v3818_v45 = vmax.f32 %v13834_v23, 0.0  ;;  %v17764_v23 = vld [vmem:[#allocation73_spill] sm:$0xff] }
 0x3bf   : > { %v3890_v62 = vpack.c.bf16 %v3820_v47, %v3819_v49  ;;  %v17760_v47 = vld [vmem:[#allocation68_spill] sm:$0xff]  ;;  %v17761_v49 = vld [vmem:[#allocation67_spill] sm:$0xff] }
 0x3c0   : > { %v3889_v59 = vpack.c.bf16 %v3818_v45, %v3817_v63  ;;  %v1642_v45 = vadd.f32 %v17760_v47, %v12524_v39 }
 0x3c2   : > { %10347 = vmatprep.mubr.bf16.mxu1 %v3889_v59 }
 0x3c3   : > { %10348 = vmatmul.mubr.bf16.gmra.mrb[240].mxu1 %v3890_v62  ;;  %v17762_v62 = vld [vmem:[#allocation74_spill] sm:$0xff] }
 0x3c4   : > { %v10241_v52 = vpop.f32.mrb[244].mxu0 }
 0x3c5   : > { %v3373_v34 = vadd.f32 %v13811_v55, %v10241_v52  ;;  %v3364_v30 = vpop.f32.mrb[245].mxu0  ;;  %v1656_v52 = vadd.f32 %v17762_v62, %v12524_v39 }
 0x3c6   : > { %v3365_v57 = vadd.f32 %v13811_v55, %v3364_v30  ;;  %v10242_v43 = vpop.f32.mrb[246].mxu0 }
 0x3c7   : > { %v3593_v21 = vadd.f32 %v3373_v34, %v17759_v15  ;;  %v3376_v17 = vadd.f32 %v13811_v55, %v10242_v43  ;;  %v3367_v63 = vpop.f32.mrb[247].mxu0  ;;  %v1646_v34 = vadd.f32 %v17765_v50, %v12524_v39  ;;  %v17767_v43 = vld [vmem:[#allocation69_spill] sm:$0xff]  ;;  %v17770_v50 = vld [vmem:[#allocation80_spill] sm:$0xff] }
 0x3c8   : > { %v3591_v8 = vadd.f32 %v3365_v57, %v17761_v49  ;;  %v3368_v59 = vadd.f32 %v13811_v55, %v3367_v63 }
 0x3c9   : > { %v13855_v30 = vadd.f32 %v3593_v21, %v1652_v32  ;;  %v3594_v41 = vadd.f32 %v3376_v17, %v17764_v23  ;;  %v11780_v23 = vld [vmem:[%s17249_s5 + $0x68] sm:$0xff]  }
 0x3ca   : > { %v13860_v15 = vadd.f32 %v3591_v8, %v1642_v45  ;;  %v3592_v31 = vadd.f32 %v3368_v59, %v17767_v43  ;;  %10405 = vmatprep.subr.bf16.mxu1 %v11780_v23  ;;  %v17771_v43 = vld [vmem:[#allocation79_spill] sm:$0xff] }
 0x3cb   : > { %17763 = vst [vmem:[#allocation35_spill] sm:$0xff] %v13855_v30  ;;  %v13863_v33 = vadd.f32 %v3594_v41, %v1656_v52  ;;  %v3823_v21 = vmax.f32 %v13855_v30, 0.0  ;;  %10406 = vmatpush3.bf16.msra.mxu1 %v11780_v23 }
 0x3cc   : > { %17766 = vst [vmem:[#allocation42_spill] sm:$0xff] %v13860_v15  ;;  %v13865_v47 = vadd.f32 %v3592_v31, %v1646_v34  ;;  %v3821_v63 = vmax.f32 %v13860_v15, 0.0  ;;  %v13877_v31 = vld [vmem:[%s17248_s4 + $0x1] ss:$0 sm:$0xff]  ;;  %v1672_v34 = vadd.f32 %v17770_v50, %v12524_v39  ;;  %v17774_v50 = vld [vmem:[#allocation82_spill] sm:$0xff] }
 0x3cd   : > { %17768 = vst [vmem:[#allocation41_spill] sm:$0xff] %v13863_v33  ;;  %v3824_v57 = vmax.f32 %v13863_v33, 0.0  ;;  %v1676_v30 = vadd.f32 %v17774_v50, %v12524_v39 }
 0x3ce   : > { %17769 = vst [vmem:[#allocation38_spill] sm:$0xff] %v13865_v47  ;;  %v3822_v32 = vmax.f32 %v13865_v47, 0.0 }
 0x3cf   : > { %v3892_v45 = vpack.c.bf16 %v3824_v57, %v3823_v21 }
 0x3d0   : > { %v3891_v17 = vpack.c.bf16 %v3822_v32, %v3821_v63 }
 0x3d2   : > { %10351 = vmatprep.mubr.bf16.mxu1 %v3891_v17  ;;  %v17772_v17 = vld [vmem:[#allocation76_spill] sm:$0xff] }
 0x3d3   : > { %10352 = vmatmul.mubr.bf16.gmra.mrb[244].mxu1 %v3892_v45  ;;  %v1662_v45 = vadd.f32 %v17772_v17, %v12524_v39  ;;  %v1666_v17 = vadd.f32 %v17777_v42, %v12524_v39 }
 0x3d4   : > { %v10245_v41 = vpop.f32.mrb[248].mxu0 }
 0x3d5   : > { %v3389_v49 = vadd.f32 %v13811_v55, %v10245_v41  ;;  %v3380_v8 = vpop.f32.mrb[249].mxu0  ;;  %v17773_v41 = vld [vmem:[#allocation75_spill] sm:$0xff] }
 0x3d6   : > { %v3381_v59 = vadd.f32 %v13811_v55, %v3380_v8  ;;  %v10246_v62 = vpop.f32.mrb[250].mxu0  ;;  %v10301_v52 = vpop.f32.mrb[192].mxu1 }
 0x3d7   : > { %v3597_v57 = vadd.f32 %v3389_v49, %v17771_v43  ;;  %v3392_v63 = vadd.f32 %v13811_v55, %v10246_v62  ;;  %v4010_v32 = vadd.f32 %v10301_v52, %v13877_v31  ;;  %v3383_v21 = vpop.f32.mrb[251].mxu0  ;;  %v4001_v23 = vpop.f32.mrb[193].mxu1  ;;  %v17776_v62 = vld [vmem:[#allocation81_spill] sm:$0xff] }
 0x3d8   : > { %v3595_v47 = vadd.f32 %v3381_v59, %v17773_v41  ;;  %v3384_v8 = vadd.f32 %v13811_v55, %v3383_v21  ;;  %v4002_v33 = vadd.f32 %v13877_v31, %v4001_v23  ;;  %v10302_v15 = vpop.f32.mrb[194].mxu1  ;;  %v17779_v59 = vld [vmem:[#allocation77_spill] sm:$0xff] }
 0x3d9   : > { %v13893_v49 = vadd.f32 %v3597_v57, %v1672_v34  ;;  %v3598_v43 = vadd.f32 %v3392_v63, %v17776_v62  ;;  %v4013_v52 = vadd.f32 %v10302_v15, %v13877_v31  ;;  %v4004_v35 = vpop.f32.mrb[195].mxu1  ;;  %v4386_v36 = vmax.f32 %v4010_v32, 0.0 }
 0x3da   : > { %v13899_v53 = vadd.f32 %v3595_v47, %v1662_v45  ;;  %v3596_v21 = vadd.f32 %v3384_v8, %v17779_v59  ;;  %v4005_v23 = vadd.f32 %v13877_v31, %v4004_v35  ;;  %v4384_v57 = vmax.f32 %v4002_v33, 0.0  ;;  %v17782_v59 = vld [vmem:[#allocation88_spill] sm:$0xff] }
 0x3db   : > { %17775 = vst [vmem:[#allocation37_spill] sm:$0xff] %v13893_v49  ;;  %v13903_v41 = vadd.f32 %v3598_v43, %v1676_v30  ;;  %v4387_v50 = vmax.f32 %v4013_v52, 0.0  ;;  %v3827_v35 = vmax.f32 %v13893_v49, 0.0  ;;  %v17789_v49 = vld [vmem:[#allocation86_spill] sm:$0xff] }
 0x3dc   : > { %17778 = vst [vmem:[#allocation48_spill] sm:$0xff] %v13899_v53  ;;  %v13905_v34 = vadd.f32 %v3596_v21, %v1666_v17  ;;  %v4385_v63 = vmax.f32 %v4005_v23, 0.0  ;;  %v3825_v42 = vmax.f32 %v13899_v53, 0.0  ;;  %v1692_v21 = vadd.f32 %v17782_v59, %v12524_v39  ;;  %v17783_v23 = vld [vmem:[#allocation87_spill] sm:$0xff]  ;;  %v17786_v59 = vld [vmem:[#allocation90_spill] sm:$0xff] }
 0x3dd   : > { %17780 = vst [vmem:[#allocation47_spill] sm:$0xff] %v13903_v41  ;;  %v13907_v62 = vpack.c.bf16 %v4387_v50, %v4386_v36  ;;  %v3828_v15 = vmax.f32 %v13903_v41, 0.0  ;;  %v1696_v41 = vadd.f32 %v17786_v59, %v12524_v39 }
 0x3de   : > { %17781 = vst [vmem:[#allocation44_spill] sm:$0xff] %v13905_v34  ;;  %v3826_v47 = vmax.f32 %v13905_v34, 0.0  ;;  %v13912_v45 = vpack.c.bf16 %v4385_v63, %v4384_v57 }
 0x3df   : > { %v3894_v8 = vpack.c.bf16 %v3828_v15, %v3827_v35 }
 0x3e0   : > { %v3893_v30 = vpack.c.bf16 %v3826_v47, %v3825_v42  ;;  %v17784_v47 = vld [vmem:[#allocation84_spill] sm:$0xff] }
 0x3e1   : > { %v1682_v35 = vadd.f32 %v17784_v47, %v12524_v39  ;;  %v1686_v47 = vadd.f32 %v17789_v49, %v12524_v39 }
 0x3e2   : > { %10355 = vmatprep.mubr.bf16.mxu1 %v3893_v30  ;;  %v17785_v30 = vld [vmem:[#allocation83_spill] sm:$0xff] }
 0x3e3   : > { %10356 = vmatmul.mubr.bf16.gmra.mrb[248].mxu1 %v3894_v8 }
 0x3e4   : > { %v10249_v32 = vpop.f32.mrb[252].mxu0 }
 0x3e5   : > { %v3405_v33 = vadd.f32 %v13811_v55, %v10249_v32  ;;  %v3396_v43 = vpop.f32.mrb[253].mxu0 }
 0x3e6   : > { %v3397_v36 = vadd.f32 %v13811_v55, %v3396_v43  ;;  %v10250_v52 = vpop.f32.mrb[254].mxu0  ;;  %v10305_v17 = vpop.f32.mrb[196].mxu1 }
 0x3e7   : > { %v3601_v50 = vadd.f32 %v3405_v33, %v17783_v23  ;;  %v3408_v57 = vadd.f32 %v13811_v55, %v10250_v52  ;;  %v4026_v63 = vadd.f32 %v10305_v17, %v13877_v31  ;;  %v3399_v15 = vpop.f32.mrb[255].mxu0  ;;  %v4017_v42 = vpop.f32.mrb[197].mxu1  ;;  %v17788_v52 = vld [vmem:[#allocation89_spill] sm:$0xff] }
 0x3e8   : > { %v3599_v8 = vadd.f32 %v3397_v36, %v17785_v30  ;;  %v3400_v32 = vadd.f32 %v13811_v55, %v3399_v15  ;;  %v4018_v43 = vadd.f32 %v13877_v31, %v4017_v42  ;;  %v10306_v34 = vpop.f32.mrb[198].mxu1  ;;  %v17791_v36 = vld [vmem:[#allocation85_spill] sm:$0xff] }
 0x3e9   : > { %v13929_v33 = vadd.f32 %v3601_v50, %v1692_v21  ;;  %v3602_v23 = vadd.f32 %v3408_v57, %v17788_v52  ;;  %v4029_v17 = vadd.f32 %v10306_v34, %v13877_v31  ;;  %v4020_v53 = vpop.f32.mrb[199].mxu1  ;;  %v4390_v14 = vmax.f32 %v4026_v63, 0.0 }
 0x3ea   : > { %v13935_v1 = vadd.f32 %v3599_v8, %v1682_v35  ;;  %v3600_v15 = vadd.f32 %v3400_v32, %v17791_v36  ;;  %v4021_v42 = vadd.f32 %v13877_v31, %v4020_v53  ;;  %v4388_v50 = vmax.f32 %v4018_v43, 0.0 }
 0x3eb   : > { %17787 = vst [vmem:[#allocation43_spill] sm:$0xff] %v13929_v33  ;;  %v13939_v30 = vadd.f32 %v3602_v23, %v1696_v41  ;;  %v4391_v59 = vmax.f32 %v4029_v17, 0.0  ;;  %v3831_v53 = vmax.f32 %v13929_v33, 0.0  ;;  %v11781_v41 = vld [vmem:[%s17249_s5 + $0x70] sm:$0xff]   ;;  %v11782_v17 = vld [vmem:[%s17249_s5 + $0x78] sm:$0xff]  }
 0x3ec   : > { %17790 = vst [vmem:[#allocation50_spill] sm:$0xff] %v13935_v1  ;;  %v13941_v21 = vadd.f32 %v3600_v15, %v1686_v47  ;;  %v4389_v57 = vmax.f32 %v4021_v42, 0.0  ;;  %v3829_v49 = vmax.f32 %v13935_v1, 0.0  ;;  %10407 = vmatprep.subr.bf16.mxu1 %v11781_v41  ;;  %v17794_v42 = vld [vmem:[#allocation95_spill] sm:$0xff] }
 0x3ed   : > { %17792 = vst [vmem:[#allocation49_spill] sm:$0xff] %v13939_v30  ;;  %v3832_v34 = vmax.f32 %v13939_v30, 0.0  ;;  %v13944_v52 = vpack.c.bf16 %v4391_v59, %v4390_v14  ;;  %10408 = vmatpush3.bf16.msra.mxu1 %v11781_v41  ;;  %v1712_v59 = vadd.f32 %v17794_v42, %v12524_v39  ;;  %v17796_v41 = vld [vmem:[#allocation91_spill] sm:$0xff] }
 0x3ee   : > { %17793 = vst [vmem:[#allocation46_spill] sm:$0xff] %v13941_v21  ;;  %v3830_v35 = vmax.f32 %v13941_v21, 0.0  ;;  %v13948_v8 = vpack.c.bf16 %v4389_v57, %v4388_v50  ;;  %v17795_v50 = vld [vmem:[#allocation96_spill] sm:$0xff]  ;;  %10409 = vmatprep.subr.bf16.mxu1 %v11782_v17 }
 0x3ef   : > { %v3896_v32 = vpack.c.bf16 %v3832_v34, %v3831_v53 }
 0x3f0   : > { %v3895_v63 = vpack.c.bf16 %v3830_v35, %v3829_v49 }
 0x3f1   : > { %10410 = vmatpush3.bf16.msra.mxu1 %v11782_v17 }
 0x3f2   : > { %10359 = vmatprep.mubr.bf16.mxu1 %v3895_v63  ;;  %v1702_v63 = vadd.f32 %v17796_v41, %v12524_v39 }
 0x3f3   : > { %10360 = vmatmul.mubr.bf16.gmra.mrb[252].mxu1 %v3896_v32  ;;  %v17797_v32 = vld [vmem:[#allocation92_spill] sm:$0xff] }
 0x3f4   : > { %v10253_v14 = vpop.f32.mrb[0].mxu0 }
 0x3f5   : > { %v3421_v43 = vadd.f32 %v13811_v55, %v10253_v14  ;;  %v3412_v23 = vpop.f32.mrb[1].mxu0 }
 0x3f6   : > { %v3413_v47 = vadd.f32 %v13811_v55, %v3412_v23  ;;  %v10254_v36 = vpop.f32.mrb[2].mxu0  ;;  %v10309_v15 = vpop.f32.mrb[200].mxu1 }
 0x3f7   : > { %v3605_v57 = vadd.f32 %v3421_v43, %v17795_v50  ;;  %v3424_v34 = vadd.f32 %v13811_v55, %v10254_v36  ;;  %v4042_v49 = vadd.f32 %v10309_v15, %v13877_v31  ;;  %v3415_v35 = vpop.f32.mrb[3].mxu0  ;;  %v4033_v53 = vpop.f32.mrb[201].mxu1  ;;  %v17799_v43 = vld [vmem:[#allocation97_spill] sm:$0xff]  ;;  %v17800_v15 = vld [vmem:[#allocation98_spill] sm:$0xff] }
 0x3f8   : > { %v3603_v14 = vadd.f32 %v3413_v47, %v17797_v32  ;;  %v3416_v23 = vadd.f32 %v13811_v55, %v3415_v35  ;;  %v4034_v21 = vadd.f32 %v13877_v31, %v4033_v53  ;;  %v10310_v30 = vpop.f32.mrb[202].mxu1  ;;  %v1716_v36 = vadd.f32 %v17799_v43, %v12524_v39  ;;  %v17802_v47 = vld [vmem:[#allocation93_spill] sm:$0xff]  ;;  %v17803_v35 = vld [vmem:[#allocation94_spill] sm:$0xff] }
 0x3f9   : > { %v13969_v42 = vadd.f32 %v3605_v57, %v1712_v59  ;;  %v3606_v50 = vadd.f32 %v3424_v34, %v17800_v15  ;;  %v4045_v1 = vadd.f32 %v10310_v30, %v13877_v31  ;;  %v4036_v33 = vpop.f32.mrb[203].mxu1  ;;  %v1706_v41 = vadd.f32 %v17802_v47, %v12524_v39 }
 0x3fa   : > { %v13975_v48 = vadd.f32 %v3603_v14, %v1702_v63  ;;  %v3604_v32 = vadd.f32 %v3416_v23, %v17803_v35  ;;  %v4037_v53 = vadd.f32 %v13877_v31, %v4036_v33  ;;  %v4394_v59 = vmax.f32 %v4042_v49, 0.0 }
 0x3fb   : > { %17798 = vst [vmem:[#allocation45_spill] sm:$0xff] %v13969_v42  ;;  %v13981_v17 = vadd.f32 %v3606_v50, %v1716_v36  ;;  %v4395_v57 = vmax.f32 %v4045_v1, 0.0  ;;  %v4392_v43 = vmax.f32 %v4034_v21, 0.0  ;;  %v3835_v33 = vmax.f32 %v13969_v42, 0.0 }
 0x3fc   : > { %17801 = vst [vmem:[#allocation56_spill] sm:$0xff] %v13975_v48  ;;  %v13983_v0 = vadd.f32 %v3604_v32, %v1706_v41  ;;  %v4393_v34 = vmax.f32 %v4037_v53, 0.0  ;;  %v3833_v63 = vmax.f32 %v13975_v48, 0.0  ;;  %v17806_v32 = vld [vmem:[#allocation103_spill] sm:$0xff] }
 0x3fd   : > { %17804 = vst [vmem:[#allocation55_spill] sm:$0xff] %v13981_v17  ;;  %v3836_v30 = vmax.f32 %v13981_v17, 0.0  ;;  %v13986_v15 = vpack.c.bf16 %v4395_v57, %v4394_v59  ;;  %v1732_v53 = vadd.f32 %v17806_v32, %v12524_v39  ;;  %v17807_v59 = vld [vmem:[#allocation104_spill] sm:$0xff] }
 0x3fe   : > { %17805 = vst [vmem:[#allocation52_spill] sm:$0xff] %v13983_v0  ;;  %v3834_v14 = vmax.f32 %v13983_v0, 0.0  ;;  %v13990_v47 = vpack.c.bf16 %v4393_v34, %v4392_v43 }
 0x3ff   : > { %v3898_v36 = vpack.c.bf16 %v3836_v30, %v3835_v33 }
 0x400   : > { %v3897_v23 = vpack.c.bf16 %v3834_v14, %v3833_v63  ;;  %v17808_v14 = vld [vmem:[#allocation99_spill] sm:$0xff] }
 0x401   : > { %v1722_v33 = vadd.f32 %v17808_v14, %v12524_v39  ;;  %v17814_v14 = vld [vmem:[#allocation101_spill] sm:$0xff] }
 0x402   : > { %10363 = vmatprep.mubr.bf16.mxu1 %v3897_v23  ;;  %v17809_v23 = vld [vmem:[#allocation100_spill] sm:$0xff] }
 0x403   : > { %10364 = vmatmul.mubr.bf16.gmra.mrb[96].mxu1 %v3898_v36 }
 0x404   : > { %v10257_v1 = vpop.f32.mrb[4].mxu0 }
 0x405   : > { %v3437_v21 = vadd.f32 %v13811_v55, %v10257_v1  ;;  %v3428_v49 = vpop.f32.mrb[5].mxu0 }
 0x406   : > { %v3429_v50 = vadd.f32 %v13811_v55, %v3428_v49  ;;  %v10258_v41 = vpop.f32.mrb[6].mxu0  ;;  %v10313_v35 = vpop.f32.mrb[204].mxu1 }
 0x407   : > { %v3609_v57 = vadd.f32 %v3437_v21, %v17807_v59  ;;  %v3440_v43 = vadd.f32 %v13811_v55, %v10258_v41  ;;  %v4058_v34 = vadd.f32 %v10313_v35, %v13877_v31  ;;  %v3431_v30 = vpop.f32.mrb[7].mxu0  ;;  %v4049_v63 = vpop.f32.mrb[205].mxu1  ;;  %v17811_v21 = vld [vmem:[#allocation105_spill] sm:$0xff]  ;;  %v17812_v41 = vld [vmem:[#allocation106_spill] sm:$0xff] }
 0x408   : > { %v3607_v36 = vadd.f32 %v3429_v50, %v17809_v23  ;;  %v3432_v1 = vadd.f32 %v13811_v55, %v3431_v30  ;;  %v4050_v49 = vadd.f32 %v13877_v31, %v4049_v63  ;;  %v10314_v0 = vpop.f32.mrb[206].mxu1  ;;  %v1736_v32 = vadd.f32 %v17811_v21, %v12524_v39  ;;  %v17815_v23 = vld [vmem:[#allocation102_spill] sm:$0xff] }
 0x409   : > { %v14005_v17 = vadd.f32 %v3609_v57, %v1732_v53  ;;  %v3610_v59 = vadd.f32 %v3440_v43, %v17812_v41  ;;  %v4061_v35 = vadd.f32 %v10314_v0, %v13877_v31  ;;  %v4052_v48 = vpop.f32.mrb[207].mxu1  ;;  %v1726_v50 = vadd.f32 %v17814_v14, %v12524_v39 }
 0x40a   : > { %v14011_v42 = vadd.f32 %v3607_v36, %v1722_v33  ;;  %v3608_v30 = vadd.f32 %v3432_v1, %v17815_v23  ;;  %v4053_v63 = vadd.f32 %v13877_v31, %v4052_v48  ;;  %v4398_v53 = vmax.f32 %v4058_v34, 0.0 }
 0x40b   : > { %17810 = vst [vmem:[#allocation51_spill] sm:$0xff] %v14005_v17  ;;  %v14017_v16 = vadd.f32 %v3610_v59, %v1736_v32  ;;  %v4399_v57 = vmax.f32 %v4061_v35, 0.0  ;;  %v4396_v21 = vmax.f32 %v4050_v49, 0.0  ;;  %v3839_v48 = vmax.f32 %v14005_v17, 0.0 }
 0x40c   : > { %17813 = vst [vmem:[#allocation58_spill] sm:$0xff] %v14011_v42  ;;  %v14019_v40 = vadd.f32 %v3608_v30, %v1726_v50  ;;  %v4397_v43 = vmax.f32 %v4053_v63, 0.0  ;;  %v3837_v33 = vmax.f32 %v14011_v42, 0.0  ;;  %v1752_v30 = vadd.f32 %v13217_v7, %v12524_v39  ;;  %v17818_v63 = vld [vmem:[#allocation111_spill] sm:$0xff]  ;;  %v17822_v7 = vld [vmem:[#allocation112_spill] sm:$0xff] }
 0x40d   : > { %17816 = vst [vmem:[#allocation57_spill] sm:$0xff] %v14017_v16  ;;  %v3840_v0 = vmax.f32 %v14017_v16, 0.0  ;;  %v14022_v41 = vpack.c.bf16 %v4399_v57, %v4398_v53 }
 0x40e   : > { %17817 = vst [vmem:[#allocation54_spill] sm:$0xff] %v14019_v40  ;;  %v3838_v36 = vmax.f32 %v14019_v40, 0.0  ;;  %v14026_v14 = vpack.c.bf16 %v4397_v43, %v4396_v21 }
 0x40f   : > { %v3900_v32 = vpack.c.bf16 %v3840_v0, %v3839_v48  ;;  %v17820_v48 = vld [vmem:[#allocation108_spill] sm:$0xff] }
 0x410   : > { %v3899_v1 = vpack.c.bf16 %v3838_v36, %v3837_v33  ;;  %v17819_v33 = vld [vmem:[#allocation107_spill] sm:$0xff] }
 0x411   : > { %v1742_v36 = vadd.f32 %v17819_v33, %v12524_v39  ;;  %v17825_v33 = vld [vmem:[#allocation109_spill] sm:$0xff] }
 0x412   : > { %10367 = vmatprep.mubr.bf16.mxu1 %v3899_v1 }
 0x413   : > { %10368 = vmatmul.mubr.bf16.gmra.mrb[100].mxu1 %v3900_v32 }
 0x414   : > { %v10261_v34 = vpop.f32.mrb[8].mxu0 }
 0x415   : > { %v3453_v49 = vadd.f32 %v13811_v55, %v10261_v34  ;;  %v3444_v59 = vpop.f32.mrb[9].mxu0 }
 0x416   : > { %v3445_v35 = vadd.f32 %v13811_v55, %v3444_v59  ;;  %v10262_v50 = vpop.f32.mrb[10].mxu0  ;;  %v10317_v23 = vpop.f32.mrb[208].mxu1 }
 0x417   : > { %v3613_v53 = vadd.f32 %v3453_v49, %v17818_v63  ;;  %v3456_v57 = vadd.f32 %v13811_v55, %v10262_v50  ;;  %v4074_v21 = vadd.f32 %v10317_v23, %v13877_v31  ;;  %v3447_v43 = vpop.f32.mrb[11].mxu0  ;;  %v4065_v0 = vpop.f32.mrb[209].mxu1  ;;  %v1756_v49 = vadd.f32 %v17822_v7, %v12524_v39  ;;  %v17823_v50 = vld [vmem:[#allocation113_spill] sm:$0xff] }
 0x418   : > { %v3611_v1 = vadd.f32 %v3445_v35, %v17820_v48  ;;  %v3448_v32 = vadd.f32 %v13811_v55, %v3447_v43  ;;  %v4066_v34 = vadd.f32 %v13877_v31, %v4065_v0  ;;  %v10318_v59 = vpop.f32.mrb[210].mxu1  ;;  %v1746_v35 = vadd.f32 %v17825_v33, %v12524_v39  ;;  %v17826_v48 = vld [vmem:[#allocation110_spill] sm:$0xff] }
 0x419   : > { %v14041_v40 = vadd.f32 %v3613_v53, %v1752_v30  ;;  %v3614_v63 = vadd.f32 %v3456_v57, %v17823_v50  ;;  %v4077_v23 = vadd.f32 %v10318_v59, %v13877_v31  ;;  %v4068_v16 = vpop.f32.mrb[211].mxu1  ;;  %v4402_v30 = vmax.f32 %v4074_v21, 0.0 }
 0x41a   : > { %v14047_v42 = vadd.f32 %v3611_v1, %v1742_v36  ;;  %v3612_v43 = vadd.f32 %v3448_v32, %v17826_v48  ;;  %v4069_v0 = vadd.f32 %v13877_v31, %v4068_v16  ;;  %v4400_v7 = vmax.f32 %v4066_v34, 0.0 }
 0x41b   : > { %17821 = vst [vmem:[#allocation53_spill] sm:$0xff] %v14041_v40  ;;  %v14053_v17 = vadd.f32 %v3614_v63, %v1756_v49  ;;  %v4403_v53 = vmax.f32 %v4077_v23, 0.0  ;;  %v3843_v16 = vmax.f32 %v14041_v40, 0.0 }
 0x41c   : > { %17824 = vst [vmem:[#allocation64_spill] sm:$0xff] %v14047_v42  ;;  %v14055_v19 = vadd.f32 %v3612_v43, %v1746_v35  ;;  %v4401_v57 = vmax.f32 %v4069_v0, 0.0  ;;  %v3841_v36 = vmax.f32 %v14047_v42, 0.0  ;;  %v17829_v43 = vld [vmem:[#allocation118_spill] sm:$0xff] }
 0x41d   : > { %17827 = vst [vmem:[#allocation63_spill] sm:$0xff] %v14053_v17  ;;  %v3844_v59 = vmax.f32 %v14053_v17, 0.0  ;;  %v14058_v50 = vpack.c.bf16 %v4403_v53, %v4402_v30  ;;  %v1772_v0 = vadd.f32 %v17829_v43, %v12524_v39  ;;  %v17830_v30 = vld [vmem:[#allocation119_spill] sm:$0xff] }
 0x41e   : > { %17828 = vst [vmem:[#allocation60_spill] sm:$0xff] %v14055_v19  ;;  %v3842_v1 = vmax.f32 %v14055_v19, 0.0  ;;  %v14062_v33 = vpack.c.bf16 %v4401_v57, %v4400_v7 }
 0x41f   : > { %v3902_v49 = vpack.c.bf16 %v3844_v59, %v3843_v16 }
 0x420   : > { %v3901_v32 = vpack.c.bf16 %v3842_v1, %v3841_v36  ;;  %v17831_v1 = vld [vmem:[#allocation114_spill] sm:$0xff] }
 0x421   : > { %v1762_v16 = vadd.f32 %v17831_v1, %v12524_v39  ;;  %v17837_v1 = vld [vmem:[#allocation116_spill] sm:$0xff] }
 0x422   : > { %10371 = vmatprep.mubr.bf16.mxu1 %v3901_v32  ;;  %v17832_v32 = vld [vmem:[#allocation115_spill] sm:$0xff] }
 0x423   : > { %10372 = vmatmul.mubr.bf16.gmra.mrb[104].mxu1 %v3902_v49 }
 0x424   : > { %v10265_v21 = vpop.f32.mrb[12].mxu0 }
 0x425   : > { %v3469_v34 = vadd.f32 %v13811_v55, %v10265_v21  ;;  %v3460_v63 = vpop.f32.mrb[13].mxu0 }
 0x426   : > { %v3461_v23 = vadd.f32 %v13811_v55, %v3460_v63  ;;  %v10266_v35 = vpop.f32.mrb[14].mxu0  ;;  %v10321_v48 = vpop.f32.mrb[212].mxu1 }
 0x427   : > { %v3617_v53 = vadd.f32 %v3469_v34, %v17830_v30  ;;  %v3472_v7 = vadd.f32 %v13811_v55, %v10266_v35  ;;  %v4090_v57 = vadd.f32 %v10321_v48, %v13877_v31  ;;  %v3463_v59 = vpop.f32.mrb[15].mxu0  ;;  %v4081_v36 = vpop.f32.mrb[213].mxu1  ;;  %v17834_v34 = vld [vmem:[#allocation120_spill] sm:$0xff]  ;;  %v17835_v35 = vld [vmem:[#allocation121_spill] sm:$0xff] }
 0x428   : > { %v3615_v49 = vadd.f32 %v3461_v23, %v17832_v32  ;;  %v3464_v21 = vadd.f32 %v13811_v55, %v3463_v59  ;;  %v4082_v63 = vadd.f32 %v13877_v31, %v4081_v36  ;;  %v10322_v19 = vpop.f32.mrb[214].mxu1  ;;  %v1776_v43 = vadd.f32 %v17834_v34, %v12524_v39  ;;  %v17838_v32 = vld [vmem:[#allocation117_spill] sm:$0xff] }
 0x429   : > { %v14077_v17 = vadd.f32 %v3617_v53, %v1772_v0  ;;  %v3618_v30 = vadd.f32 %v3472_v7, %v17835_v35  ;;  %v4093_v48 = vadd.f32 %v10322_v19, %v13877_v31  ;;  %v4084_v42 = vpop.f32.mrb[215].mxu1  ;;  %v1766_v23 = vadd.f32 %v17837_v1, %v12524_v39 }
 0x42a   : > { %v14083_v40 = vadd.f32 %v3615_v49, %v1762_v16  ;;  %v3616_v59 = vadd.f32 %v3464_v21, %v17838_v32  ;;  %v4085_v36 = vadd.f32 %v13877_v31, %v4084_v42  ;;  %v4406_v0 = vmax.f32 %v4090_v57, 0.0 }
 0x42b   : > { %17833 = vst [vmem:[#allocation59_spill] sm:$0xff] %v14077_v17  ;;  %v14089_v4 = vadd.f32 %v3618_v30, %v1776_v43  ;;  %v4407_v53 = vmax.f32 %v4093_v48, 0.0  ;;  %v4404_v34 = vmax.f32 %v4082_v63, 0.0  ;;  %v3847_v42 = vmax.f32 %v14077_v17, 0.0 }
 0x42c   : > { %17836 = vst [vmem:[#allocation66_spill] sm:$0xff] %v14083_v40  ;;  %v14091_v38 = vadd.f32 %v3616_v59, %v1766_v23  ;;  %v4405_v7 = vmax.f32 %v4085_v36, 0.0  ;;  %v3845_v16 = vmax.f32 %v14083_v40, 0.0  ;;  %v17841_v59 = vld [vmem:[#allocation127_spill] sm:$0xff] }
 0x42d   : > { %17839 = vst [vmem:[#allocation65_spill] sm:$0xff] %v14089_v4  ;;  %v3848_v19 = vmax.f32 %v14089_v4, 0.0  ;;  %v14094_v35 = vpack.c.bf16 %v4407_v53, %v4406_v0  ;;  %v1792_v36 = vadd.f32 %v17841_v59, %v12524_v39  ;;  %v17842_v0 = vld [vmem:[#allocation126_spill] sm:$0xff]  ;;  %v17845_v59 = vld [vmem:[#allocation129_spill] sm:$0xff] }
 0x42e   : > { %17840 = vst [vmem:[#allocation62_spill] sm:$0xff] %v14091_v38  ;;  %v3846_v49 = vmax.f32 %v14091_v38, 0.0  ;;  %v14098_v1 = vpack.c.bf16 %v4405_v7, %v4404_v34  ;;  %v1796_v4 = vadd.f32 %v17845_v59, %v12524_v39 }
 0x42f   : > { %v3904_v43 = vpack.c.bf16 %v3848_v19, %v3847_v42 }
 0x430   : > { %v3903_v21 = vpack.c.bf16 %v3846_v49, %v3845_v16  ;;  %v17843_v49 = vld [vmem:[#allocation123_spill] sm:$0xff] }
 0x431   : > { %v1782_v42 = vadd.f32 %v17843_v49, %v12524_v39  ;;  %v11783_v49 = vld [vmem:[%s17247_s3 + $0x80] sm:$0xff]  }
 0x432   : > { %10375 = vmatprep.mubr.bf16.mxu1 %v3903_v21  ;;  %v17844_v21 = vld [vmem:[#allocation122_spill] sm:$0xff]  ;;  %10507 = vmatprep.subr.bf16.mxu0 %v11783_v49 }
 0x433   : > { %10376 = vmatmul.mubr.bf16.gmra.mrb[108].mxu1 %v3904_v43  ;;  %10508 = vmatpush3.bf16.msra.mxu0 %v11783_v49 }
 0x434   : > { %v10269_v57 = vpop.f32.mrb[16].mxu0 }
 0x435   : > { %v3485_v63 = vadd.f32 %v13811_v55, %v10269_v57  ;;  %v3476_v30 = vpop.f32.mrb[17].mxu0 }
 0x436   : > { %v3477_v48 = vadd.f32 %v13811_v55, %v3476_v30  ;;  %v10270_v23 = vpop.f32.mrb[18].mxu0  ;;  %v10325_v32 = vpop.f32.mrb[216].mxu1 }
 0x437   : > { %v3621_v53 = vadd.f32 %v3485_v63, %v17842_v0  ;;  %v3488_v34 = vadd.f32 %v13811_v55, %v10270_v23  ;;  %v4106_v7 = vadd.f32 %v10325_v32, %v13877_v31  ;;  %v3479_v19 = vpop.f32.mrb[19].mxu0  ;;  %v4097_v16 = vpop.f32.mrb[217].mxu1  ;;  %v17847_v23 = vld [vmem:[#allocation128_spill] sm:$0xff] }
 0x438   : > { %v3619_v43 = vadd.f32 %v3477_v48, %v17844_v21  ;;  %v3480_v57 = vadd.f32 %v13811_v55, %v3479_v19  ;;  %v4098_v30 = vadd.f32 %v13877_v31, %v4097_v16  ;;  %v10326_v38 = vpop.f32.mrb[218].mxu1  ;;  %v17848_v48 = vld [vmem:[#allocation125_spill] sm:$0xff]  ;;  %v17850_v16 = vld [vmem:[#allocation124_spill] sm:$0xff] }
 0x439   : > { %v14115_v63 = vadd.f32 %v3621_v53, %v1792_v36  ;;  %v3622_v0 = vadd.f32 %v3488_v34, %v17847_v23  ;;  %v4109_v32 = vadd.f32 %v10326_v38, %v13877_v31  ;;  %v4100_v40 = vpop.f32.mrb[219].mxu1  ;;  %v1786_v19 = vadd.f32 %v17848_v48, %v12524_v39 }
 0x43a   : > { %v14124_v21 = vadd.f32 %v3619_v43, %v1782_v42  ;;  %v3620_v17 = vadd.f32 %v3480_v57, %v17850_v16  ;;  %v4101_v59 = vadd.f32 %v13877_v31, %v4100_v40  ;;  %v4410_v53 = vmax.f32 %v4106_v7, 0.0 }
 0x43b   : > { %17846 = vst [vmem:[#allocation61_spill] sm:$0xff] %v14115_v63  ;;  %v14128_v36 = vadd.f32 %v3622_v0, %v1796_v4  ;;  %v4411_v34 = vmax.f32 %v4109_v32, 0.0  ;;  %v4408_v23 = vmax.f32 %v4098_v30, 0.0  ;;  %v3851_v4 = vmax.f32 %v14115_v63, 0.0 }
 0x43c   : > { %17849 = vst [vmem:[#allocation72_spill] sm:$0xff] %v14124_v21  ;;  %v14130_v38 = vadd.f32 %v3620_v17, %v1786_v19  ;;  %v4409_v5 = vmax.f32 %v4101_v59, 0.0  ;;  %v3849_v42 = vmax.f32 %v14124_v21, 0.0  ;;  %v17853_v19 = vld [vmem:[#allocation135_spill] sm:$0xff]  ;;  %v17854_v59 = vld [vmem:[#allocation134_spill] sm:$0xff]  ;;  %v17860_v21 = vld [vmem:[#allocation133_spill] sm:$0xff] }
 0x43d   : > { %17851 = vst [vmem:[#allocation71_spill] sm:$0xff] %v14128_v36  ;;  %v3852_v46 = vmax.f32 %v14128_v36, 0.0  ;;  %v14133_v2 = vpack.c.bf16 %v4411_v34, %v4410_v53  ;;  %v1812_v16 = vadd.f32 %v17853_v19, %v12524_v39  ;;  %v17857_v19 = vld [vmem:[#allocation137_spill] sm:$0xff] }
 0x43e   : > { %17852 = vst [vmem:[#allocation68_spill] sm:$0xff] %v14130_v38  ;;  %v3850_v43 = vmax.f32 %v14130_v38, 0.0  ;;  %v14137_v57 = vpack.c.bf16 %v4409_v5, %v4408_v23  ;;  %v1816_v38 = vadd.f32 %v17857_v19, %v12524_v39 }
 0x43f   : > { %v3906_v7 = vpack.c.bf16 %v3852_v46, %v3851_v4  ;;  %v17856_v4 = vld [vmem:[#allocation130_spill] sm:$0xff] }
 0x440   : > { %v3905_v40 = vpack.c.bf16 %v3850_v43, %v3849_v42  ;;  %v17855_v42 = vld [vmem:[#allocation131_spill] sm:$0xff] }
 0x441   : > { %v1802_v43 = vadd.f32 %v17855_v42, %v12524_v39  ;;  %v1806_v42 = vadd.f32 %v17860_v21, %v12524_v39 }
 0x442   : > { %10379 = vmatprep.mubr.bf16.mxu1 %v3905_v40 }
 0x443   : > { %10380 = vmatmul.mubr.bf16.gmra.mrb[112].mxu1 %v3906_v7 }
 0x444   : > { %v10273_v17 = vpop.f32.mrb[20].mxu0 }
 0x445   : > { %v3501_v30 = vadd.f32 %v13811_v55, %v10273_v17  ;;  %v3492_v0 = vpop.f32.mrb[21].mxu0 }
 0x446   : > { %v3493_v32 = vadd.f32 %v13811_v55, %v3492_v0  ;;  %v10274_v49 = vpop.f32.mrb[22].mxu0  ;;  %v10329_v48 = vpop.f32.mrb[220].mxu1 }
 0x447   : > { %v3625_v5 = vadd.f32 %v3501_v30, %v17854_v59  ;;  %v3504_v53 = vadd.f32 %v13811_v55, %v10274_v49  ;;  %v4122_v34 = vadd.f32 %v10329_v48, %v13877_v31  ;;  %v3495_v46 = vpop.f32.mrb[23].mxu0  ;;  %v4113_v23 = vpop.f32.mrb[221].mxu1  ;;  %v17859_v49 = vld [vmem:[#allocation136_spill] sm:$0xff] }
 0x448   : > { %v3623_v40 = vadd.f32 %v3493_v32, %v17856_v4  ;;  %v3496_v7 = vadd.f32 %v13811_v55, %v3495_v46  ;;  %v4114_v17 = vadd.f32 %v13877_v31, %v4113_v23  ;;  %v10330_v0 = vpop.f32.mrb[222].mxu1  ;;  %v17862_v32 = vld [vmem:[#allocation132_spill] sm:$0xff] }
 0x449   : > { %v14154_v30 = vadd.f32 %v3625_v5, %v1812_v16  ;;  %v3626_v59 = vadd.f32 %v3504_v53, %v17859_v49  ;;  %v4125_v48 = vadd.f32 %v10330_v0, %v13877_v31  ;;  %v4116_v36 = vpop.f32.mrb[223].mxu1  ;;  %v4414_v58 = vmax.f32 %v4122_v34, 0.0  ;;  %v11784_v0 = vld [vmem:[%s17247_s3 + $0x88] sm:$0xff]  }
 0x44a   : > { %v14160_v63 = vadd.f32 %v3623_v40, %v1802_v43  ;;  %v3624_v46 = vadd.f32 %v3496_v7, %v17862_v32  ;;  %v4117_v23 = vadd.f32 %v13877_v31, %v4116_v36  ;;  %v4412_v5 = vmax.f32 %v4114_v17, 0.0  ;;  %10509 = vmatprep.subr.bf16.mxu0 %v11784_v0 }
 0x44b   : > { %17858 = vst [vmem:[#allocation67_spill] sm:$0xff] %v14154_v30  ;;  %v14164_v4 = vadd.f32 %v3626_v59, %v1816_v38  ;;  %v4415_v19 = vmax.f32 %v4125_v48, 0.0  ;;  %v3855_v34 = vmax.f32 %v14154_v30, 0.0  ;;  %10510 = vmatpush3.bf16.msra.mxu0 %v11784_v0  ;;  %v17872_v30 = vld [vmem:[#allocation141_spill] sm:$0xff] }
 0x44c   : > { %17861 = vst [vmem:[#allocation74_spill] sm:$0xff] %v14160_v63  ;;  %v14166_v16 = vadd.f32 %v3624_v46, %v1806_v42  ;;  %v4413_v53 = vmax.f32 %v4117_v23, 0.0  ;;  %v3853_v40 = vmax.f32 %v14160_v63, 0.0  ;;  %v17865_v46 = vld [vmem:[#allocation143_spill] sm:$0xff] }
 0x44d   : > { %17863 = vst [vmem:[#allocation73_spill] sm:$0xff] %v14164_v4  ;;  %v3856_v21 = vmax.f32 %v14164_v4, 0.0  ;;  %v14172_v43 = vpack.c.bf16 %v4415_v19, %v4414_v58  ;;  %v1832_v23 = vadd.f32 %v17865_v46, %v12524_v39  ;;  %v17866_v19 = vld [vmem:[#allocation142_spill] sm:$0xff]  ;;  %v17869_v46 = vld [vmem:[#allocation145_spill] sm:$0xff] }
 0x44e   : > { %17864 = vst [vmem:[#allocation70_spill] sm:$0xff] %v14166_v16  ;;  %v3854_v36 = vmax.f32 %v14166_v16, 0.0  ;;  %v14176_v38 = vpack.c.bf16 %v4413_v53, %v4412_v5  ;;  %v1836_v4 = vadd.f32 %v17869_v46, %v12524_v39 }
 0x44f   : > { %v3908_v17 = vpack.c.bf16 %v3856_v21, %v3855_v34 }
 0x450   : > { %v3907_v7 = vpack.c.bf16 %v3854_v36, %v3853_v40  ;;  %v17867_v36 = vld [vmem:[#allocation139_spill] sm:$0xff] }
 0x451   : > { %v1822_v34 = vadd.f32 %v17867_v36, %v12524_v39  ;;  %v1826_v36 = vadd.f32 %v17872_v30, %v12524_v39 }
 0x452   : > { %10383 = vmatprep.mubr.bf16.mxu1 %v3907_v7  ;;  %v17868_v7 = vld [vmem:[#allocation138_spill] sm:$0xff] }
 0x453   : > { %10384 = vmatmul.mubr.bf16.gmra.mrb[116].mxu1 %v3908_v17 }
 0x454   : > { %v10277_v49 = vpop.f32.mrb[24].mxu0 }
 0x455   : > { %v3517_v59 = vadd.f32 %v13811_v55, %v10277_v49  ;;  %v3508_v48 = vpop.f32.mrb[25].mxu0 }
 0x456   : > { %v3509_v58 = vadd.f32 %v13811_v55, %v3508_v48  ;;  %v10278_v42 = vpop.f32.mrb[26].mxu0  ;;  %v10333_v32 = vpop.f32.mrb[224].mxu1 }
 0x457   : > { %v3629_v5 = vadd.f32 %v3517_v59, %v17866_v19  ;;  %v3520_v53 = vadd.f32 %v13811_v55, %v10278_v42  ;;  %v4138_v0 = vadd.f32 %v10333_v32, %v13877_v31  ;;  %v3511_v21 = vpop.f32.mrb[27].mxu0  ;;  %v4129_v40 = vpop.f32.mrb[225].mxu1  ;;  %v17871_v42 = vld [vmem:[#allocation144_spill] sm:$0xff] }
 0x458   : > { %v3627_v17 = vadd.f32 %v3509_v58, %v17868_v7  ;;  %v3512_v49 = vadd.f32 %v13811_v55, %v3511_v21  ;;  %v4130_v48 = vadd.f32 %v13877_v31, %v4129_v40  ;;  %v10334_v16 = vpop.f32.mrb[226].mxu1  ;;  %v17874_v58 = vld [vmem:[#allocation140_spill] sm:$0xff] }
 0x459   : > { %v14193_v59 = vadd.f32 %v3629_v5, %v1832_v23  ;;  %v3630_v19 = vadd.f32 %v3520_v53, %v17871_v42  ;;  %v4141_v32 = vadd.f32 %v10334_v16, %v13877_v31  ;;  %v4132_v63 = vpop.f32.mrb[227].mxu1  ;;  %v4418_v60 = vmax.f32 %v4138_v0, 0.0 }
 0x45a   : > { %v14199_v13 = vadd.f32 %v3627_v17, %v1822_v34  ;;  %v3628_v21 = vadd.f32 %v3512_v49, %v17874_v58  ;;  %v4133_v40 = vadd.f32 %v13877_v31, %v4132_v63  ;;  %v4416_v5 = vmax.f32 %v4130_v48, 0.0 }
 0x45b   : > { %17870 = vst [vmem:[#allocation69_spill] sm:$0xff] %v14193_v59  ;;  %v14203_v7 = vadd.f32 %v3630_v19, %v1836_v4  ;;  %v4419_v46 = vmax.f32 %v4141_v32, 0.0  ;;  %v3859_v63 = vmax.f32 %v14193_v59, 0.0  ;;  %v1852_v58 = vadd.f32 %v13384_v51, %v12524_v39  ;;  %v17880_v51 = vld [vmem:[#allocation152_spill] sm:$0xff] }
 0x45c   : > { %17873 = vst [vmem:[#allocation80_spill] sm:$0xff] %v14199_v13  ;;  %v14205_v23 = vadd.f32 %v3628_v21, %v1826_v36  ;;  %v4417_v53 = vmax.f32 %v4133_v40, 0.0  ;;  %v3857_v30 = vmax.f32 %v14199_v13, 0.0  ;;  %v17877_v21 = vld [vmem:[#allocation150_spill] sm:$0xff] }
 0x45d   : > { %17875 = vst [vmem:[#allocation79_spill] sm:$0xff] %v14203_v7  ;;  %v3860_v16 = vmax.f32 %v14203_v7, 0.0  ;;  %v14208_v42 = vpack.c.bf16 %v4419_v46, %v4418_v60 }
 0x45e   : > { %17876 = vst [vmem:[#allocation76_spill] sm:$0xff] %v14205_v23  ;;  %v3858_v34 = vmax.f32 %v14205_v23, 0.0  ;;  %v14212_v17 = vpack.c.bf16 %v4417_v53, %v4416_v5  ;;  %v1856_v23 = vadd.f32 %v17880_v51, %v12524_v39 }
 0x45f   : > { %v3910_v49 = vpack.c.bf16 %v3860_v16, %v3859_v63  ;;  %v17879_v63 = vld [vmem:[#allocation146_spill] sm:$0xff] }
 0x460   : > { %v3909_v4 = vpack.c.bf16 %v3858_v34, %v3857_v30  ;;  %v17878_v30 = vld [vmem:[#allocation147_spill] sm:$0xff] }
 0x461   : > { %v1842_v34 = vadd.f32 %v17878_v30, %v12524_v39  ;;  %v11785_v30 = vld [vmem:[%s17247_s3 + $0x90] sm:$0xff]  }
 0x462   : > { %10387 = vmatprep.mubr.bf16.mxu1 %v3909_v4  ;;  %10511 = vmatprep.subr.bf16.mxu0 %v11785_v30 }
 0x463   : > { %10388 = vmatmul.mubr.bf16.gmra.mrb[120].mxu1 %v3910_v49  ;;  %10512 = vmatpush3.bf16.msra.mxu0 %v11785_v30 }
 0x464   : > { %v10281_v0 = vpop.f32.mrb[28].mxu0 }
 0x465   : > { %v3533_v48 = vadd.f32 %v13811_v55, %v10281_v0  ;;  %v3524_v19 = vpop.f32.mrb[29].mxu0 }
 0x466   : > { %v3525_v32 = vadd.f32 %v13811_v55, %v3524_v19  ;;  %v10282_v60 = vpop.f32.mrb[30].mxu0  ;;  %v10337_v36 = vpop.f32.mrb[228].mxu1 }
 0x467   : > { %v3633_v40 = vadd.f32 %v3533_v48, %v17877_v21  ;;  %v3536_v46 = vadd.f32 %v13811_v55, %v10282_v60  ;;  %v4154_v5 = vadd.f32 %v10337_v36, %v13877_v31  ;;  %v3527_v53 = vpop.f32.mrb[31].mxu0  ;;  %v4145_v16 = vpop.f32.mrb[229].mxu1  ;;  %v17882_v60 = vld [vmem:[#allocation151_spill] sm:$0xff] }
 0x468   : > { %v3631_v4 = vadd.f32 %v3525_v32, %v17879_v63  ;;  %v3528_v49 = vadd.f32 %v13811_v55, %v3527_v53  ;;  %v4146_v0 = vadd.f32 %v13877_v31, %v4145_v16  ;;  %v10338_v19 = vpop.f32.mrb[230].mxu1  ;;  %v17883_v32 = vld [vmem:[#allocation149_spill] sm:$0xff]  ;;  %v17885_v16 = vld [vmem:[#allocation148_spill] sm:$0xff] }
 0x469   : > { %v14229_v48 = vadd.f32 %v3633_v40, %v1852_v58  ;;  %v3634_v21 = vadd.f32 %v3536_v46, %v17882_v60  ;;  %v4157_v36 = vadd.f32 %v10338_v19, %v13877_v31  ;;  %v4148_v7 = vpop.f32.mrb[231].mxu1  ;;  %v1846_v55 = vadd.f32 %v17883_v32, %v12524_v39 }
 0x46a   : > { %v14238_v53 = vadd.f32 %v3631_v4, %v1842_v34  ;;  %v3632_v63 = vadd.f32 %v3528_v49, %v17885_v16  ;;  %v4149_v51 = vadd.f32 %v13877_v31, %v4148_v7  ;;  %v4422_v40 = vmax.f32 %v4154_v5, 0.0 }
 0x46b   : > { %17881 = vst [vmem:[#allocation75_spill] sm:$0xff] %v14229_v48  ;;  %v14242_v58 = vadd.f32 %v3634_v21, %v1856_v23  ;;  %v4423_v46 = vmax.f32 %v4157_v36, 0.0  ;;  %v4420_v60 = vmax.f32 %v4146_v0, 0.0  ;;  %v3863_v7 = vmax.f32 %v14229_v48, 0.0  ;;  %v17896_v48 = vld [vmem:[#allocation16_spill] sm:$0xff] }
 0x46c   : > { %17884 = vst [vmem:[#allocation82_spill] sm:$0xff] %v14238_v53  ;;  %v14244_v19 = vadd.f32 %v3632_v63, %v1846_v55  ;;  %v4421_v13 = vmax.f32 %v4149_v51, 0.0  ;;  %v3861_v39 = vmax.f32 %v14238_v53, 0.0 }
 0x46d   : > { %17886 = vst [vmem:[#allocation81_spill] sm:$0xff] %v14242_v58  ;;  %v3864_v59 = vmax.f32 %v14242_v58, 0.0  ;;  %v14247_v18 = vpack.c.bf16 %v4423_v46, %v4422_v40  ;;  %v11786_v46 = vld [vmem:[%s17247_s3 + $0x98] sm:$0xff]  }
 0x46e   : > { %17887 = vst [vmem:[#allocation78_spill] sm:$0xff] %v14244_v19  ;;  %v3862_v34 = vmax.f32 %v14244_v19, 0.0  ;;  %v14251_v4 = vpack.c.bf16 %v4421_v13, %v4420_v60  ;;  %10513 = vmatprep.subr.bf16.mxu0 %v11786_v46  ;;  %v17895_v19 = vld [vmem:[#allocation8_spill] sm:$0xff] }
 0x46f   : > { %v3912_v5 = vpack.c.bf16 %v3864_v59, %v3863_v7  ;;  %10514 = vmatpush3.bf16.msra.mxu0 %v11786_v46 }
 0x470   : > { %v3911_v23 = vpack.c.bf16 %v3862_v34, %v3861_v39 }
 0x472   : > { %10391 = vmatprep.mubr.bf16.mxu1 %v3911_v23 }
 0x473   : > { %10392 = vmatmul.mubr.bf16.gmra.mrb[124].mxu1 %v3912_v5 }
 0x474   : > { %10411 = vmatprep.mubr.bf16.mxu1 %v13912_v45 }
 0x476   : > { %v10341_v49 = vpop.f32.mrb[232].mxu1 }
 0x477   : > { %v4170_v0 = vadd.f32 %v10341_v49, %v13877_v31  ;;  %v4161_v21 = vpop.f32.mrb[233].mxu1 }
 0x478   : > { %v4162_v36 = vadd.f32 %v13877_v31, %v4161_v21  ;;  %v10342_v30 = vpop.f32.mrb[234].mxu1 }
 0x479   : > { %v4173_v32 = vadd.f32 %v10342_v30, %v13877_v31  ;;  %v4164_v55 = vpop.f32.mrb[235].mxu1  ;;  %v4426_v16 = vmax.f32 %v4170_v0, 0.0 }
 0x47a   : > { %v4165_v13 = vadd.f32 %v13877_v31, %v4164_v55  ;;  %v4424_v59 = vmax.f32 %v4162_v36, 0.0 }
 0x47b   : > { %v4427_v63 = vmax.f32 %v4173_v32, 0.0  ;;  %10412 = vmatmul.mubr.bf16.vlgmr.msra.gmra.mrb[0].mxu1 %v13907_v62 }
 0x47c   : > { %v4425_v51 = vmax.f32 %v4165_v13, 0.0  ;;  %10415 = vmatprep.mubr.bf16.mxu1 %v13948_v8 }
 0x47d   : > { %v14261_v45 = vpack.c.bf16 %v4427_v63, %v4426_v16 }
 0x47e   : > { %v14263_v40 = vpack.c.bf16 %v4425_v51, %v4424_v59 }
 0x483   : > { %10416 = vmatmul.mubr.bf16.gmra.mrb[4].mxu1 %v13944_v52 }
 0x484   : > { %10419 = vmatprep.mubr.bf16.mxu1 %v13990_v47 }
 0x486   : > { %v10345_v60 = vpop.f32.mrb[236].mxu1 }
 0x487   : > { %v4186_v62 = vadd.f32 %v10345_v60, %v13877_v31  ;;  %v4177_v39 = vpop.f32.mrb[237].mxu1 }
 0x488   : > { %v4178_v8 = vadd.f32 %v13877_v31, %v4177_v39  ;;  %v10346_v34 = vpop.f32.mrb[238].mxu1 }
 0x489   : > { %v4189_v7 = vadd.f32 %v10346_v34, %v13877_v31  ;;  %v4180_v23 = vpop.f32.mrb[239].mxu1  ;;  %v4430_v49 = vmax.f32 %v4186_v62, 0.0 }
 0x48a   : > { %v4181_v5 = vadd.f32 %v13877_v31, %v4180_v23  ;;  %v4428_v21 = vmax.f32 %v4178_v8, 0.0 }
 0x48b   : > { %v4431_v0 = vmax.f32 %v4189_v7, 0.0  ;;  %10420 = vmatmul.mubr.bf16.gmra.mrb[8].mxu1 %v13986_v15 }
 0x48c   : > { %v4429_v52 = vmax.f32 %v4181_v5, 0.0  ;;  %10423 = vmatprep.mubr.bf16.mxu1 %v14026_v14  ;;  %v11787_v14 = vld [vmem:[%s17247_s3 + $0xa0] sm:$0xff]  }
 0x48d   : > { %v14276_v47 = vpack.c.bf16 %v4431_v0, %v4430_v49  ;;  %10515 = vmatprep.subr.bf16.mxu0 %v11787_v14 }
 0x48e   : > { %v14278_v36 = vpack.c.bf16 %v4429_v52, %v4428_v21  ;;  %10516 = vmatpush3.bf16.msra.mxu0 %v11787_v14 }
 0x493   : > { %10424 = vmatmul.mubr.bf16.gmra.mrb[12].mxu1 %v14022_v41 }
 0x494   : > { %10427 = vmatprep.mubr.bf16.mxu1 %v14062_v33 }
 0x496   : > { %v10349_v30 = vpop.f32.mrb[240].mxu1 }
 0x497   : > { %v4202_v32 = vadd.f32 %v10349_v30, %v13877_v31  ;;  %v4193_v55 = vpop.f32.mrb[241].mxu1  ;;  %v11788_v30 = vld [vmem:[%s17247_s3 + $0xa8] sm:$0xff]  }
 0x498   : > { %v4194_v13 = vadd.f32 %v13877_v31, %v4193_v55  ;;  %v10350_v16 = vpop.f32.mrb[242].mxu1  ;;  %10517 = vmatprep.subr.bf16.mxu0 %v11788_v30 }
 0x499   : > { %v4205_v15 = vadd.f32 %v10350_v16, %v13877_v31  ;;  %v4196_v63 = vpop.f32.mrb[243].mxu1  ;;  %v4434_v51 = vmax.f32 %v4202_v32, 0.0  ;;  %10518 = vmatpush3.bf16.msra.mxu0 %v11788_v30 }
 0x49a   : > { %v4197_v59 = vadd.f32 %v13877_v31, %v4196_v63  ;;  %v4432_v33 = vmax.f32 %v4194_v13, 0.0 }
 0x49b   : > { %v4435_v41 = vmax.f32 %v4205_v15, 0.0  ;;  %10428 = vmatmul.mubr.bf16.gmra.mrb[16].mxu1 %v14058_v50 }
 0x49c   : > { %v4433_v46 = vmax.f32 %v4197_v59, 0.0  ;;  %10431 = vmatprep.mubr.bf16.mxu1 %v14098_v1 }
 0x49d   : > { %v14291_v60 = vpack.c.bf16 %v4435_v41, %v4434_v51 }
 0x49e   : > { %v14293_v62 = vpack.c.bf16 %v4433_v46, %v4432_v33 }
 0x4a3   : > { %10432 = vmatmul.mubr.bf16.gmra.mrb[20].mxu1 %v14094_v35 }
 0x4a4   : > { %10435 = vmatprep.mubr.bf16.mxu1 %v14137_v57 }
 0x4a6   : > { %v10353_v39 = vpop.f32.mrb[244].mxu1 }
 0x4a7   : > { %v4218_v8 = vadd.f32 %v10353_v39, %v13877_v31  ;;  %v4209_v34 = vpop.f32.mrb[245].mxu1 }
 0x4a8   : > { %v4210_v50 = vadd.f32 %v13877_v31, %v4209_v34  ;;  %v10354_v7 = vpop.f32.mrb[246].mxu1 }
 0x4a9   : > { %v4221_v23 = vadd.f32 %v10354_v7, %v13877_v31  ;;  %v4212_v5 = vpop.f32.mrb[247].mxu1  ;;  %v4438_v49 = vmax.f32 %v4218_v8, 0.0 }
 0x4aa   : > { %v4213_v1 = vadd.f32 %v13877_v31, %v4212_v5  ;;  %v4436_v21 = vmax.f32 %v4210_v50, 0.0 }
 0x4ab   : > { %v4439_v0 = vmax.f32 %v4221_v23, 0.0  ;;  %10436 = vmatmul.mubr.bf16.gmra.mrb[24].mxu1 %v14133_v2  ;;  %v14313_v2 = vld [vmem:[%s17248_s4 + $0x1] ss:$0 sm:$0xff] }
 0x4ac   : > { %v4437_v35 = vmax.f32 %v4213_v1, 0.0  ;;  %10439 = vmatprep.mubr.bf16.mxu1 %v14176_v38 }
 0x4ad   : > { %v14303_v57 = vpack.c.bf16 %v4439_v0, %v4438_v49  ;;  %v11790_v0 = vld [vmem:[%s17247_s3 + $0xb8] sm:$0xff]  }
 0x4ae   : > { %v4506_v52 = vpack.c.bf16 %v4437_v35, %v4436_v21 }
 0x4b3   : > { %10440 = vmatmul.mubr.bf16.gmra.mrb[28].mxu1 %v14172_v43 }
 0x4b4   : > { %10443 = vmatprep.mubr.bf16.mxu1 %v14212_v17 }
 0x4b6   : > { %v10357_v31 = vpop.f32.mrb[248].mxu1 }
 0x4b7   : > { %v4234_v38 = vadd.f32 %v14313_v2, %v10357_v31  ;;  %v4225_v32 = vpop.f32.mrb[249].mxu1 }
 0x4b8   : > { %v4226_v55 = vadd.f32 %v14313_v2, %v4225_v32  ;;  %v10358_v13 = vpop.f32.mrb[250].mxu1 }
 0x4b9   : > { %v4237_v16 = vadd.f32 %v14313_v2, %v10358_v13  ;;  %v4228_v15 = vpop.f32.mrb[251].mxu1  ;;  %v4442_v43 = vmax.f32 %v4234_v38, 0.0 }
 0x4ba   : > { %v4229_v63 = vadd.f32 %v14313_v2, %v4228_v15  ;;  %v4440_v17 = vmax.f32 %v4226_v55, 0.0 }
 0x4bb   : > { %v4443_v14 = vmax.f32 %v4237_v16, 0.0  ;;  %10444 = vmatmul.mubr.bf16.gmra.mrb[32].mxu1 %v14208_v42 }
 0x4bc   : > { %v4441_v59 = vmax.f32 %v4229_v63, 0.0  ;;  %10447 = vmatprep.mubr.bf16.mxu1 %v14251_v4  ;;  %v11789_v4 = vld [vmem:[%s17247_s3 + $0xb0] sm:$0xff]  }
 0x4bd   : > { %v4509_v51 = vpack.c.bf16 %v4443_v14, %v4442_v43  ;;  %10519 = vmatprep.subr.bf16.mxu0 %v11789_v4 }
 0x4be   : > { %v4508_v41 = vpack.c.bf16 %v4441_v59, %v4440_v17  ;;  %10520 = vmatpush3.bf16.msra.mxu0 %v11789_v4 }
 0x4bf   : > { %10521 = vmatprep.subr.bf16.mxu0 %v11790_v0 }
 0x4c2   : > { %10522 = vmatpush3.bf16.msra.mxu0 %v11790_v0 }
 0x4c3   : > { %10448 = vmatmul.mubr.bf16.gmra.mrb[36].mxu1 %v14247_v18 }
 0x4c4   : > { %10451 = vmatprep.mubr.bf16.mxu1 %v14263_v40 }
 0x4c6   : > { %v10361_v33 = vpop.f32.mrb[252].mxu1 }
 0x4c7   : > { %v4250_v46 = vadd.f32 %v14313_v2, %v10361_v33  ;;  %v4241_v39 = vpop.f32.mrb[253].mxu1 }
 0x4c8   : > { %v4242_v8 = vadd.f32 %v14313_v2, %v4241_v39  ;;  %v10362_v34 = vpop.f32.mrb[254].mxu1 }
 0x4c9   : > { %v4253_v50 = vadd.f32 %v14313_v2, %v10362_v34  ;;  %v4244_v42 = vpop.f32.mrb[255].mxu1  ;;  %v4446_v23 = vmax.f32 %v4250_v46, 0.0 }
 0x4ca   : > { %v4245_v7 = vadd.f32 %v14313_v2, %v4244_v42  ;;  %v4444_v40 = vmax.f32 %v4242_v8, 0.0 }
 0x4cb   : > { %v4447_v18 = vmax.f32 %v4253_v50, 0.0  ;;  %10452 = vmatmul.mubr.bf16.gmra.mrb[40].mxu1 %v14261_v45 }
 0x4cc   : > { %v4445_v5 = vmax.f32 %v4245_v7, 0.0  ;;  %10455 = vmatprep.mubr.bf16.mxu1 %v14278_v36 }
 0x4cd   : > { %v4511_v1 = vpack.c.bf16 %v4447_v18, %v4446_v23 }
 0x4ce   : > { %v4510_v49 = vpack.c.bf16 %v4445_v5, %v4444_v40 }
 0x4d3   : > { %10456 = vmatmul.mubr.bf16.gmra.mrb[44].mxu1 %v14276_v47 }
 0x4d4   : > { %10459 = vmatprep.mubr.bf16.mxu1 %v14293_v62 }
 0x4d6   : > { %v10365_v21 = vpop.f32.mrb[96].mxu1 }
 0x4d7   : > { %v4266_v45 = vadd.f32 %v14313_v2, %v10365_v21  ;;  %v4257_v35 = vpop.f32.mrb[97].mxu1 }
 0x4d8   : > { %v4258_v30 = vadd.f32 %v14313_v2, %v4257_v35  ;;  %v10366_v36 = vpop.f32.mrb[98].mxu1 }
 0x4d9   : > { %v4269_v31 = vadd.f32 %v14313_v2, %v10366_v36  ;;  %v4260_v38 = vpop.f32.mrb[99].mxu1  ;;  %v4450_v32 = vmax.f32 %v4266_v45, 0.0 }
 0x4da   : > { %v4261_v47 = vadd.f32 %v14313_v2, %v4260_v38  ;;  %v4448_v13 = vmax.f32 %v4258_v30, 0.0 }
 0x4db   : > { %v4451_v55 = vmax.f32 %v4269_v31, 0.0  ;;  %10460 = vmatmul.mubr.bf16.gmra.mrb[48].mxu1 %v14291_v60 }
 0x4dc   : > { %v4449_v62 = vmax.f32 %v4261_v47, 0.0  ;;  %10463 = vmatprep.mubr.bf16.mxu1 %v4506_v52 }
 0x4dd   : > { %v4513_v16 = vpack.c.bf16 %v4451_v55, %v4450_v32 }
 0x4de   : > { %v4512_v15 = vpack.c.bf16 %v4449_v62, %v4448_v13 }
 0x4e3   : > { %10464 = vmatmul.mubr.bf16.gmra.mrb[52].mxu1 %v14303_v57 }
 0x4e4   : > { %10467 = vmatprep.mubr.bf16.mxu1 %v4508_v41 }
 0x4e6   : > { %v10369_v63 = vpop.f32.mrb[100].mxu1 }
 0x4e7   : > { %v4282_v43 = vadd.f32 %v14313_v2, %v10369_v63  ;;  %v4273_v14 = vpop.f32.mrb[101].mxu1 }
 0x4e8   : > { %v4274_v17 = vadd.f32 %v14313_v2, %v4273_v14  ;;  %v10370_v59 = vpop.f32.mrb[102].mxu1 }
 0x4e9   : > { %v4285_v33 = vadd.f32 %v14313_v2, %v10370_v59  ;;  %v4276_v46 = vpop.f32.mrb[103].mxu1  ;;  %v4454_v39 = vmax.f32 %v4282_v43, 0.0 }
 0x4ea   : > { %v4277_v60 = vadd.f32 %v14313_v2, %v4276_v46  ;;  %v4452_v52 = vmax.f32 %v4274_v17, 0.0 }
 0x4eb   : > { %v4455_v8 = vmax.f32 %v4285_v33, 0.0  ;;  %10468 = vmatmul.mubr.bf16.gmra.mrb[56].mxu1 %v4509_v51 }
 0x4ec   : > { %v4453_v34 = vmax.f32 %v4277_v60, 0.0  ;;  %10471 = vmatprep.mubr.bf16.mxu1 %v4510_v49  ;;  %v14360_v60 = vld [vmem:[%s17249_s5 + $0x80] sm:$0xff]  }
 0x4ed   : > { %v4515_v57 = vpack.c.bf16 %v4455_v8, %v4454_v39  ;;  %10619 = vmatprep.subr.bf16.mxu0 %v14360_v60 }
 0x4ee   : > { %v4514_v41 = vpack.c.bf16 %v4453_v34, %v4452_v52 }
 0x4f3   : > { %10472 = vmatmul.mubr.bf16.gmra.mrb[60].mxu1 %v4511_v1 }
 0x4f4   : > { %10475 = vmatprep.mubr.bf16.mxu1 %v4512_v15 }
 0x4f6   : > { %v10373_v50 = vpop.f32.mrb[104].mxu1 }
 0x4f7   : > { %v4298_v42 = vadd.f32 %v14313_v2, %v10373_v50  ;;  %v4289_v4 = vpop.f32.mrb[105].mxu1 }
 0x4f8   : > { %v4290_v7 = vadd.f32 %v14313_v2, %v4289_v4  ;;  %v10374_v23 = vpop.f32.mrb[106].mxu1 }
 0x4f9   : > { %v4301_v18 = vadd.f32 %v14313_v2, %v10374_v23  ;;  %v4292_v40 = vpop.f32.mrb[107].mxu1  ;;  %v4458_v51 = vmax.f32 %v4298_v42, 0.0 }
 0x4fa   : > { %v4293_v5 = vadd.f32 %v14313_v2, %v4292_v40  ;;  %v4456_v49 = vmax.f32 %v4290_v7, 0.0 }
 0x4fb   : > { %v4459_v0 = vmax.f32 %v4301_v18, 0.0  ;;  %10476 = vmatmul.mubr.bf16.gmra.mrb[64].mxu1 %v4513_v16 }
 0x4fc   : > { %v4457_v21 = vmax.f32 %v4293_v5, 0.0  ;;  %10479 = vmatprep.mubr.bf16.mxu1 %v4514_v41 }
 0x4fd   : > { %v4517_v1 = vpack.c.bf16 %v4459_v0, %v4458_v51 }
 0x4fe   : > { %v4516_v45 = vpack.c.bf16 %v4457_v21, %v4456_v49 }
 0x503   : > { %10480 = vmatmul.mubr.bf16.gmra.mrb[68].mxu1 %v4515_v57 }
 0x504   : > { %10483 = vmatprep.mubr.bf16.mxu1 %v4516_v45 }
 0x506   : > { %v10377_v35 = vpop.f32.mrb[108].mxu1 }
 0x507   : > { %v4314_v30 = vadd.f32 %v14313_v2, %v10377_v35  ;;  %v4305_v36 = vpop.f32.mrb[109].mxu1 }
 0x508   : > { %v4306_v31 = vadd.f32 %v14313_v2, %v4305_v36  ;;  %v10378_v38 = vpop.f32.mrb[110].mxu1 }
 0x509   : > { %v4317_v47 = vadd.f32 %v14313_v2, %v10378_v38  ;;  %v4308_v32 = vpop.f32.mrb[111].mxu1  ;;  %v4462_v13 = vmax.f32 %v4314_v30, 0.0 }
 0x50a   : > { %v4309_v55 = vadd.f32 %v14313_v2, %v4308_v32  ;;  %v4460_v16 = vmax.f32 %v4306_v31, 0.0 }
 0x50b   : > { %v4463_v62 = vmax.f32 %v4317_v47, 0.0  ;;  %10484 = vmatmul.mubr.bf16.gmra.mrb[72].mxu1 %v4517_v1 }
 0x50c   : > { %v4461_v15 = vmax.f32 %v4309_v55, 0.0 }
 0x50d   : > { %v4519_v63 = vpack.c.bf16 %v4463_v62, %v4462_v13 }
 0x50e   : > { %v4518_v43 = vpack.c.bf16 %v4461_v15, %v4460_v16 }
 0x510   : > { %10487 = vmatprep.mubr.bf16.mxu1 %v4518_v43 }
 0x513   : > { %10488 = vmatmul.mubr.bf16.gmra.mrb[76].mxu1 %v4519_v63 }
 0x516   : > { %v10381_v14 = vpop.f32.mrb[112].mxu1 }
 0x517   : > { %v4330_v17 = vadd.f32 %v14313_v2, %v10381_v14  ;;  %v4321_v59 = vpop.f32.mrb[113].mxu1 }
 0x518   : > { %v4322_v33 = vadd.f32 %v14313_v2, %v4321_v59  ;;  %v10382_v46 = vpop.f32.mrb[114].mxu1 }
 0x519   : > { %v4333_v39 = vadd.f32 %v14313_v2, %v10382_v46  ;;  %v4324_v8 = vpop.f32.mrb[115].mxu1  ;;  %v4466_v34 = vmax.f32 %v4330_v17, 0.0 }
 0x51a   : > { %v4325_v52 = vadd.f32 %v14313_v2, %v4324_v8  ;;  %v4464_v41 = vmax.f32 %v4322_v33, 0.0 }
 0x51b   : > { %v4467_v57 = vmax.f32 %v4333_v39, 0.0 }
 0x51c   : > { %v4465_v50 = vmax.f32 %v4325_v52, 0.0 }
 0x51d   : > { %v4521_v42 = vpack.c.bf16 %v4467_v57, %v4466_v34 }
 0x51e   : > { %v4520_v4 = vpack.c.bf16 %v4465_v50, %v4464_v41  ;;  %v17888_v41 = vld [vmem:[#allocation4_spill] sm:$0xff] }
 0x51f   : > { %v10977_v50 = vadd.f32 %v13438_v61, %v17888_v41 }
 0x520   : > { %10491 = vmatprep.mubr.bf16.mxu1 %v4520_v4  ;;  %v14382_v4 = vld [vmem:[%s17250_s6 + $0x1] ss:$0 sm:$0xff] }
 0x521   : > { %10492 = vmatmul.mubr.bf16.gmra.mrb[80].mxu1 %v4521_v42 }
 0x526   : > { %v10385_v7 = vpop.f32.mrb[116].mxu1 }
 0x527   : > { %v4346_v23 = vadd.f32 %v14313_v2, %v10385_v7  ;;  %v4337_v18 = vpop.f32.mrb[117].mxu1  ;;  %v10980_v7 = vadd.f32 %v13440_v6, %v17888_v41 }
 0x528   : > { %v4338_v40 = vadd.f32 %v14313_v2, %v4337_v18  ;;  %v10386_v5 = vpop.f32.mrb[118].mxu1  ;;  %v10986_v18 = vadd.f32 %v13466_v54, %v17888_v41 }
 0x529   : > { %v4349_v51 = vadd.f32 %v14313_v2, %v10386_v5  ;;  %v4340_v0 = vpop.f32.mrb[119].mxu1  ;;  %v4470_v21 = vmax.f32 %v4346_v23, 0.0  ;;  %v10983_v23 = vadd.f32 %v13460_v44, %v17888_v41 }
 0x52a   : > { %v4341_v49 = vadd.f32 %v14313_v2, %v4340_v0  ;;  %v4468_v45 = vmax.f32 %v4338_v40, 0.0 }
 0x52b   : > { %v4471_v1 = vmax.f32 %v4349_v51, 0.0  ;;  %v10989_v51 = vadd.f32 %v13475_v25, %v17888_v41 }
 0x52c   : > { %v4469_v35 = vmax.f32 %v4341_v49, 0.0 }
 0x52d   : > { %v4523_v30 = vpack.c.bf16 %v4471_v1, %v4470_v21  ;;  %v10971_v1 = vadd.f32 %v13428_v24, %v17888_v41 }
 0x52e   : > { %v4522_v36 = vpack.c.bf16 %v4469_v35, %v4468_v45  ;;  %v10974_v45 = vadd.f32 %v13434_v3, %v17888_v41  ;;  %v10978_v35 = vadd.f32 %v10977_v50, %v14382_v4  ;;  %v11016_v50 = vadd.f32 %v13541_v12, %v17888_v41  ;;  %v17906_v12 = vld [vmem:[#allocation23_spill] sm:$0xff] }
 0x530   : > { %10495 = vmatprep.mubr.bf16.mxu1 %v4522_v36 }
 0x531   : > { %10496 = vmatmul.mubr.bf16.gmra.mrb[84].mxu1 %v4523_v30 }
 0x536   : > { %v10389_v31 = vpop.f32.mrb[120].mxu1 }
 0x537   : > { %v4362_v38 = vadd.f32 %v14313_v2, %v10389_v31  ;;  %v4353_v47 = vpop.f32.mrb[121].mxu1  ;;  %v10981_v31 = vadd.f32 %v10980_v7, %v14382_v4 }
 0x538   : > { %v4354_v32 = vadd.f32 %v14313_v2, %v4353_v47  ;;  %v10390_v55 = vpop.f32.mrb[122].mxu1  ;;  %v10987_v47 = vadd.f32 %v10986_v18, %v14382_v4  ;;  %v11022_v18 = vadd.f32 %v13567_v27, %v17888_v41 }
 0x539   : > { %v4365_v13 = vadd.f32 %v14313_v2, %v10390_v55  ;;  %v4356_v62 = vpop.f32.mrb[123].mxu1  ;;  %v4474_v15 = vmax.f32 %v4362_v38, 0.0  ;;  %v10984_v38 = vadd.f32 %v10983_v23, %v14382_v4  ;;  %v11019_v23 = vadd.f32 %v13561_v56, %v17888_v41 }
 0x53a   : > { %v4357_v16 = vadd.f32 %v14313_v2, %v4356_v62  ;;  %v4472_v43 = vmax.f32 %v4354_v32, 0.0 }
 0x53b   : > { %v4475_v63 = vmax.f32 %v4365_v13, 0.0  ;;  %v10990_v13 = vadd.f32 %v10989_v51, %v14382_v4  ;;  %v11025_v51 = vadd.f32 %v13571_v20, %v17888_v41 }
 0x53c   : > { %v4473_v14 = vmax.f32 %v4357_v16, 0.0  ;;  %v10995_v16 = vadd.f32 %v13497_v22, %v17888_v41 }
 0x53d   : > { %v4525_v17 = vpack.c.bf16 %v4475_v63, %v4474_v15 }
 0x53e   : > { %v4524_v59 = vpack.c.bf16 %v4473_v14, %v4472_v43  ;;  %v10998_v43 = vadd.f32 %v13503_v37, %v17888_v41  ;;  %v11001_v14 = vadd.f32 %v13507_v28, %v17888_v41 }
 0x540   : > { %10499 = vmatprep.mubr.bf16.mxu1 %v4524_v59 }
 0x541   : > { %10500 = vmatmul.mubr.bf16.gmra.mrb[88].mxu1 %v4525_v17  ;;  %v11004_v17 = vadd.f32 %v13509_v9, %v17888_v41 }
 0x546   : > { %v10393_v33 = vpop.f32.mrb[124].mxu1 }
 0x547   : > { %v4378_v46 = vadd.f32 %v14313_v2, %v10393_v33  ;;  %v4369_v39 = vpop.f32.mrb[125].mxu1 }
 0x548   : > { %v4370_v8 = vadd.f32 %v14313_v2, %v4369_v39  ;;  %v10394_v52 = vpop.f32.mrb[126].mxu1  ;;  %v11007_v39 = vadd.f32 %v13529_v11, %v17888_v41 }
 0x549   : > { %v4381_v34 = vadd.f32 %v14313_v2, %v10394_v52  ;;  %v4372_v57 = vpop.f32.mrb[127].mxu1  ;;  %v4478_v40 = vmax.f32 %v4378_v46, 0.0 }
 0x54a   : > { %v4373_v42 = vadd.f32 %v14313_v2, %v4372_v57  ;;  %v10992_v2 = vadd.f32 %v13477_v26, %v17888_v41  ;;  %v4476_v0 = vmax.f32 %v4370_v8, 0.0  ;;  %v11010_v8 = vadd.f32 %v13535_v29, %v17888_v41 }
 0x54b   : > { %v4479_v5 = vmax.f32 %v4381_v34, 0.0  ;;  %v11013_v57 = vadd.f32 %v13539_v10, %v17888_v41  ;;  %v11073_v10 = vadd.f32 %v17906_v12, %v17888_v41  ;;  %v17911_v12 = vld [vmem:[#allocation22_spill] sm:$0xff] }
 0x54c   : > { %v4477_v49 = vmax.f32 %v4373_v42, 0.0  ;;  %v10993_v62 = vadd.f32 %v10992_v2, %v14382_v4  ;;  %v17889_v2 = vld [vmem:[#allocation164_spill] sm:$0xff] }
 0x54d   : > { %v4527_v21 = vpack.c.bf16 %v4479_v5, %v4478_v40 }
 0x54e   : > { %v4526_v30 = vpack.c.bf16 %v4477_v49, %v4476_v0  ;;  %v14399_v36 = vpop.f32.mrb[0].mxu1  ;;  %v11028_v0 = vadd.f32 %v17889_v2, %v17888_v41  ;;  %v17898_v2 = vld [vmem:[#allocation12_spill] sm:$0xff] }
 0x54f   : > { %v10972_v32 = vadd.f32 %v10971_v1, %v14399_v36  ;;  %v14405_v55 = vpop.f32.mrb[1].mxu1  ;;  %v10999_v1 = vadd.f32 %v10998_v43, %v14382_v4  ;;  %v14463_v43 = vadd.f32 %v11016_v50, %v14382_v4 }
 0x550   : > { %v10975_v15 = vadd.f32 %v10974_v45, %v14405_v55  ;;  %v14412_v63 = vpop.f32.mrb[2].mxu1  ;;  %10503 = vmatprep.mubr.bf16.mxu1 %v4526_v30  ;;  %v11002_v45 = vadd.f32 %v11001_v14, %v14382_v4  ;;  %v14466_v14 = vadd.f32 %v11019_v23, %v14382_v4 }
 0x551   : > { %v10973_v59 = vadd.f32 %v10972_v32, %v14382_v4  ;;  %v10979_v33 = vadd.f32 %v10978_v35, %v14412_v63  ;;  %v14422_v46 = vpop.f32.mrb[3].mxu1  ;;  %10504 = vmatmul.mubr.bf16.gmra.mrb[92].mxu1 %v4527_v21  ;;  %v10996_v21 = vadd.f32 %v10995_v16, %v14382_v4  ;;  %v14451_v32 = vadd.f32 %v11007_v39, %v14382_v4 }
 0x552   : > { %v10976_v52 = vadd.f32 %v10975_v15, %v14382_v4  ;;  %v10982_v34 = vadd.f32 %v10981_v31, %v14422_v46  ;;  %v14448_v31 = vadd.f32 %v11004_v17, %v14382_v4  ;;  %v14454_v15 = vadd.f32 %v11010_v8, %v14382_v4  ;;  %v11792_v17 = vld [vmem:[%s17249_s5 + $0x88] sm:$0xff]  }
 0x553   : > { %v5231_v42 = vmax.f32 %v10973_v59, 0.0  ;;  %v5232_v7 = vmax.f32 %v10979_v33, 0.0  ;;  %v14460_v16 = vadd.f32 %v11013_v57, %v14382_v4 }
 0x554   : > { %v5229_v40 = vmax.f32 %v10976_v52, 0.0  ;;  %v5230_v5 = vmax.f32 %v10982_v34, 0.0  ;;  %v14478_v52 = vadd.f32 %v11025_v51, %v14382_v4  ;;  %v14481_v34 = vadd.f32 %v11028_v0, %v14382_v4  ;;  %v17893_v51 = vld [vmem:[#allocation10_spill] sm:$0xff] }
 0x555   : > { %v5326_v49 = vpack.c.bf16 %v5232_v7, %v5231_v42  ;;  %v17890_v42 = vld [vmem:[#allocation7_spill] sm:$0xff]  ;;  %v17891_v7 = vld [vmem:[#allocation6_spill] sm:$0xff]  ;;  %v11040_v0 = vadd.f32 %v17893_v51, %v17888_v41 }
 0x556   : > { %v14445_v35 = vpop.f32.mrb[4].mxu1  ;;  %v5325_v30 = vpack.c.bf16 %v5230_v5, %v5229_v40  ;;  %v11034_v23 = vadd.f32 %v17891_v7, %v17888_v41  ;;  %v11049_v7 = vadd.f32 %v17896_v48, %v17888_v41 }
 0x557   : > { %v10985_v59 = vadd.f32 %v10984_v38, %v14445_v35  ;;  %v14457_v33 = vpop.f32.mrb[5].mxu1  ;;  %v14475_v38 = vadd.f32 %v11022_v18, %v14382_v4  ;;  %v17892_v18 = vld [vmem:[#allocation11_spill] sm:$0xff] }
 0x558   : > { %v10988_v39 = vadd.f32 %v10987_v47, %v14457_v33  ;;  %v14472_v8 = vpop.f32.mrb[6].mxu1  ;;  %10523 = vmatprep.mubr.bf16.mxu0 %v5325_v30  ;;  %v11031_v47 = vadd.f32 %v17890_v42, %v17888_v41  ;;  %v11037_v40 = vadd.f32 %v17892_v18, %v17888_v41  ;;  %v17894_v30 = vld [vmem:[#allocation9_spill] sm:$0xff]  ;;  %v14515_v48 = vadd.f32 %v11034_v23, %v14382_v4 }
 0x559   : > { %v10991_v57 = vadd.f32 %v10990_v13, %v14472_v8  ;;  %v14484_v50 = vpop.f32.mrb[7].mxu1  ;;  %10524 = vmatmul.mubr.bf16.vlgmr.msra.gmra.mrb[32].mxu0 %v5326_v49  ;;  %v11043_v13 = vadd.f32 %v17894_v30, %v17888_v41  ;;  %v11046_v49 = vadd.f32 %v17895_v19, %v17888_v41  ;;  %v5235_v58 = vmax.f32 %v10985_v59, 0.0  ;;  %v17897_v18 = vld [vmem:[#allocation13_spill] sm:$0xff] }
 0x55a   : > { %v10994_v5 = vadd.f32 %v10993_v62, %v14484_v50  ;;  %10620 = vmatpush3.bf16.msra.mxu0 %v14360_v60  ;;  %v11052_v42 = vadd.f32 %v17897_v18, %v17888_v41  ;;  %v11793_v62 = vld [vmem:[%s17249_s5 + $0x90] sm:$0xff]   ;;  %v5233_v51 = vmax.f32 %v10988_v39, 0.0  ;;  %v11055_v19 = vadd.f32 %v17898_v2, %v17888_v41  ;;  %v17900_v18 = vld [vmem:[#allocation17_spill] sm:$0xff] }
 0x55b   : > { %v5236_v53 = vmax.f32 %v10991_v57, 0.0  ;;  %10621 = vmatprep.subr.bf16.mxu0 %v11792_v17  ;;  %v17899_v60 = vld [vmem:[#allocation18_spill] sm:$0xff]  ;;  %v14512_v20 = vadd.f32 %v11031_v47, %v14382_v4  ;;  %v11061_v27 = vadd.f32 %v17900_v18, %v17888_v41  ;;  %v14525_v2 = vadd.f32 %v11040_v0, %v14382_v4 }
 0x55c   : > { %v5234_v30 = vmax.f32 %v10994_v5, 0.0  ;;  %v11058_v59 = vadd.f32 %v17899_v60, %v17888_v41  ;;  %v14522_v5 = vadd.f32 %v11037_v40, %v14382_v4  ;;  %v14534_v23 = vadd.f32 %v11046_v49, %v14382_v4 }
 0x55d   : > { %v5328_v57 = vpack.c.bf16 %v5236_v53, %v5235_v58  ;;  %v14528_v53 = vadd.f32 %v11043_v13, %v14382_v4  ;;  %v14537_v18 = vadd.f32 %v11049_v7, %v14382_v4  ;;  %v14540_v40 = vadd.f32 %v11052_v42, %v14382_v4  ;;  %v11794_v42 = vld [vmem:[%s17249_s5 + $0x98] sm:$0xff]  }
 0x55e   : > { %v14519_v56 = vpop.f32.mrb[8].mxu1  ;;  %v5327_v39 = vpack.c.bf16 %v5234_v30, %v5233_v51  ;;  %10622 = vmatpush3.bf16.msra.mxu0 %v11792_v17  ;;  %v14546_v17 = vadd.f32 %v11055_v19, %v14382_v4  ;;  %v17902_v30 = vld [vmem:[#allocation15_spill] sm:$0xff]  ;;  %v17904_v19 = vld [vmem:[#allocation14_spill] sm:$0xff] }
 0x55f   : > { %v10997_v58 = vadd.f32 %v10996_v21, %v14519_v56  ;;  %v14531_v47 = vpop.f32.mrb[9].mxu1  ;;  %10623 = vmatprep.subr.bf16.mxu0 %v11793_v62  ;;  %v14549_v21 = vadd.f32 %v11058_v59, %v14382_v4  ;;  %v11064_v13 = vadd.f32 %v17902_v30, %v17888_v41  ;;  %v17905_v59 = vld [vmem:[#allocation24_spill] sm:$0xff] }
 0x560   : > { %v11000_v51 = vadd.f32 %v10999_v1, %v14531_v47  ;;  %v14543_v0 = vpop.f32.mrb[10].mxu1  ;;  %10527 = vmatprep.mubr.bf16.mxu0 %v5327_v39  ;;  %v14560_v1 = vadd.f32 %v11061_v27, %v14382_v4  ;;  %v11067_v39 = vadd.f32 %v17904_v19, %v17888_v41  ;;  %v11070_v60 = vadd.f32 %v17905_v59, %v17888_v41  ;;  %v17909_v19 = vld [vmem:[#allocation26_spill] sm:$0xff]  ;;  %v17910_v59 = vld [vmem:[#allocation25_spill] sm:$0xff] }
 0x561   : > { %17901 = vst [vmem:[#allocation77_spill] sm:$0xff] %v14549_v21  ;;  %v11003_v7 = vadd.f32 %v11002_v45, %v14543_v0  ;;  %v14557_v49 = vpop.f32.mrb[11].mxu1  ;;  %10528 = vmatmul.mubr.bf16.gmra.mrb[36].mxu0 %v5328_v57  ;;  %v17907_v45 = vld [vmem:[#allocation20_spill] sm:$0xff]  ;;  %v17908_v57 = vld [vmem:[#allocation19_spill] sm:$0xff]  ;;  %v5239_v27 = vmax.f32 %v10997_v58, 0.0  ;;  %v11085_v28 = vadd.f32 %v17910_v59, %v17888_v41  ;;  %v11088_v21 = vadd.f32 %v17911_v12, %v17888_v41 }
 0x562   : > { %17903 = vst [vmem:[#allocation88_spill] sm:$0xff] %v14560_v1  ;;  %v11006_v30 = vadd.f32 %v14448_v31, %v14557_v49  ;;  %v11076_v29 = vadd.f32 %v17907_v45, %v17888_v41  ;;  %v11079_v11 = vadd.f32 %v17908_v57, %v17888_v41  ;;  %10624 = vmatpush3.bf16.msra.mxu0 %v11793_v62  ;;  %v5237_v31 = vmax.f32 %v11000_v51, 0.0  ;;  %v17912_v45 = vld [vmem:[#allocation21_spill] sm:$0xff] }
 0x563   : > { %v5240_v9 = vmax.f32 %v11003_v7, 0.0  ;;  %v11082_v1 = vadd.f32 %v17909_v19, %v17888_v41  ;;  %10625 = vmatprep.subr.bf16.mxu0 %v11794_v42  ;;  %v11091_v22 = vadd.f32 %v17912_v45, %v17888_v41  ;;  %v14583_v62 = vadd.f32 %v11064_v13, %v14382_v4  ;;  %v17914_v7 = vld [vmem:[#allocation32_spill] sm:$0xff]  ;;  %v17930_v57 = vld [vmem:[#allocation29_spill] sm:$0xff] }
 0x564   : > { %v5238_v37 = vmax.f32 %v11006_v30, 0.0  ;;  %v14586_v58 = vadd.f32 %v11067_v39, %v14382_v4  ;;  %v11094_v19 = vadd.f32 %v17914_v7, %v17888_v41  ;;  %v14593_v30 = vadd.f32 %v11070_v60, %v14382_v4 }
 0x565   : > { %v5330_v26 = vpack.c.bf16 %v5240_v9, %v5239_v27  ;;  %v14596_v12 = vadd.f32 %v11073_v10, %v14382_v4  ;;  %v14599_v9 = vadd.f32 %v11076_v29, %v14382_v4  ;;  %v14606_v27 = vadd.f32 %v11079_v11, %v14382_v4  ;;  %v17923_v11 = vld [vmem:[#allocation31_spill] sm:$0xff] }
 0x566   : > { %17913 = vst [vmem:[#allocation87_spill] sm:$0xff] %v14586_v58  ;;  %v14590_v59 = vpop.f32.mrb[12].mxu1  ;;  %v5329_v51 = vpack.c.bf16 %v5238_v37, %v5237_v31  ;;  %17915 = vst [vmem:[#allocation84_spill] sm:$0xff] %v14593_v30  ;;  %10626 = vmatpush3.bf16.msra.mxu0 %v11794_v42  ;;  %v14609_v37 = vadd.f32 %v11082_v1, %v14382_v4  ;;  %v14612_v60 = vadd.f32 %v11085_v28, %v14382_v4 }
 0x567   : > { %17916 = vst [vmem:[#allocation83_spill] sm:$0xff] %v14596_v12  ;;  %17917 = vst [vmem:[#allocation90_spill] sm:$0xff] %v14599_v9  ;;  %v11009_v13 = vadd.f32 %v14451_v32, %v14590_v59  ;;  %v14603_v39 = vpop.f32.mrb[13].mxu1  ;;  %v14619_v42 = vadd.f32 %v11088_v21, %v14382_v4  ;;  %v14622_v32 = vadd.f32 %v11091_v22, %v14382_v4  ;;  %v17926_v21 = vld [vmem:[#allocation27_spill] sm:$0xff] }
 0x568   : > { %17918 = vst [vmem:[#allocation89_spill] sm:$0xff] %v14606_v27  ;;  %17919 = vst [vmem:[#allocation86_spill] sm:$0xff] %v14609_v37  ;;  %v11012_v10 = vadd.f32 %v14454_v15, %v14603_v39  ;;  %v14616_v29 = vpop.f32.mrb[14].mxu1  ;;  %10531 = vmatprep.mubr.bf16.mxu0 %v5329_v51  ;;  %v11097_v31 = vadd.f32 %v17923_v11, %v17888_v41  ;;  %v14631_v15 = vadd.f32 %v11094_v19, %v14382_v4  ;;  %v17925_v51 = vld [vmem:[#allocation28_spill] sm:$0xff]  ;;  %v17927_v11 = vld [vmem:[#allocation34_spill] sm:$0xff] }
 0x569   : > { %17920 = vst [vmem:[#allocation85_spill] sm:$0xff] %v14612_v60  ;;  %17921 = vst [vmem:[#allocation95_spill] sm:$0xff] %v14619_v42  ;;  %v11015_v1 = vadd.f32 %v14460_v16, %v14616_v29  ;;  %v14628_v28 = vpop.f32.mrb[15].mxu1  ;;  %10532 = vmatmul.mubr.bf16.gmra.mrb[40].mxu0 %v5330_v26  ;;  %v11100_v7 = vadd.f32 %v17925_v51, %v17888_v41  ;;  %v11103_v45 = vadd.f32 %v17926_v21, %v17888_v41  ;;  %v17928_v16 = vld [vmem:[#allocation33_spill] sm:$0xff]  ;;  %v17929_v26 = vld [vmem:[#allocation30_spill] sm:$0xff] }
 0x56a   : > { %17922 = vst [vmem:[#allocation96_spill] sm:$0xff] %v14622_v32  ;;  %17924 = vst [vmem:[#allocation91_spill] sm:$0xff] %v14631_v15  ;;  %v11018_v22 = vadd.f32 %v14463_v43, %v14628_v28  ;;  %v11106_v32 = vadd.f32 %v17927_v11, %v17888_v41  ;;  %v11109_v42 = vadd.f32 %v17928_v16, %v17888_v41  ;;  %v5243_v19 = vmax.f32 %v11009_v13, 0.0  ;;  %v17931_v37 = vld [vmem:[#allocation40_spill] sm:$0xff]  ;;  %v17932_v43 = vld [vmem:[#allocation39_spill] sm:$0xff] }
 0x56b   : > { %v11112_v60 = vadd.f32 %v17929_v26, %v17888_v41  ;;  %v5244_v15 = vmax.f32 %v11015_v1, 0.0  ;;  %v11115_v51 = vadd.f32 %v17930_v57, %v17888_v41  ;;  %v11118_v21 = vadd.f32 %v17931_v37, %v17888_v41  ;;  %v17933_v11 = vld [vmem:[#allocation36_spill] sm:$0xff]  ;;  %v17936_v1 = vld [vmem:[#allocation35_spill] sm:$0xff] }
 0x56c   : > { %v5241_v27 = vmax.f32 %v11012_v10, 0.0  ;;  %v5242_v9 = vmax.f32 %v11018_v22, 0.0  ;;  %v11121_v12 = vadd.f32 %v17932_v43, %v17888_v41  ;;  %v11124_v30 = vadd.f32 %v17933_v11, %v17888_v41 }
 0x56d   : > { %v5332_v16 = vpack.c.bf16 %v5244_v15, %v5243_v19  ;;  %v14654_v58 = vadd.f32 %v11097_v31, %v14382_v4  ;;  %v14657_v13 = vadd.f32 %v11100_v7, %v14382_v4  ;;  %v11127_v57 = vadd.f32 %v17936_v1, %v17888_v41 }
 0x56e   : > { %v14661_v26 = vpop.f32.mrb[16].mxu1  ;;  %v5331_v10 = vpack.c.bf16 %v5242_v9, %v5241_v27  ;;  %v14664_v22 = vadd.f32 %v11103_v45, %v14382_v4  ;;  %v14667_v43 = vadd.f32 %v11106_v32, %v14382_v4  ;;  %v14670_v15 = vadd.f32 %v11109_v42, %v14382_v4 }
 0x56f   : > { %17934 = vst [vmem:[#allocation92_spill] sm:$0xff] %v14654_v58  ;;  %17935 = vst [vmem:[#allocation97_spill] sm:$0xff] %v14657_v13  ;;  %v11021_v31 = vadd.f32 %v14466_v14, %v14661_v26  ;;  %v14674_v7 = vpop.f32.mrb[17].mxu1  ;;  %v14677_v19 = vadd.f32 %v11112_v60, %v14382_v4  ;;  %v14680_v1 = vadd.f32 %v11115_v51, %v14382_v4  ;;  %v17945_v60 = vld [vmem:[#allocation42_spill] sm:$0xff] }
 0x570   : > { %17937 = vst [vmem:[#allocation98_spill] sm:$0xff] %v14664_v22  ;;  %17938 = vst [vmem:[#allocation93_spill] sm:$0xff] %v14667_v43  ;;  %v14683_v45 = vadd.f32 %v11118_v21, %v14382_v4  ;;  %v11024_v9 = vadd.f32 %v14475_v38, %v14674_v7  ;;  %v14687_v27 = vpop.f32.mrb[18].mxu1  ;;  %10535 = vmatprep.mubr.bf16.mxu0 %v5331_v10  ;;  %v14690_v42 = vadd.f32 %v11121_v12, %v14382_v4  ;;  %v17947_v10 = vld [vmem:[#allocation41_spill] sm:$0xff]  ;;  %v17948_v12 = vld [vmem:[#allocation38_spill] sm:$0xff] }
 0x571   : > { %17939 = vst [vmem:[#allocation94_spill] sm:$0xff] %v14670_v15  ;;  %17940 = vst [vmem:[#allocation103_spill] sm:$0xff] %v14677_v19  ;;  %v14693_v14 = vadd.f32 %v11124_v30, %v14382_v4  ;;  %v11130_v32 = vadd.f32 %v17945_v60, %v17888_v41  ;;  %v11027_v51 = vadd.f32 %v14478_v52, %v14687_v27  ;;  %v14699_v21 = vpop.f32.mrb[19].mxu1  ;;  %10536 = vmatmul.mubr.bf16.gmra.mrb[44].mxu0 %v5332_v16  ;;  %v17949_v60 = vld [vmem:[#allocation37_spill] sm:$0xff]  ;;  %v17950_v52 = vld [vmem:[#allocation48_spill] sm:$0xff] }
 0x572   : > { %17941 = vst [vmem:[#allocation104_spill] sm:$0xff] %v14680_v1  ;;  %17942 = vst [vmem:[#allocation99_spill] sm:$0xff] %v14683_v45  ;;  %v14702_v38 = vadd.f32 %v11127_v57, %v14382_v4  ;;  %v11133_v11 = vadd.f32 %v17947_v10, %v17888_v41  ;;  %v11136_v37 = vadd.f32 %v17948_v12, %v17888_v41  ;;  %v17951_v16 = vld [vmem:[#allocation47_spill] sm:$0xff]  ;;  %v5247_v57 = vmax.f32 %v11021_v31, 0.0  ;;  %v17952_v1 = vld [vmem:[#allocation44_spill] sm:$0xff] }
 0x573   : > { %17943 = vst [vmem:[#allocation100_spill] sm:$0xff] %v14690_v42  ;;  %17944 = vst [vmem:[#allocation105_spill] sm:$0xff] %v14693_v14  ;;  %v11030_v30 = vadd.f32 %v14481_v34, %v14699_v21  ;;  %v11139_v14 = vadd.f32 %v17949_v60, %v17888_v41  ;;  %v11142_v42 = vadd.f32 %v17950_v52, %v17888_v41  ;;  %v17953_v19 = vld [vmem:[#allocation43_spill] sm:$0xff]  ;;  %v5245_v15 = vmax.f32 %v11024_v9, 0.0  ;;  %v17954_v34 = vld [vmem:[#allocation50_spill] sm:$0xff] }
 0x574   : > { %17946 = vst [vmem:[#allocation106_spill] sm:$0xff] %v14702_v38  ;;  %v11145_v45 = vadd.f32 %v17951_v16, %v17888_v41  ;;  %v5248_v38 = vmax.f32 %v11027_v51, 0.0  ;;  %v11148_v10 = vadd.f32 %v17952_v1, %v17888_v41  ;;  %v11151_v12 = vadd.f32 %v17953_v19, %v17888_v41  ;;  %v17955_v60 = vld [vmem:[#allocation49_spill] sm:$0xff]  ;;  %v17956_v51 = vld [vmem:[#allocation46_spill] sm:$0xff] }
 0x575   : > { %v5246_v43 = vmax.f32 %v11030_v30, 0.0  ;;  %v11154_v22 = vadd.f32 %v17954_v34, %v17888_v41  ;;  %v11157_v13 = vadd.f32 %v17955_v60, %v17888_v41  ;;  %v14725_v58 = vadd.f32 %v11130_v32, %v14382_v4 }
 0x576   : > { %v5334_v52 = vpack.c.bf16 %v5248_v38, %v5247_v57  ;;  %v14728_v31 = vadd.f32 %v11133_v11, %v14382_v4  ;;  %v11160_v1 = vadd.f32 %v17956_v51, %v17888_v41  ;;  %v14732_v16 = vpop.f32.mrb[20].mxu1  ;;  %v14735_v30 = vadd.f32 %v11136_v37, %v14382_v4  ;;  %v17958_v37 = vld [vmem:[#allocation45_spill] sm:$0xff] }
 0x577   : > { %v5333_v9 = vpack.c.bf16 %v5246_v43, %v5245_v15  ;;  %v14738_v34 = vadd.f32 %v11139_v14, %v14382_v4  ;;  %v14741_v38 = vadd.f32 %v11142_v42, %v14382_v4  ;;  %v11033_v32 = vadd.f32 %v14512_v20, %v14732_v16  ;;  %v14745_v11 = vpop.f32.mrb[21].mxu1 }
 0x578   : > { %v14748_v57 = vadd.f32 %v11145_v45, %v14382_v4  ;;  %v14751_v51 = vadd.f32 %v11148_v10, %v14382_v4  ;;  %v11163_v43 = vadd.f32 %v17958_v37, %v17888_v41  ;;  %v11036_v15 = vadd.f32 %v14515_v48, %v14745_v11  ;;  %v14757_v14 = vpop.f32.mrb[22].mxu1 }
 0x579   : > { %10539 = vmatprep.mubr.bf16.mxu0 %v5333_v9  ;;  %v14760_v42 = vadd.f32 %v11151_v12, %v14382_v4  ;;  %v14763_v20 = vadd.f32 %v11154_v22, %v14382_v4  ;;  %v14766_v45 = vadd.f32 %v11157_v13, %v14382_v4  ;;  %v4625_v10 = vadd.f32 %v14399_v36, %v14382_v4  ;;  %v14772_v60 = vpop.f32.mrb[23].mxu1  ;;  %v17963_v12 = vld [vmem:[#allocation56_spill] sm:$0xff] }
 0x57a   : > { %17957 = vst [vmem:[#allocation101_spill] sm:$0xff] %v14751_v51  ;;  %v11039_v37 = vadd.f32 %v14522_v5, %v14757_v14  ;;  %10540 = vmatmul.mubr.bf16.gmra.mrb[48].mxu0 %v5334_v52  ;;  %v14775_v48 = vadd.f32 %v11160_v1, %v14382_v4  ;;  %v11166_v9 = vadd.f32 %v17963_v12, %v17888_v41  ;;  %v5249_v19 = vmax.f32 %v11036_v15, 0.0 }
 0x57b   : > { %17959 = vst [vmem:[#allocation102_spill] sm:$0xff] %v14760_v42  ;;  %17960 = vst [vmem:[#allocation111_spill] sm:$0xff] %v14763_v20  ;;  %v4617_v22 = vadd.f32 %v14382_v4, %v14405_v55  ;;  %v4628_v13 = vadd.f32 %v14412_v63, %v14382_v4  ;;  %v4620_v36 = vadd.f32 %v14382_v4, %v14422_v46  ;;  %v11795_v55 = vld [vmem:[%s17249_s5 + $0xa0] sm:$0xff]   ;;  %v17967_v42 = vld [vmem:[#allocation51_spill] sm:$0xff] }
 0x57c   : > { %17961 = vst [vmem:[#allocation107_spill] sm:$0xff] %v14766_v45  ;;  %17962 = vst [vmem:[#allocation108_spill] sm:$0xff] %v14775_v48  ;;  %v11042_v5 = vadd.f32 %v14525_v2, %v14772_v60  ;;  %v5251_v45 = vmax.f32 %v11033_v32, 0.0  ;;  %v5252_v52 = vmax.f32 %v11039_v37, 0.0  ;;  %v14788_v1 = vadd.f32 %v11163_v43, %v14382_v4  ;;  %v17965_v48 = vld [vmem:[#allocation55_spill] sm:$0xff]  ;;  %v17966_v20 = vld [vmem:[#allocation52_spill] sm:$0xff]  ;;  %10627 = vmatprep.subr.bf16.mxu0 %v11795_v55 }
 0x57d   : > { %v11169_v12 = vadd.f32 %v17965_v48, %v17888_v41  ;;  %v11172_v46 = vadd.f32 %v17966_v20, %v17888_v41  ;;  %v11175_v2 = vadd.f32 %v17967_v42, %v17888_v41  ;;  %v14800_v32 = vadd.f32 nan, %v17888_v41  ;;  %10628 = vmatpush3.bf16.msra.mxu0 %v11795_v55 }
 0x57e   : > { %17964 = vst [vmem:[#allocation112_spill] sm:$0xff] %v14788_v1  ;;  %v5250_v63 = vmax.f32 %v11042_v5, 0.0  ;;  %v5001_v37 = vadd.f32 %v4625_v10, %v13428_v24  ;;  %v5336_v43 = vpack.c.bf16 %v5252_v52, %v5251_v45  ;;  %v14804_v48 = vadd.f32 %v11166_v9, %v14382_v4  ;;  %v14809_v20 = vpop.f32.mrb[24].mxu1 }
 0x57f   : > { %v4999_v1 = vadd.f32 %v4617_v22, %v13434_v3  ;;  %v5002_v15 = vadd.f32 %v4628_v13, %v13438_v61  ;;  %v5000_v5 = vadd.f32 %v4620_v36, %v13440_v6  ;;  %v4641_v42 = vadd.f32 %v14445_v35, %v14382_v4  ;;  %v14817_v10 = vpop.f32.mrb[25].mxu1  ;;  %v17974_v22 = vld [vmem:[#allocation57_spill] sm:$0xff] }
 0x580   : > { %17968 = vst [vmem:[#allocation113_spill] sm:$0xff] %v14804_v48  ;;  %v5335_v51 = vpack.c.bf16 %v5250_v63, %v5249_v19  ;;  %v4633_v24 = vadd.f32 %v14382_v4, %v14457_v33  ;;  %v11045_v45 = vadd.f32 %v14528_v53, %v14809_v20  ;;  %v14820_v3 = vadd.f32 %v11169_v12, %v14382_v4  ;;  %v14824_v6 = vpop.f32.mrb[26].mxu1  ;;  %v17972_v33 = vld [vmem:[#allocation58_spill] sm:$0xff] }
 0x581   : > { %v11048_v61 = vadd.f32 %v14534_v23, %v14817_v10  ;;  %v14827_v19 = vadd.f32 %v11172_v46, %v14382_v4  ;;  %v14830_v35 = vadd.f32 %v11175_v2, %v14382_v4  ;;  %v14834_v53 = vadd.f32 %v17972_v33, %v17888_v41 }
 0x582   : > { %17969 = vst [vmem:[#allocation109_spill] sm:$0xff] %v14820_v3  ;;  %10543 = vmatprep.mubr.bf16.mxu0 %v5335_v51  ;;  %v14837_v9 = vadd.f32 %v5001_v37, %v14800_v32  ;;  %v4644_v12 = vadd.f32 %v14472_v8, %v14382_v4  ;;  %v11051_v23 = vadd.f32 %v14537_v18, %v14824_v6  ;;  %v14843_v51 = vpop.f32.mrb[27].mxu1  ;;  %v5255_v46 = vmax.f32 %v11045_v45, 0.0 }
 0x583   : > { %17970 = vst [vmem:[#allocation110_spill] sm:$0xff] %v14827_v19  ;;  %17971 = vst [vmem:[#allocation118_spill] sm:$0xff] %v14830_v35  ;;  %10544 = vmatmul.mubr.bf16.gmra.mrb[52].mxu0 %v5336_v43  ;;  %v14847_v13 = vadd.f32 %v17974_v22, %v17888_v41  ;;  %v14850_v36 = vadd.f32 %v4999_v1, %v14800_v32  ;;  %v14853_v52 = vadd.f32 %v5002_v15, %v14800_v32 }
 0x584   : > { %17973 = vst [vmem:[#allocation119_spill] sm:$0xff] %v14834_v53  ;;  %v14856_v55 = vadd.f32 %v5000_v5, %v14800_v32  ;;  %v11054_v8 = vadd.f32 %v14540_v40, %v14843_v51  ;;  %v5005_v18 = vadd.f32 %v4641_v42, %v13460_v44  ;;  %v5003_v63 = vadd.f32 %v4633_v24, %v13466_v54 }
 0x585   : > { %17975 = vst [vmem:[#allocation114_spill] sm:$0xff] %v14847_v13  ;;  %v5256_v2 = vmax.f32 %v11051_v23, 0.0  ;;  %v4636_v37 = vadd.f32 %v14382_v4, %v14484_v50  ;;  %v4657_v1 = vadd.f32 %v14519_v56, %v14382_v4  ;;  %v5253_v43 = vmax.f32 %v11048_v61, 0.0 }
 0x586   : > { %v5254_v15 = vmax.f32 %v11054_v8, 0.0  ;;  %v5006_v5 = vadd.f32 %v4644_v12, %v13475_v25  ;;  %v4649_v22 = vadd.f32 %v14382_v4, %v14531_v47  ;;  %v4660_v44 = vadd.f32 %v14543_v0, %v14382_v4  ;;  %v14877_v42 = vpop.f32.mrb[28].mxu1  ;;  %v17977_v12 = vld [vmem:[#allocation154_spill] sm:$0xff]  ;;  %v17978_v8 = vld [vmem:[#allocation77_spill] sm:$0xff] }
 0x587   : > { %v5338_v40 = vpack.c.bf16 %v5256_v2, %v5255_v46  ;;  %v4652_v54 = vadd.f32 %v14382_v4, %v14557_v49  ;;  %v4673_v50 = vadd.f32 %v14590_v59, %v14382_v4  ;;  %v4665_v56 = vadd.f32 %v14382_v4, %v14603_v39  ;;  %v14888_v45 = vpop.f32.mrb[29].mxu1  ;;  %v17976_v39 = vld [vmem:[#allocation153_spill] sm:$0xff]  ;;  %v17980_v2 = vld [vmem:[#allocation156_spill] sm:$0xff] }
 0x588   : > { %v5337_v24 = vpack.c.bf16 %v5254_v15, %v5253_v43  ;;  %v14880_v25 = vadd.f32 %v5005_v18, %v14800_v32  ;;  %v4676_v47 = vadd.f32 %v14616_v29, %v14382_v4  ;;  %v4668_v0 = vadd.f32 %v14382_v4, %v14628_v28  ;;  %v14897_v46 = vpop.f32.mrb[30].mxu1  ;;  %v17979_v28 = vld [vmem:[#allocation155_spill] sm:$0xff] }
 0x589   : > { %v11057_v49 = vadd.f32 %v14546_v17, %v14877_v42  ;;  %v14891_v59 = vadd.f32 %v5003_v63, %v14800_v32  ;;  %v5004_v61 = vadd.f32 %v4636_v37, %v17976_v39  ;;  %v5009_v23 = vadd.f32 %v4657_v1, %v17977_v12  ;;  %v17981_v63 = vld [vmem:[#allocation88_spill] sm:$0xff]  ;;  %v14906_v33 = vpop.f32.mrb[31].mxu1  ;;  %v17983_v37 = vld [vmem:[#allocation157_spill] sm:$0xff]  ;;  %v17984_v39 = vld [vmem:[#allocation158_spill] sm:$0xff] }
 0x58a   : > { %v11060_v18 = vadd.f32 %v17978_v8, %v14888_v45  ;;  %10547 = vmatprep.mubr.bf16.mxu0 %v5337_v24  ;;  %v14900_v29 = vadd.f32 %v5006_v5, %v14800_v32  ;;  %v5007_v17 = vadd.f32 %v4649_v22, %v17979_v28  ;;  %v5010_v43 = vadd.f32 %v4660_v44, %v17980_v2  ;;  %v17985_v8 = vld [vmem:[#allocation159_spill] sm:$0xff]  ;;  %v17986_v24 = vld [vmem:[#allocation160_spill] sm:$0xff]  ;;  %v17987_v22 = vld [vmem:[#allocation161_spill] sm:$0xff] }
 0x58b   : > { %v11063_v15 = vadd.f32 %v17981_v63, %v14897_v46  ;;  %17982 = vst [vmem:[#allocation115_spill] sm:$0xff] %v14906_v33  ;;  %10548 = vmatmul.mubr.bf16.gmra.mrb[56].mxu0 %v5338_v40  ;;  %v5008_v1 = vadd.f32 %v4652_v54, %v17983_v37  ;;  %v5013_v12 = vadd.f32 %v4673_v50, %v17984_v39  ;;  %v5259_v44 = vmax.f32 %v11057_v49, 0.0 }
 0x58c   : > { %v5011_v35 = vadd.f32 %v4665_v56, %v17985_v8  ;;  %v11066_v5 = vadd.f32 %v14583_v62, %v14906_v33  ;;  %v5014_v19 = vadd.f32 %v4676_v47, %v17986_v24  ;;  %v5012_v28 = vadd.f32 %v4668_v0, %v17987_v22 }
 0x58d   : > { %v5260_v2 = vmax.f32 %v11063_v15, 0.0  ;;  %v14916_v63 = vadd.f32 %v5004_v61, %v14800_v32  ;;  %v14919_v40 = vadd.f32 %v5009_v23, %v14800_v32  ;;  %v5257_v54 = vmax.f32 %v11060_v18, 0.0 }
 0x58e   : > { %v5258_v37 = vmax.f32 %v11066_v5, 0.0  ;;  %v14922_v50 = vadd.f32 %v5007_v17, %v14800_v32  ;;  %v14925_v56 = vadd.f32 %v5010_v43, %v14800_v32  ;;  %v4689_v62 = vadd.f32 %v14661_v26, %v14382_v4  ;;  %v10445_v23 = vpop.f32.mrb[32].mxu1  ;;  %v11796_v17 = vld [vmem:[%s17249_s5 + $0xa8] sm:$0xff]   ;;  %v17989_v5 = vld [vmem:[#allocation84_spill] sm:$0xff] }
 0x58f   : > { %v5340_v47 = vpack.c.bf16 %v5260_v2, %v5259_v44  ;;  %v14930_v0 = vadd.f32 %v5008_v1, %v14800_v32  ;;  %v14933_v49 = vadd.f32 %v5013_v12, %v14800_v32  ;;  %v14936_v61 = vadd.f32 %v5011_v35, %v14800_v32  ;;  %v17988_v1 = vld [vmem:[#allocation87_spill] sm:$0xff]  ;;  %v4744_v12 = vpop.f32.mrb[33].mxu1  ;;  %10629 = vmatprep.subr.bf16.mxu0 %v11796_v17  ;;  %v17991_v2 = vld [vmem:[#allocation14_spill] sm:$0xff] }
 0x590   : > { %v5339_v18 = vpack.c.bf16 %v5258_v37, %v5257_v54  ;;  %v14942_v43 = vadd.f32 %v5014_v19, %v14800_v32  ;;  %v14945_v26 = vadd.f32 %v5012_v28, %v14800_v32  ;;  %v4753_v15 = vadd.f32 %v10445_v23, %v14382_v4  ;;  %v10446_v22 = vpop.f32.mrb[34].mxu1  ;;  %v17990_v19 = vld [vmem:[#allocation162_spill] sm:$0xff]  ;;  %v17992_v37 = vld [vmem:[#allocation83_spill] sm:$0xff]  ;;  %10630 = vmatpush3.bf16.msra.mxu0 %v11796_v17 }
 0x591   : > { %v11069_v39 = vadd.f32 %v17988_v1, %v10445_v23  ;;  %v4681_v35 = vadd.f32 %v14382_v4, %v14674_v7  ;;  %v4745_v8 = vadd.f32 %v14382_v4, %v4744_v12  ;;  %v11072_v24 = vadd.f32 %v17989_v5, %v4744_v12  ;;  %v4747_v23 = vpop.f32.mrb[35].mxu1  ;;  %v17993_v1 = vld [vmem:[#allocation24_spill] sm:$0xff]  ;;  %v17994_v5 = vld [vmem:[#allocation90_spill] sm:$0xff] }
 0x592   : > { %10551 = vmatprep.mubr.bf16.mxu0 %v5339_v18  ;;  %v5017_v44 = vadd.f32 %v4689_v62, %v17990_v19  ;;  %v5033_v28 = vadd.f32 %v4753_v15, %v17991_v2  ;;  %v4756_v54 = vadd.f32 %v10446_v22, %v14382_v4  ;;  %v11075_v13 = vadd.f32 %v17992_v37, %v10446_v22  ;;  %v17995_v15 = vld [vmem:[#allocation23_spill] sm:$0xff] }
 0x593   : > { %10552 = vmatmul.mubr.bf16.gmra.mrb[60].mxu0 %v5340_v47  ;;  %v4692_v7 = vadd.f32 %v14687_v27, %v14382_v4  ;;  %v5031_v3 = vadd.f32 %v4745_v8, %v17993_v1  ;;  %v4748_v12 = vadd.f32 %v14382_v4, %v4747_v23  ;;  %v11078_v18 = vadd.f32 %v17994_v5, %v4747_v23  ;;  %v17996_v47 = vld [vmem:[#allocation20_spill] sm:$0xff]  ;;  %v17997_v27 = vld [vmem:[#allocation163_spill] sm:$0xff]  ;;  %v17998_v1 = vld [vmem:[#allocation89_spill] sm:$0xff] }
 0x594   : > { %v5129_v62 = vadd.f32 %v5033_v28, %v14800_v32  ;;  %v5263_v19 = vmax.f32 %v11069_v39, 0.0  ;;  %v5034_v2 = vadd.f32 %v4756_v54, %v17995_v15  ;;  %v5264_v41 = vmax.f32 %v11075_v13, 0.0  ;;  %v17999_v5 = vld [vmem:[#allocation5_spill] sm:$0xff] }
 0x595   : > { %v5127_v22 = vadd.f32 %v5031_v3, %v14800_v32  ;;  %v5261_v37 = vmax.f32 %v11072_v24, 0.0  ;;  %v5032_v48 = vadd.f32 %v4748_v12, %v17996_v47  ;;  %v5262_v53 = vmax.f32 %v11078_v18, 0.0  ;;  %v18000_v18 = vld [vmem:[#allocation86_spill] sm:$0xff] }
 0x596   : > { %v5015_v33 = vadd.f32 %v4681_v35, %v17997_v27  ;;  %v14968_v8 = vadd.f32 %v5129_v62, %v14837_v9  ;;  %v5130_v23 = vadd.f32 %v5034_v2, %v14800_v32  ;;  %v5342_v17 = vpack.c.bf16 %v5264_v41, %v5263_v19  ;;  %v10449_v13 = vpop.f32.mrb[36].mxu1  ;;  %v18002_v2 = vld [vmem:[#allocation85_spill] sm:$0xff]  ;;  %v18004_v47 = vld [vmem:[#allocation26_spill] sm:$0xff] }
 0x597   : > { %v4684_v39 = vadd.f32 %v14382_v4, %v14699_v21  ;;  %v14974_v28 = vadd.f32 %v5127_v22, %v14850_v36  ;;  %v5128_v3 = vadd.f32 %v5032_v48, %v14800_v32  ;;  %v5341_v24 = vpack.c.bf16 %v5262_v53, %v5261_v37  ;;  %v4760_v12 = vpop.f32.mrb[37].mxu1 }
 0x598   : > { %v14978_v54 = vadd.f32 %v5017_v44, %v14800_v32  ;;  %v14981_v35 = vadd.f32 %v5130_v23, %v14853_v52  ;;  %v4769_v9 = vadd.f32 %v10449_v13, %v14382_v4  ;;  %v11081_v41 = vadd.f32 %v17998_v1, %v10449_v13  ;;  %v10450_v62 = vpop.f32.mrb[38].mxu1  ;;  %v18001_v52 = vld [vmem:[#allocation19_spill] sm:$0xff]  ;;  %v18006_v1 = vld [vmem:[#allocation25_spill] sm:$0xff] }
 0x599   : > { %v5018_v21 = vadd.f32 %v4692_v7, %v17999_v5  ;;  %v14987_v36 = vadd.f32 %v5128_v3, %v14856_v55  ;;  %v4761_v48 = vadd.f32 %v14382_v4, %v4760_v12  ;;  %v11084_v53 = vadd.f32 %v18000_v18, %v4760_v12  ;;  %10555 = vmatprep.mubr.bf16.mxu0 %v5341_v24  ;;  %v4763_v37 = vpop.f32.mrb[39].mxu1  ;;  %v18003_v7 = vld [vmem:[#allocation164_spill] sm:$0xff]  ;;  %v18005_v3 = vld [vmem:[#allocation95_spill] sm:$0xff] }
 0x59a   : > { %v14992_v44 = vadd.f32 %v5015_v33, %v14800_v32  ;;  %v5037_v19 = vadd.f32 %v4769_v9, %v18001_v52  ;;  %v4772_v15 = vadd.f32 %v10450_v62, %v14382_v4  ;;  %v11087_v22 = vadd.f32 %v18002_v2, %v10450_v62  ;;  %v18007_v62 = vld [vmem:[#allocation22_spill] sm:$0xff] }
 0x59b   : > { %10556 = vmatmul.mubr.bf16.gmra.mrb[64].mxu0 %v5342_v17  ;;  %v5016_v55 = vadd.f32 %v4684_v39, %v18003_v7  ;;  %v5035_v27 = vadd.f32 %v4761_v48, %v18004_v47  ;;  %v4764_v23 = vadd.f32 %v14382_v4, %v4763_v37  ;;  %v11090_v13 = vadd.f32 %v18005_v3, %v4763_v37  ;;  %v18008_v47 = vld [vmem:[#allocation96_spill] sm:$0xff] }
 0x59c   : > { %v5133_v24 = vadd.f32 %v5037_v19, %v14800_v32  ;;  %v5267_v33 = vmax.f32 %v11081_v41, 0.0  ;;  %v5038_v12 = vadd.f32 %v4772_v15, %v18006_v1  ;;  %v5268_v9 = vmax.f32 %v11087_v22, 0.0  ;;  %v18011_v1 = vld [vmem:[#allocation21_spill] sm:$0xff] }
 0x59d   : > { %v5131_v5 = vadd.f32 %v5035_v27, %v14800_v32  ;;  %v5265_v18 = vmax.f32 %v11084_v53, 0.0  ;;  %v5036_v52 = vadd.f32 %v4764_v23, %v18007_v62  ;;  %v5266_v17 = vmax.f32 %v11090_v13, 0.0  ;;  %v18009_v13 = vld [vmem:[#allocation91_spill] sm:$0xff] }
 0x59e   : > { %v4705_v39 = vadd.f32 %v14732_v16, %v14382_v4  ;;  %v15008_v48 = vadd.f32 %v5133_v24, %v14880_v25  ;;  %v5134_v2 = vadd.f32 %v5038_v12, %v14800_v32  ;;  %v5344_v37 = vpack.c.bf16 %v5268_v9, %v5267_v33  ;;  %v10453_v15 = vpop.f32.mrb[40].mxu1  ;;  %v18010_v33 = vld [vmem:[#allocation7_spill] sm:$0xff] }
 0x59f   : > { %v15012_v41 = vadd.f32 %v5018_v21, %v14800_v32  ;;  %v15015_v19 = vadd.f32 %v5131_v5, %v14891_v59  ;;  %v5132_v53 = vadd.f32 %v5036_v52, %v14800_v32  ;;  %v5343_v22 = vpack.c.bf16 %v5266_v17, %v5265_v18  ;;  %v4776_v23 = vpop.f32.mrb[41].mxu1  ;;  %v18012_v5 = vld [vmem:[#allocation92_spill] sm:$0xff] }
 0x5a0   : > { %v15019_v7 = vadd.f32 %v5016_v55, %v14800_v32  ;;  %v15022_v16 = vadd.f32 %v5134_v2, %v14900_v29  ;;  %v4785_v25 = vadd.f32 %v10453_v15, %v14382_v4  ;;  %v11093_v27 = vadd.f32 %v18008_v47, %v10453_v15  ;;  %v10454_v55 = vpop.f32.mrb[42].mxu1  ;;  %v18014_v2 = vld [vmem:[#allocation97_spill] sm:$0xff] }
 0x5a1   : > { %v4697_v21 = vadd.f32 %v14382_v4, %v14745_v11  ;;  %v15029_v59 = vadd.f32 %v5132_v53, %v14916_v63  ;;  %v4777_v3 = vadd.f32 %v14382_v4, %v4776_v23  ;;  %v11096_v24 = vadd.f32 %v18009_v13, %v4776_v23  ;;  %10559 = vmatprep.mubr.bf16.mxu0 %v5343_v22  ;;  %v4779_v62 = vpop.f32.mrb[43].mxu1  ;;  %v18013_v63 = vld [vmem:[#allocation32_spill] sm:$0xff]  ;;  %v18015_v22 = vld [vmem:[#allocation31_spill] sm:$0xff] }
 0x5a2   : > { %v5021_v29 = vadd.f32 %v4705_v39, %v18010_v33  ;;  %v5041_v12 = vadd.f32 %v4785_v25, %v18011_v1  ;;  %v4788_v9 = vadd.f32 %v10454_v55, %v14382_v4  ;;  %v11099_v18 = vadd.f32 %v18012_v5, %v10454_v55  ;;  %v18016_v55 = vld [vmem:[#allocation28_spill] sm:$0xff]  ;;  %v18017_v1 = vld [vmem:[#allocation6_spill] sm:$0xff] }
 0x5a3   : > { %10560 = vmatmul.mubr.bf16.gmra.mrb[68].mxu0 %v5344_v37  ;;  %v4708_v11 = vadd.f32 %v14757_v14, %v14382_v4  ;;  %v5039_v52 = vadd.f32 %v4777_v3, %v18013_v63  ;;  %v4780_v17 = vadd.f32 %v14382_v4, %v4779_v62  ;;  %v11102_v53 = vadd.f32 %v18014_v2, %v4779_v62 }
 0x5a4   : > { %v5137_v15 = vadd.f32 %v5041_v12, %v14800_v32  ;;  %v5271_v39 = vmax.f32 %v11093_v27, 0.0  ;;  %v5042_v25 = vadd.f32 %v4788_v9, %v18015_v22  ;;  %v5272_v47 = vmax.f32 %v11099_v18, 0.0 }
 0x5a5   : > { %v5135_v23 = vadd.f32 %v5039_v52, %v14800_v32  ;;  %v5269_v13 = vmax.f32 %v11096_v24, 0.0  ;;  %v5040_v37 = vadd.f32 %v4780_v17, %v18016_v55  ;;  %v5270_v33 = vmax.f32 %v11102_v53, 0.0  ;;  %v18018_v52 = vld [vmem:[#allocation98_spill] sm:$0xff]  ;;  %v18019_v53 = vld [vmem:[#allocation11_spill] sm:$0xff] }
 0x5a6   : > { %v5019_v14 = vadd.f32 %v4697_v21, %v18017_v1  ;;  %v15048_v3 = vadd.f32 %v5137_v15, %v14919_v40  ;;  %v5138_v5 = vadd.f32 %v5042_v25, %v14800_v32  ;;  %v5346_v62 = vpack.c.bf16 %v5272_v47, %v5271_v39  ;;  %v10457_v24 = vpop.f32.mrb[44].mxu1  ;;  %v18020_v39 = vld [vmem:[#allocation93_spill] sm:$0xff] }
 0x5a7   : > { %v4700_v27 = vadd.f32 %v14382_v4, %v14772_v60  ;;  %v15054_v12 = vadd.f32 %v5135_v23, %v14922_v50  ;;  %v5136_v9 = vadd.f32 %v5040_v37, %v14800_v32  ;;  %v5345_v18 = vpack.c.bf16 %v5270_v33, %v5269_v13  ;;  %v4792_v2 = vpop.f32.mrb[45].mxu1  ;;  %v18022_v13 = vld [vmem:[#allocation94_spill] sm:$0xff] }
 0x5a8   : > { %v15058_v63 = vadd.f32 %v5021_v29, %v14800_v32  ;;  %v15061_v21 = vadd.f32 %v5138_v5, %v14925_v56  ;;  %v4801_v40 = vadd.f32 %v10457_v24, %v14382_v4  ;;  %v11105_v17 = vadd.f32 %v18018_v52, %v10457_v24  ;;  %v10458_v25 = vpop.f32.mrb[46].mxu1  ;;  %v18021_v56 = vld [vmem:[#allocation27_spill] sm:$0xff]  ;;  %v18024_v33 = vld [vmem:[#allocation34_spill] sm:$0xff]  ;;  %v18026_v52 = vld [vmem:[#allocation33_spill] sm:$0xff] }
 0x5a9   : > { %v5022_v60 = vadd.f32 %v4708_v11, %v18019_v53  ;;  %v15067_v50 = vadd.f32 %v5136_v9, %v14930_v0  ;;  %v4793_v15 = vadd.f32 %v14382_v4, %v4792_v2  ;;  %v11108_v22 = vadd.f32 %v18020_v39, %v4792_v2  ;;  %10563 = vmatprep.mubr.bf16.mxu0 %v5345_v18  ;;  %v4795_v37 = vpop.f32.mrb[47].mxu1  ;;  %v18023_v11 = vld [vmem:[#allocation10_spill] sm:$0xff]  ;;  %v18025_v9 = vld [vmem:[#allocation103_spill] sm:$0xff] }
 0x5aa   : > { %v15072_v29 = vadd.f32 %v5019_v14, %v14800_v32  ;;  %v5045_v47 = vadd.f32 %v4801_v40, %v18021_v56  ;;  %v4804_v23 = vadd.f32 %v10458_v25, %v14382_v4  ;;  %v11111_v55 = vadd.f32 %v18022_v13, %v10458_v25  ;;  %v11797_v53 = vld [vmem:[%s17249_s5 + $0xb0] sm:$0xff]  }
 0x5ab   : > { %10564 = vmatmul.mubr.bf16.gmra.mrb[72].mxu0 %v5346_v62  ;;  %v5020_v0 = vadd.f32 %v4700_v27, %v18023_v11  ;;  %v5043_v1 = vadd.f32 %v4793_v15, %v18024_v33  ;;  %v4796_v5 = vadd.f32 %v14382_v4, %v4795_v37  ;;  %v11114_v24 = vadd.f32 %v18025_v9, %v4795_v37  ;;  %v18027_v27 = vld [vmem:[#allocation30_spill] sm:$0xff] }
 0x5ac   : > { %v5141_v18 = vadd.f32 %v5045_v47, %v14800_v32  ;;  %v5275_v14 = vmax.f32 %v11105_v17, 0.0  ;;  %v5046_v2 = vadd.f32 %v4804_v23, %v18026_v52  ;;  %v5276_v40 = vmax.f32 %v11111_v55, 0.0  ;;  %10631 = vmatprep.subr.bf16.mxu0 %v11797_v53  ;;  %v18030_v52 = vld [vmem:[#allocation9_spill] sm:$0xff] }
 0x5ad   : > { %v5139_v62 = vadd.f32 %v5043_v1, %v14800_v32  ;;  %v5273_v39 = vmax.f32 %v11108_v22, 0.0  ;;  %v5044_v25 = vadd.f32 %v4796_v5, %v18027_v27  ;;  %v5274_v15 = vmax.f32 %v11114_v24, 0.0  ;;  %10632 = vmatpush3.bf16.msra.mxu0 %v11797_v53  ;;  %v18028_v1 = vld [vmem:[#allocation104_spill] sm:$0xff] }
 0x5ae   : > { %v4721_v56 = vadd.f32 %v14809_v20, %v14382_v4  ;;  %v15091_v13 = vadd.f32 %v5141_v18, %v14933_v49  ;;  %v5142_v17 = vadd.f32 %v5046_v2, %v14800_v32  ;;  %v5348_v47 = vpack.c.bf16 %v5276_v40, %v5275_v14  ;;  %v10461_v37 = vpop.f32.mrb[48].mxu1  ;;  %v18029_v18 = vld [vmem:[#allocation99_spill] sm:$0xff]  ;;  %v18031_v2 = vld [vmem:[#allocation29_spill] sm:$0xff] }
 0x5af   : > { %v15095_v23 = vadd.f32 %v5022_v60, %v14800_v32  ;;  %v15098_v55 = vadd.f32 %v5139_v62, %v14936_v61  ;;  %v5140_v22 = vadd.f32 %v5044_v25, %v14800_v32  ;;  %v5347_v11 = vpack.c.bf16 %v5274_v15, %v5273_v39  ;;  %v4808_v60 = vpop.f32.mrb[49].mxu1  ;;  %v18032_v62 = vld [vmem:[#allocation100_spill] sm:$0xff] }
 0x5b0   : > { %v15102_v20 = vadd.f32 %v5020_v0, %v14800_v32  ;;  %v15105_v49 = vadd.f32 %v5142_v17, %v14942_v43  ;;  %v4817_v33 = vadd.f32 %v10461_v37, %v14382_v4  ;;  %v11117_v5 = vadd.f32 %v18028_v1, %v10461_v37  ;;  %v10462_v0 = vpop.f32.mrb[50].mxu1  ;;  %v18033_v25 = vld [vmem:[#allocation40_spill] sm:$0xff] }
 0x5b1   : > { %v4713_v61 = vadd.f32 %v14382_v4, %v14817_v10  ;;  %v15112_v9 = vadd.f32 %v5140_v22, %v14945_v26  ;;  %v4809_v24 = vadd.f32 %v14382_v4, %v4808_v60  ;;  %v11120_v14 = vadd.f32 %v18029_v18, %v4808_v60  ;;  %10567 = vmatprep.mubr.bf16.mxu0 %v5347_v11  ;;  %v4811_v27 = vpop.f32.mrb[51].mxu1  ;;  %v11798_v10 = vld [vmem:[%s17249_s5 + $0xb8] sm:$0xff]   ;;  %v18034_v22 = vld [vmem:[#allocation105_spill] sm:$0xff] }
 0x5b2   : > { %v5025_v43 = vadd.f32 %v4721_v56, %v18030_v52  ;;  %v5049_v40 = vadd.f32 %v4817_v33, %v18031_v2  ;;  %v4820_v53 = vadd.f32 %v10462_v0, %v14382_v4  ;;  %v11123_v39 = vadd.f32 %v18032_v62, %v10462_v0  ;;  %v15129_v56 = vld [vmem:[%s17250_s6 + $0x1] ss:$0 sm:$0xff]  ;;  %v18035_v33 = vld [vmem:[#allocation39_spill] sm:$0xff]  ;;  %10633 = vmatprep.subr.bf16.mxu0 %v11798_v10 }
 0x5b3   : > { %10568 = vmatmul.mubr.bf16.gmra.mrb[76].mxu0 %v5348_v47  ;;  %v4724_v26 = vadd.f32 %v14824_v6, %v14382_v4  ;;  %v5047_v15 = vadd.f32 %v4809_v24, %v18033_v25  ;;  %v4812_v17 = vadd.f32 %v15129_v56, %v4811_v27  ;;  %v11126_v37 = vadd.f32 %v18034_v22, %v4811_v27  ;;  %v18036_v24 = vld [vmem:[#allocation36_spill] sm:$0xff] }
 0x5b4   : > { %v5145_v47 = vadd.f32 %v5049_v40, %v14800_v32  ;;  %v5279_v11 = vmax.f32 %v11117_v5, 0.0  ;;  %v5050_v1 = vadd.f32 %v4820_v53, %v18035_v33  ;;  %v5280_v60 = vmax.f32 %v11123_v39, 0.0  ;;  %10634 = vmatpush3.bf16.msra.mxu0 %v11798_v10  ;;  %v18037_v52 = vld [vmem:[#allocation8_spill] sm:$0xff] }
 0x5b5   : > { %v5143_v4 = vadd.f32 %v5047_v15, %v14800_v32  ;;  %v5277_v6 = vmax.f32 %v11120_v14, 0.0  ;;  %v5048_v18 = vadd.f32 %v4812_v17, %v18036_v24  ;;  %v5278_v0 = vmax.f32 %v11126_v37, 0.0  ;;  %v18038_v15 = vld [vmem:[#allocation106_spill] sm:$0xff]  ;;  %v18039_v37 = vld [vmem:[#allocation16_spill] sm:$0xff] }
 0x5b6   : > { %v5023_v2 = vadd.f32 %v4713_v61, %v18037_v52  ;;  %v15139_v62 = vadd.f32 %v5145_v47, %v14978_v54  ;;  %v5146_v27 = vadd.f32 %v5050_v1, %v14800_v32  ;;  %v5350_v40 = vpack.c.bf16 %v5280_v60, %v5279_v11  ;;  %v10465_v39 = vpop.f32.mrb[52].mxu1 }
 0x5b7   : > { %v4716_v5 = vadd.f32 %v15129_v56, %v14843_v51  ;;  %v15145_v53 = vadd.f32 %v5143_v4, %v14992_v44  ;;  %v5144_v14 = vadd.f32 %v5048_v18, %v14800_v32  ;;  %v5349_v25 = vpack.c.bf16 %v5278_v0, %v5277_v6  ;;  %v4824_v22 = vpop.f32.mrb[53].mxu1 }
 0x5b8   : > { %v15149_v10 = vadd.f32 %v5025_v43, %v14800_v32  ;;  %v15152_v61 = vadd.f32 %v5146_v27, %v15012_v41  ;;  %v4833_v54 = vadd.f32 %v15129_v56, %v10465_v39  ;;  %v11129_v17 = vadd.f32 %v18038_v15, %v10465_v39  ;;  %v10466_v33 = vpop.f32.mrb[54].mxu1  ;;  %v18040_v41 = vld [vmem:[#allocation35_spill] sm:$0xff] }
 0x5b9   : > { %v5026_v51 = vadd.f32 %v4724_v26, %v18039_v37  ;;  %v15158_v44 = vadd.f32 %v5144_v14, %v15019_v7  ;;  %v4825_v47 = vadd.f32 %v15129_v56, %v4824_v22  ;;  %v11132_v11 = vadd.f32 %v14725_v58, %v4824_v22  ;;  %10571 = vmatprep.mubr.bf16.mxu0 %v5349_v25  ;;  %v4827_v6 = vpop.f32.mrb[55].mxu1  ;;  %v18041_v26 = vld [vmem:[#allocation13_spill] sm:$0xff]  ;;  %v18042_v7 = vld [vmem:[#allocation42_spill] sm:$0xff] }
 0x5ba   : > { %v5119_v43 = vadd.f32 %v5023_v2, %v14800_v32  ;;  %v5053_v1 = vadd.f32 %v4833_v54, %v18040_v41  ;;  %v4836_v60 = vadd.f32 %v15129_v56, %v10466_v33  ;;  %v11135_v4 = vadd.f32 %v14728_v31, %v10466_v33  ;;  %v18043_v2 = vld [vmem:[#allocation41_spill] sm:$0xff]  ;;  %v18044_v31 = vld [vmem:[#allocation38_spill] sm:$0xff] }
 0x5bb   : > { %10572 = vmatmul.mubr.bf16.gmra.mrb[80].mxu0 %v5350_v40  ;;  %v5024_v24 = vadd.f32 %v4716_v5, %v18041_v26  ;;  %v5051_v18 = vadd.f32 %v4825_v47, %v18042_v7  ;;  %v4828_v0 = vadd.f32 %v15129_v56, %v4827_v6  ;;  %v11138_v58 = vadd.f32 %v14735_v30, %v4827_v6 }
 0x5bc   : > { %v5149_v52 = vadd.f32 %v5053_v1, %v14800_v32  ;;  %v5283_v27 = vmax.f32 %v11129_v17, 0.0  ;;  %v5054_v14 = vadd.f32 %v4836_v60, %v18043_v2  ;;  %v5284_v39 = vmax.f32 %v11135_v4, 0.0 }
 0x5bd   : > { %v5147_v25 = vadd.f32 %v5051_v18, %v14800_v32  ;;  %v5281_v54 = vmax.f32 %v11132_v11, 0.0  ;;  %v5052_v15 = vadd.f32 %v4828_v0, %v18044_v31  ;;  %v5282_v40 = vmax.f32 %v11138_v58, 0.0  ;;  %v18046_v18 = vld [vmem:[#allocation37_spill] sm:$0xff] }
 0x5be   : > { %v4737_v5 = vadd.f32 %v15129_v56, %v14877_v42  ;;  %v15177_v22 = vadd.f32 %v5149_v52, %v15058_v63  ;;  %v5150_v30 = vadd.f32 %v5054_v14, %v14800_v32  ;;  %v5352_v37 = vpack.c.bf16 %v5284_v39, %v5283_v27  ;;  %v10469_v11 = vpop.f32.mrb[56].mxu1 }
 0x5bf   : > { %v5122_v17 = vadd.f32 %v5026_v51, %v14800_v32  ;;  %v15182_v47 = vadd.f32 %v5147_v25, %v15072_v29  ;;  %v5148_v33 = vadd.f32 %v5052_v15, %v14800_v32  ;;  %v5351_v41 = vpack.c.bf16 %v5282_v40, %v5281_v54  ;;  %v4840_v4 = vpop.f32.mrb[57].mxu1  ;;  %v18049_v54 = vld [vmem:[#allocation47_spill] sm:$0xff] }
 0x5c0   : > { %v5120_v1 = vadd.f32 %v5024_v24, %v14800_v32  ;;  %v15187_v60 = vadd.f32 %v5150_v30, %v15095_v23  ;;  %v4849_v42 = vadd.f32 %v15129_v56, %v10469_v11  ;;  %v11141_v63 = vadd.f32 %v14738_v34, %v10469_v11  ;;  %v10470_v7 = vpop.f32.mrb[58].mxu1  ;;  %v18045_v24 = vld [vmem:[#allocation12_spill] sm:$0xff] }
 0x5c1   : > { %v4729_v51 = vadd.f32 %v15129_v56, %v14888_v45  ;;  %v15194_v29 = vadd.f32 %v5148_v33, %v15102_v20  ;;  %v4841_v6 = vadd.f32 %v15129_v56, %v4840_v4  ;;  %v11144_v26 = vadd.f32 %v14741_v38, %v4840_v4  ;;  %10575 = vmatprep.mubr.bf16.mxu0 %v5351_v41  ;;  %v4843_v52 = vpop.f32.mrb[59].mxu1  ;;  %v18047_v20 = vld [vmem:[#allocation48_spill] sm:$0xff]  ;;  %v18048_v38 = vld [vmem:[#allocation101_spill] sm:$0xff]  ;;  %v18051_v33 = vld [vmem:[#allocation18_spill] sm:$0xff] }
 0x5c2   : > { %v5029_v23 = vadd.f32 %v4737_v5, %v18045_v24  ;;  %v5057_v0 = vadd.f32 %v4849_v42, %v18046_v18  ;;  %v4852_v58 = vadd.f32 %v15129_v56, %v10470_v7  ;;  %v11147_v34 = vadd.f32 %v14748_v57, %v10470_v7  ;;  %v18050_v5 = vld [vmem:[#allocation44_spill] sm:$0xff]  ;;  %v18052_v4 = vld [vmem:[#allocation115_spill] sm:$0xff] }
 0x5c3   : > { %10576 = vmatmul.mubr.bf16.gmra.mrb[84].mxu0 %v5352_v37  ;;  %v4740_v45 = vadd.f32 %v15129_v56, %v14897_v46  ;;  %v5055_v27 = vadd.f32 %v4841_v6, %v18047_v20  ;;  %v4844_v2 = vadd.f32 %v15129_v56, %v4843_v52  ;;  %v11150_v14 = vadd.f32 %v18048_v38, %v4843_v52  ;;  %v18054_v52 = vld [vmem:[#allocation17_spill] sm:$0xff] }
 0x5c4   : > { %v5153_v39 = vadd.f32 %v5057_v0, %v14800_v32  ;;  %v5287_v25 = vmax.f32 %v11141_v63, 0.0  ;;  %v5058_v31 = vadd.f32 %v4852_v58, %v18049_v54  ;;  %v5288_v15 = vmax.f32 %v11147_v34, 0.0  ;;  %v18057_v54 = vld [vmem:[#allocation107_spill] sm:$0xff] }
 0x5c5   : > { %v5151_v40 = vadd.f32 %v5055_v27, %v14800_v32  ;;  %v5285_v57 = vmax.f32 %v11144_v26, 0.0  ;;  %v5056_v30 = vadd.f32 %v4844_v2, %v18050_v5  ;;  %v5286_v37 = vmax.f32 %v11150_v14, 0.0  ;;  %v18055_v2 = vld [vmem:[#allocation111_spill] sm:$0xff] }
 0x5c6   : > { %v5027_v46 = vadd.f32 %v4729_v51, %v18051_v33  ;;  %v15213_v11 = vadd.f32 %v5153_v39, %v15149_v10  ;;  %v5154_v41 = vadd.f32 %v5058_v31, %v14800_v32  ;;  %v5354_v42 = vpack.c.bf16 %v5288_v15, %v5287_v25  ;;  %v10473_v24 = vpop.f32.mrb[60].mxu1  ;;  %v18053_v10 = vld [vmem:[#allocation102_spill] sm:$0xff] }
 0x5c7   : > { %v4732_v63 = vadd.f32 %v15129_v56, %v18052_v4  ;;  %v15218_v6 = vadd.f32 %v5151_v40, %v5119_v43  ;;  %v5152_v7 = vadd.f32 %v5056_v30, %v14800_v32  ;;  %v5353_v26 = vpack.c.bf16 %v5286_v37, %v5285_v57  ;;  %v4856_v34 = vpop.f32.mrb[61].mxu1  ;;  %v18058_v40 = vld [vmem:[#allocation15_spill] sm:$0xff]  ;;  %v18060_v30 = vld [vmem:[#allocation108_spill] sm:$0xff] }
 0x5c8   : > { %v5125_v18 = vadd.f32 %v5029_v23, %v14800_v32  ;;  %v15222_v0 = vadd.f32 %v5154_v41, %v5122_v17  ;;  %v4865_v51 = vadd.f32 %v15129_v56, %v10473_v24  ;;  %v11153_v58 = vadd.f32 %v18053_v10, %v10473_v24  ;;  %v10474_v14 = vpop.f32.mrb[62].mxu1  ;;  %v18056_v23 = vld [vmem:[#allocation43_spill] sm:$0xff] }
 0x5c9   : > { %v5030_v20 = vadd.f32 %v4740_v45, %v18054_v52  ;;  %v15227_v27 = vadd.f32 %v5152_v7, %v5120_v1  ;;  %v4857_v43 = vadd.f32 %v15129_v56, %v4856_v34  ;;  %v11156_v38 = vadd.f32 %v18055_v2, %v4856_v34  ;;  %10579 = vmatprep.mubr.bf16.mxu0 %v5353_v26  ;;  %v4859_v15 = vpop.f32.mrb[63].mxu1  ;;  %v18059_v1 = vld [vmem:[#allocation50_spill] sm:$0xff] }
 0x5ca   : > { %v5123_v39 = vadd.f32 %v5027_v46, %v14800_v32  ;;  %v5061_v17 = vadd.f32 %v4865_v51, %v18056_v23  ;;  %v4868_v25 = vadd.f32 %v15129_v56, %v10474_v14  ;;  %v11159_v31 = vadd.f32 %v18057_v54, %v10474_v14  ;;  %v18061_v46 = vld [vmem:[#allocation49_spill] sm:$0xff]  ;;  %v18062_v51 = vld [vmem:[#allocation46_spill] sm:$0xff]  ;;  %v18063_v54 = vld [vmem:[#allocation112_spill] sm:$0xff] }
 0x5cb   : > { %10580 = vmatmul.mubr.bf16.gmra.mrb[88].mxu0 %v5354_v42  ;;  %v5028_v45 = vadd.f32 %v4732_v63, %v18058_v40  ;;  %v5059_v57 = vadd.f32 %v4857_v43, %v18059_v1  ;;  %v4860_v5 = vadd.f32 %v15129_v56, %v4859_v15  ;;  %v11162_v37 = vadd.f32 %v18060_v30, %v4859_v15  ;;  %v18067_v30 = vld [vmem:[#allocation54_spill] sm:$0xff] }
 0x5cc   : > { %v5157_v33 = vadd.f32 %v5061_v17, %v14800_v32  ;;  %v5291_v41 = vmax.f32 %v11153_v58, 0.0  ;;  %v5062_v4 = vadd.f32 %v4868_v25, %v18061_v46  ;;  %v5292_v7 = vmax.f32 %v11159_v31, 0.0 }
 0x5cd   : > { %v5155_v24 = vadd.f32 %v5059_v57, %v14800_v32  ;;  %v5289_v26 = vmax.f32 %v11156_v38, 0.0  ;;  %v5060_v10 = vadd.f32 %v4860_v5, %v18062_v51  ;;  %v5290_v42 = vmax.f32 %v11162_v37, 0.0  ;;  %v18066_v5 = vld [vmem:[#allocation4_spill] sm:$0xff] }
 0x5ce   : > { %v5126_v63 = vadd.f32 %v5030_v20, %v14800_v32  ;;  %v15244_v34 = vadd.f32 %v5157_v33, %v5125_v18  ;;  %v5158_v52 = vadd.f32 %v5062_v4, %v14800_v32  ;;  %v5356_v43 = vpack.c.bf16 %v5292_v7, %v5291_v41  ;;  %v10477_v23 = vpop.f32.mrb[64].mxu1  ;;  %v18064_v18 = vld [vmem:[#allocation119_spill] sm:$0xff]  ;;  %v18068_v33 = vld [vmem:[#allocation45_spill] sm:$0xff] }
 0x5cf   : > { %v5124_v2 = vadd.f32 %v5028_v45, %v14800_v32  ;;  %v15248_v14 = vadd.f32 %v5155_v24, %v5123_v39  ;;  %v5156_v58 = vadd.f32 %v5060_v10, %v14800_v32  ;;  %v5355_v17 = vpack.c.bf16 %v5290_v42, %v5289_v26  ;;  %v4872_v20 = vpop.f32.mrb[65].mxu1  ;;  %v18065_v39 = vld [vmem:[#allocation113_spill] sm:$0xff]  ;;  %v18070_v26 = vld [vmem:[#allocation114_spill] sm:$0xff]  ;;  %v18071_v10 = vld [vmem:[#allocation56_spill] sm:$0xff] }
 0x5d0   : > { %v15251_v25 = vadd.f32 %v5158_v52, %v5126_v63  ;;  %v4881_v38 = vadd.f32 %v15129_v56, %v10477_v23  ;;  %v11165_v31 = vadd.f32 %v18063_v54, %v10477_v23  ;;  %v11179_v15 = vadd.f32 %v15129_v56, %v18064_v18  ;;  %v10478_v57 = vpop.f32.mrb[66].mxu1  ;;  %v18069_v4 = vld [vmem:[#allocation109_spill] sm:$0xff]  ;;  %v18072_v52 = vld [vmem:[#allocation110_spill] sm:$0xff]  ;;  %v18074_v54 = vld [vmem:[#allocation55_spill] sm:$0xff] }
 0x5d1   : > { %v15257_v40 = vadd.f32 %v5156_v58, %v5124_v2  ;;  %v4873_v45 = vadd.f32 %v15129_v56, %v4872_v20  ;;  %v11168_v1 = vadd.f32 %v18065_v39, %v4872_v20  ;;  %10583 = vmatprep.mubr.bf16.mxu0 %v5355_v17  ;;  %v11184_v37 = vadd.f32 %v18067_v30, %v18066_v5  ;;  %v4875_v24 = vpop.f32.mrb[67].mxu1  ;;  %v18073_v58 = vld [vmem:[#allocation53_spill] sm:$0xff] }
 0x5d2   : > { %v5065_v41 = vadd.f32 %v4881_v38, %v18068_v33  ;;  %v4884_v46 = vadd.f32 %v15129_v56, %v10478_v57  ;;  %v11171_v7 = vadd.f32 %v18069_v4, %v10478_v57  ;;  %v11182_v51 = vadd.f32 %v15129_v56, %v18070_v26  ;;  %v18075_v57 = vld [vmem:[#allocation52_spill] sm:$0xff] }
 0x5d3   : > { %10584 = vmatmul.mubr.bf16.gmra.mrb[92].mxu0 %v5356_v43  ;;  %v5063_v42 = vadd.f32 %v4873_v45, %v18071_v10  ;;  %v4876_v63 = vadd.f32 %v15129_v56, %v4875_v24  ;;  %v11174_v2 = vadd.f32 %v18072_v52, %v4875_v24  ;;  %v11187_v23 = vadd.f32 %v18073_v58, %v18066_v5  ;;  %v18076_v10 = vld [vmem:[#allocation64_spill] sm:$0xff] }
 0x5d4   : > { %v5161_v17 = vadd.f32 %v5065_v41, %v14800_v32  ;;  %v5295_v38 = vmax.f32 %v11165_v31, 0.0  ;;  %v5066_v20 = vadd.f32 %v4884_v46, %v18074_v54  ;;  %v5296_v18 = vmax.f32 %v11171_v7, 0.0 }
 0x5d5   : > { %v5159_v43 = vadd.f32 %v5063_v42, %v14800_v32  ;;  %v5293_v39 = vmax.f32 %v11168_v1, 0.0  ;;  %v5064_v33 = vadd.f32 %v4876_v63, %v18075_v57  ;;  %v5294_v4 = vmax.f32 %v11174_v2, 0.0  ;;  %v18077_v63 = vld [vmem:[#allocation118_spill] sm:$0xff] }
 0x5d6   : > { %v15278_v45 = vadd.f32 %v14968_v8, %v5161_v17  ;;  %v5162_v24 = vadd.f32 %v5066_v20, %v14800_v32  ;;  %v5358_v26 = vpack.c.bf16 %v5296_v18, %v5295_v38  ;;  %v11190_v52 = vadd.f32 %v18076_v10, %v18066_v5  ;;  %v10481_v46 = vpop.f32.mrb[68].mxu1 }
 0x5d7   : > { %v15284_v31 = vadd.f32 %v14974_v28, %v5159_v43  ;;  %v5160_v41 = vadd.f32 %v5064_v33, %v14800_v32  ;;  %v5357_v7 = vpack.c.bf16 %v5294_v4, %v5293_v39  ;;  %v11185_v1 = vadd.f32 %v15129_v56, %v11184_v37  ;;  %v4888_v17 = vpop.f32.mrb[69].mxu1  ;;  %v18079_v37 = vld [vmem:[#allocation63_spill] sm:$0xff] }
 0x5d8   : > { %v15289_v42 = vadd.f32 %v14981_v35, %v5162_v24  ;;  %v4897_v8 = vadd.f32 %v15129_v56, %v10481_v46  ;;  %v11177_v2 = vadd.f32 %v18077_v63, %v10481_v46  ;;  %v11188_v38 = vadd.f32 %v15129_v56, %v11187_v23  ;;  %v10482_v18 = vpop.f32.mrb[70].mxu1  ;;  %v18080_v35 = vld [vmem:[#allocation51_spill] sm:$0xff]  ;;  %v18081_v24 = vld [vmem:[#allocation58_spill] sm:$0xff] }
 0x5d9   : > { %v15295_v54 = vadd.f32 %v14987_v36, %v5160_v41  ;;  %v4889_v28 = vadd.f32 %v15129_v56, %v4888_v17  ;;  %v11180_v20 = vadd.f32 %v11179_v15, %v4888_v17  ;;  %10587 = vmatprep.mubr.bf16.mxu0 %v5357_v7  ;;  %v11193_v43 = vadd.f32 %v18079_v37, %v18066_v5  ;;  %v4891_v4 = vpop.f32.mrb[71].mxu1  ;;  %v18082_v15 = vld [vmem:[#allocation60_spill] sm:$0xff] }
 0x5da   : > { %v5069_v39 = vadd.f32 %v4897_v8, %v18080_v35  ;;  %v4900_v57 = vadd.f32 %v15129_v56, %v10482_v18  ;;  %v11183_v33 = vadd.f32 %v11182_v51, %v10482_v18  ;;  %v11191_v23 = vadd.f32 %v15129_v56, %v11190_v52 }
 0x5db   : > { %18078 = vst [vmem:[#allocation120_spill] sm:$0xff] %v15295_v54  ;;  %10588 = vmatmul.mubr.bf16.gmra.mrb[96].mxu0 %v5358_v26  ;;  %v5067_v36 = vadd.f32 %v4889_v28, %v18081_v24  ;;  %v4892_v41 = vadd.f32 %v15129_v56, %v4891_v4  ;;  %v11186_v46 = vadd.f32 %v11185_v1, %v4891_v4  ;;  %v5299_v17 = vmax.f32 %v11177_v2, 0.0  ;;  %v18083_v54 = vld [vmem:[#allocation57_spill] sm:$0xff] }
 0x5dc   : > { %v11196_v7 = vadd.f32 %v18082_v15, %v18066_v5  ;;  %v5165_v63 = vadd.f32 %v5069_v39, %v14800_v32  ;;  %v5070_v8 = vadd.f32 %v4900_v57, %v18083_v54  ;;  %v5300_v35 = vmax.f32 %v11183_v33, 0.0 }
 0x5dd   : > { %v5163_v51 = vadd.f32 %v5067_v36, %v14800_v32  ;;  %v5297_v18 = vmax.f32 %v11180_v20, 0.0  ;;  %v5068_v26 = vadd.f32 %v4892_v41, %v18067_v30  ;;  %v5298_v52 = vmax.f32 %v11186_v46, 0.0  ;;  %v18084_v41 = vld [vmem:[#allocation59_spill] sm:$0xff] }
 0x5de   : > { %v15312_v28 = vadd.f32 %v15008_v48, %v5165_v63  ;;  %v5166_v1 = vadd.f32 %v5070_v8, %v14800_v32  ;;  %v5360_v4 = vpack.c.bf16 %v5300_v35, %v5299_v17  ;;  %v11194_v24 = vadd.f32 %v15129_v56, %v11193_v43  ;;  %v10485_v54 = vpop.f32.mrb[72].mxu1 }
 0x5df   : > { %v15317_v39 = vadd.f32 %v15015_v19, %v5163_v51  ;;  %v5164_v2 = vadd.f32 %v5068_v26, %v14800_v32  ;;  %v5359_v57 = vpack.c.bf16 %v5298_v52, %v5297_v18  ;;  %v11197_v20 = vadd.f32 %v15129_v56, %v11196_v7  ;;  %v4904_v36 = vpop.f32.mrb[73].mxu1  ;;  %v18085_v7 = vld [vmem:[#allocation66_spill] sm:$0xff]  ;;  %v18086_v18 = vld [vmem:[#allocation65_spill] sm:$0xff] }
 0x5e0   : > { %v15322_v30 = vadd.f32 %v15022_v16, %v5166_v1  ;;  %v4913_v48 = vadd.f32 %v15129_v56, %v10485_v54  ;;  %v11189_v33 = vadd.f32 %v11188_v38, %v10485_v54  ;;  %v11199_v46 = vadd.f32 %v18084_v41, %v18066_v5  ;;  %v10486_v17 = vpop.f32.mrb[74].mxu1  ;;  %v18087_v1 = vld [vmem:[#allocation62_spill] sm:$0xff] }
 0x5e1   : > { %v15328_v43 = vadd.f32 %v15029_v59, %v5164_v2  ;;  %v4905_v19 = vadd.f32 %v15129_v56, %v4904_v36  ;;  %v11192_v63 = vadd.f32 %v11191_v23, %v4904_v36  ;;  %10591 = vmatprep.mubr.bf16.mxu0 %v5359_v57  ;;  %v11202_v8 = vadd.f32 %v18085_v7, %v18066_v5  ;;  %v4907_v51 = vpop.f32.mrb[75].mxu1 }
 0x5e2   : > { %v5073_v16 = vadd.f32 %v4913_v48, %v18073_v58  ;;  %v4916_v35 = vadd.f32 %v15129_v56, %v10486_v17  ;;  %v11195_v38 = vadd.f32 %v11194_v24, %v10486_v17  ;;  %v11205_v26 = vadd.f32 %v18086_v18, %v18066_v5 }
 0x5e3   : > { %10592 = vmatmul.mubr.bf16.gmra.mrb[100].mxu0 %v5360_v4  ;;  %v5071_v59 = vadd.f32 %v4905_v19, %v18076_v10  ;;  %v4908_v52 = vadd.f32 %v15129_v56, %v4907_v51  ;;  %v11198_v23 = vadd.f32 %v11197_v20, %v4907_v51  ;;  %v11208_v2 = vadd.f32 %v18087_v1, %v18066_v5 }
 0x5e4   : > { %v5169_v54 = vadd.f32 %v5073_v16, %v14800_v32  ;;  %v5303_v57 = vmax.f32 %v11189_v33, 0.0  ;;  %v5074_v58 = vadd.f32 %v4916_v35, %v18079_v37  ;;  %v5304_v48 = vmax.f32 %v11195_v38, 0.0 }
 0x5e5   : > { %v5167_v24 = vadd.f32 %v5071_v59, %v14800_v32  ;;  %v5301_v4 = vmax.f32 %v11192_v63, 0.0  ;;  %v5072_v36 = vadd.f32 %v4908_v52, %v18082_v15  ;;  %v5302_v17 = vmax.f32 %v11198_v23, 0.0 }
 0x5e6   : > { %v15346_v10 = vadd.f32 %v15048_v3, %v5169_v54  ;;  %v5170_v20 = vadd.f32 %v5074_v58, %v14800_v32  ;;  %v5362_v19 = vpack.c.bf16 %v5304_v48, %v5303_v57  ;;  %v11200_v51 = vadd.f32 %v15129_v56, %v11199_v46  ;;  %v10489_v33 = vpop.f32.mrb[76].mxu1 }
 0x5e7   : > { %v15351_v16 = vadd.f32 %v15054_v12, %v5167_v24  ;;  %v5168_v37 = vadd.f32 %v5072_v36, %v14800_v32  ;;  %v11203_v35 = vadd.f32 %v15129_v56, %v11202_v8  ;;  %v5361_v63 = vpack.c.bf16 %v5302_v17, %v5301_v4  ;;  %v4920_v59 = vpop.f32.mrb[77].mxu1 }
 0x5e8   : > { %v15356_v15 = vadd.f32 %v15061_v21, %v5170_v20  ;;  %v4929_v3 = vadd.f32 %v15129_v56, %v10489_v33  ;;  %v11201_v38 = vadd.f32 %v11200_v51, %v10489_v33  ;;  %v11206_v52 = vadd.f32 %v15129_v56, %v11205_v26  ;;  %v10490_v54 = vpop.f32.mrb[78].mxu1 }
 0x5e9   : > { %v15361_v46 = vadd.f32 %v15067_v50, %v5168_v37  ;;  %v4921_v12 = vadd.f32 %v15129_v56, %v4920_v59  ;;  %v11204_v23 = vadd.f32 %v11203_v35, %v4920_v59  ;;  %10595 = vmatprep.mubr.bf16.mxu0 %v5361_v63  ;;  %v11209_v8 = vadd.f32 %v15129_v56, %v11208_v2  ;;  %v4923_v48 = vpop.f32.mrb[79].mxu1 }
 0x5ea   : > { %v5077_v57 = vadd.f32 %v4929_v3, %v18084_v41  ;;  %v4932_v21 = vadd.f32 %v15129_v56, %v10490_v54  ;;  %v11207_v58 = vadd.f32 %v11206_v52, %v10490_v54  ;;  %v4924_v26 = vadd.f32 %v15129_v56, %v4923_v48 }
 0x5eb   : > { %10596 = vmatmul.mubr.bf16.gmra.mrb[104].mxu0 %v5362_v19  ;;  %v5075_v24 = vadd.f32 %v4921_v12, %v18085_v7  ;;  %v11210_v50 = vadd.f32 %v11209_v8, %v4923_v48  ;;  %v5307_v36 = vmax.f32 %v11201_v38, 0.0  ;;  %v5305_v51 = vmax.f32 %v11204_v23, 0.0  ;;  %v18088_v38 = vld [vmem:[#allocation61_spill] sm:$0xff]  ;;  %v18091_v23 = vld [vmem:[#allocation68_spill] sm:$0xff] }
 0x5ec   : > { %v5173_v4 = vadd.f32 %v5077_v57, %v14800_v32  ;;  %v5078_v17 = vadd.f32 %v4932_v21, %v18086_v18  ;;  %v5308_v20 = vmax.f32 %v11207_v58, 0.0  ;;  %v5076_v41 = vadd.f32 %v4924_v26, %v18087_v1 }
 0x5ed   : > { %v5171_v2 = vadd.f32 %v5075_v24, %v14800_v32  ;;  %v5306_v37 = vmax.f32 %v11210_v50, 0.0  ;;  %v11211_v59 = vadd.f32 %v18088_v38, %v18066_v5  ;;  %v11220_v54 = vadd.f32 %v18091_v23, %v18066_v5 }
 0x5ee   : > { %v15374_v33 = vadd.f32 %v15091_v13, %v5173_v4  ;;  %v5174_v7 = vadd.f32 %v5078_v17, %v14800_v32  ;;  %v5364_v19 = vpack.c.bf16 %v5308_v20, %v5307_v36  ;;  %v5172_v63 = vadd.f32 %v5076_v41, %v14800_v32  ;;  %v18089_v13 = vld [vmem:[#allocation72_spill] sm:$0xff] }
 0x5ef   : > { %v15378_v35 = vadd.f32 %v15098_v55, %v5171_v2  ;;  %v5363_v3 = vpack.c.bf16 %v5306_v37, %v5305_v51  ;;  %v11214_v52 = vadd.f32 %v18089_v13, %v18066_v5  ;;  %v18090_v55 = vld [vmem:[#allocation71_spill] sm:$0xff]  ;;  %v11221_v4 = vadd.f32 %v15129_v56, %v11220_v54 }
 0x5f0   : > { %v15382_v18 = vadd.f32 %v15105_v49, %v5174_v7  ;;  %v15387_v1 = vadd.f32 %v15112_v9, %v5172_v63  ;;  %v11217_v12 = vadd.f32 %v18090_v55, %v18066_v5  ;;  %v11212_v49 = vadd.f32 %v15129_v56, %v11211_v59 }
 0x5f1   : > { %10599 = vmatprep.mubr.bf16.mxu0 %v5363_v3  ;;  %v11215_v57 = vadd.f32 %v15129_v56, %v11214_v52 }
 0x5f2   : > { %v11218_v48 = vadd.f32 %v15129_v56, %v11217_v12 }
 0x5f3   : > { %10600 = vmatmul.mubr.bf16.gmra.mrb[108].mxu0 %v5364_v19 }
 0x5f4   : > { %v10493_v8 = vpop.f32.mrb[80].mxu1 }
 0x5f5   : > { %v4945_v21 = vadd.f32 %v15129_v56, %v10493_v8  ;;  %v11213_v9 = vadd.f32 %v11212_v49, %v10493_v8  ;;  %v4936_v58 = vpop.f32.mrb[81].mxu1 }
 0x5f6   : > { %v4937_v24 = vadd.f32 %v15129_v56, %v4936_v58  ;;  %v11216_v26 = vadd.f32 %v11215_v57, %v4936_v58  ;;  %v10494_v50 = vpop.f32.mrb[82].mxu1  ;;  %v18093_v58 = vld [vmem:[#allocation74_spill] sm:$0xff] }
 0x5f7   : > { %v5081_v36 = vadd.f32 %v4945_v21, %v18088_v38  ;;  %v4948_v17 = vadd.f32 %v15129_v56, %v10494_v50  ;;  %v11219_v20 = vadd.f32 %v11218_v48, %v10494_v50  ;;  %v4939_v2 = vpop.f32.mrb[83].mxu1  ;;  %v5311_v19 = vmax.f32 %v11213_v9, 0.0 }
 0x5f8   : > { %v5079_v51 = vadd.f32 %v4937_v24, %v18089_v13  ;;  %v4940_v41 = vadd.f32 %v15129_v56, %v4939_v2  ;;  %v11222_v37 = vadd.f32 %v11221_v4, %v4939_v2  ;;  %v5309_v52 = vmax.f32 %v11216_v26, 0.0  ;;  %v18095_v26 = vld [vmem:[#allocation70_spill] sm:$0xff] }
 0x5f9   : > { %v5177_v7 = vadd.f32 %v5081_v36, %v14800_v32  ;;  %v5082_v63 = vadd.f32 %v4948_v17, %v18090_v55  ;;  %v5312_v3 = vmax.f32 %v11219_v20, 0.0  ;;  %v11226_v48 = vadd.f32 %v18093_v58, %v18066_v5 }
 0x5fa   : > { %v5175_v59 = vadd.f32 %v5079_v51, %v14800_v32  ;;  %v5080_v38 = vadd.f32 %v4940_v41, %v18091_v23  ;;  %v5310_v12 = vmax.f32 %v11222_v37, 0.0  ;;  %v11232_v50 = vadd.f32 %v18095_v26, %v18066_v5 }
 0x5fb   : > { %v15410_v54 = vadd.f32 %v15139_v62, %v5177_v7  ;;  %v5178_v13 = vadd.f32 %v5082_v63, %v14800_v32  ;;  %v5366_v49 = vpack.c.bf16 %v5312_v3, %v5311_v19  ;;  %v18092_v62 = vld [vmem:[#allocation67_spill] sm:$0xff] }
 0x5fc   : > { %v15414_v8 = vadd.f32 %v15145_v53, %v5175_v59  ;;  %v5176_v57 = vadd.f32 %v5080_v38, %v14800_v32  ;;  %v5365_v21 = vpack.c.bf16 %v5310_v12, %v5309_v52  ;;  %v11223_v23 = vadd.f32 %v18092_v62, %v18066_v5  ;;  %v18094_v53 = vld [vmem:[#allocation73_spill] sm:$0xff] }
 0x5fd   : > { %v15418_v55 = vadd.f32 %v15152_v61, %v5178_v13  ;;  %v11229_v24 = vadd.f32 %v18094_v53, %v18066_v5  ;;  %v11233_v7 = vadd.f32 %v15129_v56, %v11232_v50 }
 0x5fe   : > { %v15421_v9 = vadd.f32 %v15158_v44, %v5176_v57  ;;  %10603 = vmatprep.mubr.bf16.mxu0 %v5365_v21  ;;  %v11224_v61 = vadd.f32 %v15129_v56, %v11223_v23  ;;  %v11227_v44 = vadd.f32 %v15129_v56, %v11226_v48 }
 0x5ff   : > { %10604 = vmatmul.mubr.bf16.gmra.mrb[112].mxu0 %v5366_v49  ;;  %v11230_v2 = vadd.f32 %v15129_v56, %v11229_v24 }
 0x604   : > { %v10497_v4 = vpop.f32.mrb[84].mxu1 }
 0x605   : > { %v4961_v36 = vadd.f32 %v15129_v56, %v10497_v4  ;;  %v11225_v17 = vadd.f32 %v11224_v61, %v10497_v4  ;;  %v4952_v20 = vpop.f32.mrb[85].mxu1 }
 0x606   : > { %v4953_v51 = vadd.f32 %v15129_v56, %v4952_v20  ;;  %v11228_v41 = vadd.f32 %v11227_v44, %v4952_v20  ;;  %v10498_v37 = vpop.f32.mrb[86].mxu1  ;;  %v18097_v20 = vld [vmem:[#allocation80_spill] sm:$0xff] }
 0x607   : > { %v5085_v19 = vadd.f32 %v4961_v36, %v18092_v62  ;;  %v4964_v63 = vadd.f32 %v15129_v56, %v10498_v37  ;;  %v11231_v3 = vadd.f32 %v11230_v2, %v10498_v37  ;;  %v4955_v59 = vpop.f32.mrb[87].mxu1  ;;  %v5315_v49 = vmax.f32 %v11225_v17, 0.0 }
 0x608   : > { %v5083_v52 = vadd.f32 %v4953_v51, %v18093_v58  ;;  %v4956_v38 = vadd.f32 %v15129_v56, %v4955_v59  ;;  %v11234_v12 = vadd.f32 %v11233_v7, %v4955_v59  ;;  %v5313_v48 = vmax.f32 %v11228_v41, 0.0  ;;  %v18099_v41 = vld [vmem:[#allocation76_spill] sm:$0xff] }
 0x609   : > { %v5181_v13 = vadd.f32 %v5085_v19, %v14800_v32  ;;  %v5086_v57 = vadd.f32 %v4964_v63, %v18094_v53  ;;  %v5316_v21 = vmax.f32 %v11231_v3, 0.0  ;;  %v11238_v2 = vadd.f32 %v18097_v20, %v18066_v5 }
 0x60a   : > { %v5179_v23 = vadd.f32 %v5083_v52, %v14800_v32  ;;  %v5084_v62 = vadd.f32 %v4956_v38, %v18095_v26  ;;  %v5314_v24 = vmax.f32 %v11234_v12, 0.0  ;;  %v11244_v37 = vadd.f32 %v18099_v41, %v18066_v5 }
 0x60b   : > { %v15446_v50 = vadd.f32 %v15177_v22, %v5181_v13  ;;  %v5182_v58 = vadd.f32 %v5086_v57, %v14800_v32  ;;  %v5368_v61 = vpack.c.bf16 %v5316_v21, %v5315_v49  ;;  %v18096_v22 = vld [vmem:[#allocation69_spill] sm:$0xff] }
 0x60c   : > { %v15450_v4 = vadd.f32 %v15182_v47, %v5179_v23  ;;  %v5180_v44 = vadd.f32 %v5084_v62, %v14800_v32  ;;  %v5367_v36 = vpack.c.bf16 %v5314_v24, %v5313_v48  ;;  %v11235_v26 = vadd.f32 %v18096_v22, %v18066_v5  ;;  %v18098_v47 = vld [vmem:[#allocation79_spill] sm:$0xff] }
 0x60d   : > { %v15454_v53 = vadd.f32 %v15187_v60, %v5182_v58  ;;  %v11241_v51 = vadd.f32 %v18098_v47, %v18066_v5  ;;  %v11245_v13 = vadd.f32 %v15129_v56, %v11244_v37 }
 0x60e   : > { %v15457_v17 = vadd.f32 %v15194_v29, %v5180_v44  ;;  %10607 = vmatprep.mubr.bf16.mxu0 %v5367_v36  ;;  %v11236_v60 = vadd.f32 %v15129_v56, %v11235_v26  ;;  %v11239_v29 = vadd.f32 %v15129_v56, %v11238_v2 }
 0x60f   : > { %10608 = vmatmul.mubr.bf16.gmra.mrb[116].mxu0 %v5368_v61  ;;  %v11242_v59 = vadd.f32 %v15129_v56, %v11241_v51 }
 0x614   : > { %v10501_v7 = vpop.f32.mrb[88].mxu1 }
 0x615   : > { %v4977_v19 = vadd.f32 %v15129_v56, %v10501_v7  ;;  %v11237_v63 = vadd.f32 %v11236_v60, %v10501_v7  ;;  %v4968_v3 = vpop.f32.mrb[89].mxu1 }
 0x616   : > { %v4969_v52 = vadd.f32 %v15129_v56, %v4968_v3  ;;  %v11240_v38 = vadd.f32 %v11239_v29, %v4968_v3  ;;  %v10502_v12 = vpop.f32.mrb[90].mxu1  ;;  %v18101_v3 = vld [vmem:[#allocation82_spill] sm:$0xff] }
 0x617   : > { %v5089_v49 = vadd.f32 %v4977_v19, %v18096_v22  ;;  %v4980_v57 = vadd.f32 %v15129_v56, %v10502_v12  ;;  %v11243_v21 = vadd.f32 %v11242_v59, %v10502_v12  ;;  %v4971_v23 = vpop.f32.mrb[91].mxu1  ;;  %v5319_v61 = vmax.f32 %v11237_v63, 0.0 }
 0x618   : > { %v5087_v48 = vadd.f32 %v4969_v52, %v18097_v20  ;;  %v4972_v62 = vadd.f32 %v15129_v56, %v4971_v23  ;;  %v11246_v24 = vadd.f32 %v11245_v13, %v4971_v23  ;;  %v5317_v2 = vmax.f32 %v11240_v38, 0.0  ;;  %v18103_v38 = vld [vmem:[#allocation78_spill] sm:$0xff] }
 0x619   : > { %v5185_v58 = vadd.f32 %v5089_v49, %v14800_v32  ;;  %v5090_v44 = vadd.f32 %v4980_v57, %v18098_v47  ;;  %v5320_v36 = vmax.f32 %v11243_v21, 0.0  ;;  %v11250_v59 = vadd.f32 %v18101_v3, %v18066_v5 }
 0x61a   : > { %v5183_v26 = vadd.f32 %v5087_v48, %v14800_v32  ;;  %v5088_v22 = vadd.f32 %v4972_v62, %v18099_v41  ;;  %v5318_v51 = vmax.f32 %v11246_v24, 0.0  ;;  %v11256_v12 = vadd.f32 %v18103_v38, %v18066_v5 }
 0x61b   : > { %v15482_v37 = vadd.f32 %v15213_v11, %v5185_v58  ;;  %v5186_v20 = vadd.f32 %v5090_v44, %v14800_v32  ;;  %v5370_v60 = vpack.c.bf16 %v5320_v36, %v5319_v61  ;;  %v18100_v11 = vld [vmem:[#allocation75_spill] sm:$0xff] }
 0x61c   : > { %v15486_v7 = vadd.f32 %v15218_v6, %v5183_v26  ;;  %v5184_v29 = vadd.f32 %v5088_v22, %v14800_v32  ;;  %v5369_v19 = vpack.c.bf16 %v5318_v51, %v5317_v2  ;;  %v11247_v41 = vadd.f32 %v18100_v11, %v18066_v5  ;;  %v18102_v6 = vld [vmem:[#allocation81_spill] sm:$0xff] }
 0x61d   : > { %v15490_v47 = vadd.f32 %v15222_v0, %v5186_v20  ;;  %v11253_v52 = vadd.f32 %v18102_v6, %v18066_v5  ;;  %v11257_v58 = vadd.f32 %v15129_v56, %v11256_v12 }
 0x61e   : > { %v15493_v63 = vadd.f32 %v15227_v27, %v5184_v29  ;;  %10611 = vmatprep.mubr.bf16.mxu0 %v5369_v19  ;;  %v11248_v0 = vadd.f32 %v15129_v56, %v11247_v41  ;;  %v11251_v27 = vadd.f32 %v15129_v56, %v11250_v59 }
 0x61f   : > { %10612 = vmatmul.mubr.bf16.gmra.mrb[120].mxu0 %v5370_v60  ;;  %v11254_v23 = vadd.f32 %v15129_v56, %v11253_v52  ;;  %v15520_v52 = vld [vmem:[%s17248_s4 + $0x2] ss:$0 sm:$0xff] }
 0x624   : > { %v10505_v13 = vpop.f32.mrb[92].mxu1 }
 0x625   : > { %v4993_v49 = vadd.f32 %v15129_v56, %v10505_v13  ;;  %v11249_v57 = vadd.f32 %v11248_v0, %v10505_v13  ;;  %v4984_v21 = vpop.f32.mrb[93].mxu1 }
 0x626   : > { %v4985_v48 = vadd.f32 %v15129_v56, %v4984_v21  ;;  %v11252_v62 = vadd.f32 %v11251_v27, %v4984_v21  ;;  %v10506_v24 = vpop.f32.mrb[94].mxu1 }
 0x627   : > { %v5093_v61 = vadd.f32 %v4993_v49, %v18100_v11  ;;  %v4996_v5 = vadd.f32 %v15129_v56, %v10506_v24  ;;  %v11255_v44 = vadd.f32 %v11254_v23, %v10506_v24  ;;  %v4987_v36 = vpop.f32.mrb[95].mxu1  ;;  %v5323_v20 = vmax.f32 %v11249_v57, 0.0 }
 0x628   : > { %v5091_v26 = vadd.f32 %v4985_v48, %v18101_v3  ;;  %v4988_v2 = vadd.f32 %v15129_v56, %v4987_v36  ;;  %v11258_v22 = vadd.f32 %v11257_v58, %v4987_v36  ;;  %v5321_v41 = vmax.f32 %v11252_v62, 0.0 }
 0x629   : > { %v5189_v51 = vadd.f32 %v5093_v61, %v14800_v32  ;;  %v5094_v60 = vadd.f32 %v4996_v5, %v18102_v6  ;;  %v5324_v29 = vmax.f32 %v11255_v44, 0.0 }
 0x62a   : > { %v5187_v19 = vadd.f32 %v5091_v26, %v14800_v32  ;;  %v5092_v11 = vadd.f32 %v4988_v2, %v18103_v38  ;;  %v5322_v59 = vmax.f32 %v11258_v22, 0.0 }
 0x62b   : > { %v15523_v56 = vadd.f32 %v15244_v34, %v5189_v51  ;;  %v5190_v3 = vadd.f32 %v5094_v60, %v14800_v32  ;;  %v5372_v12 = vpack.c.bf16 %v5324_v29, %v5323_v20 }
 0x62c   : > { %v15527_v6 = vadd.f32 %v15248_v14, %v5187_v19  ;;  %v5188_v0 = vadd.f32 %v5092_v11, %v14800_v32  ;;  %v10525_v13 = vpop.f32.mrb[32].mxu0  ;;  %v5371_v27 = vpack.c.bf16 %v5322_v59, %v5321_v41 }
 0x62d   : > { %v15531_v38 = vadd.f32 %v15251_v25, %v5190_v3  ;;  %v5470_v49 = vadd.f32 %v10525_v13, %v15520_v52  ;;  %v5461_v57 = vpop.f32.mrb[33].mxu0 }
 0x62e   : > { %v15535_v21 = vadd.f32 %v15257_v40, %v5188_v0  ;;  %v5462_v34 = vadd.f32 %v15520_v52, %v5461_v57  ;;  %v10526_v23 = vpop.f32.mrb[34].mxu0  ;;  %10615 = vmatprep.mubr.bf16.mxu0 %v5371_v27 }
 0x62f   : > { %v5473_v14 = vadd.f32 %v10526_v23, %v15520_v52  ;;  %v5464_v48 = vpop.f32.mrb[35].mxu0  ;;  %10616 = vmatmul.mubr.bf16.gmra.mrb[124].mxu0 %v5372_v12  ;;  %v5846_v62 = vmax.f32 %v5470_v49, 0.0 }
 0x630   : > { %v5465_v32 = vadd.f32 %v15520_v52, %v5464_v48  ;;  %v5844_v25 = vmax.f32 %v5462_v34, 0.0 }
 0x631   : > { %v5847_v24 = vmax.f32 %v5473_v14, 0.0 }
 0x632   : > { %v5845_v58 = vmax.f32 %v5465_v32, 0.0 }
 0x633   : > { %v5941_v61 = vpack.c.bf16 %v5847_v24, %v5846_v62 }
 0x634   : > { %v5940_v5 = vpack.c.bf16 %v5845_v58, %v5844_v25  ;;  %v10529_v44 = vpop.f32.mrb[36].mxu0 }
 0x635   : > { %v5486_v40 = vadd.f32 %v10529_v44, %v15520_v52  ;;  %v5477_v36 = vpop.f32.mrb[37].mxu0 }
 0x636   : > { %v5478_v26 = vadd.f32 %v15520_v52, %v5477_v36  ;;  %v10530_v2 = vpop.f32.mrb[38].mxu0  ;;  %10635 = vmatprep.mubr.bf16.mxu0 %v5940_v5 }
 0x637   : > { %v5489_v22 = vadd.f32 %v10530_v2, %v15520_v52  ;;  %v5480_v51 = vpop.f32.mrb[39].mxu0  ;;  %10636 = vmatmul.mubr.bf16.vlgmr.msra.gmra.mrb[128].mxu0 %v5941_v61  ;;  %v5850_v60 = vmax.f32 %v5486_v40, 0.0 }
 0x638   : > { %v5481_v20 = vadd.f32 %v15520_v52, %v5480_v51  ;;  %v5848_v19 = vmax.f32 %v5478_v26, 0.0 }
 0x639   : > { %v5851_v29 = vmax.f32 %v5489_v22, 0.0 }
 0x63a   : > { %v5849_v41 = vmax.f32 %v5481_v20, 0.0 }
 0x63b   : > { %v5943_v11 = vpack.c.bf16 %v5851_v29, %v5850_v60 }
 0x63c   : > { %v5942_v59 = vpack.c.bf16 %v5849_v41, %v5848_v19  ;;  %v10533_v3 = vpop.f32.mrb[40].mxu0 }
 0x63d   : > { %v5502_v12 = vadd.f32 %v10533_v3, %v15520_v52  ;;  %v5493_v0 = vpop.f32.mrb[41].mxu0 }
 0x63e   : > { %v5494_v13 = vadd.f32 %v15520_v52, %v5493_v0  ;;  %v10534_v27 = vpop.f32.mrb[42].mxu0  ;;  %10639 = vmatprep.mubr.bf16.mxu0 %v5942_v59 }
 0x63f   : > { %v5505_v49 = vadd.f32 %v10534_v27, %v15520_v52  ;;  %v5496_v57 = vpop.f32.mrb[43].mxu0  ;;  %10640 = vmatmul.mubr.bf16.gmra.mrb[132].mxu0 %v5943_v11  ;;  %v5854_v23 = vmax.f32 %v5502_v12, 0.0 }
 0x640   : > { %v5497_v34 = vadd.f32 %v15520_v52, %v5496_v57  ;;  %v5852_v48 = vmax.f32 %v5494_v13, 0.0 }
 0x641   : > { %v5855_v14 = vmax.f32 %v5505_v49, 0.0 }
 0x642   : > { %v5853_v32 = vmax.f32 %v5497_v34, 0.0 }
 0x643   : > { %v5945_v62 = vpack.c.bf16 %v5855_v14, %v5854_v23 }
 0x644   : > { %v5944_v24 = vpack.c.bf16 %v5853_v32, %v5852_v48  ;;  %v10537_v25 = vpop.f32.mrb[44].mxu0 }
 0x645   : > { %v5518_v58 = vadd.f32 %v10537_v25, %v15520_v52  ;;  %v5509_v61 = vpop.f32.mrb[45].mxu0 }
 0x646   : > { %v5510_v5 = vadd.f32 %v15520_v52, %v5509_v61  ;;  %v10538_v44 = vpop.f32.mrb[46].mxu0  ;;  %10643 = vmatprep.mubr.bf16.mxu0 %v5944_v24 }
 0x647   : > { %v5521_v40 = vadd.f32 %v10538_v44, %v15520_v52  ;;  %v5512_v36 = vpop.f32.mrb[47].mxu0  ;;  %10644 = vmatmul.mubr.bf16.gmra.mrb[136].mxu0 %v5945_v62  ;;  %v5858_v2 = vmax.f32 %v5518_v58, 0.0 }
 0x648   : > { %v5513_v26 = vadd.f32 %v15520_v52, %v5512_v36  ;;  %v5856_v51 = vmax.f32 %v5510_v5, 0.0 }
 0x649   : > { %v5859_v22 = vmax.f32 %v5521_v40, 0.0 }
 0x64a   : > { %v5857_v20 = vmax.f32 %v5513_v26, 0.0 }
 0x64b   : > { %v5947_v60 = vpack.c.bf16 %v5859_v22, %v5858_v2 }
 0x64c   : > { %v5946_v29 = vpack.c.bf16 %v5857_v20, %v5856_v51 }
 0x64d   : > { %v10541_v19 = vpop.f32.mrb[48].mxu0 }
 0x64e   : > { %v5534_v41 = vadd.f32 %v10541_v19, %v15520_v52  ;;  %v5525_v11 = vpop.f32.mrb[49].mxu0  ;;  %10647 = vmatprep.mubr.bf16.mxu0 %v5946_v29 }
 0x64f   : > { %v5526_v59 = vadd.f32 %v15520_v52, %v5525_v11  ;;  %v10542_v3 = vpop.f32.mrb[50].mxu0  ;;  %10648 = vmatmul.mubr.bf16.gmra.mrb[140].mxu0 %v5947_v60 }
 0x650   : > { %v5537_v12 = vadd.f32 %v10542_v3, %v15520_v52  ;;  %v5528_v0 = vpop.f32.mrb[51].mxu0  ;;  %v5862_v27 = vmax.f32 %v5534_v41, 0.0 }
 0x651   : > { %v5529_v13 = vadd.f32 %v15520_v52, %v5528_v0  ;;  %v5860_v57 = vmax.f32 %v5526_v59, 0.0 }
 0x652   : > { %v5863_v49 = vmax.f32 %v5537_v12, 0.0 }
 0x653   : > { %v5861_v34 = vmax.f32 %v5529_v13, 0.0 }
 0x654   : > { %v5949_v23 = vpack.c.bf16 %v5863_v49, %v5862_v27 }
 0x655   : > { %v5948_v14 = vpack.c.bf16 %v5861_v34, %v5860_v57 }
 0x656   : > { %v10545_v48 = vpop.f32.mrb[52].mxu0 }
 0x657   : > { %v5550_v32 = vadd.f32 %v10545_v48, %v15520_v52  ;;  %v5541_v62 = vpop.f32.mrb[53].mxu0  ;;  %10651 = vmatprep.mubr.bf16.mxu0 %v5948_v14 }
 0x658   : > { %v5542_v24 = vadd.f32 %v15520_v52, %v5541_v62  ;;  %v10546_v25 = vpop.f32.mrb[54].mxu0  ;;  %10652 = vmatmul.mubr.bf16.gmra.mrb[144].mxu0 %v5949_v23 }
 0x659   : > { %v5553_v58 = vadd.f32 %v10546_v25, %v15520_v52  ;;  %v5544_v61 = vpop.f32.mrb[55].mxu0  ;;  %v5866_v44 = vmax.f32 %v5550_v32, 0.0 }
 0x65a   : > { %v5545_v5 = vadd.f32 %v15520_v52, %v5544_v61  ;;  %v5864_v36 = vmax.f32 %v5542_v24, 0.0 }
 0x65b   : > { %v5867_v40 = vmax.f32 %v5553_v58, 0.0 }
 0x65c   : > { %v5865_v26 = vmax.f32 %v5545_v5, 0.0 }
 0x65d   : > { %v5951_v2 = vpack.c.bf16 %v5867_v40, %v5866_v44 }
 0x65e   : > { %v5950_v22 = vpack.c.bf16 %v5865_v26, %v5864_v36  ;;  %v10549_v51 = vpop.f32.mrb[56].mxu0 }
 0x65f   : > { %v5566_v20 = vadd.f32 %v10549_v51, %v15520_v52  ;;  %v5557_v60 = vpop.f32.mrb[57].mxu0 }
 0x660   : > { %v5558_v29 = vadd.f32 %v15520_v52, %v5557_v60  ;;  %v10550_v19 = vpop.f32.mrb[58].mxu0  ;;  %10655 = vmatprep.mubr.bf16.mxu0 %v5950_v22 }
 0x661   : > { %v5569_v41 = vadd.f32 %v10550_v19, %v15520_v52  ;;  %v5560_v11 = vpop.f32.mrb[59].mxu0  ;;  %10656 = vmatmul.mubr.bf16.gmra.mrb[148].mxu0 %v5951_v2  ;;  %v5870_v3 = vmax.f32 %v5566_v20, 0.0 }
 0x662   : > { %v5561_v59 = vadd.f32 %v15520_v52, %v5560_v11  ;;  %v5868_v0 = vmax.f32 %v5558_v29, 0.0 }
 0x663   : > { %v5871_v12 = vmax.f32 %v5569_v41, 0.0 }
 0x664   : > { %v5869_v13 = vmax.f32 %v5561_v59, 0.0 }
 0x665   : > { %v5953_v27 = vpack.c.bf16 %v5871_v12, %v5870_v3 }
 0x666   : > { %v5952_v49 = vpack.c.bf16 %v5869_v13, %v5868_v0  ;;  %v10553_v57 = vpop.f32.mrb[60].mxu0 }
 0x667   : > { %v5582_v34 = vadd.f32 %v10553_v57, %v15520_v52  ;;  %v5573_v23 = vpop.f32.mrb[61].mxu0 }
 0x668   : > { %v5574_v14 = vadd.f32 %v15520_v52, %v5573_v23  ;;  %v10554_v48 = vpop.f32.mrb[62].mxu0  ;;  %10659 = vmatprep.mubr.bf16.mxu0 %v5952_v49 }
 0x669   : > { %v5585_v32 = vadd.f32 %v10554_v48, %v15520_v52  ;;  %v5576_v62 = vpop.f32.mrb[63].mxu0  ;;  %10660 = vmatmul.mubr.bf16.gmra.mrb[152].mxu0 %v5953_v27  ;;  %v5874_v25 = vmax.f32 %v5582_v34, 0.0 }
 0x66a   : > { %v5577_v24 = vadd.f32 %v15520_v52, %v5576_v62  ;;  %v5872_v61 = vmax.f32 %v5574_v14, 0.0  ;;  %v11799_v62 = vld [vmem:[%s17247_s3 + $0xc0] sm:$0xff]  }
 0x66b   : > { %v5875_v58 = vmax.f32 %v5585_v32, 0.0  ;;  %10731 = vmatprep.subr.bf16.mxu1 %v11799_v62 }
 0x66c   : > { %v5873_v5 = vmax.f32 %v5577_v24, 0.0  ;;  %10732 = vmatpush3.bf16.msra.mxu1 %v11799_v62 }
 0x66d   : > { %v5955_v44 = vpack.c.bf16 %v5875_v58, %v5874_v25 }
 0x66e   : > { %v5954_v40 = vpack.c.bf16 %v5873_v5, %v5872_v61  ;;  %v10557_v36 = vpop.f32.mrb[64].mxu0 }
 0x66f   : > { %v5598_v26 = vadd.f32 %v10557_v36, %v15520_v52  ;;  %v5589_v2 = vpop.f32.mrb[65].mxu0 }
 0x670   : > { %v5590_v22 = vadd.f32 %v15520_v52, %v5589_v2  ;;  %v10558_v51 = vpop.f32.mrb[66].mxu0  ;;  %10663 = vmatprep.mubr.bf16.mxu0 %v5954_v40 }
 0x671   : > { %v5601_v20 = vadd.f32 %v10558_v51, %v15520_v52  ;;  %v5592_v60 = vpop.f32.mrb[67].mxu0  ;;  %10664 = vmatmul.mubr.bf16.gmra.mrb[156].mxu0 %v5955_v44  ;;  %v5878_v19 = vmax.f32 %v5598_v26, 0.0 }
 0x672   : > { %v5593_v29 = vadd.f32 %v15520_v52, %v5592_v60  ;;  %v5876_v11 = vmax.f32 %v5590_v22, 0.0 }
 0x673   : > { %v5879_v41 = vmax.f32 %v5601_v20, 0.0 }
 0x674   : > { %v5877_v59 = vmax.f32 %v5593_v29, 0.0 }
 0x675   : > { %v5957_v3 = vpack.c.bf16 %v5879_v41, %v5878_v19 }
 0x676   : > { %v5956_v12 = vpack.c.bf16 %v5877_v59, %v5876_v11  ;;  %v10561_v0 = vpop.f32.mrb[68].mxu0 }
 0x677   : > { %v5614_v13 = vadd.f32 %v10561_v0, %v15520_v52  ;;  %v5605_v27 = vpop.f32.mrb[69].mxu0 }
 0x678   : > { %v5606_v49 = vadd.f32 %v15520_v52, %v5605_v27  ;;  %v10562_v57 = vpop.f32.mrb[70].mxu0  ;;  %10667 = vmatprep.mubr.bf16.mxu0 %v5956_v12 }
 0x679   : > { %v5617_v34 = vadd.f32 %v10562_v57, %v15520_v52  ;;  %v5608_v23 = vpop.f32.mrb[71].mxu0  ;;  %10668 = vmatmul.mubr.bf16.gmra.mrb[128].mxu0 %v5957_v3  ;;  %v5882_v48 = vmax.f32 %v5614_v13, 0.0 }
 0x67a   : > { %v5609_v14 = vadd.f32 %v15520_v52, %v5608_v23  ;;  %v5880_v24 = vmax.f32 %v5606_v49, 0.0 }
 0x67b   : > { %v5883_v32 = vmax.f32 %v5617_v34, 0.0 }
 0x67c   : > { %v5881_v25 = vmax.f32 %v5609_v14, 0.0 }
 0x67d   : > { %v5959_v58 = vpack.c.bf16 %v5883_v32, %v5882_v48 }
 0x67e   : > { %v5958_v61 = vpack.c.bf16 %v5881_v25, %v5880_v24  ;;  %v10565_v5 = vpop.f32.mrb[72].mxu0  ;;  %v11800_v25 = vld [vmem:[%s17247_s3 + $0xc8] sm:$0xff]  }
 0x67f   : > { %v5630_v44 = vadd.f32 %v10565_v5, %v15520_v52  ;;  %v5621_v40 = vpop.f32.mrb[73].mxu0  ;;  %v11801_v5 = vld [vmem:[%s17247_s3 + $0xd0] sm:$0xff]   ;;  %10733 = vmatprep.subr.bf16.mxu1 %v11800_v25 }
 0x680   : > { %v5622_v36 = vadd.f32 %v15520_v52, %v5621_v40  ;;  %v10566_v26 = vpop.f32.mrb[74].mxu0  ;;  %10671 = vmatprep.mubr.bf16.mxu0 %v5958_v61  ;;  %10734 = vmatpush3.bf16.msra.mxu1 %v11800_v25 }
 0x681   : > { %v5633_v2 = vadd.f32 %v10566_v26, %v15520_v52  ;;  %v5624_v22 = vpop.f32.mrb[75].mxu0  ;;  %10672 = vmatmul.mubr.bf16.gmra.mrb[132].mxu0 %v5959_v58  ;;  %v5886_v20 = vmax.f32 %v5630_v44, 0.0  ;;  %10735 = vmatprep.subr.bf16.mxu1 %v11801_v5 }
 0x682   : > { %v5625_v51 = vadd.f32 %v15520_v52, %v5624_v22  ;;  %v5884_v29 = vmax.f32 %v5622_v36, 0.0  ;;  %v11802_v22 = vld [vmem:[%s17247_s3 + $0xd8] sm:$0xff]  }
 0x683   : > { %v5887_v60 = vmax.f32 %v5633_v2, 0.0 }
 0x684   : > { %v5885_v19 = vmax.f32 %v5625_v51, 0.0  ;;  %10736 = vmatpush3.bf16.msra.mxu1 %v11801_v5 }
 0x685   : > { %v5961_v41 = vpack.c.bf16 %v5887_v60, %v5886_v20  ;;  %10737 = vmatprep.subr.bf16.mxu1 %v11802_v22 }
 0x686   : > { %v5960_v11 = vpack.c.bf16 %v5885_v19, %v5884_v29  ;;  %v10569_v59 = vpop.f32.mrb[76].mxu0 }
 0x687   : > { %v5646_v3 = vadd.f32 %v10569_v59, %v15520_v52  ;;  %v5637_v12 = vpop.f32.mrb[77].mxu0  ;;  %v11803_v59 = vld [vmem:[%s17247_s3 + $0xe0] sm:$0xff]  }
 0x688   : > { %v5638_v0 = vadd.f32 %v15520_v52, %v5637_v12  ;;  %v10570_v13 = vpop.f32.mrb[78].mxu0  ;;  %10675 = vmatprep.mubr.bf16.mxu0 %v5960_v11  ;;  %10738 = vmatpush3.bf16.msra.mxu1 %v11802_v22 }
 0x689   : > { %v5649_v27 = vadd.f32 %v10570_v13, %v15520_v52  ;;  %v5640_v49 = vpop.f32.mrb[79].mxu0  ;;  %10676 = vmatmul.mubr.bf16.gmra.mrb[136].mxu0 %v5961_v41  ;;  %v5890_v34 = vmax.f32 %v5646_v3, 0.0  ;;  %10739 = vmatprep.subr.bf16.mxu1 %v11803_v59 }
 0x68a   : > { %v5641_v57 = vadd.f32 %v15520_v52, %v5640_v49  ;;  %v5888_v14 = vmax.f32 %v5638_v0, 0.0 }
 0x68b   : > { %v5891_v23 = vmax.f32 %v5649_v27, 0.0 }
 0x68c   : > { %v5889_v48 = vmax.f32 %v5641_v57, 0.0  ;;  %10740 = vmatpush3.bf16.msra.mxu1 %v11803_v59 }
 0x68d   : > { %v5963_v32 = vpack.c.bf16 %v5891_v23, %v5890_v34  ;;  %v11804_v34 = vld [vmem:[%s17247_s3 + $0xe8] sm:$0xff]  }
 0x68e   : > { %v5962_v62 = vpack.c.bf16 %v5889_v48, %v5888_v14  ;;  %v10573_v24 = vpop.f32.mrb[80].mxu0  ;;  %10741 = vmatprep.subr.bf16.mxu1 %v11804_v34 }
 0x68f   : > { %v5662_v58 = vadd.f32 %v10573_v24, %v15520_v52  ;;  %v5653_v61 = vpop.f32.mrb[81].mxu0 }
 0x690   : > { %v5654_v44 = vadd.f32 %v15520_v52, %v5653_v61  ;;  %v10574_v40 = vpop.f32.mrb[82].mxu0  ;;  %10679 = vmatprep.mubr.bf16.mxu0 %v5962_v62  ;;  %10742 = vmatpush3.bf16.msra.mxu1 %v11804_v34 }
 0x691   : > { %v5665_v36 = vadd.f32 %v10574_v40, %v15520_v52  ;;  %v5656_v26 = vpop.f32.mrb[83].mxu0  ;;  %10680 = vmatmul.mubr.bf16.gmra.mrb[140].mxu0 %v5963_v32  ;;  %v5894_v51 = vmax.f32 %v5662_v58, 0.0  ;;  %v11805_v58 = vld [vmem:[%s17247_s3 + $0xf0] sm:$0xff]  }
 0x692   : > { %v5657_v2 = vadd.f32 %v15520_v52, %v5656_v26  ;;  %v5892_v60 = vmax.f32 %v5654_v44, 0.0  ;;  %10743 = vmatprep.subr.bf16.mxu1 %v11805_v58 }
 0x693   : > { %v5895_v20 = vmax.f32 %v5665_v36, 0.0 }
 0x694   : > { %v5893_v29 = vmax.f32 %v5657_v2, 0.0  ;;  %10744 = vmatpush3.bf16.msra.mxu1 %v11805_v58 }
 0x695   : > { %v5965_v19 = vpack.c.bf16 %v5895_v20, %v5894_v51 }
 0x696   : > { %v5964_v41 = vpack.c.bf16 %v5893_v29, %v5892_v60  ;;  %v10577_v11 = vpop.f32.mrb[84].mxu0 }
 0x697   : > { %v5678_v3 = vadd.f32 %v10577_v11, %v15520_v52  ;;  %v5669_v12 = vpop.f32.mrb[85].mxu0 }
 0x698   : > { %v5670_v0 = vadd.f32 %v15520_v52, %v5669_v12  ;;  %v10578_v13 = vpop.f32.mrb[86].mxu0  ;;  %10683 = vmatprep.mubr.bf16.mxu0 %v5964_v41 }
 0x699   : > { %v5681_v27 = vadd.f32 %v10578_v13, %v15520_v52  ;;  %v5672_v49 = vpop.f32.mrb[87].mxu0  ;;  %10684 = vmatmul.mubr.bf16.gmra.mrb[144].mxu0 %v5965_v19  ;;  %v5898_v23 = vmax.f32 %v5678_v3, 0.0 }
 0x69a   : > { %v5673_v57 = vadd.f32 %v15520_v52, %v5672_v49  ;;  %v5896_v48 = vmax.f32 %v5670_v0, 0.0 }
 0x69b   : > { %v5899_v14 = vmax.f32 %v5681_v27, 0.0 }
 0x69c   : > { %v5897_v32 = vmax.f32 %v5673_v57, 0.0 }
 0x69d   : > { %v5967_v62 = vpack.c.bf16 %v5899_v14, %v5898_v23 }
 0x69e   : > { %v5966_v24 = vpack.c.bf16 %v5897_v32, %v5896_v48  ;;  %v10581_v25 = vpop.f32.mrb[88].mxu0 }
 0x69f   : > { %v5694_v61 = vadd.f32 %v10581_v25, %v15520_v52  ;;  %v5685_v5 = vpop.f32.mrb[89].mxu0 }
 0x6a0   : > { %v5686_v44 = vadd.f32 %v15520_v52, %v5685_v5  ;;  %v10582_v40 = vpop.f32.mrb[90].mxu0  ;;  %10687 = vmatprep.mubr.bf16.mxu0 %v5966_v24 }
 0x6a1   : > { %v5697_v36 = vadd.f32 %v10582_v40, %v15520_v52  ;;  %v5688_v26 = vpop.f32.mrb[91].mxu0  ;;  %10688 = vmatmul.mubr.bf16.gmra.mrb[148].mxu0 %v5967_v62  ;;  %v5902_v22 = vmax.f32 %v5694_v61, 0.0 }
 0x6a2   : > { %v5689_v2 = vadd.f32 %v15520_v52, %v5688_v26  ;;  %v5900_v20 = vmax.f32 %v5686_v44, 0.0 }
 0x6a3   : > { %v5903_v51 = vmax.f32 %v5697_v36, 0.0 }
 0x6a4   : > { %v5901_v60 = vmax.f32 %v5689_v2, 0.0 }
 0x6a5   : > { %v5969_v29 = vpack.c.bf16 %v5903_v51, %v5902_v22 }
 0x6a6   : > { %v5968_v19 = vpack.c.bf16 %v5901_v60, %v5900_v20  ;;  %v10585_v41 = vpop.f32.mrb[92].mxu0 }
 0x6a7   : > { %v5710_v11 = vadd.f32 %v10585_v41, %v15520_v52  ;;  %v5701_v59 = vpop.f32.mrb[93].mxu0 }
 0x6a8   : > { %v5702_v3 = vadd.f32 %v15520_v52, %v5701_v59  ;;  %v10586_v12 = vpop.f32.mrb[94].mxu0  ;;  %10691 = vmatprep.mubr.bf16.mxu0 %v5968_v19 }
 0x6a9   : > { %v5713_v0 = vadd.f32 %v10586_v12, %v15520_v52  ;;  %v5704_v13 = vpop.f32.mrb[95].mxu0  ;;  %10692 = vmatmul.mubr.bf16.gmra.mrb[152].mxu0 %v5969_v29  ;;  %v5906_v49 = vmax.f32 %v5710_v11, 0.0 }
 0x6aa   : > { %v5705_v27 = vadd.f32 %v15520_v52, %v5704_v13  ;;  %v5904_v34 = vmax.f32 %v5702_v3, 0.0 }
 0x6ab   : > { %v5907_v57 = vmax.f32 %v5713_v0, 0.0 }
 0x6ac   : > { %v5905_v23 = vmax.f32 %v5705_v27, 0.0 }
 0x6ad   : > { %v5971_v14 = vpack.c.bf16 %v5907_v57, %v5906_v49 }
 0x6ae   : > { %v5970_v48 = vpack.c.bf16 %v5905_v23, %v5904_v34  ;;  %v10589_v32 = vpop.f32.mrb[96].mxu0 }
 0x6af   : > { %v5726_v62 = vadd.f32 %v10589_v32, %v15520_v52  ;;  %v5717_v24 = vpop.f32.mrb[97].mxu0 }
 0x6b0   : > { %v5718_v25 = vadd.f32 %v15520_v52, %v5717_v24  ;;  %v10590_v58 = vpop.f32.mrb[98].mxu0  ;;  %10695 = vmatprep.mubr.bf16.mxu0 %v5970_v48 }
 0x6b1   : > { %v5729_v61 = vadd.f32 %v10590_v58, %v15520_v52  ;;  %v5720_v5 = vpop.f32.mrb[99].mxu0  ;;  %10696 = vmatmul.mubr.bf16.gmra.mrb[156].mxu0 %v5971_v14  ;;  %v5910_v40 = vmax.f32 %v5726_v62, 0.0 }
 0x6b2   : > { %v5721_v44 = vadd.f32 %v15520_v52, %v5720_v5  ;;  %v5908_v26 = vmax.f32 %v5718_v25, 0.0 }
 0x6b3   : > { %v5911_v36 = vmax.f32 %v5729_v61, 0.0 }
 0x6b4   : > { %v5909_v2 = vmax.f32 %v5721_v44, 0.0 }
 0x6b5   : > { %v5973_v22 = vpack.c.bf16 %v5911_v36, %v5910_v40 }
 0x6b6   : > { %v5972_v51 = vpack.c.bf16 %v5909_v2, %v5908_v26  ;;  %v10593_v20 = vpop.f32.mrb[100].mxu0 }
 0x6b7   : > { %v5742_v60 = vadd.f32 %v10593_v20, %v15520_v52  ;;  %v5733_v29 = vpop.f32.mrb[101].mxu0 }
 0x6b8   : > { %v5734_v19 = vadd.f32 %v15520_v52, %v5733_v29  ;;  %v10594_v41 = vpop.f32.mrb[102].mxu0  ;;  %10699 = vmatprep.mubr.bf16.mxu0 %v5972_v51 }
 0x6b9   : > { %v5745_v11 = vadd.f32 %v10594_v41, %v15520_v52  ;;  %v5736_v59 = vpop.f32.mrb[103].mxu0  ;;  %10700 = vmatmul.mubr.bf16.gmra.mrb[128].mxu0 %v5973_v22  ;;  %v5914_v12 = vmax.f32 %v5742_v60, 0.0 }
 0x6ba   : > { %v5737_v3 = vadd.f32 %v15520_v52, %v5736_v59  ;;  %v5912_v13 = vmax.f32 %v5734_v19, 0.0 }
 0x6bb   : > { %v5915_v0 = vmax.f32 %v5745_v11, 0.0 }
 0x6bc   : > { %v5913_v27 = vmax.f32 %v5737_v3, 0.0 }
 0x6bd   : > { %v5975_v49 = vpack.c.bf16 %v5915_v0, %v5914_v12 }
 0x6be   : > { %v5974_v57 = vpack.c.bf16 %v5913_v27, %v5912_v13  ;;  %v10597_v34 = vpop.f32.mrb[104].mxu0 }
 0x6bf   : > { %v5758_v23 = vadd.f32 %v10597_v34, %v15520_v52  ;;  %v5749_v14 = vpop.f32.mrb[105].mxu0 }
 0x6c0   : > { %v5750_v48 = vadd.f32 %v15520_v52, %v5749_v14  ;;  %v10598_v32 = vpop.f32.mrb[106].mxu0  ;;  %10703 = vmatprep.mubr.bf16.mxu0 %v5974_v57 }
 0x6c1   : > { %v5761_v62 = vadd.f32 %v10598_v32, %v15520_v52  ;;  %v5752_v24 = vpop.f32.mrb[107].mxu0  ;;  %10704 = vmatmul.mubr.bf16.gmra.mrb[132].mxu0 %v5975_v49  ;;  %v5918_v58 = vmax.f32 %v5758_v23, 0.0 }
 0x6c2   : > { %v5753_v25 = vadd.f32 %v15520_v52, %v5752_v24  ;;  %v5916_v5 = vmax.f32 %v5750_v48, 0.0 }
 0x6c3   : > { %v5919_v61 = vmax.f32 %v5761_v62, 0.0 }
 0x6c4   : > { %v5917_v44 = vmax.f32 %v5753_v25, 0.0 }
 0x6c5   : > { %v5977_v40 = vpack.c.bf16 %v5919_v61, %v5918_v58 }
 0x6c6   : > { %v5976_v36 = vpack.c.bf16 %v5917_v44, %v5916_v5  ;;  %v10601_v26 = vpop.f32.mrb[108].mxu0 }
 0x6c7   : > { %v5774_v2 = vadd.f32 %v10601_v26, %v15520_v52  ;;  %v5765_v22 = vpop.f32.mrb[109].mxu0 }
 0x6c8   : > { %v5766_v51 = vadd.f32 %v15520_v52, %v5765_v22  ;;  %v10602_v20 = vpop.f32.mrb[110].mxu0  ;;  %10707 = vmatprep.mubr.bf16.mxu0 %v5976_v36 }
 0x6c9   : > { %v5777_v60 = vadd.f32 %v10602_v20, %v15520_v52  ;;  %v5768_v29 = vpop.f32.mrb[111].mxu0  ;;  %10708 = vmatmul.mubr.bf16.gmra.mrb[136].mxu0 %v5977_v40  ;;  %v5922_v41 = vmax.f32 %v5774_v2, 0.0 }
 0x6ca   : > { %v5769_v19 = vadd.f32 %v15520_v52, %v5768_v29  ;;  %v5920_v59 = vmax.f32 %v5766_v51, 0.0 }
 0x6cb   : > { %v5923_v11 = vmax.f32 %v5777_v60, 0.0 }
 0x6cc   : > { %v5921_v3 = vmax.f32 %v5769_v19, 0.0 }
 0x6cd   : > { %v5979_v12 = vpack.c.bf16 %v5923_v11, %v5922_v41 }
 0x6ce   : > { %v5978_v0 = vpack.c.bf16 %v5921_v3, %v5920_v59 }
 0x6d0   : > { %10711 = vmatprep.mubr.bf16.mxu0 %v5978_v0 }
 0x6d1   : > { %10712 = vmatmul.mubr.bf16.gmra.mrb[140].mxu0 %v5979_v12 }
 0x6d2   : > { %v10605_v13 = vpop.f32.mrb[112].mxu0 }
 0x6d3   : > { %v5790_v27 = vadd.f32 %v10605_v13, %v15520_v52  ;;  %v5781_v49 = vpop.f32.mrb[113].mxu0 }
 0x6d4   : > { %v5782_v57 = vadd.f32 %v15520_v52, %v5781_v49  ;;  %v10606_v34 = vpop.f32.mrb[114].mxu0 }
 0x6d5   : > { %v5793_v23 = vadd.f32 %v10606_v34, %v15520_v52  ;;  %v5784_v14 = vpop.f32.mrb[115].mxu0  ;;  %v5926_v32 = vmax.f32 %v5790_v27, 0.0 }
 0x6d6   : > { %v5785_v48 = vadd.f32 %v15520_v52, %v5784_v14  ;;  %v5924_v24 = vmax.f32 %v5782_v57, 0.0 }
 0x6d7   : > { %v5927_v62 = vmax.f32 %v5793_v23, 0.0 }
 0x6d8   : > { %v5925_v25 = vmax.f32 %v5785_v48, 0.0 }
 0x6d9   : > { %v5981_v58 = vpack.c.bf16 %v5927_v62, %v5926_v32 }
 0x6da   : > { %v5980_v61 = vpack.c.bf16 %v5925_v25, %v5924_v24 }
 0x6dc   : > { %10715 = vmatprep.mubr.bf16.mxu0 %v5980_v61 }
 0x6dd   : > { %10716 = vmatmul.mubr.bf16.gmra.mrb[144].mxu0 %v5981_v58 }
 0x6e2   : > { %v10609_v5 = vpop.f32.mrb[116].mxu0 }
 0x6e3   : > { %v5806_v44 = vadd.f32 %v10609_v5, %v15520_v52  ;;  %v5797_v40 = vpop.f32.mrb[117].mxu0 }
 0x6e4   : > { %v5798_v36 = vadd.f32 %v15520_v52, %v5797_v40  ;;  %v10610_v26 = vpop.f32.mrb[118].mxu0 }
 0x6e5   : > { %v5809_v2 = vadd.f32 %v10610_v26, %v15520_v52  ;;  %v5800_v22 = vpop.f32.mrb[119].mxu0  ;;  %v5930_v20 = vmax.f32 %v5806_v44, 0.0 }
 0x6e6   : > { %v5801_v51 = vadd.f32 %v15520_v52, %v5800_v22  ;;  %v5928_v29 = vmax.f32 %v5798_v36, 0.0 }
 0x6e7   : > { %v5931_v60 = vmax.f32 %v5809_v2, 0.0 }
 0x6e8   : > { %v5929_v19 = vmax.f32 %v5801_v51, 0.0 }
 0x6e9   : > { %v5983_v41 = vpack.c.bf16 %v5931_v60, %v5930_v20 }
 0x6ea   : > { %v5982_v11 = vpack.c.bf16 %v5929_v19, %v5928_v29  ;;  %v11806_v29 = vld [vmem:[%s17247_s3 + $0xf8] sm:$0xff]   ;;  %v15659_v19 = vld [vmem:[%s17249_s5 + $0xc0] sm:$0xff]  }
 0x6eb   : > { %10745 = vmatprep.subr.bf16.mxu1 %v11806_v29 }
 0x6ec   : > { %10719 = vmatprep.mubr.bf16.mxu0 %v5982_v11  ;;  %10746 = vmatpush3.bf16.msra.mxu1 %v11806_v29 }
 0x6ed   : > { %10720 = vmatmul.mubr.bf16.gmra.mrb[148].mxu0 %v5983_v41  ;;  %10779 = vmatprep.subr.bf16.mxu1 %v15659_v19 }
 0x6f2   : > { %v10613_v59 = vpop.f32.mrb[120].mxu0 }
 0x6f3   : > { %v5822_v3 = vadd.f32 %v10613_v59, %v15520_v52  ;;  %v5813_v12 = vpop.f32.mrb[121].mxu0 }
 0x6f4   : > { %v5814_v0 = vadd.f32 %v15520_v52, %v5813_v12  ;;  %v10614_v13 = vpop.f32.mrb[122].mxu0 }
 0x6f5   : > { %v5825_v27 = vadd.f32 %v10614_v13, %v15520_v52  ;;  %v5816_v49 = vpop.f32.mrb[123].mxu0  ;;  %v5934_v34 = vmax.f32 %v5822_v3, 0.0  ;;  %v18104_v3 = vld [vmem:[#allocation120_spill] sm:$0xff] }
 0x6f6   : > { %v5817_v57 = vadd.f32 %v15520_v52, %v5816_v49  ;;  %v5932_v14 = vmax.f32 %v5814_v0, 0.0 }
 0x6f7   : > { %v5935_v23 = vmax.f32 %v5825_v27, 0.0 }
 0x6f8   : > { %v5933_v48 = vmax.f32 %v5817_v57, 0.0 }
 0x6f9   : > { %v5985_v32 = vpack.c.bf16 %v5935_v23, %v5934_v34 }
 0x6fa   : > { %v5984_v62 = vpack.c.bf16 %v5933_v48, %v5932_v14 }
 0x6fc   : > { %10723 = vmatprep.mubr.bf16.mxu0 %v5984_v62 }
 0x6fd   : > { %10724 = vmatmul.mubr.bf16.gmra.mrb[152].mxu0 %v5985_v32 }
 0x702   : > { %v10617_v24 = vpop.f32.mrb[124].mxu0 }
 0x703   : > { %v5838_v25 = vadd.f32 %v10617_v24, %v15520_v52  ;;  %v5829_v58 = vpop.f32.mrb[125].mxu0 }
 0x704   : > { %v5830_v61 = vadd.f32 %v15520_v52, %v5829_v58  ;;  %v10618_v5 = vpop.f32.mrb[126].mxu0 }
 0x705   : > { %v5841_v44 = vadd.f32 %v10618_v5, %v15520_v52  ;;  %v5832_v40 = vpop.f32.mrb[127].mxu0  ;;  %v5938_v26 = vmax.f32 %v5838_v25, 0.0 }
 0x706   : > { %v5833_v36 = vadd.f32 %v15520_v52, %v5832_v40  ;;  %v5936_v22 = vmax.f32 %v5830_v61, 0.0  ;;  %v15665_v52 = vld [vmem:[%s17250_s6 + $0x2] ss:$0 sm:$0xff] }
 0x707   : > { %v5939_v2 = vmax.f32 %v5841_v44, 0.0  ;;  %v11261_v41 = vadd.f32 %v15278_v45, %v15665_v52  ;;  %v11267_v11 = vadd.f32 %v15284_v31, %v15665_v52  ;;  %v11273_v59 = vadd.f32 %v15289_v42, %v15665_v52 }
 0x708   : > { %v5937_v51 = vmax.f32 %v5833_v36, 0.0  ;;  %v11279_v12 = vadd.f32 %v18104_v3, %v15665_v52  ;;  %v11285_v45 = vadd.f32 %v15312_v28, %v15665_v52  ;;  %v11291_v42 = vadd.f32 %v15317_v39, %v15665_v52 }
 0x709   : > { %v5987_v20 = vpack.c.bf16 %v5939_v2, %v5938_v26  ;;  %v11262_v0 = vadd.f32 %v11261_v41, %v15665_v52  ;;  %v11268_v13 = vadd.f32 %v11267_v11, %v15665_v52  ;;  %v11274_v27 = vadd.f32 %v11273_v59, %v15665_v52 }
 0x70a   : > { %v5986_v60 = vpack.c.bf16 %v5937_v51, %v5936_v22  ;;  %v11280_v49 = vadd.f32 %v11279_v12, %v15665_v52  ;;  %v11297_v32 = vadd.f32 %v15322_v30, %v15665_v52  ;;  %v11303_v28 = vadd.f32 %v15328_v43, %v15665_v52 }
 0x70b   : > { %v11263_v57 = vadd.f32 %v11262_v0, %v15665_v52  ;;  %v11269_v34 = vadd.f32 %v11268_v13, %v15665_v52  ;;  %v11275_v48 = vadd.f32 %v11274_v27, %v15665_v52  ;;  %v11286_v5 = vadd.f32 %v11285_v45, %v15665_v52 }
 0x70c   : > { %10727 = vmatprep.mubr.bf16.mxu0 %v5986_v60  ;;  %v11281_v25 = vadd.f32 %v11280_v49, %v15665_v52  ;;  %v11292_v40 = vadd.f32 %v11291_v42, %v15665_v52  ;;  %v11298_v30 = vadd.f32 %v11297_v32, %v15665_v52  ;;  %v11304_v22 = vadd.f32 %v11303_v28, %v15665_v52 }
 0x70d   : > { %10728 = vmatmul.mubr.bf16.gmra.mrb[156].mxu0 %v5987_v20  ;;  %v11287_v51 = vadd.f32 %v11286_v5, %v15665_v52  ;;  %v11309_v20 = vadd.f32 %v15346_v10, %v15665_v52  ;;  %v11315_v59 = vadd.f32 %v15351_v16, %v15665_v52  ;;  %v11321_v27 = vadd.f32 %v15356_v15, %v15665_v52 }
 0x70e   : > { %v11293_v11 = vadd.f32 %v11292_v40, %v15665_v52  ;;  %v11299_v13 = vadd.f32 %v11298_v30, %v15665_v52  ;;  %v11333_v5 = vadd.f32 %v15374_v33, %v15665_v52 }
 0x70f   : > { %v11316_v32 = vadd.f32 %v11315_v59, %v15665_v52 }
 0x78c   : > { %v10701_v31 = vpop.f32.mrb[128].mxu0 }
 0x78d   : > { %v11264_v23 = vadd.f32 %v11263_v57, %v10701_v31  ;;  %v6332_v14 = vpop.f32.mrb[129].mxu0  ;;  %v11305_v57 = vadd.f32 %v11304_v22, %v15665_v52  ;;  %v11327_v31 = vadd.f32 %v15361_v46, %v15665_v52  ;;  %v11322_v46 = vadd.f32 %v11321_v27, %v15665_v52 }
 0x78e   : > { %v11270_v62 = vadd.f32 %v11269_v34, %v6332_v14  ;;  %v10702_v24 = vpop.f32.mrb[130].mxu0  ;;  %v11808_v14 = vld [vmem:[%s17249_s5 + $0xc8] sm:$0xff]   ;;  %v11334_v27 = vadd.f32 %v11333_v5, %v15665_v52 }
 0x78f   : > { %v11276_v58 = vadd.f32 %v11275_v48, %v10702_v24  ;;  %v6335_v61 = vpop.f32.mrb[131].mxu0  ;;  %v15695_v36 = vmul.f32 0.33333334, %v11264_v23  ;;  %v11310_v23 = vadd.f32 %v11309_v20, %v15665_v52  ;;  %v11328_v28 = vadd.f32 %v11327_v31, %v15665_v52 }
 0x790   : > { %v15692_v44 = vmul.f32 0.33333334, %v11270_v62  ;;  %v11282_v39 = vadd.f32 %v11281_v25, %v6335_v61  ;;  %v11323_v33 = vadd.f32 %v11322_v46, %v15665_v52 }
 0x791   : > { %v15697_v26 = vmul.f32 0.33333334, %v11276_v58  ;;  %v6691_v3 = vmax.f32 %v15695_v36, 0.0  ;;  %v11311_v61 = vadd.f32 %v11310_v23, %v15665_v52  ;;  %v11329_v59 = vadd.f32 %v11328_v28, %v15665_v52 }
 0x792   : > { %v15700_v2 = vmul.f32 0.33333334, %v11282_v39  ;;  %v6689_v60 = vmax.f32 %v15692_v44, 0.0  ;;  %v11809_v39 = vld [vmem:[%s17249_s5 + $0xd0] sm:$0xff]   ;;  %v11335_v23 = vadd.f32 %v11334_v27, %v15665_v52 }
 0x793   : > { %v6692_v43 = vmax.f32 %v15697_v26, 0.0 }
 0x794   : > { %v6690_v29 = vmax.f32 %v15700_v2, 0.0  ;;  %v10705_v41 = vpop.f32.mrb[132].mxu0 }
 0x795   : > { %v11288_v12 = vadd.f32 %v11287_v51, %v10705_v41  ;;  %v6348_v0 = vpop.f32.mrb[133].mxu0  ;;  %v6722_v34 = vpack.c.bf16 %v6692_v43, %v6691_v3  ;;  %v11317_v43 = vadd.f32 %v11316_v32, %v15665_v52 }
 0x796   : > { %v11294_v10 = vadd.f32 %v11293_v11, %v6348_v0  ;;  %v10706_v49 = vpop.f32.mrb[134].mxu0  ;;  %v6721_v45 = vpack.c.bf16 %v6690_v29, %v6689_v60  ;;  %v11345_v29 = vadd.f32 %v15382_v18, %v15665_v52 }
 0x797   : > { %v11300_v42 = vadd.f32 %v11299_v13, %v10706_v49  ;;  %v6351_v16 = vpop.f32.mrb[135].mxu0  ;;  %v15726_v62 = vmul.f32 0.33333334, %v11288_v12  ;;  %v11351_v12 = vadd.f32 %v15387_v1, %v15665_v52 }
 0x798   : > { %v15723_v48 = vmul.f32 0.33333334, %v11294_v10  ;;  %v11306_v15 = vadd.f32 %v11305_v57, %v6351_v16  ;;  %10747 = vmatprep.mubr.bf16.mxu1 %v6721_v45  ;;  %v11810_v10 = vld [vmem:[%s17249_s5 + $0xd8] sm:$0xff]   ;;  %v11346_v31 = vadd.f32 %v11345_v29, %v15665_v52 }
 0x799   : > { %v15728_v24 = vmul.f32 0.33333334, %v11300_v42  ;;  %10748 = vmatmul.mubr.bf16.vlgmr.msra.gmra.mrb[128].mxu1 %v6722_v34  ;;  %v6695_v51 = vmax.f32 %v15726_v62, 0.0  ;;  %v11352_v42 = vadd.f32 %v11351_v12, %v15665_v52  ;;  %v11363_v12 = vadd.f32 %v15414_v8, %v15665_v52 }
 0x79a   : > { %v15731_v25 = vmul.f32 0.33333334, %v11306_v15  ;;  %10780 = vmatpush3.bf16.msra.mxu1 %v15659_v19  ;;  %v6693_v40 = vmax.f32 %v15723_v48, 0.0  ;;  %v11339_v19 = vadd.f32 %v15378_v35, %v15665_v52 }
 0x79b   : > { %v6696_v58 = vmax.f32 %v15728_v24, 0.0  ;;  %10781 = vmatprep.subr.bf16.mxu1 %v11808_v14  ;;  %v11364_v8 = vadd.f32 %v11363_v12, %v15665_v52  ;;  %v11393_v12 = vadd.f32 %v15454_v53, %v15665_v52 }
 0x79c   : > { %v6694_v30 = vmax.f32 %v15731_v25, 0.0  ;;  %v10709_v22 = vpop.f32.mrb[136].mxu0  ;;  %v11340_v57 = vadd.f32 %v11339_v19, %v15665_v52 }
 0x79d   : > { %v11312_v20 = vadd.f32 %v11311_v61, %v10709_v22  ;;  %v6364_v60 = vpop.f32.mrb[137].mxu0  ;;  %v6724_v0 = vpack.c.bf16 %v6696_v58, %v6695_v51  ;;  %v11353_v22 = vadd.f32 %v11352_v42, %v15665_v52 }
 0x79e   : > { %v11318_v41 = vadd.f32 %v11317_v43, %v6364_v60  ;;  %v10710_v11 = vpop.f32.mrb[138].mxu0  ;;  %v6723_v3 = vpack.c.bf16 %v6694_v30, %v6693_v40  ;;  %10782 = vmatpush3.bf16.msra.mxu1 %v11808_v14  ;;  %v11811_v14 = vld [vmem:[%s17249_s5 + $0xe0] sm:$0xff]   ;;  %v11341_v28 = vadd.f32 %v11340_v57, %v15665_v52  ;;  %v11812_v60 = vld [vmem:[%s17249_s5 + $0xe8] sm:$0xff]  }
 0x79f   : > { %v11324_v35 = vadd.f32 %v11323_v33, %v10710_v11  ;;  %v6367_v13 = vpop.f32.mrb[139].mxu0  ;;  %10783 = vmatprep.subr.bf16.mxu1 %v11809_v39  ;;  %v15761_v45 = vmul.f32 0.33333334, %v11312_v20 }
 0x7a0   : > { %v15758_v18 = vmul.f32 0.33333334, %v11318_v41  ;;  %v11330_v49 = vadd.f32 %v11329_v59, %v6367_v13  ;;  %10751 = vmatprep.mubr.bf16.mxu1 %v6723_v3  ;;  %v11357_v59 = vadd.f32 %v15410_v54, %v15665_v52 }
 0x7a1   : > { %v15763_v1 = vmul.f32 0.33333334, %v11324_v35  ;;  %10752 = vmatmul.mubr.bf16.gmra.mrb[132].mxu1 %v6724_v0  ;;  %v6699_v58 = vmax.f32 %v15761_v45, 0.0  ;;  %v11369_v35 = vadd.f32 %v15418_v55, %v15665_v52 }
 0x7a2   : > { %v15766_v34 = vmul.f32 0.33333334, %v11330_v49  ;;  %10784 = vmatpush3.bf16.msra.mxu1 %v11809_v39  ;;  %v6697_v15 = vmax.f32 %v15758_v18, 0.0  ;;  %v11347_v39 = vadd.f32 %v11346_v31, %v15665_v52  ;;  %v11358_v49 = vadd.f32 %v11357_v59, %v15665_v52 }
 0x7a3   : > { %v6700_v16 = vmax.f32 %v15763_v1, 0.0  ;;  %10785 = vmatprep.subr.bf16.mxu1 %v11810_v10  ;;  %v11370_v42 = vadd.f32 %v11369_v35, %v15665_v52  ;;  %v11399_v35 = vadd.f32 %v15457_v17, %v15665_v52 }
 0x7a4   : > { %v6698_v32 = vmax.f32 %v15766_v34, 0.0  ;;  %v10713_v46 = vpop.f32.mrb[140].mxu0 }
 0x7a5   : > { %v11336_v61 = vadd.f32 %v11335_v23, %v10713_v46  ;;  %v6380_v5 = vpop.f32.mrb[141].mxu0  ;;  %v6726_v19 = vpack.c.bf16 %v6700_v16, %v6699_v58  ;;  %v11359_v16 = vadd.f32 %v11358_v49, %v15665_v52 }
 0x7a6   : > { %v11342_v40 = vadd.f32 %v11341_v28, %v6380_v5  ;;  %v10714_v30 = vpop.f32.mrb[142].mxu0  ;;  %v6725_v43 = vpack.c.bf16 %v6698_v32, %v6697_v15  ;;  %10786 = vmatpush3.bf16.msra.mxu1 %v11810_v10  ;;  %v11375_v10 = vadd.f32 %v15421_v9, %v15665_v52  ;;  %v11365_v9 = vadd.f32 %v11364_v8, %v15665_v52 }
 0x7a7   : > { %v11348_v51 = vadd.f32 %v11347_v39, %v10714_v30  ;;  %v6383_v20 = vpop.f32.mrb[143].mxu0  ;;  %10787 = vmatprep.subr.bf16.mxu1 %v11811_v14  ;;  %v15785_v41 = vmul.f32 0.33333334, %v11336_v61  ;;  %v11371_v32 = vadd.f32 %v11370_v42, %v15665_v52 }
 0x7a8   : > { %v15783_v33 = vmul.f32 0.33333334, %v11342_v40  ;;  %v11354_v29 = vadd.f32 %v11353_v22, %v6383_v20  ;;  %10755 = vmatprep.mubr.bf16.mxu1 %v6725_v43  ;;  %v11376_v55 = vadd.f32 %v11375_v10, %v15665_v52  ;;  %v11394_v10 = vadd.f32 %v11393_v12, %v15665_v52 }
 0x7a9   : > { %v15787_v11 = vmul.f32 0.33333334, %v11348_v51  ;;  %10756 = vmatmul.mubr.bf16.gmra.mrb[136].mxu1 %v6726_v19  ;;  %v6703_v54 = vmax.f32 %v15785_v41, 0.0  ;;  %v11381_v51 = vadd.f32 %v15446_v50, %v15665_v52 }
 0x7aa   : > { %v15791_v3 = vmul.f32 0.33333334, %v11354_v29  ;;  %10788 = vmatpush3.bf16.msra.mxu1 %v11811_v14  ;;  %v6701_v13 = vmax.f32 %v15783_v33, 0.0  ;;  %v11377_v58 = vadd.f32 %v11376_v55, %v15665_v52  ;;  %v11387_v29 = vadd.f32 %v15450_v4, %v15665_v52 }
 0x7ab   : > { %v6704_v0 = vmax.f32 %v15787_v11, 0.0  ;;  %10789 = vmatprep.subr.bf16.mxu1 %v11812_v60  ;;  %v11400_v4 = vadd.f32 %v11399_v35, %v15665_v52  ;;  %v11395_v17 = vadd.f32 %v11394_v10, %v15665_v52 }
 0x7ac   : > { %v6702_v27 = vmax.f32 %v15791_v3, 0.0  ;;  %v11388_v50 = vadd.f32 %v11387_v29, %v15665_v52 }
 0x7ad   : > { %v6728_v31 = vpack.c.bf16 %v6704_v0, %v6703_v54  ;;  %v11401_v55 = vadd.f32 %v11400_v4, %v15665_v52 }
 0x7ae   : > { %v6727_v57 = vpack.c.bf16 %v6702_v27, %v6701_v13  ;;  %10790 = vmatpush3.bf16.msra.mxu1 %v11812_v60  ;;  %v11382_v27 = vadd.f32 %v11381_v51, %v15665_v52  ;;  %v11389_v53 = vadd.f32 %v11388_v50, %v15665_v52  ;;  %v11417_v51 = vadd.f32 %v15490_v47, %v15665_v52 }
 0x7b0   : > { %10759 = vmatprep.mubr.bf16.mxu1 %v6727_v57  ;;  %v10717_v23 = vpop.f32.mrb[144].mxu0  ;;  %v11383_v54 = vadd.f32 %v11382_v27, %v15665_v52  ;;  %v11418_v12 = vadd.f32 %v11417_v51, %v15665_v52 }
 0x7b1   : > { %10760 = vmatmul.mubr.bf16.gmra.mrb[140].mxu1 %v6728_v31  ;;  %v11360_v14 = vadd.f32 %v11359_v16, %v10717_v23  ;;  %v6396_v15 = vpop.f32.mrb[145].mxu0 }
 0x7b2   : > { %v11366_v46 = vadd.f32 %v11365_v9, %v6396_v15  ;;  %v10718_v28 = vpop.f32.mrb[146].mxu0 }
 0x7b3   : > { %v11372_v61 = vadd.f32 %v11371_v32, %v10718_v28  ;;  %v6399_v5 = vpop.f32.mrb[147].mxu0  ;;  %v15813_v30 = vmul.f32 0.33333334, %v11360_v14 }
 0x7b4   : > { %v15811_v39 = vmul.f32 0.33333334, %v11366_v46  ;;  %v11378_v40 = vadd.f32 %v11377_v58, %v6399_v5  ;;  %v11405_v58 = vadd.f32 %v15482_v37, %v15665_v52 }
 0x7b5   : > { %v15815_v22 = vmul.f32 0.33333334, %v11372_v61  ;;  %v6707_v59 = vmax.f32 %v15813_v30, 0.0 }
 0x7b6   : > { %v15817_v43 = vmul.f32 0.33333334, %v11378_v40  ;;  %v6705_v20 = vmax.f32 %v15811_v39, 0.0  ;;  %v11411_v40 = vadd.f32 %v15486_v7, %v15665_v52 }
 0x7b7   : > { %v6708_v19 = vmax.f32 %v15815_v22, 0.0 }
 0x7b8   : > { %v6706_v60 = vmax.f32 %v15817_v43, 0.0  ;;  %v11412_v37 = vadd.f32 %v11411_v40, %v15665_v52 }
 0x7b9   : > { %v6730_v13 = vpack.c.bf16 %v6708_v19, %v6707_v59  ;;  %v11406_v59 = vadd.f32 %v11405_v58, %v15665_v52  ;;  %v11441_v58 = vadd.f32 %v15531_v38, %v15665_v52 }
 0x7ba   : > { %v6729_v0 = vpack.c.bf16 %v6706_v60, %v6705_v20  ;;  %v11423_v60 = vadd.f32 %v15493_v63, %v15665_v52  ;;  %v11413_v47 = vadd.f32 %v11412_v37, %v15665_v52  ;;  %v11419_v63 = vadd.f32 %v11418_v12, %v15665_v52 }
 0x7bb   : > { %v11442_v51 = vadd.f32 %v11441_v58, %v15665_v52 }
 0x7bc   : > { %10763 = vmatprep.mubr.bf16.mxu1 %v6729_v0  ;;  %v11424_v7 = vadd.f32 %v11423_v60, %v15665_v52  ;;  %v11407_v0 = vadd.f32 %v11406_v59, %v15665_v52 }
 0x7bd   : > { %10764 = vmatmul.mubr.bf16.gmra.mrb[144].mxu1 %v6730_v13 }
 0x7be   : > { %v11425_v4 = vadd.f32 %v11424_v7, %v15665_v52 }
 0x7c0   : > { %v10721_v49 = vpop.f32.mrb[148].mxu0 }
 0x7c1   : > { %v11384_v57 = vadd.f32 %v11383_v54, %v10721_v49  ;;  %v6412_v8 = vpop.f32.mrb[149].mxu0 }
 0x7c2   : > { %v11390_v31 = vadd.f32 %v11389_v53, %v6412_v8  ;;  %v10722_v42 = vpop.f32.mrb[150].mxu0 }
 0x7c3   : > { %v11396_v16 = vadd.f32 %v11395_v17, %v10722_v42  ;;  %v6415_v23 = vpop.f32.mrb[151].mxu0  ;;  %v15841_v15 = vmul.f32 0.33333334, %v11384_v57 }
 0x7c4   : > { %v15839_v9 = vmul.f32 0.33333334, %v11390_v31  ;;  %v11402_v14 = vadd.f32 %v11401_v55, %v6415_v23  ;;  %v11429_v55 = vadd.f32 %v15523_v56, %v15665_v52 }
 0x7c5   : > { %v15843_v32 = vmul.f32 0.33333334, %v11396_v16  ;;  %v6711_v19 = vmax.f32 %v15841_v15, 0.0 }
 0x7c6   : > { %v15845_v46 = vmul.f32 0.33333334, %v11402_v14  ;;  %v6709_v61 = vmax.f32 %v15839_v9, 0.0  ;;  %v11435_v14 = vadd.f32 %v15527_v6, %v15665_v52 }
 0x7c7   : > { %v6712_v28 = vmax.f32 %v15843_v32, 0.0 }
 0x7c8   : > { %v6710_v5 = vmax.f32 %v15845_v46, 0.0  ;;  %v11436_v56 = vadd.f32 %v11435_v14, %v15665_v52 }
 0x7c9   : > { %v6732_v29 = vpack.c.bf16 %v6712_v28, %v6711_v19  ;;  %v11430_v19 = vadd.f32 %v11429_v55, %v15665_v52  ;;  %v11814_v55 = vld [vmem:[%s17249_s5 + $0xf8] sm:$0xff]  }
 0x7ca   : > { %v6731_v20 = vpack.c.bf16 %v6710_v5, %v6709_v61  ;;  %v11447_v5 = vadd.f32 %v15535_v21, %v15665_v52  ;;  %v11437_v38 = vadd.f32 %v11436_v56, %v15665_v52  ;;  %v11443_v21 = vadd.f32 %v11442_v51, %v15665_v52 }
 0x7cc   : > { %10767 = vmatprep.mubr.bf16.mxu1 %v6731_v20  ;;  %v11448_v6 = vadd.f32 %v11447_v5, %v15665_v52  ;;  %v11431_v20 = vadd.f32 %v11430_v19, %v15665_v52 }
 0x7cd   : > { %10768 = vmatmul.mubr.bf16.gmra.mrb[148].mxu1 %v6732_v29 }
 0x7ce   : > { %v11449_v7 = vadd.f32 %v11448_v6, %v15665_v52 }
 0x7d0   : > { %v10725_v35 = vpop.f32.mrb[152].mxu0 }
 0x7d1   : > { %v11408_v13 = vadd.f32 %v11407_v0, %v10725_v35  ;;  %v6428_v27 = vpop.f32.mrb[153].mxu0 }
 0x7d2   : > { %v11414_v50 = vadd.f32 %v11413_v47, %v6428_v27  ;;  %v10726_v10 = vpop.f32.mrb[154].mxu0 }
 0x7d3   : > { %v11420_v54 = vadd.f32 %v11419_v63, %v10726_v10  ;;  %v6431_v49 = vpop.f32.mrb[155].mxu0  ;;  %v15869_v8 = vmul.f32 0.33333334, %v11408_v13 }
 0x7d4   : > { %v15867_v53 = vmul.f32 0.33333334, %v11414_v50  ;;  %v11426_v57 = vadd.f32 %v11425_v4, %v6431_v49 }
 0x7d5   : > { %v15871_v17 = vmul.f32 0.33333334, %v11420_v54  ;;  %v6715_v28 = vmax.f32 %v15869_v8, 0.0 }
 0x7d6   : > { %v15873_v31 = vmul.f32 0.33333334, %v11426_v57  ;;  %v6713_v16 = vmax.f32 %v15867_v53, 0.0 }
 0x7d7   : > { %v6716_v42 = vmax.f32 %v15871_v17, 0.0 }
 0x7d8   : > { %v6714_v23 = vmax.f32 %v15873_v31, 0.0 }
 0x7d9   : > { %v6734_v40 = vpack.c.bf16 %v6716_v42, %v6715_v28  ;;  %v11813_v42 = vld [vmem:[%s17249_s5 + $0xf0] sm:$0xff]  }
 0x7da   : > { %v6733_v61 = vpack.c.bf16 %v6714_v23, %v6713_v16  ;;  %10791 = vmatprep.subr.bf16.mxu1 %v11813_v42  ;;  %v11815_v16 = vld [vmem:[%s17247_s3 + $0x100] sm:$0xff]  }
 0x7db   : > { %10792 = vmatpush3.bf16.msra.mxu1 %v11813_v42  ;;  %v15919_v23 = vld [vmem:[%s17248_s4 + $0x3] ss:$0 sm:$0xff] }
 0x7dc   : > { %10771 = vmatprep.mubr.bf16.mxu1 %v6733_v61  ;;  %10793 = vmatprep.subr.bf16.mxu1 %v11814_v55 }
 0x7dd   : > { %10772 = vmatmul.mubr.bf16.gmra.mrb[152].mxu1 %v6734_v40 }
 0x7df   : > { %10794 = vmatpush3.bf16.msra.mxu1 %v11814_v55 }
 0x7e0   : > { %v10729_v60 = vpop.f32.mrb[156].mxu0  ;;  %10827 = vmatprep.subr.bf16.mxu1 %v11815_v16 }
 0x7e1   : > { %v11432_v29 = vadd.f32 %v11431_v20, %v10729_v60  ;;  %v6444_v59 = vpop.f32.mrb[157].mxu0 }
 0x7e2   : > { %v11438_v37 = vadd.f32 %v11437_v38, %v6444_v59  ;;  %v10730_v12 = vpop.f32.mrb[158].mxu0 }
 0x7e3   : > { %v11444_v0 = vadd.f32 %v11443_v21, %v10730_v12  ;;  %v6447_v35 = vpop.f32.mrb[159].mxu0  ;;  %v15897_v27 = vmul.f32 0.33333334, %v11432_v29  ;;  %v11816_v12 = vld [vmem:[%s17247_s3 + $0x108] sm:$0xff]  }
 0x7e4   : > { %v15895_v47 = vmul.f32 0.33333334, %v11438_v37  ;;  %v11450_v13 = vadd.f32 %v11449_v7, %v6447_v35 }
 0x7e5   : > { %v15899_v63 = vmul.f32 0.33333334, %v11444_v0  ;;  %v6719_v49 = vmax.f32 %v15897_v27, 0.0 }
 0x7e6   : > { %v15901_v50 = vmul.f32 0.33333334, %v11450_v13  ;;  %v6717_v4 = vmax.f32 %v15895_v47, 0.0 }
 0x7e7   : > { %v6720_v10 = vmax.f32 %v15899_v63, 0.0 }
 0x7e8   : > { %v6718_v54 = vmax.f32 %v15901_v50, 0.0 }
 0x7e9   : > { %v6736_v57 = vpack.c.bf16 %v6720_v10, %v6719_v49  ;;  %v11817_v49 = vld [vmem:[%s17247_s3 + $0x110] sm:$0xff]  }
 0x7ea   : > { %v6735_v52 = vpack.c.bf16 %v6718_v54, %v6717_v4 }
 0x7ec   : > { %10775 = vmatprep.mubr.bf16.mxu1 %v6735_v52 }
 0x7ed   : > { %10776 = vmatmul.mubr.bf16.gmra.mrb[156].mxu1 %v6736_v57 }
 0x86c   : > { %v10749_v14 = vpop.f32.mrb[128].mxu1 }
 0x86d   : > { %v6834_v28 = vadd.f32 %v10749_v14, %v15919_v23  ;;  %v6825_v58 = vpop.f32.mrb[129].mxu1 }
 0x86e   : > { %v6826_v61 = vadd.f32 %v15919_v23, %v6825_v58  ;;  %v10750_v5 = vpop.f32.mrb[130].mxu1 }
 0x86f   : > { %v6837_v40 = vadd.f32 %v10750_v5, %v15919_v23  ;;  %v6828_v19 = vpop.f32.mrb[131].mxu1  ;;  %v6954_v51 = vmax.f32 %v6834_v28, 0.0 }
 0x870   : > { %v6829_v56 = vadd.f32 %v15919_v23, %v6828_v19  ;;  %v6952_v20 = vmax.f32 %v6826_v61, 0.0 }
 0x871   : > { %v6955_v6 = vmax.f32 %v6837_v40, 0.0 }
 0x872   : > { %v6953_v60 = vmax.f32 %v6829_v56, 0.0 }
 0x873   : > { %v6985_v38 = vpack.c.bf16 %v6955_v6, %v6954_v51 }
 0x874   : > { %v6984_v29 = vpack.c.bf16 %v6953_v60, %v6952_v20  ;;  %v10753_v59 = vpop.f32.mrb[132].mxu1  ;;  %v11819_v20 = vld [vmem:[%s17247_s3 + $0x120] sm:$0xff]  }
 0x875   : > { %v6850_v21 = vadd.f32 %v10753_v59, %v15919_v23  ;;  %v6841_v37 = vpop.f32.mrb[133].mxu1 }
 0x876   : > { %v6842_v7 = vadd.f32 %v15919_v23, %v6841_v37  ;;  %v10754_v0 = vpop.f32.mrb[134].mxu1  ;;  %10795 = vmatprep.mubr.bf16.mxu1 %v6984_v29 }
 0x877   : > { %v6853_v35 = vadd.f32 %v10754_v0, %v15919_v23  ;;  %v6844_v13 = vpop.f32.mrb[135].mxu1  ;;  %10796 = vmatmul.mubr.bf16.vlgmr.msra.gmra.mrb[160].mxu1 %v6985_v38  ;;  %v6958_v4 = vmax.f32 %v6850_v21, 0.0 }
 0x878   : > { %v6845_v10 = vadd.f32 %v15919_v23, %v6844_v13  ;;  %10828 = vmatpush3.bf16.msra.mxu1 %v11815_v16  ;;  %v6956_v52 = vmax.f32 %v6842_v7, 0.0  ;;  %v11818_v16 = vld [vmem:[%s17247_s3 + $0x118] sm:$0xff]  }
 0x879   : > { %v6959_v54 = vmax.f32 %v6853_v35, 0.0  ;;  %10829 = vmatprep.subr.bf16.mxu1 %v11816_v12 }
 0x87a   : > { %v6957_v57 = vmax.f32 %v6845_v10, 0.0 }
 0x87b   : > { %v6987_v42 = vpack.c.bf16 %v6959_v54, %v6958_v4 }
 0x87c   : > { %v6986_v55 = vpack.c.bf16 %v6957_v57, %v6956_v52  ;;  %v10757_v14 = vpop.f32.mrb[136].mxu1  ;;  %10830 = vmatpush3.bf16.msra.mxu1 %v11816_v12 }
 0x87d   : > { %v6866_v28 = vadd.f32 %v10757_v14, %v15919_v23  ;;  %v6857_v58 = vpop.f32.mrb[137].mxu1  ;;  %10831 = vmatprep.subr.bf16.mxu1 %v11817_v49 }
 0x87e   : > { %v6858_v61 = vadd.f32 %v15919_v23, %v6857_v58  ;;  %v10758_v5 = vpop.f32.mrb[138].mxu1  ;;  %10799 = vmatprep.mubr.bf16.mxu1 %v6986_v55 }
 0x87f   : > { %v6869_v40 = vadd.f32 %v10758_v5, %v15919_v23  ;;  %v6860_v19 = vpop.f32.mrb[139].mxu1  ;;  %10800 = vmatmul.mubr.bf16.gmra.mrb[164].mxu1 %v6987_v42  ;;  %v6962_v51 = vmax.f32 %v6866_v28, 0.0 }
 0x880   : > { %v6861_v56 = vadd.f32 %v15919_v23, %v6860_v19  ;;  %10832 = vmatpush3.bf16.msra.mxu1 %v11817_v49  ;;  %v6960_v60 = vmax.f32 %v6858_v61, 0.0 }
 0x881   : > { %v6963_v6 = vmax.f32 %v6869_v40, 0.0  ;;  %10833 = vmatprep.subr.bf16.mxu1 %v11818_v16 }
 0x882   : > { %v6961_v38 = vmax.f32 %v6861_v56, 0.0 }
 0x883   : > { %v6989_v29 = vpack.c.bf16 %v6963_v6, %v6962_v51 }
 0x884   : > { %v6988_v59 = vpack.c.bf16 %v6961_v38, %v6960_v60  ;;  %v10761_v21 = vpop.f32.mrb[140].mxu1  ;;  %10834 = vmatpush3.bf16.msra.mxu1 %v11818_v16 }
 0x885   : > { %v6882_v37 = vadd.f32 %v10761_v21, %v15919_v23  ;;  %v6873_v12 = vpop.f32.mrb[141].mxu1  ;;  %10835 = vmatprep.subr.bf16.mxu1 %v11819_v20 }
 0x886   : > { %v6874_v7 = vadd.f32 %v15919_v23, %v6873_v12  ;;  %v10762_v0 = vpop.f32.mrb[142].mxu1  ;;  %10803 = vmatprep.mubr.bf16.mxu1 %v6988_v59 }
 0x887   : > { %v6885_v35 = vadd.f32 %v10762_v0, %v15919_v23  ;;  %v6876_v13 = vpop.f32.mrb[143].mxu1  ;;  %10804 = vmatmul.mubr.bf16.gmra.mrb[168].mxu1 %v6989_v29  ;;  %v6966_v4 = vmax.f32 %v6882_v37, 0.0 }
 0x888   : > { %v6877_v10 = vadd.f32 %v15919_v23, %v6876_v13  ;;  %10836 = vmatpush3.bf16.msra.mxu1 %v11819_v20  ;;  %v6964_v49 = vmax.f32 %v6874_v7, 0.0 }
 0x889   : > { %v6967_v54 = vmax.f32 %v6885_v35, 0.0 }
 0x88a   : > { %v6965_v52 = vmax.f32 %v6877_v10, 0.0 }
 0x88b   : > { %v6991_v57 = vpack.c.bf16 %v6967_v54, %v6966_v4 }
 0x88c   : > { %v6990_v42 = vpack.c.bf16 %v6965_v52, %v6964_v49 }
 0x88e   : > { %10807 = vmatprep.mubr.bf16.mxu1 %v6990_v42 }
 0x88f   : > { %10808 = vmatmul.mubr.bf16.gmra.mrb[172].mxu1 %v6991_v57 }
 0x890   : > { %v10765_v55 = vpop.f32.mrb[144].mxu1 }
 0x891   : > { %v6898_v14 = vadd.f32 %v10765_v55, %v15919_v23  ;;  %v6889_v28 = vpop.f32.mrb[145].mxu1 }
 0x892   : > { %v6890_v58 = vadd.f32 %v15919_v23, %v6889_v28  ;;  %v10766_v16 = vpop.f32.mrb[146].mxu1 }
 0x893   : > { %v6901_v61 = vadd.f32 %v10766_v16, %v15919_v23  ;;  %v6892_v5 = vpop.f32.mrb[147].mxu1  ;;  %v6970_v19 = vmax.f32 %v6898_v14, 0.0 }
 0x894   : > { %v6893_v40 = vadd.f32 %v15919_v23, %v6892_v5  ;;  %v6968_v51 = vmax.f32 %v6890_v58, 0.0 }
 0x895   : > { %v6971_v56 = vmax.f32 %v6901_v61, 0.0 }
 0x896   : > { %v6969_v6 = vmax.f32 %v6893_v40, 0.0 }
 0x897   : > { %v6993_v20 = vpack.c.bf16 %v6971_v56, %v6970_v19 }
 0x898   : > { %v6992_v60 = vpack.c.bf16 %v6969_v6, %v6968_v51 }
 0x89a   : > { %10811 = vmatprep.mubr.bf16.mxu1 %v6992_v60 }
 0x89b   : > { %10812 = vmatmul.mubr.bf16.gmra.mrb[176].mxu1 %v6993_v20 }
 0x8a0   : > { %v10769_v38 = vpop.f32.mrb[148].mxu1 }
 0x8a1   : > { %v6914_v29 = vadd.f32 %v10769_v38, %v15919_v23  ;;  %v6905_v59 = vpop.f32.mrb[149].mxu1 }
 0x8a2   : > { %v6906_v21 = vadd.f32 %v15919_v23, %v6905_v59  ;;  %v10770_v37 = vpop.f32.mrb[150].mxu1 }
 0x8a3   : > { %v6917_v12 = vadd.f32 %v10770_v37, %v15919_v23  ;;  %v6908_v7 = vpop.f32.mrb[151].mxu1  ;;  %v6974_v35 = vmax.f32 %v6914_v29, 0.0 }
 0x8a4   : > { %v6909_v0 = vadd.f32 %v15919_v23, %v6908_v7  ;;  %v6972_v10 = vmax.f32 %v6906_v21, 0.0 }
 0x8a5   : > { %v6975_v13 = vmax.f32 %v6917_v12, 0.0 }
 0x8a6   : > { %v6973_v4 = vmax.f32 %v6909_v0, 0.0 }
 0x8a7   : > { %v6995_v54 = vpack.c.bf16 %v6975_v13, %v6974_v35 }
 0x8a8   : > { %v6994_v49 = vpack.c.bf16 %v6973_v4, %v6972_v10  ;;  %v11820_v4 = vld [vmem:[%s17247_s3 + $0x128] sm:$0xff]  }
 0x8a9   : > { %10837 = vmatprep.subr.bf16.mxu1 %v11820_v4 }
 0x8aa   : > { %10815 = vmatprep.mubr.bf16.mxu1 %v6994_v49  ;;  %10838 = vmatpush3.bf16.msra.mxu1 %v11820_v4  ;;  %v11823_v49 = vld [vmem:[%s17249_s5 + $0x100] sm:$0xff]  }
 0x8ab   : > { %10816 = vmatmul.mubr.bf16.gmra.mrb[180].mxu1 %v6995_v54  ;;  %v11821_v54 = vld [vmem:[%s17247_s3 + $0x130] sm:$0xff]   ;;  %10875 = vmatprep.subr.bf16.mxu0 %v11823_v49 }
 0x8ac   : > { %10839 = vmatprep.subr.bf16.mxu1 %v11821_v54  ;;  %10876 = vmatpush3.bf16.msra.mxu0 %v11823_v49 }
 0x8ae   : > { %10840 = vmatpush3.bf16.msra.mxu1 %v11821_v54 }
 0x8b0   : > { %v10773_v52 = vpop.f32.mrb[152].mxu1 }
 0x8b1   : > { %v6930_v57 = vadd.f32 %v10773_v52, %v15919_v23  ;;  %v6921_v42 = vpop.f32.mrb[153].mxu1  ;;  %v11824_v52 = vld [vmem:[%s17249_s5 + $0x108] sm:$0xff]  }
 0x8b2   : > { %v6922_v55 = vadd.f32 %v15919_v23, %v6921_v42  ;;  %v10774_v14 = vpop.f32.mrb[154].mxu1  ;;  %10877 = vmatprep.subr.bf16.mxu0 %v11824_v52  ;;  %v11826_v42 = vld [vmem:[%s17249_s5 + $0x118] sm:$0xff]  }
 0x8b3   : > { %v6933_v28 = vadd.f32 %v10774_v14, %v15919_v23  ;;  %v6924_v58 = vpop.f32.mrb[155].mxu1  ;;  %v6978_v61 = vmax.f32 %v6930_v57, 0.0  ;;  %10878 = vmatpush3.bf16.msra.mxu0 %v11824_v52  ;;  %v11825_v57 = vld [vmem:[%s17249_s5 + $0x110] sm:$0xff]   ;;  %v11828_v14 = vld [vmem:[%s17249_s5 + $0x128] sm:$0xff]  }
 0x8b4   : > { %v6925_v16 = vadd.f32 %v15919_v23, %v6924_v58  ;;  %v6976_v40 = vmax.f32 %v6922_v55, 0.0  ;;  %10879 = vmatprep.subr.bf16.mxu0 %v11825_v57  ;;  %v11827_v55 = vld [vmem:[%s17249_s5 + $0x120] sm:$0xff]  }
 0x8b5   : > { %v6979_v5 = vmax.f32 %v6933_v28, 0.0  ;;  %v11829_v28 = vld [vmem:[%s17249_s5 + $0x130] sm:$0xff]   ;;  %v15998_v58 = vld [vmem:[%s17250_s6 + $0x3] ss:$0 sm:$0xff] }
 0x8b6   : > { %v6977_v19 = vmax.f32 %v6925_v16, 0.0 }
 0x8b7   : > { %v6997_v56 = vpack.c.bf16 %v6979_v5, %v6978_v61  ;;  %10880 = vmatpush3.bf16.msra.mxu0 %v11825_v57 }
 0x8b8   : > { %v6996_v51 = vpack.c.bf16 %v6977_v19, %v6976_v40  ;;  %10881 = vmatprep.subr.bf16.mxu0 %v11826_v42 }
 0x8ba   : > { %10819 = vmatprep.mubr.bf16.mxu1 %v6996_v51 }
 0x8bb   : > { %10820 = vmatmul.mubr.bf16.gmra.mrb[184].mxu1 %v6997_v56  ;;  %10882 = vmatpush3.bf16.msra.mxu0 %v11826_v42 }
 0x8bc   : > { %10883 = vmatprep.subr.bf16.mxu0 %v11827_v55 }
 0x8bf   : > { %10884 = vmatpush3.bf16.msra.mxu0 %v11827_v55 }
 0x8c0   : > { %v10777_v6 = vpop.f32.mrb[156].mxu1  ;;  %10885 = vmatprep.subr.bf16.mxu0 %v11828_v14 }
 0x8c1   : > { %v6946_v20 = vadd.f32 %v10777_v6, %v15919_v23  ;;  %v6937_v60 = vpop.f32.mrb[157].mxu1 }
 0x8c2   : > { %v6938_v38 = vadd.f32 %v15919_v23, %v6937_v60  ;;  %v10778_v29 = vpop.f32.mrb[158].mxu1 }
 0x8c3   : > { %v6949_v59 = vadd.f32 %v10778_v29, %v15919_v23  ;;  %v6940_v21 = vpop.f32.mrb[159].mxu1  ;;  %v6982_v12 = vmax.f32 %v6946_v20, 0.0  ;;  %10886 = vmatpush3.bf16.msra.mxu0 %v11828_v14 }
 0x8c4   : > { %v6941_v37 = vadd.f32 %v15919_v23, %v6940_v21  ;;  %v6980_v0 = vmax.f32 %v6938_v38, 0.0  ;;  %v11822_v23 = vld [vmem:[%s17247_s3 + $0x138] sm:$0xff]   ;;  %10887 = vmatprep.subr.bf16.mxu0 %v11829_v28 }
 0x8c5   : > { %v6983_v7 = vmax.f32 %v6949_v59, 0.0  ;;  %10841 = vmatprep.subr.bf16.mxu1 %v11822_v23 }
 0x8c6   : > { %v6981_v35 = vmax.f32 %v6941_v37, 0.0  ;;  %10842 = vmatpush3.bf16.msra.mxu1 %v11822_v23 }
 0x8c7   : > { %v6999_v13 = vpack.c.bf16 %v6983_v7, %v6982_v12  ;;  %10888 = vmatpush3.bf16.msra.mxu0 %v11829_v28 }
 0x8c8   : > { %v6998_v10 = vpack.c.bf16 %v6981_v35, %v6980_v0 }
 0x8ca   : > { %10823 = vmatprep.mubr.bf16.mxu1 %v6998_v10 }
 0x8cb   : > { %10824 = vmatmul.mubr.bf16.gmra.mrb[188].mxu1 %v6999_v13 }
 0x94a   : > { %v10797_v16 = vpop.f32.mrb[160].mxu1 }
 0x94b   : > { %v7097_v61 = vadd.f32 %v10797_v16, %v15998_v58  ;;  %v7088_v5 = vpop.f32.mrb[161].mxu1 }
 0x94c   : > { %v7089_v40 = vadd.f32 %v15998_v58, %v7088_v5  ;;  %v10798_v19 = vpop.f32.mrb[162].mxu1 }
 0x94d   : > { %v7100_v56 = vadd.f32 %v10798_v19, %v15998_v58  ;;  %v7091_v51 = vpop.f32.mrb[163].mxu1  ;;  %v16008_v60 = vadd.f32 %v7097_v61, %v15695_v36 }
 0x94e   : > { %v16004_v6 = vadd.f32 %v7089_v40, %v15692_v44  ;;  %v7092_v20 = vadd.f32 %v15998_v58, %v7091_v51 }
 0x94f   : > { %v16011_v38 = vadd.f32 %v7100_v56, %v15697_v26  ;;  %v7287_v44 = vmax.f32 %v16008_v60, 0.0 }
 0x950   : > { %v16014_v29 = vadd.f32 %v7092_v20, %v15700_v2  ;;  %v7285_v21 = vmax.f32 %v16004_v6, 0.0 }
 0x951   : > { %v7288_v59 = vmax.f32 %v16011_v38, 0.0 }
 0x952   : > { %v7286_v37 = vmax.f32 %v16014_v29, 0.0  ;;  %v10801_v12 = vpop.f32.mrb[164].mxu1 }
 0x953   : > { %v7113_v7 = vadd.f32 %v10801_v12, %v15998_v58  ;;  %v7104_v0 = vpop.f32.mrb[165].mxu1  ;;  %v7318_v13 = vpack.c.bf16 %v7288_v59, %v7287_v44 }
 0x954   : > { %v7105_v36 = vadd.f32 %v15998_v58, %v7104_v0  ;;  %v10802_v35 = vpop.f32.mrb[166].mxu1  ;;  %v7317_v26 = vpack.c.bf16 %v7286_v37, %v7285_v21 }
 0x955   : > { %v7116_v2 = vadd.f32 %v10802_v35, %v15998_v58  ;;  %v7107_v10 = vpop.f32.mrb[167].mxu1  ;;  %v16028_v23 = vadd.f32 %v7113_v7, %v15726_v62 }
 0x956   : > { %v16024_v4 = vadd.f32 %v7105_v36, %v15723_v48  ;;  %v7108_v54 = vadd.f32 %v15998_v58, %v7107_v10  ;;  %10843 = vmatprep.mubr.bf16.mxu1 %v7317_v26 }
 0x957   : > { %v16031_v49 = vadd.f32 %v7116_v2, %v15728_v24  ;;  %10844 = vmatmul.mubr.bf16.vlgmr.msra.gmra.mrb[192].mxu1 %v7318_v13  ;;  %v7291_v14 = vmax.f32 %v16028_v23, 0.0 }
 0x958   : > { %v16034_v52 = vadd.f32 %v7108_v54, %v15731_v25  ;;  %v7289_v42 = vmax.f32 %v16024_v4, 0.0 }
 0x959   : > { %v7292_v57 = vmax.f32 %v16031_v49, 0.0 }
 0x95a   : > { %v7290_v48 = vmax.f32 %v16034_v52, 0.0  ;;  %v10805_v55 = vpop.f32.mrb[168].mxu1 }
 0x95b   : > { %v7129_v28 = vadd.f32 %v10805_v55, %v15998_v58  ;;  %v7120_v62 = vpop.f32.mrb[169].mxu1  ;;  %v7320_v5 = vpack.c.bf16 %v7292_v57, %v7291_v14 }
 0x95c   : > { %v7121_v16 = vadd.f32 %v15998_v58, %v7120_v62  ;;  %v10806_v24 = vpop.f32.mrb[170].mxu1  ;;  %v7319_v61 = vpack.c.bf16 %v7290_v48, %v7289_v42 }
 0x95d   : > { %v7132_v25 = vadd.f32 %v10806_v24, %v15998_v58  ;;  %v7123_v40 = vpop.f32.mrb[171].mxu1  ;;  %v16048_v51 = vadd.f32 %v7129_v28, %v15761_v45 }
 0x95e   : > { %v16044_v19 = vadd.f32 %v7121_v16, %v15758_v18  ;;  %v7124_v56 = vadd.f32 %v15998_v58, %v7123_v40  ;;  %10847 = vmatprep.mubr.bf16.mxu1 %v7319_v61 }
 0x95f   : > { %v16051_v20 = vadd.f32 %v7132_v25, %v15763_v1  ;;  %10848 = vmatmul.mubr.bf16.gmra.mrb[196].mxu1 %v7320_v5  ;;  %v7295_v44 = vmax.f32 %v16048_v51, 0.0 }
 0x960   : > { %v16054_v59 = vadd.f32 %v7124_v56, %v15766_v34  ;;  %v7293_v37 = vmax.f32 %v16044_v19, 0.0 }
 0x961   : > { %v7296_v21 = vmax.f32 %v16051_v20, 0.0 }
 0x962   : > { %v7294_v18 = vmax.f32 %v16054_v59, 0.0  ;;  %v10809_v12 = vpop.f32.mrb[172].mxu1 }
 0x963   : > { %v7145_v7 = vadd.f32 %v10809_v12, %v15998_v58  ;;  %v7136_v45 = vpop.f32.mrb[173].mxu1  ;;  %v7322_v35 = vpack.c.bf16 %v7296_v21, %v7295_v44 }
 0x964   : > { %v7137_v0 = vadd.f32 %v15998_v58, %v7136_v45  ;;  %v10810_v1 = vpop.f32.mrb[174].mxu1  ;;  %v7321_v36 = vpack.c.bf16 %v7294_v18, %v7293_v37 }
 0x965   : > { %v7148_v34 = vadd.f32 %v10810_v1, %v15998_v58  ;;  %v7139_v26 = vpop.f32.mrb[175].mxu1  ;;  %v16068_v10 = vadd.f32 %v7145_v7, %v15785_v41 }
 0x966   : > { %v16064_v13 = vadd.f32 %v7137_v0, %v15783_v33  ;;  %v7140_v2 = vadd.f32 %v15998_v58, %v7139_v26  ;;  %10851 = vmatprep.mubr.bf16.mxu1 %v7321_v36 }
 0x967   : > { %v16071_v54 = vadd.f32 %v7148_v34, %v15787_v11  ;;  %10852 = vmatmul.mubr.bf16.gmra.mrb[200].mxu1 %v7322_v35  ;;  %v7299_v55 = vmax.f32 %v16068_v10, 0.0 }
 0x968   : > { %v16074_v57 = vadd.f32 %v7140_v2, %v15791_v3  ;;  %v7297_v48 = vmax.f32 %v16064_v13, 0.0 }
 0x969   : > { %v7300_v42 = vmax.f32 %v16071_v54, 0.0 }
 0x96a   : > { %v7298_v33 = vmax.f32 %v16074_v57, 0.0 }
 0x96b   : > { %v7324_v28 = vpack.c.bf16 %v7300_v42, %v7299_v55 }
 0x96c   : > { %v7323_v14 = vpack.c.bf16 %v7298_v33, %v7297_v48 }
 0x96e   : > { %10855 = vmatprep.mubr.bf16.mxu1 %v7323_v14  ;;  %v10813_v41 = vpop.f32.mrb[176].mxu1 }
 0x96f   : > { %10856 = vmatmul.mubr.bf16.gmra.mrb[204].mxu1 %v7324_v28  ;;  %v7161_v11 = vadd.f32 %v10813_v41, %v15998_v58  ;;  %v7152_v62 = vpop.f32.mrb[177].mxu1 }
 0x970   : > { %v7153_v16 = vadd.f32 %v15998_v58, %v7152_v62  ;;  %v10814_v3 = vpop.f32.mrb[178].mxu1 }
 0x971   : > { %v7164_v24 = vadd.f32 %v10814_v3, %v15998_v58  ;;  %v7155_v61 = vpop.f32.mrb[179].mxu1  ;;  %v16088_v40 = vadd.f32 %v7161_v11, %v15813_v30 }
 0x972   : > { %v16084_v5 = vadd.f32 %v7153_v16, %v15811_v39  ;;  %v7156_v25 = vadd.f32 %v15998_v58, %v7155_v61 }
 0x973   : > { %v16091_v56 = vadd.f32 %v7164_v24, %v15815_v22  ;;  %v7303_v39 = vmax.f32 %v16088_v40, 0.0 }
 0x974   : > { %v16094_v21 = vadd.f32 %v7156_v25, %v15817_v43  ;;  %v7301_v18 = vmax.f32 %v16084_v5, 0.0 }
 0x975   : > { %v7304_v37 = vmax.f32 %v16091_v56, 0.0 }
 0x976   : > { %v7302_v12 = vmax.f32 %v16094_v21, 0.0 }
 0x977   : > { %v7326_v7 = vpack.c.bf16 %v7304_v37, %v7303_v39 }
 0x978   : > { %v7325_v44 = vpack.c.bf16 %v7302_v12, %v7301_v18 }
 0x97a   : > { %10859 = vmatprep.mubr.bf16.mxu1 %v7325_v44 }
 0x97b   : > { %10860 = vmatmul.mubr.bf16.gmra.mrb[208].mxu1 %v7326_v7 }
 0x97e   : > { %v10817_v30 = vpop.f32.mrb[180].mxu1 }
 0x97f   : > { %v7177_v45 = vadd.f32 %v10817_v30, %v15998_v58  ;;  %v7168_v22 = vpop.f32.mrb[181].mxu1 }
 0x980   : > { %v7169_v0 = vadd.f32 %v15998_v58, %v7168_v22  ;;  %v10818_v43 = vpop.f32.mrb[182].mxu1 }
 0x981   : > { %v7180_v1 = vadd.f32 %v10818_v43, %v15998_v58  ;;  %v7171_v36 = vpop.f32.mrb[183].mxu1  ;;  %v16108_v26 = vadd.f32 %v7177_v45, %v15841_v15 }
 0x982   : > { %v16104_v35 = vadd.f32 %v7169_v0, %v15839_v9  ;;  %v7172_v34 = vadd.f32 %v15998_v58, %v7171_v36 }
 0x983   : > { %v16111_v2 = vadd.f32 %v7180_v1, %v15843_v32  ;;  %v7307_v9 = vmax.f32 %v16108_v26, 0.0 }
 0x984   : > { %v16114_v42 = vadd.f32 %v7172_v34, %v15845_v46  ;;  %v7305_v33 = vmax.f32 %v16104_v35, 0.0 }
 0x985   : > { %v7308_v48 = vmax.f32 %v16111_v2, 0.0 }
 0x986   : > { %v7306_v55 = vmax.f32 %v16114_v42, 0.0 }
 0x987   : > { %v7328_v28 = vpack.c.bf16 %v7308_v48, %v7307_v9 }
 0x988   : > { %v7327_v14 = vpack.c.bf16 %v7306_v55, %v7305_v33 }
 0x98a   : > { %10863 = vmatprep.mubr.bf16.mxu1 %v7327_v14 }
 0x98b   : > { %10864 = vmatmul.mubr.bf16.gmra.mrb[212].mxu1 %v7328_v28 }
 0x98e   : > { %v10821_v15 = vpop.f32.mrb[184].mxu1 }
 0x98f   : > { %v7193_v41 = vadd.f32 %v10821_v15, %v15998_v58  ;;  %v7184_v32 = vpop.f32.mrb[185].mxu1  ;;  %v11834_v15 = vld [vmem:[%s17251_s7 + $0x18] sm:$0xff]  }
 0x990   : > { %v7185_v11 = vadd.f32 %v15998_v58, %v7184_v32  ;;  %v10822_v46 = vpop.f32.mrb[186].mxu1  ;;  %v16181_v32 = vld [vmem:[%s17248_s4 + $0x4] ss:$0 sm:$0xff] }
 0x991   : > { %v7196_v62 = vadd.f32 %v10822_v46, %v15998_v58  ;;  %v7187_v16 = vpop.f32.mrb[187].mxu1  ;;  %v16128_v61 = vadd.f32 %v7193_v41, %v15869_v8  ;;  %v11835_v41 = vld [vmem:[%s17251_s7 + $0x20] sm:$0xff]  }
 0x992   : > { %v16124_v3 = vadd.f32 %v7185_v11, %v15867_v53  ;;  %v7188_v24 = vadd.f32 %v15998_v58, %v7187_v16 }
 0x993   : > { %v16131_v25 = vadd.f32 %v7196_v62, %v15871_v17  ;;  %v7311_v53 = vmax.f32 %v16128_v61, 0.0 }
 0x994   : > { %v16134_v37 = vadd.f32 %v7188_v24, %v15873_v31  ;;  %v7309_v12 = vmax.f32 %v16124_v3, 0.0 }
 0x995   : > { %v7312_v18 = vmax.f32 %v16131_v25, 0.0 }
 0x996   : > { %v7310_v39 = vmax.f32 %v16134_v37, 0.0 }
 0x997   : > { %v7330_v7 = vpack.c.bf16 %v7312_v18, %v7311_v53 }
 0x998   : > { %v7329_v44 = vpack.c.bf16 %v7310_v39, %v7309_v12 }
 0x99a   : > { %10867 = vmatprep.mubr.bf16.mxu1 %v7329_v44 }
 0x99b   : > { %10868 = vmatmul.mubr.bf16.gmra.mrb[216].mxu1 %v7330_v7 }
 0x99e   : > { %v10825_v8 = vpop.f32.mrb[188].mxu1 }
 0x99f   : > { %v7209_v30 = vadd.f32 %v10825_v8, %v15998_v58  ;;  %v7200_v17 = vpop.f32.mrb[189].mxu1 }
 0x9a0   : > { %v7201_v45 = vadd.f32 %v15998_v58, %v7200_v17  ;;  %v10826_v31 = vpop.f32.mrb[190].mxu1 }
 0x9a1   : > { %v7212_v22 = vadd.f32 %v10826_v31, %v15998_v58  ;;  %v7203_v0 = vpop.f32.mrb[191].mxu1  ;;  %v16148_v36 = vadd.f32 %v7209_v30, %v15897_v27  ;;  %v11830_v27 = vld [vmem:[%s17249_s5 + $0x138] sm:$0xff]  }
 0x9a2   : > { %v16144_v43 = vadd.f32 %v7201_v45, %v15895_v47  ;;  %v7204_v1 = vadd.f32 %v15998_v58, %v7203_v0  ;;  %10889 = vmatprep.subr.bf16.mxu0 %v11830_v27  ;;  %v11833_v58 = vld [vmem:[%s17251_s7 + $0x10] sm:$0xff]  }
 0x9a3   : > { %v16151_v34 = vadd.f32 %v7212_v22, %v15899_v63  ;;  %v7315_v47 = vmax.f32 %v16148_v36, 0.0  ;;  %10890 = vmatpush3.bf16.msra.mxu0 %v11830_v27  ;;  %v11831_v63 = vld [vmem:[%s17251_s7] sm:$0xff]  }
 0x9a4   : > { %v16154_v48 = vadd.f32 %v7204_v1, %v15901_v50  ;;  %v7313_v55 = vmax.f32 %v16144_v43, 0.0  ;;  %v11832_v50 = vld [vmem:[%s17251_s7 + $0x8] sm:$0xff]   ;;  %10923 = vmatprep.subr.bf16.mxu1 %v11831_v63 }
 0x9a5   : > { %v7316_v33 = vmax.f32 %v16151_v34, 0.0  ;;  %10924 = vmatpush3.bf16.msra.mxu1 %v11831_v63 }
 0x9a6   : > { %v7314_v9 = vmax.f32 %v16154_v48, 0.0  ;;  %10925 = vmatprep.subr.bf16.mxu1 %v11832_v50 }
 0x9a7   : > { %v7332_v28 = vpack.c.bf16 %v7316_v33, %v7315_v47 }
 0x9a8   : > { %v7331_v14 = vpack.c.bf16 %v7314_v9, %v7313_v55 }
 0x9a9   : > { %10926 = vmatpush3.bf16.msra.mxu1 %v11832_v50 }
 0x9aa   : > { %10871 = vmatprep.mubr.bf16.mxu1 %v7331_v14  ;;  %10927 = vmatprep.subr.bf16.mxu1 %v11833_v58 }
 0x9ab   : > { %10872 = vmatmul.mubr.bf16.gmra.mrb[220].mxu1 %v7332_v28 }
 0x9ad   : > { %10928 = vmatpush3.bf16.msra.mxu1 %v11833_v58 }
 0x9ae   : > { %10929 = vmatprep.subr.bf16.mxu1 %v11834_v15 }
 0x9b1   : > { %10930 = vmatpush3.bf16.msra.mxu1 %v11834_v15 }
 0x9b2   : > { %10931 = vmatprep.subr.bf16.mxu1 %v11835_v41 }
 0x9b5   : > { %10932 = vmatpush3.bf16.msra.mxu1 %v11835_v41 }
 0xa2a   : > { %v10845_v11 = vpop.f32.mrb[192].mxu1 }
 0xa2b   : > { %v7430_v46 = vadd.f32 %v10845_v11, %v16181_v32  ;;  %v7421_v62 = vpop.f32.mrb[193].mxu1 }
 0xa2c   : > { %v7422_v16 = vadd.f32 %v16181_v32, %v7421_v62  ;;  %v10846_v24 = vpop.f32.mrb[194].mxu1 }
 0xa2d   : > { %v7433_v18 = vadd.f32 %v10846_v24, %v16181_v32  ;;  %v7424_v12 = vpop.f32.mrb[195].mxu1  ;;  %v7550_v53 = vmax.f32 %v7430_v46, 0.0 }
 0xa2e   : > { %v7425_v39 = vadd.f32 %v16181_v32, %v7424_v12  ;;  %v7548_v7 = vmax.f32 %v7422_v16, 0.0 }
 0xa2f   : > { %v7551_v44 = vmax.f32 %v7433_v18, 0.0 }
 0xa30   : > { %v7549_v8 = vmax.f32 %v7425_v39, 0.0 }
 0xa31   : > { %v7581_v30 = vpack.c.bf16 %v7551_v44, %v7550_v53 }
 0xa32   : > { %v7580_v17 = vpack.c.bf16 %v7549_v8, %v7548_v7  ;;  %v10849_v45 = vpop.f32.mrb[196].mxu1 }
 0xa33   : > { %v7446_v31 = vadd.f32 %v10849_v45, %v16181_v32  ;;  %v7437_v22 = vpop.f32.mrb[197].mxu1 }
 0xa34   : > { %v7438_v0 = vadd.f32 %v16181_v32, %v7437_v22  ;;  %v10850_v1 = vpop.f32.mrb[198].mxu1  ;;  %10891 = vmatprep.mubr.bf16.mxu0 %v7580_v17 }
 0xa35   : > { %v7449_v33 = vadd.f32 %v10850_v1, %v16181_v32  ;;  %v7440_v55 = vpop.f32.mrb[199].mxu1  ;;  %10892 = vmatmul.mubr.bf16.vlgmr.msra.gmra.mrb[160].mxu0 %v7581_v30  ;;  %v7554_v47 = vmax.f32 %v7446_v31, 0.0 }
 0xa36   : > { %v7441_v9 = vadd.f32 %v16181_v32, %v7440_v55  ;;  %v7552_v28 = vmax.f32 %v7438_v0, 0.0 }
 0xa37   : > { %v7555_v14 = vmax.f32 %v7449_v33, 0.0 }
 0xa38   : > { %v7553_v27 = vmax.f32 %v7441_v9, 0.0 }
 0xa39   : > { %v7583_v63 = vpack.c.bf16 %v7555_v14, %v7554_v47 }
 0xa3a   : > { %v7582_v50 = vpack.c.bf16 %v7553_v27, %v7552_v28  ;;  %v10853_v58 = vpop.f32.mrb[200].mxu1 }
 0xa3b   : > { %v7462_v15 = vadd.f32 %v10853_v58, %v16181_v32  ;;  %v7453_v41 = vpop.f32.mrb[201].mxu1 }
 0xa3c   : > { %v7454_v11 = vadd.f32 %v16181_v32, %v7453_v41  ;;  %v10854_v46 = vpop.f32.mrb[202].mxu1  ;;  %10895 = vmatprep.mubr.bf16.mxu0 %v7582_v50 }
 0xa3d   : > { %v7465_v62 = vadd.f32 %v10854_v46, %v16181_v32  ;;  %v7456_v16 = vpop.f32.mrb[203].mxu1  ;;  %10896 = vmatmul.mubr.bf16.gmra.mrb[164].mxu0 %v7583_v63  ;;  %v7558_v18 = vmax.f32 %v7462_v15, 0.0 }
 0xa3e   : > { %v7457_v24 = vadd.f32 %v16181_v32, %v7456_v16  ;;  %v7556_v39 = vmax.f32 %v7454_v11, 0.0 }
 0xa3f   : > { %v7559_v12 = vmax.f32 %v7465_v62, 0.0 }
 0xa40   : > { %v7557_v53 = vmax.f32 %v7457_v24, 0.0 }
 0xa41   : > { %v7585_v44 = vpack.c.bf16 %v7559_v12, %v7558_v18 }
 0xa42   : > { %v7584_v7 = vpack.c.bf16 %v7557_v53, %v7556_v39  ;;  %v10857_v8 = vpop.f32.mrb[204].mxu1 }
 0xa43   : > { %v7478_v30 = vadd.f32 %v10857_v8, %v16181_v32  ;;  %v7469_v17 = vpop.f32.mrb[205].mxu1 }
 0xa44   : > { %v7470_v45 = vadd.f32 %v16181_v32, %v7469_v17  ;;  %v10858_v31 = vpop.f32.mrb[206].mxu1  ;;  %10899 = vmatprep.mubr.bf16.mxu0 %v7584_v7 }
 0xa45   : > { %v7481_v22 = vadd.f32 %v10858_v31, %v16181_v32  ;;  %v7472_v0 = vpop.f32.mrb[207].mxu1  ;;  %10900 = vmatmul.mubr.bf16.gmra.mrb[168].mxu0 %v7585_v44  ;;  %v7562_v33 = vmax.f32 %v7478_v30, 0.0 }
 0xa46   : > { %v7473_v1 = vadd.f32 %v16181_v32, %v7472_v0  ;;  %v7560_v9 = vmax.f32 %v7470_v45, 0.0 }
 0xa47   : > { %v7563_v55 = vmax.f32 %v7481_v22, 0.0 }
 0xa48   : > { %v7561_v47 = vmax.f32 %v7473_v1, 0.0 }
 0xa49   : > { %v7587_v14 = vpack.c.bf16 %v7563_v55, %v7562_v33 }
 0xa4a   : > { %v7586_v28 = vpack.c.bf16 %v7561_v47, %v7560_v9 }
 0xa4c   : > { %10903 = vmatprep.mubr.bf16.mxu0 %v7586_v28 }
 0xa4d   : > { %10904 = vmatmul.mubr.bf16.gmra.mrb[172].mxu0 %v7587_v14 }
 0xa4e   : > { %v10861_v27 = vpop.f32.mrb[208].mxu1 }
 0xa4f   : > { %v7494_v63 = vadd.f32 %v10861_v27, %v16181_v32  ;;  %v7485_v50 = vpop.f32.mrb[209].mxu1 }
 0xa50   : > { %v7486_v58 = vadd.f32 %v16181_v32, %v7485_v50  ;;  %v10862_v15 = vpop.f32.mrb[210].mxu1 }
 0xa51   : > { %v7497_v41 = vadd.f32 %v10862_v15, %v16181_v32  ;;  %v7488_v11 = vpop.f32.mrb[211].mxu1  ;;  %v7566_v62 = vmax.f32 %v7494_v63, 0.0 }
 0xa52   : > { %v7489_v46 = vadd.f32 %v16181_v32, %v7488_v11  ;;  %v7564_v24 = vmax.f32 %v7486_v58, 0.0 }
 0xa53   : > { %v7567_v16 = vmax.f32 %v7497_v41, 0.0 }
 0xa54   : > { %v7565_v18 = vmax.f32 %v7489_v46, 0.0 }
 0xa55   : > { %v7589_v12 = vpack.c.bf16 %v7567_v16, %v7566_v62 }
 0xa56   : > { %v7588_v39 = vpack.c.bf16 %v7565_v18, %v7564_v24 }
 0xa58   : > { %10907 = vmatprep.mubr.bf16.mxu0 %v7588_v39 }
 0xa59   : > { %10908 = vmatmul.mubr.bf16.gmra.mrb[176].mxu0 %v7589_v12 }
 0xa5e   : > { %v10865_v53 = vpop.f32.mrb[212].mxu1 }
 0xa5f   : > { %v7510_v44 = vadd.f32 %v10865_v53, %v16181_v32  ;;  %v7501_v7 = vpop.f32.mrb[213].mxu1 }
 0xa60   : > { %v7502_v8 = vadd.f32 %v16181_v32, %v7501_v7  ;;  %v10866_v30 = vpop.f32.mrb[214].mxu1 }
 0xa61   : > { %v7513_v17 = vadd.f32 %v10866_v30, %v16181_v32  ;;  %v7504_v45 = vpop.f32.mrb[215].mxu1  ;;  %v7570_v22 = vmax.f32 %v7510_v44, 0.0 }
 0xa62   : > { %v7505_v31 = vadd.f32 %v16181_v32, %v7504_v45  ;;  %v7568_v1 = vmax.f32 %v7502_v8, 0.0 }
 0xa63   : > { %v7571_v0 = vmax.f32 %v7513_v17, 0.0 }
 0xa64   : > { %v7569_v33 = vmax.f32 %v7505_v31, 0.0 }
 0xa65   : > { %v7591_v55 = vpack.c.bf16 %v7571_v0, %v7570_v22 }
 0xa66   : > { %v7590_v9 = vpack.c.bf16 %v7569_v33, %v7568_v1  ;;  %v11836_v33 = vld [vmem:[%s17251_s7 + $0x28] sm:$0xff]  }
 0xa67   : > { %10933 = vmatprep.subr.bf16.mxu1 %v11836_v33 }
 0xa68   : > { %10911 = vmatprep.mubr.bf16.mxu0 %v7590_v9  ;;  %10934 = vmatpush3.bf16.msra.mxu1 %v11836_v33  ;;  %v16227_v9 = vld [vmem:[%s17250_s6 + $0x4] ss:$0 sm:$0xff] }
 0xa69   : > { %10912 = vmatmul.mubr.bf16.gmra.mrb[180].mxu0 %v7591_v55  ;;  %v11837_v55 = vld [vmem:[%s17251_s7 + $0x30] sm:$0xff]  }
 0xa6a   : > { %10935 = vmatprep.subr.bf16.mxu1 %v11837_v55 }
 0xa6c   : > { %10936 = vmatpush3.bf16.msra.mxu1 %v11837_v55 }
 0xa6e   : > { %v10869_v47 = vpop.f32.mrb[216].mxu1 }
 0xa6f   : > { %v7526_v14 = vadd.f32 %v10869_v47, %v16181_v32  ;;  %v7517_v28 = vpop.f32.mrb[217].mxu1 }
 0xa70   : > { %v7518_v27 = vadd.f32 %v16181_v32, %v7517_v28  ;;  %v10870_v63 = vpop.f32.mrb[218].mxu1 }
 0xa71   : > { %v7529_v50 = vadd.f32 %v10870_v63, %v16181_v32  ;;  %v7520_v58 = vpop.f32.mrb[219].mxu1  ;;  %v7574_v41 = vmax.f32 %v7526_v14, 0.0 }
 0xa72   : > { %v7521_v15 = vadd.f32 %v16181_v32, %v7520_v58  ;;  %v7572_v46 = vmax.f32 %v7518_v27, 0.0 }
 0xa73   : > { %v7575_v11 = vmax.f32 %v7529_v50, 0.0 }
 0xa74   : > { %v7573_v62 = vmax.f32 %v7521_v15, 0.0 }
 0xa75   : > { %v7593_v16 = vpack.c.bf16 %v7575_v11, %v7574_v41 }
 0xa76   : > { %v7592_v24 = vpack.c.bf16 %v7573_v62, %v7572_v46 }
 0xa78   : > { %10915 = vmatprep.mubr.bf16.mxu0 %v7592_v24 }
 0xa79   : > { %10916 = vmatmul.mubr.bf16.gmra.mrb[184].mxu0 %v7593_v16 }
 0xa7e   : > { %v10873_v18 = vpop.f32.mrb[220].mxu1 }
 0xa7f   : > { %v7542_v12 = vadd.f32 %v10873_v18, %v16181_v32  ;;  %v7533_v39 = vpop.f32.mrb[221].mxu1 }
 0xa80   : > { %v7534_v53 = vadd.f32 %v16181_v32, %v7533_v39  ;;  %v10874_v44 = vpop.f32.mrb[222].mxu1 }
 0xa81   : > { %v7545_v7 = vadd.f32 %v10874_v44, %v16181_v32  ;;  %v7536_v8 = vpop.f32.mrb[223].mxu1  ;;  %v7578_v17 = vmax.f32 %v7542_v12, 0.0 }
 0xa82   : > { %v7537_v30 = vadd.f32 %v16181_v32, %v7536_v8  ;;  %v7576_v31 = vmax.f32 %v7534_v53, 0.0  ;;  %v11838_v32 = vld [vmem:[%s17251_s7 + $0x38] sm:$0xff]  }
 0xa83   : > { %v7579_v45 = vmax.f32 %v7545_v7, 0.0  ;;  %10937 = vmatprep.subr.bf16.mxu1 %v11838_v32 }
 0xa84   : > { %v7577_v22 = vmax.f32 %v7537_v30, 0.0  ;;  %10938 = vmatpush3.bf16.msra.mxu1 %v11838_v32 }
 0xa85   : > { %v7595_v0 = vpack.c.bf16 %v7579_v45, %v7578_v17 }
 0xa86   : > { %v7594_v1 = vpack.c.bf16 %v7577_v22, %v7576_v31 }
 0xa88   : > { %10919 = vmatprep.mubr.bf16.mxu0 %v7594_v1 }
 0xa89   : > { %10920 = vmatmul.mubr.bf16.gmra.mrb[188].mxu0 %v7595_v0 }
 0xb08   : > { %v10893_v47 = vpop.f32.mrb[160].mxu0 }
 0xb09   : > { %v7693_v14 = vadd.f32 %v10893_v47, %v16227_v9  ;;  %v7684_v28 = vpop.f32.mrb[161].mxu0 }
 0xb0a   : > { %v7685_v27 = vadd.f32 %v16227_v9, %v7684_v28  ;;  %v10894_v63 = vpop.f32.mrb[162].mxu0 }
 0xb0b   : > { %v7813_v50 = vadd.f32 %v7693_v14, %v16008_v60  ;;  %v7696_v58 = vadd.f32 %v10894_v63, %v16227_v9  ;;  %v7687_v15 = vpop.f32.mrb[163].mxu0 }
 0xb0c   : > { %v7811_v41 = vadd.f32 %v7685_v27, %v16004_v6  ;;  %v7688_v11 = vadd.f32 %v16227_v9, %v7687_v15 }
 0xb0d   : > { %v7814_v46 = vadd.f32 %v7696_v58, %v16011_v38  ;;  %v7845_v16 = vmax.f32 %v7813_v50, 0.0 }
 0xb0e   : > { %v7812_v62 = vadd.f32 %v7688_v11, %v16014_v29  ;;  %v7843_v18 = vmax.f32 %v7811_v41, 0.0 }
 0xb0f   : > { %v7846_v24 = vmax.f32 %v7814_v46, 0.0 }
 0xb10   : > { %v7844_v12 = vmax.f32 %v7812_v62, 0.0  ;;  %v10897_v39 = vpop.f32.mrb[164].mxu0 }
 0xb11   : > { %v7876_v53 = vpack.c.bf16 %v7846_v24, %v7845_v16  ;;  %v7709_v44 = vadd.f32 %v10897_v39, %v16227_v9  ;;  %v7700_v60 = vpop.f32.mrb[165].mxu0 }
 0xb12   : > { %v7701_v7 = vadd.f32 %v16227_v9, %v7700_v60  ;;  %v10898_v8 = vpop.f32.mrb[166].mxu0  ;;  %v7875_v30 = vpack.c.bf16 %v7844_v12, %v7843_v18 }
 0xb13   : > { %v7817_v6 = vadd.f32 %v7709_v44, %v16028_v23  ;;  %v7712_v17 = vadd.f32 %v10898_v8, %v16227_v9  ;;  %v7703_v38 = vpop.f32.mrb[167].mxu0 }
 0xb14   : > { %v7815_v29 = vadd.f32 %v7701_v7, %v16024_v4  ;;  %v7704_v45 = vadd.f32 %v16227_v9, %v7703_v38  ;;  %10939 = vmatprep.mubr.bf16.mxu1 %v7875_v30 }
 0xb15   : > { %v7818_v31 = vadd.f32 %v7712_v17, %v16031_v49  ;;  %10940 = vmatmul.mubr.bf16.vlgmr.msra.gmra.mrb[224].mxu1 %v7876_v53  ;;  %v7849_v0 = vmax.f32 %v7817_v6, 0.0 }
 0xb16   : > { %v7816_v22 = vadd.f32 %v7704_v45, %v16034_v52  ;;  %v7847_v33 = vmax.f32 %v7815_v29, 0.0 }
 0xb17   : > { %v7850_v1 = vmax.f32 %v7818_v31, 0.0 }
 0xb18   : > { %v7848_v55 = vmax.f32 %v7816_v22, 0.0  ;;  %v10901_v32 = vpop.f32.mrb[168].mxu0 }
 0xb19   : > { %v7878_v47 = vpack.c.bf16 %v7850_v1, %v7849_v0  ;;  %v7725_v23 = vadd.f32 %v10901_v32, %v16227_v9  ;;  %v7716_v14 = vpop.f32.mrb[169].mxu0 }
 0xb1a   : > { %v7717_v28 = vadd.f32 %v16227_v9, %v7716_v14  ;;  %v10902_v4 = vpop.f32.mrb[170].mxu0  ;;  %v7877_v27 = vpack.c.bf16 %v7848_v55, %v7847_v33 }
 0xb1b   : > { %v7821_v63 = vadd.f32 %v7725_v23, %v16048_v51  ;;  %v7728_v49 = vadd.f32 %v10902_v4, %v16227_v9  ;;  %v7719_v50 = vpop.f32.mrb[171].mxu0 }
 0xb1c   : > { %v7819_v52 = vadd.f32 %v7717_v28, %v16044_v19  ;;  %v7720_v58 = vadd.f32 %v16227_v9, %v7719_v50  ;;  %10943 = vmatprep.mubr.bf16.mxu1 %v7877_v27 }
 0xb1d   : > { %v7822_v15 = vadd.f32 %v7728_v49, %v16051_v20  ;;  %10944 = vmatmul.mubr.bf16.gmra.mrb[228].mxu1 %v7878_v47  ;;  %v7853_v11 = vmax.f32 %v7821_v63, 0.0 }
 0xb1e   : > { %v7820_v41 = vadd.f32 %v7720_v58, %v16054_v59  ;;  %v7851_v62 = vmax.f32 %v7819_v52, 0.0 }
 0xb1f   : > { %v7854_v46 = vmax.f32 %v7822_v15, 0.0 }
 0xb20   : > { %v7852_v16 = vmax.f32 %v7820_v41, 0.0  ;;  %v10905_v24 = vpop.f32.mrb[172].mxu0 }
 0xb21   : > { %v7880_v18 = vpack.c.bf16 %v7854_v46, %v7853_v11  ;;  %v7741_v51 = vadd.f32 %v10905_v24, %v16227_v9  ;;  %v7732_v12 = vpop.f32.mrb[173].mxu0 }
 0xb22   : > { %v7733_v39 = vadd.f32 %v16227_v9, %v7732_v12  ;;  %v10906_v19 = vpop.f32.mrb[174].mxu0  ;;  %v7879_v53 = vpack.c.bf16 %v7852_v16, %v7851_v62 }
 0xb23   : > { %v7825_v44 = vadd.f32 %v7741_v51, %v16068_v10  ;;  %v7744_v20 = vadd.f32 %v10906_v19, %v16227_v9  ;;  %v7735_v60 = vpop.f32.mrb[175].mxu0 }
 0xb24   : > { %v7823_v59 = vadd.f32 %v7733_v39, %v16064_v13  ;;  %v7736_v7 = vadd.f32 %v16227_v9, %v7735_v60  ;;  %10947 = vmatprep.mubr.bf16.mxu1 %v7879_v53 }
 0xb25   : > { %v7826_v8 = vadd.f32 %v7744_v20, %v16071_v54  ;;  %10948 = vmatmul.mubr.bf16.gmra.mrb[232].mxu1 %v7880_v18  ;;  %v7857_v6 = vmax.f32 %v7825_v44, 0.0 }
 0xb26   : > { %v7824_v30 = vadd.f32 %v7736_v7, %v16074_v57  ;;  %v7855_v38 = vmax.f32 %v7823_v59, 0.0 }
 0xb27   : > { %v7858_v17 = vmax.f32 %v7826_v8, 0.0 }
 0xb28   : > { %v7856_v29 = vmax.f32 %v7824_v30, 0.0 }
 0xb29   : > { %v7882_v45 = vpack.c.bf16 %v7858_v17, %v7857_v6 }
 0xb2a   : > { %v7881_v31 = vpack.c.bf16 %v7856_v29, %v7855_v38 }
 0xb2c   : > { %10951 = vmatprep.mubr.bf16.mxu1 %v7881_v31  ;;  %v10909_v10 = vpop.f32.mrb[176].mxu0 }
 0xb2d   : > { %10952 = vmatmul.mubr.bf16.gmra.mrb[236].mxu1 %v7882_v45  ;;  %v7757_v22 = vadd.f32 %v10909_v10, %v16227_v9  ;;  %v7748_v13 = vpop.f32.mrb[177].mxu0 }
 0xb2e   : > { %v7749_v0 = vadd.f32 %v16227_v9, %v7748_v13  ;;  %v10910_v1 = vpop.f32.mrb[178].mxu0 }
 0xb2f   : > { %v7829_v54 = vadd.f32 %v7757_v22, %v16088_v40  ;;  %v7760_v33 = vadd.f32 %v10910_v1, %v16227_v9  ;;  %v7751_v57 = vpop.f32.mrb[179].mxu0 }
 0xb30   : > { %v7827_v55 = vadd.f32 %v7749_v0, %v16084_v5  ;;  %v7752_v32 = vadd.f32 %v16227_v9, %v7751_v57 }
 0xb31   : > { %v7830_v47 = vadd.f32 %v7760_v33, %v16091_v56  ;;  %v7861_v14 = vmax.f32 %v7829_v54, 0.0 }
 0xb32   : > { %v7828_v23 = vadd.f32 %v7752_v32, %v16094_v21  ;;  %v7859_v4 = vmax.f32 %v7827_v55, 0.0 }
 0xb33   : > { %v7862_v28 = vmax.f32 %v7830_v47, 0.0 }
 0xb34   : > { %v7860_v27 = vmax.f32 %v7828_v23, 0.0 }
 0xb35   : > { %v7884_v63 = vpack.c.bf16 %v7862_v28, %v7861_v14 }
 0xb36   : > { %v7883_v49 = vpack.c.bf16 %v7860_v27, %v7859_v4 }
 0xb38   : > { %10955 = vmatprep.mubr.bf16.mxu1 %v7883_v49 }
 0xb39   : > { %10956 = vmatmul.mubr.bf16.gmra.mrb[240].mxu1 %v7884_v63 }
 0xb3c   : > { %v10913_v40 = vpop.f32.mrb[180].mxu0 }
 0xb3d   : > { %v7773_v50 = vadd.f32 %v10913_v40, %v16227_v9  ;;  %v7764_v52 = vpop.f32.mrb[181].mxu0 }
 0xb3e   : > { %v7765_v5 = vadd.f32 %v16227_v9, %v7764_v52  ;;  %v10914_v58 = vpop.f32.mrb[182].mxu0 }
 0xb3f   : > { %v7833_v15 = vadd.f32 %v7773_v50, %v16108_v26  ;;  %v7776_v56 = vadd.f32 %v10914_v58, %v16227_v9  ;;  %v7767_v21 = vpop.f32.mrb[183].mxu0 }
 0xb40   : > { %v7831_v41 = vadd.f32 %v7765_v5, %v16104_v35  ;;  %v7768_v11 = vadd.f32 %v16227_v9, %v7767_v21 }
 0xb41   : > { %v7834_v46 = vadd.f32 %v7776_v56, %v16111_v2  ;;  %v7865_v16 = vmax.f32 %v7833_v15, 0.0 }
 0xb42   : > { %v7832_v62 = vadd.f32 %v7768_v11, %v16114_v42  ;;  %v7863_v18 = vmax.f32 %v7831_v41, 0.0 }
 0xb43   : > { %v7866_v24 = vmax.f32 %v7834_v46, 0.0 }
 0xb44   : > { %v7864_v51 = vmax.f32 %v7832_v62, 0.0 }
 0xb45   : > { %v7886_v12 = vpack.c.bf16 %v7866_v24, %v7865_v16 }
 0xb46   : > { %v7885_v39 = vpack.c.bf16 %v7864_v51, %v7863_v18 }
 0xb48   : > { %10959 = vmatprep.mubr.bf16.mxu1 %v7885_v39 }
 0xb49   : > { %10960 = vmatmul.mubr.bf16.gmra.mrb[244].mxu1 %v7886_v12 }
 0xb4c   : > { %v10917_v26 = vpop.f32.mrb[184].mxu0 }
 0xb4d   : > { %v7789_v19 = vadd.f32 %v10917_v26, %v16227_v9  ;;  %v7780_v53 = vpop.f32.mrb[185].mxu0 }
 0xb4e   : > { %v7781_v35 = vadd.f32 %v16227_v9, %v7780_v53  ;;  %v10918_v44 = vpop.f32.mrb[186].mxu0 }
 0xb4f   : > { %v7837_v20 = vadd.f32 %v7789_v19, %v16128_v61  ;;  %v7792_v2 = vadd.f32 %v10918_v44, %v16227_v9  ;;  %v7783_v42 = vpop.f32.mrb[187].mxu0 }
 0xb50   : > { %v7835_v60 = vadd.f32 %v7781_v35, %v16124_v3  ;;  %v7784_v59 = vadd.f32 %v16227_v9, %v7783_v42 }
 0xb51   : > { %v7838_v7 = vadd.f32 %v7792_v2, %v16131_v25  ;;  %v7869_v30 = vmax.f32 %v7837_v20, 0.0 }
 0xb52   : > { %v7836_v8 = vadd.f32 %v7784_v59, %v16134_v37  ;;  %v7867_v17 = vmax.f32 %v7835_v60, 0.0 }
 0xb53   : > { %v7870_v6 = vmax.f32 %v7838_v7, 0.0 }
 0xb54   : > { %v7868_v38 = vmax.f32 %v7836_v8, 0.0 }
 0xb55   : > { %v7888_v29 = vpack.c.bf16 %v7870_v6, %v7869_v30 }
 0xb56   : > { %v7887_v45 = vpack.c.bf16 %v7868_v38, %v7867_v17  ;;  %v18105_v38 = vlaneseq }
 0xb58   : > { %10963 = vmatprep.mubr.bf16.mxu1 %v7887_v45 }
 0xb59   : > { %10964 = vmatmul.mubr.bf16.gmra.mrb[248].mxu1 %v7888_v29  ;;  %v16332_v29 = vand.u32 127, %v18105_v38 }
 0xb5b   : > { %vm8702_vm0 = vcmp.lt.s32.totalorder %v16332_v29, 4  ;;  %vm8125_vm1 = vcmp.lt.s32.totalorder %v16332_v29, 1 }
 0xb5c   : > { %v10921_v61 = vpop.f32.mrb[188].mxu0 }
 0xb5d   : > { %v7805_v31 = vadd.f32 %v10921_v61, %v16227_v9  ;;  %v7796_v10 = vpop.f32.mrb[189].mxu0 }
 0xb5e   : > { %v7797_v3 = vadd.f32 %v16227_v9, %v7796_v10  ;;  %v10922_v22 = vpop.f32.mrb[190].mxu0 }
 0xb5f   : > { %v7841_v13 = vadd.f32 %v7805_v31, %v16148_v36  ;;  %v7808_v25 = vadd.f32 %v10922_v22, %v16227_v9  ;;  %v7799_v37 = vpop.f32.mrb[191].mxu0  ;;  %v16296_v36 = vld [vmem:[%s17252_s8] ss:$0 sm:$0xff] }
 0xb60   : > { %v7839_v0 = vadd.f32 %v7797_v3, %v16144_v43  ;;  %v7800_v1 = vadd.f32 %v16227_v9, %v7799_v37 }
 0xb61   : > { %v7842_v54 = vadd.f32 %v7808_v25, %v16151_v34  ;;  %v7873_v57 = vmax.f32 %v7841_v13, 0.0 }
 0xb62   : > { %v7840_v33 = vadd.f32 %v7800_v1, %v16154_v48  ;;  %v7871_v32 = vmax.f32 %v7839_v0, 0.0 }
 0xb63   : > { %v7874_v55 = vmax.f32 %v7842_v54, 0.0 }
 0xb64   : > { %v7872_v47 = vmax.f32 %v7840_v33, 0.0 }
 0xb65   : > { %v7890_v23 = vpack.c.bf16 %v7874_v55, %v7873_v57 }
 0xb66   : > { %v7889_v14 = vpack.c.bf16 %v7872_v47, %v7871_v32 }
 0xb68   : > { %10967 = vmatprep.mubr.bf16.mxu1 %v7889_v14 }
 0xb69   : > { %10968 = vmatmul.mubr.bf16.gmra.mrb[252].mxu1 %v7890_v23 }
 0xbe8   : > { %v10941_v43 = vpop.f32.mrb[224].mxu1 }
 0xbe9   : > { %v16299_v9 = vadd.f32 %v10941_v43, %v16296_v36  ;;  %v7996_v34 = vpop.f32.mrb[225].mxu1 }
 0xbea   : > { %v16302_v48 = vadd.f32 %v16296_v36, %v7996_v34  ;;  %v10942_v28 = vpop.f32.mrb[226].mxu1 }
 0xbeb   : > { %v8224_v4 = vand.u32 2147483647, %v16299_v9  ;;  %v9403_v27 = vmul.f32 -1.442695, %v16299_v9  ;;  %v7999_v63 = vpop.f32.mrb[227].mxu1  ;;  %v16309_v52 = vadd.f32 %v10942_v28, %v16296_v36  ;;  %v8128_v37 = vmax.f32 %v16299_v9, 0.0 }
 0xbec   : > { %v8222_v49 = vand.u32 2147483647, %v16302_v48  ;;  %v9401_v40 = vmul.f32 -1.442695, %v16302_v48  ;;  %v16312_v5 = vadd.f32 %v16296_v36, %v7999_v63  ;;  %v8126_v1 = vmax.f32 %v16302_v48, 0.0 }
 0xbed   : > { %v8256_v50 = vsub.f32 0.0, %v8224_v4  ;;  %11839 = vpow2.f32 %v9403_v27  ;;  %v8225_v56 = vand.u32 2147483647, %v16309_v52  ;;  %v9404_v41 = vmul.f32 -1.442695, %v16309_v52 }
 0xbee   : > { %v8254_v58 = vsub.f32 0.0, %v8222_v49  ;;  %11841 = vpow2.f32 %v9401_v40  ;;  %v8223_v62 = vand.u32 2147483647, %v16312_v5  ;;  %v9402_v16 = vmul.f32 -1.442695, %v16312_v5 }
 0xbef   : > { %v8290_v15 = vmul.f32 1.442695, %v8256_v50  ;;  %v8257_v46 = vsub.f32 0.0, %v8225_v56  ;;  %v8129_v47 = vmax.f32 %v16309_v52, 0.0  ;;  %v8127_v23 = vmax.f32 %v16312_v5, 0.0 }
 0xbf0   : > { %v8286_v21 = vmul.f32 1.442695, %v8254_v58  ;;  %v10945_v11 = vpop.f32.mrb[228].mxu1  ;;  %v8255_v26 = vsub.f32 0.0, %v8223_v62  ;;  %vm8160_vm3 = vcmp.ne.f32.partialorder %v16299_v9, %v16299_v9  ;;  %vm8158_vm5 = vcmp.ne.f32.partialorder %v16302_v48, %v16302_v48 }
 0xbf1   : > { %11843 = vpow2.f32 %v8290_v15  ;;  %v8012_v24 = vpop.f32.mrb[229].mxu1  ;;  %v16319_v18 = vadd.f32 %v10945_v11, %v16296_v36  ;;  %v8292_v39 = vmul.f32 1.442695, %v8257_v46  ;;  %vm8161_vm7 = vcmp.ne.f32.partialorder %v16309_v52, %v16309_v52 }
 0xbf2   : > { %11845 = vpow2.f32 %v8286_v21  ;;  %v16322_v51 = vadd.f32 %v16296_v36, %v8012_v24  ;;  %v10946_v12 = vpop.f32.mrb[230].mxu1  ;;  %v8288_v35 = vmul.f32 1.442695, %v8255_v26  ;;  %vm8159_vm9 = vcmp.ne.f32.partialorder %v16312_v5, %v16312_v5 }
 0xbf3   : > { %11847 = vpow2.f32 %v9404_v41  ;;  %v8015_v19 = vpop.f32.mrb[231].mxu1  ;;  %v8228_v53 = vand.u32 2147483647, %v16319_v18  ;;  %v9407_v44 = vmul.f32 -1.442695, %v16319_v18  ;;  %v16329_v59 = vadd.f32 %v10946_v12, %v16296_v36 }
 0xbf4   : > { %11849 = vpow2.f32 %v9402_v16  ;;  %v8226_v2 = vand.u32 2147483647, %v16322_v51  ;;  %v9405_v42 = vmul.f32 -1.442695, %v16322_v51  ;;  %v8132_v14 = vmax.f32 %v16319_v18, 0.0 }
 0xbf5   : > { %11851 = vpow2.f32 %v8292_v39  ;;  %v8260_v20 = vsub.f32 0.0, %v8228_v53  ;;  %v8229_v22 = vand.u32 2147483647, %v16329_v59  ;;  %v8130_v34 = vmax.f32 %v16322_v51, 0.0 }
 0xbf6   : > { %11853 = vpow2.f32 %v8288_v35  ;;  %v8258_v6 = vsub.f32 0.0, %v8226_v2  ;;  %v16365_v4 = vmul.f32 -1.442695, %v16329_v59  ;;  %v16374_v40 = vadd.f32 %v16296_v36, %v8015_v19 }
 0xbf7   : > { %v11840_v60 = vpop.eup %11839  ;;  %v8298_v30 = vmul.f32 1.442695, %v8260_v20  ;;  %11855 = vpow2.f32 %v9407_v44  ;;  %v8261_v28 = vsub.f32 0.0, %v8229_v22  ;;  %vm8164_vm10 = vcmp.ne.f32.partialorder %v16319_v18, %v16319_v18 }
 0xbf8   : > { %v11842_v7 = vpop.eup %11841  ;;  %v8801_v8 = vadd.f32 1.0, %v11840_v60  ;;  %v10949_v17 = vpop.f32.mrb[232].mxu1  ;;  %11857 = vpow2.f32 %v9405_v42  ;;  %v8294_v31 = vmul.f32 1.442695, %v8258_v6  ;;  %v8227_v42 = vand.u32 2147483647, %v16374_v40 }
 0xbf9   : > { %v8799_v45 = vadd.f32 1.0, %v11842_v7  ;;  %v16334_v61 = vpop.f32.mrb[233].mxu1  ;;  %v8300_v53 = vmul.f32 1.442695, %v8261_v28  ;;  %v16391_v35 = vadd.f32 %v10949_v17, %v16296_v36  ;;  %vm8162_vm12 = vcmp.ne.f32.partialorder %v16322_v51, %v16322_v51 }
 0xbfa   : > { %11859 = vrcp.f32 %v8801_v8  ;;  %v16336_v10 = vpop.f32.mrb[234].mxu1  ;;  %v16404_v60 = vadd.f32 %v16296_v36, %v16334_v61  ;;  %vm8165_vm14 = vcmp.ne.f32.partialorder %v16329_v59, %v16329_v59 }
 0xbfb   : > { %v16338_v3 = vpop.eup %11843  ;;  %11861 = vrcp.f32 %v8799_v45  ;;  %v16341_v13 = vpop.f32.mrb[235].mxu1 }
 0xbfc   : > { %v16343_v25 = vpop.eup %11845  ;;  %v8368_v0 = vadd.f32 1.0, %v16338_v3  ;;  %11863 = vpow2.f32 %v8298_v30  ;;  %v8371_v33 = vmul.f32 -0.5, %v16338_v3  ;;  %v8374_v27 = vand.u32 2147483647, %v16338_v3 }
 0xbfd   : > { %v11848_v54 = vpop.eup %11847  ;;  %v8350_v57 = vadd.f32 1.0, %v16343_v25  ;;  %v8353_v55 = vmul.f32 -0.5, %v16343_v25  ;;  %11865 = vpow2.f32 %v8294_v31  ;;  %v8356_v21 = vand.u32 2147483647, %v16343_v25 }
 0xbfe   : > { %v11850_v32 = vpop.eup %11849  ;;  %11867 = vlog2.f32 %v8368_v0  ;;  %v8372_v15 = vadd.f32 1.0, %v8371_v33  ;;  %v8802_v41 = vadd.f32 1.0, %v11848_v54  ;;  %vm16397_vm2 = vcmp.lt.f32.partialorder %v8374_v27, 0.0004427343 }
 0xbff   : > { %v11852_v43 = vpop.eup %11851  ;;  %11869 = vlog2.f32 %v8350_v57  ;;  %v8354_v56 = vadd.f32 1.0, %v8353_v55  ;;  %v8800_v24 = vadd.f32 1.0, %v11850_v32  ;;  %vm16408_vm4 = vcmp.lt.f32.partialorder %v8356_v21, 0.0004427343 }
 0xc00   : > { %v8377_v63 = vadd.f32 1.0, %v11852_v43  ;;  %v8380_v49 = vmul.f32 -0.5, %v11852_v43  ;;  %v16376_v50 = vpop.f32.mrb[236].mxu1  ;;  %v16378_v58 = vpop.eup %11853  ;;  %v8383_v62 = vand.u32 2147483647, %v11852_v43  ;;  %v8373_v38 = vmul.f32 %v16338_v3, %v8372_v15 }
 0xc01   : > { %v16381_v11 = vpop.f32.mrb[237].mxu1  ;;  %v11856_v46 = vpop.eup %11855  ;;  %v8359_v16 = vadd.f32 1.0, %v16378_v58  ;;  %v8362_v30 = vmul.f32 -0.5, %v16378_v58  ;;  %v8365_v6 = vand.u32 2147483647, %v16378_v58  ;;  %v8355_v45 = vmul.f32 %v16343_v25, %v8354_v56 }
 0xc02   : > { %11871 = vlog2.f32 %v8377_v63  ;;  %v16384_v12 = vpop.f32.mrb[238].mxu1  ;;  %v11858_v39 = vpop.eup %11857  ;;  %v8381_v26 = vadd.f32 1.0, %v8380_v49  ;;  %v8805_v19 = vadd.f32 1.0, %v11856_v46  ;;  %vm16420_vm6 = vcmp.lt.f32.partialorder %v8383_v62, 0.0004427343 }
 0xc03   : > { %v16393_v44 = vpop.f32.mrb[239].mxu1  ;;  %11873 = vlog2.f32 %v8359_v16  ;;  %v8259_v3 = vsub.f32 0.0, %v8227_v42  ;;  %v8803_v57 = vadd.f32 1.0, %v11858_v39  ;;  %v8363_v28 = vadd.f32 1.0, %v8362_v30 }
 0xc04   : > { %v11860_v20 = vpop.eup %11859  ;;  %11875 = vrcp.f32 %v8802_v41  ;;  %v8382_v22 = vmul.f32 %v11852_v43, %v8381_v26  ;;  %vm16435_vm8 = vcmp.lt.f32.partialorder %v8365_v6, 0.0004427343  ;;  %v9406_v49 = vmul.f32 -1.442695, %v16374_v40 }
 0xc05   : > { %v11862_v7 = vpop.eup %11861  ;;  %11877 = vrcp.f32 %v8800_v24  ;;  %v8897_v25 = vsel %vm8702_vm0, %v11860_v20, %v16299_v9  ;;  %v8296_v21 = vmul.f32 1.442695, %v8259_v3  ;;  %v9411_v3 = vmul.f32 -1.442695, %v16391_v35 }
 0xc06   : > { %v16414_v17 = vpop.eup %11863  ;;  %11879 = vrcp.f32 %v8805_v19  ;;  %v8895_v56 = vsel %vm8702_vm0, %v11862_v7, %v16302_v48  ;;  %v8364_v19 = vmul.f32 %v16378_v58, %v8363_v28 }
 0xc07   : > { %v16424_v31 = vpop.eup %11865  ;;  %v8404_v0 = vadd.f32 1.0, %v16414_v17  ;;  %11881 = vpow2.f32 %v8300_v53  ;;  %v8407_v63 = vmul.f32 -0.5, %v16414_v17  ;;  %v8410_v16 = vand.u32 2147483647, %v16414_v17 }
 0xc08   : > { %v11868_v54 = vpop.eup %11867  ;;  %v8386_v33 = vadd.f32 1.0, %v16424_v31  ;;  %v8389_v39 = vmul.f32 -0.5, %v16424_v31 }
 0xc09   : > { %v11870_v55 = vpop.eup %11869  ;;  %v8370_v32 = vmul.f32 0.6931472, %v11868_v54  ;;  %11883 = vlog2.f32 %v8404_v0  ;;  %v8408_v53 = vadd.f32 1.0, %v8407_v63  ;;  %vm16494_vm11 = vcmp.lt.f32.partialorder %v8410_v16, 0.0004427343 }
 0xc0a   : > { %v8352_v27 = vmul.f32 0.6931472, %v11870_v55  ;;  %11885 = vlog2.f32 %v8386_v33 }
 0xc0b   : > { %v8376_v15 = vsel %vm16397_vm2, %v8373_v38, %v8370_v32  ;;  %11887 = vpow2.f32 %v16365_v4  ;;  %v8392_v38 = vand.u32 2147483647, %v16424_v31  ;;  %v8409_v63 = vmul.f32 %v16414_v17, %v8408_v53 }
 0xc0c   : > { %v11872_v41 = vpop.eup %11871  ;;  %v8640_v46 = vadd.f32 %v8376_v15, %v8128_v37  ;;  %v8358_v62 = vsel %vm16408_vm4, %v8355_v45, %v8352_v27  ;;  %11889 = vrcp.f32 %v8803_v57  ;;  %v16468_v20 = vpop.f32.mrb[240].mxu1 }
 0xc0d   : > { %v8638_v24 = vadd.f32 %v8358_v62, %v8126_v1  ;;  %v8379_v4 = vmul.f32 0.6931472, %v11872_v41  ;;  %11891 = vpow2.f32 %v8296_v21  ;;  %v11874_v37 = vpop.eup %11873  ;;  %v16478_v8 = vpop.f32.mrb[241].mxu1  ;;  %vm8393_vm13 = vcmp.lt.f32.partialorder %v8392_v38, 0.0004427343 }
 0xc0e   : > { %v8672_v26 = vsel %vm8160_vm3, %v16299_v9, %v8640_v46  ;;  %11893 = vpow2.f32 %v9406_v49  ;;  %v11876_v2 = vpop.eup %11875  ;;  %v8361_v9 = vmul.f32 0.6931472, %v11874_v37  ;;  %v16489_v45 = vpop.f32.mrb[242].mxu1  ;;  %v8230_v37 = vand.u32 2147483647, %v16404_v60 }
 0xc0f   : > { %v8929_v1 = vsel %vm8125_vm1, %v8672_v26, %v8897_v25  ;;  %v8670_v42 = vsel %vm8158_vm5, %v16302_v48, %v8638_v24  ;;  %v8385_v7 = vsel %vm16420_vm6, %v8382_v22, %v8379_v4  ;;  %v11878_v58 = vpop.eup %11877  ;;  %v8232_v48 = vand.u32 2147483647, %v16391_v35  ;;  %v16501_v54 = vpop.f32.mrb[243].mxu1 }
 0xc10   : > { %8961 = vst [vmem:[%s16458_s24 + $0x10] sm:$0xff] %v8929_v1  ;;  %v8927_v30 = vsel %vm8125_vm1, %v8670_v42, %v8895_v56  ;;  %v8641_v6 = vadd.f32 %v8385_v7, %v8129_v47  ;;  %v11880_v61 = vpop.eup %11879  ;;  %v8367_v22 = vsel %vm16435_vm8, %v8364_v19, %v8361_v9  ;;  %v8390_v47 = vadd.f32 1.0, %v8389_v39 }
 0xc11   : > { %8959 = vst [vmem:[%s16458_s24] sm:$0xff] %v8927_v30  ;;  %v16503_v25 = vpop.eup %11881  ;;  %v8898_v57 = vsel %vm8702_vm0, %v11876_v2, %v16309_v52  ;;  %v8639_v55 = vadd.f32 %v8367_v22, %v8127_v23  ;;  %v8264_v32 = vsub.f32 0.0, %v8232_v48  ;;  %v8896_v27 = vsel %vm8702_vm0, %v11878_v58, %v16312_v5 }
 0xc12   : > { %v8673_v33 = vsel %vm8161_vm7, %v16309_v52, %v8641_v6  ;;  %v8413_v49 = vadd.f32 1.0, %v16503_v25  ;;  %11895 = vpow2.f32 %v9411_v3  ;;  %v8391_v62 = vmul.f32 %v16424_v31, %v8390_v47 }
 0xc13   : > { %v11884_v28 = vpop.eup %11883  ;;  %v8930_v43 = vsel %vm8125_vm1, %v8673_v33, %v8898_v57  ;;  %v8671_v52 = vsel %vm8159_vm9, %v16312_v5, %v8639_v55  ;;  %v8306_v56 = vmul.f32 1.442695, %v8264_v32  ;;  %v16539_v31 = vadd.f32 %v16336_v10, %v16296_v36 }
 0xc14   : > { %v11886_v15 = vpop.eup %11885  ;;  %8962 = vst [vmem:[%s16458_s24 + $0x18] sm:$0xff] %v8930_v43  ;;  %v8406_v23 = vmul.f32 0.6931472, %v11884_v28  ;;  %v8928_v41 = vsel %vm8125_vm1, %v8671_v52, %v8896_v27  ;;  %11897 = vlog2.f32 %v8413_v49  ;;  %v8416_v53 = vmul.f32 -0.5, %v16503_v25 }
 0xc15   : > { %v11888_v21 = vpop.eup %11887  ;;  %v8388_v46 = vmul.f32 0.6931472, %v11886_v15  ;;  %8960 = vst [vmem:[%s16458_s24 + $0x8] sm:$0xff] %v8928_v41  ;;  %11899 = vpow2.f32 %v8306_v56  ;;  %v8901_v10 = vsel %vm8702_vm0, %v11880_v61, %v16319_v18  ;;  %v8262_v42 = vsub.f32 0.0, %v8230_v37 }
 0xc16   : > { %v11890_v17 = vpop.eup %11889  ;;  %v8412_v16 = vsel %vm16494_vm11, %v8409_v63, %v8406_v23  ;;  %v8806_v24 = vadd.f32 1.0, %v11888_v21  ;;  %v8417_v38 = vadd.f32 1.0, %v8416_v53  ;;  %v9409_v48 = vmul.f32 -1.442695, %v16404_v60 }
 0xc17   : > { %v16532_v5 = vpop.eup %11891  ;;  %v8644_v4 = vadd.f32 %v8412_v16, %v8132_v14  ;;  %v8394_v39 = vsel %vm8393_vm13, %v8391_v62, %v8388_v46  ;;  %v8899_v9 = vsel %vm8702_vm0, %v11890_v17, %v16322_v51  ;;  %v8302_v6 = vmul.f32 1.442695, %v8262_v42 }
 0xc18   : > { %v11894_v26 = vpop.eup %11893  ;;  %v8642_v19 = vadd.f32 %v8394_v39, %v8130_v34  ;;  %11901 = vrcp.f32 %v8806_v24  ;;  %v8395_v2 = vadd.f32 1.0, %v16532_v5  ;;  %v8398_v30 = vmul.f32 -0.5, %v16532_v5 }
 0xc19   : > { %v8676_v14 = vsel %vm8164_vm10, %v16319_v18, %v8644_v4  ;;  %v8804_v1 = vadd.f32 1.0, %v11894_v26  ;;  %v8419_v18 = vand.u32 2147483647, %v16503_v25  ;;  %v8233_v61 = vand.u32 2147483647, %v16539_v31 }
 0xc1a   : > { %v8933_v34 = vsel %vm8125_vm1, %v8676_v14, %v8901_v10  ;;  %v8674_v7 = vsel %vm8162_vm12, %v16322_v51, %v8642_v19  ;;  %11903 = vlog2.f32 %v8395_v2  ;;  %v9412_v51 = vmul.f32 -1.442695, %v16539_v31 }
 0xc1b   : > { %8965 = vst [vmem:[%s16458_s24 + $0x30] sm:$0xff] %v8933_v34  ;;  %v8931_v58 = vsel %vm8125_vm1, %v8674_v7, %v8899_v9  ;;  %11905 = vrcp.f32 %v8804_v1  ;;  %v16572_v22 = vadd.f32 %v16296_v36, %v16341_v13  ;;  %v8133_v47 = vmax.f32 %v16329_v59, 0.0 }
 0xc1c   : > { %8963 = vst [vmem:[%s16458_s24 + $0x20] sm:$0xff] %v8931_v58  ;;  %11907 = vpow2.f32 %v8302_v6  ;;  %v11896_v0 = vpop.eup %11895  ;;  %v16577_v3 = vpop.f32.mrb[244].mxu1  ;;  %vm16579_vm15 = vcmp.lt.f32.partialorder %v8419_v18, 0.0004427343  ;;  %v8399_v55 = vadd.f32 1.0, %v8398_v30  ;;  %v8265_v32 = vsub.f32 0.0, %v8233_v61 }
 0xc1d   : > { %11909 = vpow2.f32 %v9409_v48  ;;  %v16583_v28 = vpop.f32.mrb[245].mxu1  ;;  %v8418_v27 = vmul.f32 %v16503_v25, %v8417_v38  ;;  %v8231_v63 = vand.u32 2147483647, %v16572_v22  ;;  %v9410_v49 = vmul.f32 -1.442695, %v16572_v22 }
 0xc1e   : > { %v11898_v33 = vpop.eup %11897  ;;  %11911 = vpow2.f32 %v9412_v51  ;;  %v8401_v15 = vand.u32 2147483647, %v16532_v5  ;;  %v8809_v23 = vadd.f32 1.0, %v11896_v0  ;;  %v16594_v56 = vadd.f32 %v16376_v50, %v16296_v36  ;;  %v16596_v21 = vpop.f32.mrb[246].mxu1 }
 0xc1f   : > { %v16585_v13 = vpop.eup %11899  ;;  %v8415_v43 = vmul.f32 0.6931472, %v11898_v33  ;;  %v8308_v25 = vmul.f32 1.442695, %v8265_v32  ;;  %v8263_v62 = vsub.f32 0.0, %v8231_v63  ;;  %11913 = vpow2.f32 %v9410_v49  ;;  %v16600_v17 = vpop.f32.mrb[247].mxu1 }
 0xc20   : > { %v8440_v52 = vadd.f32 1.0, %v16585_v13  ;;  %v8131_v24 = vmax.f32 %v16374_v40, 0.0  ;;  %v8400_v4 = vmul.f32 %v16532_v5, %v8399_v55  ;;  %v8443_v39 = vmul.f32 -0.5, %v16585_v13 }
 0xc21   : > { %v8421_v46 = vsel %vm16579_vm15, %v8418_v27, %v8415_v43  ;;  %v8304_v37 = vmul.f32 1.442695, %v8263_v62  ;;  %v16607_v26 = vadd.f32 %v16296_v36, %v16381_v11  ;;  %vm8402_vm2 = vcmp.lt.f32.partialorder %v8401_v15, 0.0004427343 }
 0xc22   : > { %v11902_v41 = vpop.eup %11901  ;;  %v8645_v16 = vadd.f32 %v8421_v46, %v8133_v47  ;;  %11915 = vlog2.f32 %v8440_v52  ;;  %v8236_v11 = vand.u32 2147483647, %v16594_v56  ;;  %vm8163_vm3 = vcmp.ne.f32.partialorder %v16374_v40, %v16374_v40 }
 0xc23   : > { %11917 = vpow2.f32 %v8308_v25  ;;  %v8902_v5 = vsel %vm8702_vm0, %v11902_v41, %v16329_v59  ;;  %v9415_v42 = vmul.f32 -1.442695, %v16594_v56  ;;  %v8446_v7 = vand.u32 2147483647, %v16585_v13 }
 0xc24   : > { %v11904_v50 = vpop.eup %11903  ;;  %v8677_v19 = vsel %vm8165_vm14, %v16329_v59, %v8645_v16  ;;  %11919 = vrcp.f32 %v8809_v23  ;;  %v16629_v58 = vadd.f32 %v16384_v12, %v16296_v36  ;;  %v8444_v30 = vadd.f32 1.0, %v8443_v39 }
 0xc25   : > { %v8397_v53 = vmul.f32 0.6931472, %v11904_v50  ;;  %v11906_v2 = vpop.eup %11905  ;;  %v8934_v14 = vsel %vm8125_vm1, %v8677_v19, %v8902_v5  ;;  %11921 = vpow2.f32 %v8304_v37  ;;  %v8268_v38 = vsub.f32 0.0, %v8236_v11 }
 0xc26   : > { %v16619_v10 = vpop.eup %11907  ;;  %8966 = vst [vmem:[%s16458_s24 + $0x38] sm:$0xff] %v8934_v14  ;;  %v8234_v48 = vand.u32 2147483647, %v16607_v26  ;;  %v8900_v51 = vsel %vm8702_vm0, %v11906_v2, %v16374_v40  ;;  %v8136_v55 = vmax.f32 %v16391_v35, 0.0  ;;  %v8445_v27 = vmul.f32 %v16585_v13, %v8444_v30 }
 0xc27   : > { %v8403_v1 = vsel %vm8402_vm2, %v8400_v4, %v8397_v53  ;;  %v11910_v59 = vpop.eup %11909  ;;  %v8422_v9 = vadd.f32 1.0, %v16619_v10  ;;  %v8425_v0 = vmul.f32 -0.5, %v16619_v10  ;;  %v8314_v33 = vmul.f32 1.442695, %v8268_v38 }
 0xc28   : > { %v8643_v34 = vadd.f32 %v8403_v1, %v8131_v24  ;;  %v11912_v18 = vpop.eup %11911  ;;  %v8807_v6 = vadd.f32 1.0, %v11910_v59  ;;  %v8266_v32 = vsub.f32 0.0, %v8234_v48  ;;  %v9413_v63 = vmul.f32 -1.442695, %v16607_v26 }
 0xc29   : > { %11923 = vlog2.f32 %v8422_v9  ;;  %v8810_v12 = vadd.f32 1.0, %v11912_v18  ;;  %v11914_v57 = vpop.eup %11913  ;;  %v8237_v23 = vand.u32 2147483647, %v16629_v58  ;;  %vm8447_vm4 = vcmp.lt.f32.partialorder %v8446_v7, 0.0004427343 }
 0xc2a   : > { %v8675_v61 = vsel %vm8163_vm3, %v16374_v40, %v8643_v34  ;;  %11925 = vpow2.f32 %v9415_v42  ;;  %v8808_v40 = vadd.f32 1.0, %v11914_v57  ;;  %v8310_v52 = vmul.f32 1.442695, %v8266_v32 }
 0xc2b   : > { %v8932_v47 = vsel %vm8125_vm1, %v8675_v61, %v8900_v51  ;;  %11927 = vrcp.f32 %v8807_v6  ;;  %v8426_v46 = vadd.f32 1.0, %v8425_v0  ;;  %v8269_v24 = vsub.f32 0.0, %v8237_v23 }
 0xc2c   : > { %8964 = vst [vmem:[%s16458_s24 + $0x28] sm:$0xff] %v8932_v47  ;;  %v11916_v43 = vpop.eup %11915  ;;  %11929 = vrcp.f32 %v8810_v12  ;;  %v16647_v62 = vpop.f32.mrb[248].mxu1  ;;  %v9416_v4 = vmul.f32 -1.442695, %v16629_v58  ;;  %vm8168_vm5 = vcmp.ne.f32.partialorder %v16391_v35, %v16391_v35  ;;  %v8428_v5 = vand.u32 2147483647, %v16619_v10 }
 0xc2d   : > { %v16643_v49 = vpop.eup %11917  ;;  %v8442_v15 = vmul.f32 0.6931472, %v11916_v43  ;;  %11931 = vpow2.f32 %v8314_v33  ;;  %v16652_v50 = vpop.f32.mrb[249].mxu1  ;;  %v8316_v1 = vmul.f32 1.442695, %v8269_v24  ;;  %v8134_v34 = vmax.f32 %v16404_v60, 0.0 }
 0xc2e   : > { %v11920_v41 = vpop.eup %11919  ;;  %v8449_v25 = vadd.f32 1.0, %v16643_v49  ;;  %11933 = vrcp.f32 %v8808_v40  ;;  %v16656_v37 = vpop.f32.mrb[250].mxu1  ;;  %v8452_v11 = vmul.f32 -0.5, %v16643_v49  ;;  %v8427_v7 = vmul.f32 %v16619_v10, %v8426_v46 }
 0xc2f   : > { %v16649_v13 = vpop.eup %11921  ;;  %v8448_v16 = vsel %vm8447_vm4, %v8445_v27, %v8442_v15  ;;  %11935 = vpow2.f32 %v8310_v52  ;;  %v8905_v19 = vsel %vm8702_vm0, %v11920_v41, %v16391_v35  ;;  %v16663_v2 = vpop.f32.mrb[251].mxu1  ;;  %vm8166_vm6 = vcmp.ne.f32.partialorder %v16404_v60, %v16404_v60 }
 0xc30   : > { %v8648_v39 = vadd.f32 %v8448_v16, %v8136_v55  ;;  %11937 = vlog2.f32 %v8449_v25  ;;  %v8431_v53 = vadd.f32 1.0, %v16649_v13  ;;  %v8434_v30 = vmul.f32 -0.5, %v16649_v13 }
 0xc31   : > { %11939 = vpow2.f32 %v9413_v63  ;;  %vm8429_vm7 = vcmp.lt.f32.partialorder %v8428_v5, 0.0004427343  ;;  %v8137_v38 = vmax.f32 %v16539_v31, 0.0  ;;  %v8455_v10 = vand.u32 2147483647, %v16643_v49 }
 0xc32   : > { %v8680_v14 = vsel %vm8168_vm5, %v16391_v35, %v8648_v39  ;;  %11941 = vpow2.f32 %v9416_v4  ;;  %v16675_v35 = vadd.f32 %v16296_v36, %v16393_v44  ;;  %v8453_v51 = vadd.f32 1.0, %v8452_v11 }
 0xc33   : > { %v11924_v42 = vpop.eup %11923  ;;  %v8937_v59 = vsel %vm8125_vm1, %v8680_v14, %v8905_v19  ;;  %11943 = vlog2.f32 %v8431_v53  ;;  %v8135_v0 = vmax.f32 %v16572_v22, 0.0  ;;  %v8140_v47 = vmax.f32 %v16594_v56, 0.0 }
 0xc34   : > { %v11926_v9 = vpop.eup %11925  ;;  %8969 = vst [vmem:[%s16458_s24 + $0x50] sm:$0xff] %v8937_v59  ;;  %v8424_v18 = vmul.f32 0.6931472, %v11924_v42  ;;  %11945 = vpow2.f32 %v8316_v1  ;;  %vm8169_vm8 = vcmp.ne.f32.partialorder %v16539_v31, %v16539_v31  ;;  %v8437_v33 = vand.u32 2147483647, %v16649_v13 }
 0xc35   : > { %v11928_v6 = vpop.eup %11927  ;;  %v8235_v57 = vand.u32 2147483647, %v16675_v35  ;;  %v9414_v55 = vmul.f32 -1.442695, %v16675_v35  ;;  %v8435_v43 = vadd.f32 1.0, %v8434_v30  ;;  %v8813_v40 = vadd.f32 1.0, %v11926_v9 }
 0xc36   : > { %v11930_v48 = vpop.eup %11929  ;;  %v8430_v61 = vsel %vm8429_vm7, %v8427_v7, %v8424_v18  ;;  %v8138_v63 = vmax.f32 %v16607_v26, 0.0  ;;  %v8903_v23 = vsel %vm8702_vm0, %v11928_v6, %v16404_v60  ;;  %vm16701_vm9 = vcmp.lt.f32.partialorder %v8455_v10, 0.0004427343 }
 0xc37   : > { %v16683_v12 = vpop.eup %11931  ;;  %v8646_v44 = vadd.f32 %v8430_v61, %v8134_v34  ;;  %11947 = vpow2.f32 %v9414_v55  ;;  %v8454_v16 = vmul.f32 %v16643_v49, %v8453_v51  ;;  %vm8167_vm10 = vcmp.ne.f32.partialorder %v16572_v22, %v16572_v22 }
 0xc38   : > { %v11934_v32 = vpop.eup %11933  ;;  %v8476_v27 = vadd.f32 1.0, %v16683_v12  ;;  %v8267_v24 = vsub.f32 0.0, %v8235_v57  ;;  %vm16711_vm11 = vcmp.lt.f32.partialorder %v8437_v33, 0.0004427343  ;;  %v8479_v19 = vmul.f32 -0.5, %v16683_v12 }
 0xc39   : > { %v16692_v15 = vpop.eup %11935  ;;  %v8678_v52 = vsel %vm8166_vm6, %v16404_v60, %v8646_v44  ;;  %v8436_v14 = vmul.f32 %v16649_v13, %v8435_v43  ;;  %v16720_v11 = vadd.f32 %v16468_v20, %v16296_v36  ;;  %v8906_v59 = vsel %vm8702_vm0, %v11930_v48, %v16539_v31 }
 0xc3a   : > { %v11938_v46 = vpop.eup %11937  ;;  %v8935_v25 = vsel %vm8125_vm1, %v8678_v52, %v8903_v23  ;;  %11949 = vlog2.f32 %v8476_v27  ;;  %v8458_v5 = vadd.f32 1.0, %v16692_v15  ;;  %v16729_v34 = vadd.f32 %v16296_v36, %v16478_v8 }
 0xc3b   : > { %v11940_v4 = vpop.eup %11939  ;;  %8967 = vst [vmem:[%s16458_s24 + $0x40] sm:$0xff] %v8935_v25  ;;  %v8451_v39 = vmul.f32 0.6931472, %v11938_v46  ;;  %11951 = vrcp.f32 %v8813_v40  ;;  %v8461_v18 = vmul.f32 -0.5, %v16692_v15  ;;  %v8312_v30 = vmul.f32 1.442695, %v8267_v24 }
 0xc3c   : > { %v11942_v53 = vpop.eup %11941  ;;  %v8811_v49 = vadd.f32 1.0, %v11940_v4  ;;  %11953 = vlog2.f32 %v8458_v5  ;;  %v16731_v13 = vpop.f32.mrb[252].mxu1  ;;  %v8480_v10 = vadd.f32 1.0, %v8479_v19  ;;  %v8482_v48 = vand.u32 2147483647, %v16683_v12 }
 0xc3d   : > { %v11944_v1 = vpop.eup %11943  ;;  %v8457_v42 = vsel %vm16701_vm9, %v8454_v16, %v8451_v39  ;;  %v16736_v6 = vpop.f32.mrb[253].mxu1  ;;  %v8814_v44 = vadd.f32 1.0, %v11942_v53  ;;  %v8240_v33 = vand.u32 2147483647, %v16720_v11  ;;  %v8904_v27 = vsel %vm8702_vm0, %v11934_v32, %v16572_v22 }
 0xc3e   : > { %v16733_v7 = vpop.eup %11945  ;;  %v8649_v9 = vadd.f32 %v8457_v42, %v8137_v38  ;;  %v8433_v20 = vmul.f32 0.6931472, %v11944_v1  ;;  %11955 = vrcp.f32 %v8811_v49  ;;  %v16740_v8 = vpop.f32.mrb[254].mxu1  ;;  %vm8172_vm12 = vcmp.ne.f32.partialorder %v16594_v56, %v16594_v56 }
 0xc3f   : > { %v8485_v61 = vadd.f32 1.0, %v16733_v7  ;;  %v16749_v57 = vpop.f32.mrb[255].mxu1  ;;  %v8464_v40 = vand.u32 2147483647, %v16692_v15  ;;  %v8272_v52 = vsub.f32 0.0, %v8240_v33  ;;  %v8481_v41 = vmul.f32 %v16683_v12, %v8480_v10 }
 0xc40   : > { %v8681_v38 = vsel %vm8169_vm8, %v16539_v31, %v8649_v9  ;;  %v8439_v51 = vsel %vm16711_vm11, %v8436_v14, %v8433_v20  ;;  %v8462_v31 = vadd.f32 1.0, %v8461_v18  ;;  %v8488_v32 = vmul.f32 -0.5, %v16733_v7 }
 0xc41   : > { %v8938_v55 = vsel %vm8125_vm1, %v8681_v38, %v8906_v59  ;;  %v8647_v43 = vadd.f32 %v8439_v51, %v8135_v0  ;;  %11957 = vlog2.f32 %v8485_v61  ;;  %v11948_v23 = vpop.eup %11947  ;;  %v9419_v46 = vmul.f32 -1.442695, %v16720_v11 }
 0xc42   : > { %8970 = vst [vmem:[%s16458_s24 + $0x58] sm:$0xff] %v8938_v55  ;;  %11959 = vpow2.f32 %v8312_v30  ;;  %vm8170_vm13 = vcmp.ne.f32.partialorder %v16607_v26, %v16607_v26  ;;  %v8812_v24 = vadd.f32 1.0, %v11948_v23  ;;  %v8322_v4 = vmul.f32 1.442695, %v8272_v52 }
 0xc43   : > { %v8679_v0 = vsel %vm8167_vm10, %v16572_v22, %v8647_v43  ;;  %11961 = vrcp.f32 %v8814_v44  ;;  %v8238_v22 = vand.u32 2147483647, %v16729_v34  ;;  %v9417_v12 = vmul.f32 -1.442695, %v16729_v34 }
 0xc44   : > { %v11950_v25 = vpop.eup %11949  ;;  %v8936_v16 = vsel %vm8125_vm1, %v8679_v0, %v8904_v27  ;;  %11963 = vpow2.f32 %v9419_v46  ;;  %vm8483_vm14 = vcmp.lt.f32.partialorder %v8482_v48, 0.0004427343  ;;  %v8463_v19 = vmul.f32 %v16692_v15, %v8462_v31  ;;  %v16824_v46 = vld [vmem:[%s17252_s8] ss:$0 sm:$0xff] }
 0xc45   : > { %8968 = vst [vmem:[%s16458_s24 + $0x48] sm:$0xff] %v8936_v16  ;;  %v8478_v39 = vmul.f32 0.6931472, %v11950_v25  ;;  %v11952_v60 = vpop.eup %11951  ;;  %vm16775_vm15 = vcmp.lt.f32.partialorder %v8464_v40, 0.0004427343  ;;  %v16781_v53 = vadd.f32 %v16489_v45, %v16296_v36  ;;  %11965 = vpow2.f32 %v8322_v4 }
 0xc46   : > { %v11954_v14 = vpop.eup %11953  ;;  %v8491_v1 = vand.u32 2147483647, %v16733_v7  ;;  %v8270_v42 = vsub.f32 0.0, %v8238_v22  ;;  %v8489_v20 = vadd.f32 1.0, %v8488_v32  ;;  %11967 = vpow2.f32 %v9417_v12 }
 0xc47   : > { %v8484_v49 = vsel %vm8483_vm14, %v8481_v41, %v8478_v39  ;;  %v8460_v9 = vmul.f32 0.6931472, %v11954_v14  ;;  %v8909_v18 = vsel %vm8702_vm0, %v11952_v60, %v16594_v56  ;;  %11969 = vrcp.f32 %v8812_v24 }
 0xc48   : > { %v8652_v59 = vadd.f32 %v8484_v49, %v8140_v47  ;;  %v11956_v15 = vpop.eup %11955  ;;  %v8318_v45 = vmul.f32 1.442695, %v8270_v42  ;;  %v8241_v30 = vand.u32 2147483647, %v16781_v53  ;;  %v9420_v48 = vmul.f32 -1.442695, %v16781_v53 }
 0xc49   : > { %v8466_v47 = vsel %vm16775_vm15, %v8463_v19, %v8460_v9  ;;  %v16799_v61 = vadd.f32 %v16296_v36, %v16501_v54  ;;  %v8141_v33 = vmax.f32 %v16629_v58, 0.0  ;;  %v8490_v43 = vmul.f32 %v16733_v7, %v8489_v20 }
 0xc4a   : > { %v8684_v10 = vsel %vm8172_vm12, %v16594_v56, %v8652_v59  ;;  %v8650_v44 = vadd.f32 %v8466_v47, %v8138_v63  ;;  %11971 = vpow2.f32 %v8318_v45  ;;  %vm8492_vm2 = vcmp.lt.f32.partialorder %v8491_v1, 0.0004427343 }
 0xc4b   : > { %v11958_v38 = vpop.eup %11957  ;;  %v8941_v51 = vsel %vm8125_vm1, %v8684_v10, %v8909_v18  ;;  %v8273_v27 = vsub.f32 0.0, %v8241_v30  ;;  %v8907_v54 = vsel %vm8702_vm0, %v11956_v15, %v16607_v26  ;;  %11973 = vpow2.f32 %v9420_v48 }
 0xc4c   : > { %v11960_v56 = vpop.eup %11959  ;;  %8973 = vst [vmem:[%s16458_s24 + $0x70] sm:$0xff] %v8941_v51  ;;  %v8487_v55 = vmul.f32 0.6931472, %v11958_v38  ;;  %v8682_v36 = vsel %vm8170_vm13, %v16607_v26, %v8650_v44  ;;  %v8239_v7 = vand.u32 2147483647, %v16799_v61  ;;  %vm8173_vm3 = vcmp.ne.f32.partialorder %v16629_v58, %v16629_v58 }
 0xc4d   : > { %v8467_v63 = vadd.f32 1.0, %v11960_v56  ;;  %v11962_v31 = vpop.eup %11961  ;;  %v8939_v40 = vsel %vm8125_vm1, %v8682_v36, %v8907_v54  ;;  %v8324_v23 = vmul.f32 1.442695, %v8273_v27  ;;  %v8470_v32 = vmul.f32 -0.5, %v11960_v56 }
 0xc4e   : > { %v8493_v52 = vsel %vm8492_vm2, %v8490_v43, %v8487_v55  ;;  %v11964_v0 = vpop.eup %11963  ;;  %8971 = vst [vmem:[%s16458_s24 + $0x60] sm:$0xff] %v8939_v40  ;;  %v8271_v26 = vsub.f32 0.0, %v8239_v7  ;;  %v16828_v25 = vadd.f32 %v16824_v46, %v16577_v3  ;;  %v8910_v4 = vsel %vm8702_vm0, %v11962_v31, %v16629_v58 }
 0xc4f   : > { %v8653_v41 = vadd.f32 %v8493_v52, %v8141_v33  ;;  %11975 = vlog2.f32 %v8467_v63  ;;  %v11966_v16 = vpop.eup %11965  ;;  %v8473_v12 = vand.u32 2147483647, %v11960_v56  ;;  %v8817_v19 = vadd.f32 1.0, %v11964_v0 }
 0xc50   : > { %11977 = vpow2.f32 %v8324_v23  ;;  %v11968_v39 = vpop.eup %11967  ;;  %v8512_v60 = vadd.f32 1.0, %v11966_v16  ;;  %v8471_v14 = vadd.f32 1.0, %v8470_v32  ;;  %v8320_v49 = vmul.f32 1.442695, %v8271_v26 }
 0xc51   : > { %v8685_v24 = vsel %vm8173_vm3, %v16629_v58, %v8653_v41  ;;  %v11970_v5 = vpop.eup %11969  ;;  %v16839_v3 = vadd.f32 %v16824_v46, %v16583_v28  ;;  %v8139_v1 = vmax.f32 %v16675_v35, 0.0  ;;  %v8244_v58 = vand.u32 2147483647, %v16828_v25 }
 0xc52   : > { %v8942_v22 = vsel %vm8125_vm1, %v8685_v24, %v8910_v4  ;;  %11979 = vlog2.f32 %v8512_v60  ;;  %v8144_v59 = vmax.f32 %v16720_v11, 0.0  ;;  %v8515_v9 = vmul.f32 -0.5, %v11966_v16 }
 0xc53   : > { %8974 = vst [vmem:[%s16458_s24 + $0x78] sm:$0xff] %v8942_v22  ;;  %v8142_v20 = vmax.f32 %v16729_v34, 0.0  ;;  %v8815_v15 = vadd.f32 1.0, %v11968_v39  ;;  %vm8171_vm4 = vcmp.ne.f32.partialorder %v16675_v35, %v16675_v35  ;;  %vm16849_vm5 = vcmp.lt.f32.partialorder %v8473_v12, 0.0004427343 }
 0xc54   : > { %v16843_v42 = vpop.eup %11971  ;;  %11981 = vrcp.f32 %v8817_v19  ;;  %v9418_v45 = vmul.f32 -1.442695, %v16799_v61  ;;  %v8472_v10 = vmul.f32 %v11960_v56, %v8471_v14  ;;  %v8276_v47 = vsub.f32 0.0, %v8244_v58 }
 0xc55   : > { %v8494_v28 = vadd.f32 1.0, %v16843_v42  ;;  %v11974_v30 = vpop.eup %11973  ;;  %11983 = vpow2.f32 %v8320_v49  ;;  %v8242_v48 = vand.u32 2147483647, %v16839_v3  ;;  %v8908_v38 = vsel %vm8702_vm0, %v11970_v5, %v16675_v35 }
 0xc56   : > { %v8518_v51 = vand.u32 2147483647, %v11966_v16  ;;  %v9423_v44 = vmul.f32 -1.442695, %v16828_v25  ;;  %v8516_v55 = vadd.f32 1.0, %v8515_v9  ;;  %v8497_v56 = vmul.f32 -0.5, %v16843_v42 }
 0xc57   : > { %11985 = vlog2.f32 %v8494_v28  ;;  %v8330_v43 = vmul.f32 1.442695, %v8276_v47  ;;  %v8274_v27 = vsub.f32 0.0, %v8242_v48  ;;  %v8818_v63 = vadd.f32 1.0, %v11974_v30 }
 0xc58   : > { %11987 = vrcp.f32 %v8815_v15  ;;  %vm8176_vm6 = vcmp.ne.f32.partialorder %v16720_v11, %v16720_v11  ;;  %v9421_v40 = vmul.f32 -1.442695, %v16839_v3  ;;  %v16866_v52 = vadd.f32 %v16824_v46, %v16596_v21 }
 0xc59   : > { %v11976_v33 = vpop.eup %11975  ;;  %11989 = vpow2.f32 %v9418_v45  ;;  %v8326_v0 = vmul.f32 1.442695, %v8274_v27  ;;  %vm16870_vm7 = vcmp.lt.f32.partialorder %v8518_v51, 0.0004427343  ;;  %v8500_v26 = vand.u32 2147483647, %v16843_v42 }
 0xc5a   : > { %v11978_v36 = vpop.eup %11977  ;;  %v8469_v54 = vmul.f32 0.6931472, %v11976_v33  ;;  %11991 = vpow2.f32 %v8330_v43  ;;  %v8517_v4 = vmul.f32 %v11966_v16, %v8516_v55  ;;  %v8498_v39 = vadd.f32 1.0, %v8497_v56 }
 0xc5b   : > { %v8521_v31 = vadd.f32 1.0, %v11978_v36  ;;  %v8524_v7 = vmul.f32 -0.5, %v11978_v36  ;;  %11993 = vpow2.f32 %v9423_v44  ;;  %v16877_v21 = vadd.f32 %v16824_v46, %v16600_v17 }
 0xc5c   : > { %v8475_v23 = vsel %vm16849_vm5, %v8472_v10, %v8469_v54  ;;  %v11980_v24 = vpop.eup %11979  ;;  %vm8174_vm8 = vcmp.ne.f32.partialorder %v16729_v34, %v16729_v34  ;;  %v8527_v60 = vand.u32 2147483647, %v11978_v36  ;;  %v8245_v17 = vand.u32 2147483647, %v16866_v52 }
 0xc5d   : > { %v8651_v41 = vadd.f32 %v8475_v23, %v8139_v1  ;;  %11995 = vlog2.f32 %v8521_v31  ;;  %v8514_v12 = vmul.f32 0.6931472, %v11980_v24  ;;  %v8525_v5 = vadd.f32 1.0, %v8524_v7 }
 0xc5e   : > { %11997 = vpow2.f32 %v8326_v0  ;;  %v11982_v19 = vpop.eup %11981  ;;  %vm16893_vm9 = vcmp.lt.f32.partialorder %v8500_v26, 0.0004427343  ;;  %v8145_v1 = vmax.f32 %v16781_v53, 0.0  ;;  %v8143_v58 = vmax.f32 %v16799_v61, 0.0 }
 0xc5f   : > { %v8683_v22 = vsel %vm8171_vm4, %v16675_v35, %v8651_v41  ;;  %11999 = vpow2.f32 %v9421_v40  ;;  %v16888_v14 = vpop.eup %11983  ;;  %v8520_v35 = vsel %vm16870_vm7, %v8517_v4, %v8514_v12  ;;  %v9424_v28 = vmul.f32 -1.442695, %v16866_v52 }
 0xc60   : > { %v8940_v16 = vsel %vm8125_vm1, %v8683_v22, %v8908_v38  ;;  %12001 = vrcp.f32 %v8818_v63  ;;  %v8656_v15 = vadd.f32 %v8520_v35, %v8144_v59  ;;  %v8503_v18 = vadd.f32 1.0, %v16888_v14 }
 0xc61   : > { %8972 = vst [vmem:[%s16458_s24 + $0x68] sm:$0xff] %v8940_v16  ;;  %v11986_v9 = vpop.eup %11985  ;;  %v8243_v45 = vand.u32 2147483647, %v16877_v21  ;;  %v8913_v10 = vsel %vm8702_vm0, %v11982_v19, %v16720_v11  ;;  %v8499_v48 = vmul.f32 %v16843_v42, %v8498_v39  ;;  %vm16908_vm10 = vcmp.lt.f32.partialorder %v8527_v60, 0.0004427343 }
 0xc62   : > { %v11988_v30 = vpop.eup %11987  ;;  %v8496_v47 = vmul.f32 0.6931472, %v11986_v9  ;;  %v8688_v51 = vsel %vm8176_vm6, %v16720_v11, %v8656_v15  ;;  %vm8177_vm11 = vcmp.ne.f32.partialorder %v16781_v53, %v16781_v53  ;;  %v8526_v44 = vmul.f32 %v11978_v36, %v8525_v5 }
 0xc63   : > { %v11990_v59 = vpop.eup %11989  ;;  %12003 = vlog2.f32 %v8503_v18  ;;  %v8277_v33 = vsub.f32 0.0, %v8245_v17  ;;  %v8945_v42 = vsel %vm8125_vm1, %v8688_v51, %v8913_v10  ;;  %v8506_v27 = vmul.f32 -0.5, %v16888_v14 }
 0xc64   : > { %v16918_v55 = vpop.eup %11991  ;;  %v8502_v43 = vsel %vm16893_vm9, %v8499_v48, %v8496_v47  ;;  %v8816_v54 = vadd.f32 1.0, %v11990_v59  ;;  %8977 = vst [vmem:[%s16458_s24 + $0x90] sm:$0xff] %v8945_v42  ;;  %12005 = vpow2.f32 %v9424_v28  ;;  %v8275_v63 = vsub.f32 0.0, %v8243_v45 }
 0xc65   : > { %v11994_v56 = vpop.eup %11993  ;;  %v8654_v11 = vadd.f32 %v8502_v43, %v8142_v20  ;;  %v8548_v36 = vadd.f32 1.0, %v16918_v55  ;;  %v8911_v40 = vsel %vm8702_vm0, %v11988_v30, %v16729_v34  ;;  %v8509_v23 = vand.u32 2147483647, %v16888_v14 }
 0xc66   : > { %12007 = vrcp.f32 %v8816_v54  ;;  %v8821_v7 = vadd.f32 1.0, %v11994_v56  ;;  %v8332_v32 = vmul.f32 1.442695, %v8277_v33  ;;  %v8507_v4 = vadd.f32 1.0, %v8506_v27 }
 0xc67   : > { %v11996_v31 = vpop.eup %11995  ;;  %v8686_v20 = vsel %vm8174_vm8, %v16729_v34, %v8654_v11  ;;  %12009 = vlog2.f32 %v8548_v36  ;;  %v8551_v39 = vmul.f32 -0.5, %v16918_v55  ;;  %v8554_v19 = vand.u32 2147483647, %v16918_v55 }
 0xc68   : > { %v16933_v0 = vpop.eup %11997  ;;  %v8523_v41 = vmul.f32 0.6931472, %v11996_v31  ;;  %v8943_v24 = vsel %vm8125_vm1, %v8686_v20, %v8911_v40  ;;  %12011 = vrcp.f32 %v8821_v7  ;;  %v8328_v34 = vmul.f32 1.442695, %v8275_v63 }
 0xc69   : > { %v12000_v26 = vpop.eup %11999  ;;  %v8530_v22 = vadd.f32 1.0, %v16933_v0  ;;  %8975 = vst [vmem:[%s16458_s24 + $0x80] sm:$0xff] %v8943_v24  ;;  %vm8175_vm12 = vcmp.ne.f32.partialorder %v16799_v61, %v16799_v61  ;;  %v9422_v17 = vmul.f32 -1.442695, %v16877_v21  ;;  %v8148_v35 = vmax.f32 %v16828_v25, 0.0 }
 0xc6a   : > { %v12002_v12 = vpop.eup %12001  ;;  %v8529_v60 = vsel %vm16908_vm10, %v8526_v44, %v8523_v41  ;;  %v8819_v5 = vadd.f32 1.0, %v12000_v26  ;;  %v8533_v49 = vmul.f32 -0.5, %v16933_v0  ;;  %v16954_v9 = vadd.f32 %v16824_v46, %v16647_v62 }
 0xc6b   : > { %v8657_v16 = vadd.f32 %v8529_v60, %v8145_v1  ;;  %12013 = vlog2.f32 %v8530_v22  ;;  %v8914_v15 = vsel %vm8702_vm0, %v12002_v12, %v16781_v53  ;;  %v16965_v18 = vadd.f32 %v16824_v46, %v16652_v50 }
 0xc6c   : > { %12015 = vpow2.f32 %v8332_v32  ;;  %vm16969_vm13 = vcmp.lt.f32.partialorder %v8509_v23, 0.0004427343  ;;  %v8552_v30 = vadd.f32 1.0, %v8551_v39  ;;  %v8508_v47 = vmul.f32 %v16888_v14, %v8507_v4 }
 0xc6d   : > { %v8689_v1 = vsel %vm8177_vm11, %v16781_v53, %v8657_v16  ;;  %12017 = vrcp.f32 %v8819_v5  ;;  %v12004_v28 = vpop.eup %12003  ;;  %vm16975_vm14 = vcmp.lt.f32.partialorder %v8554_v19, 0.0004427343  ;;  %vm8180_vm15 = vcmp.ne.f32.partialorder %v16828_v25, %v16828_v25 }
 0xc6e   : > { %v8946_v45 = vsel %vm8125_vm1, %v8689_v1, %v8914_v15  ;;  %12019 = vpow2.f32 %v8328_v34  ;;  %v8505_v10 = vmul.f32 0.6931472, %v12004_v28  ;;  %v12006_v50 = vpop.eup %12005  ;;  %v8534_v48 = vadd.f32 1.0, %v8533_v49 }
 0xc6f   : > { %8978 = vst [vmem:[%s16458_s24 + $0x98] sm:$0xff] %v8946_v45  ;;  %12021 = vpow2.f32 %v9422_v17  ;;  %v8248_v38 = vand.u32 2147483647, %v16954_v9  ;;  %v9427_v59 = vmul.f32 -1.442695, %v16954_v9  ;;  %v16989_v42 = vadd.f32 %v16824_v46, %v16656_v37 }
 0xc70   : > { %v12008_v51 = vpop.eup %12007  ;;  %v8511_v44 = vsel %vm16969_vm13, %v8508_v47, %v8505_v10  ;;  %v8246_v14 = vand.u32 2147483647, %v16965_v18  ;;  %v9425_v33 = vmul.f32 -1.442695, %v16965_v18  ;;  %v8553_v54 = vmul.f32 %v16918_v55, %v8552_v30 }
 0xc71   : > { %v12010_v43 = vpop.eup %12009  ;;  %v8655_v27 = vadd.f32 %v8511_v44, %v8143_v58  ;;  %v8280_v56 = vsub.f32 0.0, %v8248_v38  ;;  %12023 = vpow2.f32 %v9427_v59  ;;  %v8536_v36 = vand.u32 2147483647, %v16933_v0 }
 0xc72   : > { %v8550_v11 = vmul.f32 0.6931472, %v12010_v43  ;;  %v8278_v63 = vsub.f32 0.0, %v8246_v14  ;;  %12025 = vpow2.f32 %v9425_v33  ;;  %v12012_v31 = vpop.eup %12011  ;;  %v8912_v58 = vsel %vm8702_vm0, %v12008_v51, %v16799_v61 }
 0xc73   : > { %v8687_v37 = vsel %vm8175_vm12, %v16799_v61, %v8655_v27  ;;  %v8535_v55 = vmul.f32 %v16933_v0, %v8534_v48  ;;  %v8338_v40 = vmul.f32 1.442695, %v8280_v56  ;;  %v8249_v32 = vand.u32 2147483647, %v16989_v42 }
 0xc74   : > { %v8944_v7 = vsel %vm8125_vm1, %v8687_v37, %v8912_v58  ;;  %v8556_v20 = vsel %vm16975_vm14, %v8553_v54, %v8550_v11  ;;  %v8334_v41 = vmul.f32 1.442695, %v8278_v63  ;;  %v8822_v39 = vadd.f32 1.0, %v12006_v50 }
 0xc75   : > { %v12014_v23 = vpop.eup %12013  ;;  %8976 = vst [vmem:[%s16458_s24 + $0x88] sm:$0xff] %v8944_v7  ;;  %v8660_v24 = vadd.f32 %v8556_v20, %v8148_v35  ;;  %12027 = vpow2.f32 %v8338_v40  ;;  %v8146_v0 = vmax.f32 %v16839_v3, 0.0  ;;  %vm8537_vm2 = vcmp.lt.f32.partialorder %v8536_v36, 0.0004427343 }
 0xc76   : > { %v17008_v26 = vpop.eup %12015  ;;  %v8532_v4 = vmul.f32 0.6931472, %v12014_v23  ;;  %12029 = vpow2.f32 %v8334_v41  ;;  %v8917_v19 = vsel %vm8702_vm0, %v12012_v31, %v16828_v25  ;;  %v8281_v35 = vsub.f32 0.0, %v8249_v32 }
 0xc77   : > { %v12018_v61 = vpop.eup %12017  ;;  %v8557_v22 = vadd.f32 1.0, %v17008_v26  ;;  %v8692_v60 = vsel %vm8180_vm15, %v16828_v25, %v8660_v24  ;;  %vm8178_vm3 = vcmp.ne.f32.partialorder %v16839_v3, %v16839_v3  ;;  %v9428_v28 = vmul.f32 -1.442695, %v16989_v42 }
 0xc78   : > { %v17013_v12 = vpop.eup %12019  ;;  %v8538_v34 = vsel %vm8537_vm2, %v8535_v55, %v8532_v4  ;;  %v8949_v5 = vsel %vm8125_vm1, %v8692_v60, %v8917_v19  ;;  %v8915_v25 = vsel %vm8702_vm0, %v12018_v61, %v16839_v3  ;;  %v8560_v30 = vmul.f32 -0.5, %v17008_v26 }
 0xc79   : > { %v12022_v16 = vpop.eup %12021  ;;  %v8658_v17 = vadd.f32 %v8538_v34, %v8146_v0  ;;  %12031 = vlog2.f32 %v8557_v22  ;;  %8981 = vst [vmem:[%s16458_s24 + $0xb0] sm:$0xff] %v8949_v5  ;;  %v8539_v49 = vadd.f32 1.0, %v17013_v12  ;;  %v8542_v10 = vmul.f32 -0.5, %v17013_v12 }
 0xc7a   : > { %12033 = vrcp.f32 %v8822_v39  ;;  %v8820_v15 = vadd.f32 1.0, %v12022_v16  ;;  %v8340_v50 = vmul.f32 1.442695, %v8281_v35  ;;  %v17040_v48 = vadd.f32 %v16824_v46, %v16663_v2 }
 0xc7b   : > { %v8690_v1 = vsel %vm8178_vm3, %v16839_v3, %v8658_v17  ;;  %v12024_v45 = vpop.eup %12023  ;;  %12035 = vlog2.f32 %v8539_v49  ;;  %v8563_v38 = vand.u32 2147483647, %v17008_v26  ;;  %v17046_v51 = vadd.f32 %v16824_v46, %v16731_v13 }
 0xc7c   : > { %v8947_v62 = vsel %vm8125_vm1, %v8690_v1, %v8915_v25  ;;  %v12026_v47 = vpop.eup %12025  ;;  %v8825_v53 = vadd.f32 1.0, %v12024_v45  ;;  %12037 = vrcp.f32 %v8820_v15  ;;  %v8247_v59 = vand.u32 2147483647, %v17040_v48 }
 0xc7d   : > { %8979 = vst [vmem:[%s16458_s24 + $0xa0] sm:$0xff] %v8947_v62  ;;  %v8823_v3 = vadd.f32 1.0, %v12026_v47  ;;  %12039 = vpow2.f32 %v9428_v28  ;;  %v8149_v14 = vmax.f32 %v16866_v52, 0.0  ;;  %v8561_v33 = vadd.f32 1.0, %v8560_v30 }
 0xc7e   : > { %v8543_v43 = vadd.f32 1.0, %v8542_v10  ;;  %12041 = vrcp.f32 %v8825_v53  ;;  %vm8181_vm4 = vcmp.ne.f32.partialorder %v16866_v52, %v16866_v52  ;;  %v9426_v54 = vmul.f32 -1.442695, %v17040_v48 }
 0xc7f   : > { %v17048_v44 = vpop.eup %12027  ;;  %12043 = vpow2.f32 %v8340_v50  ;;  %v8147_v13 = vmax.f32 %v16877_v21, 0.0  ;;  %v8279_v11 = vsub.f32 0.0, %v8247_v59  ;;  %vm17059_vm5 = vcmp.lt.f32.partialorder %v8563_v38, 0.0004427343 }
 0xc80   : > { %v17051_v2 = vpop.eup %12029  ;;  %v8584_v27 = vadd.f32 1.0, %v17048_v44  ;;  %12045 = vrcp.f32 %v8823_v3  ;;  %vm8179_vm6 = vcmp.ne.f32.partialorder %v16877_v21, %v16877_v21  ;;  %v8545_v31 = vand.u32 2147483647, %v17013_v12 }
 0xc81   : > { %v8566_v56 = vadd.f32 1.0, %v17051_v2  ;;  %v8252_v37 = vand.u32 2147483647, %v17046_v51  ;;  %v8562_v40 = vmul.f32 %v17008_v26, %v8561_v33  ;;  %v8544_v23 = vmul.f32 %v17013_v12, %v8543_v43 }
 0xc82   : > { %12047 = vlog2.f32 %v8584_v27  ;;  %v8587_v7 = vmul.f32 -0.5, %v17048_v44  ;;  %v8336_v20 = vmul.f32 1.442695, %v8279_v11  ;;  %v8569_v4 = vmul.f32 -0.5, %v17051_v2 }
 0xc83   : > { %v12032_v36 = vpop.eup %12031  ;;  %12049 = vlog2.f32 %v8566_v56  ;;  %v8284_v41 = vsub.f32 0.0, %v8252_v37  ;;  %v9431_v39 = vmul.f32 -1.442695, %v17046_v51  ;;  %v17076_v61 = vadd.f32 %v16824_v46, %v16736_v6 }
 0xc84   : > { %v12034_v58 = vpop.eup %12033  ;;  %v8559_v55 = vmul.f32 0.6931472, %v12032_v36  ;;  %12051 = vpow2.f32 %v9426_v54  ;;  %vm8546_vm7 = vcmp.lt.f32.partialorder %v8545_v31, 0.0004427343  ;;  %v8152_v19 = vmax.f32 %v16954_v9, 0.0 }
 0xc85   : > { %v12036_v32 = vpop.eup %12035  ;;  %12053 = vpow2.f32 %v8336_v20  ;;  %v8346_v22 = vmul.f32 1.442695, %v8284_v41  ;;  %v8918_v60 = vsel %vm8702_vm0, %v12034_v58, %v16866_v52  ;;  %v8590_v5 = vand.u32 2147483647, %v17048_v44 }
 0xc86   : > { %v8565_v24 = vsel %vm17059_vm5, %v8562_v40, %v8559_v55  ;;  %v8541_v0 = vmul.f32 0.6931472, %v12036_v32  ;;  %v12038_v12 = vpop.eup %12037  ;;  %12055 = vpow2.f32 %v9431_v39  ;;  %vm8184_vm8 = vcmp.ne.f32.partialorder %v16954_v9, %v16954_v9 }
 0xc87   : > { %v8661_v26 = vadd.f32 %v8565_v24, %v8149_v14  ;;  %v12040_v34 = vpop.eup %12039  ;;  %12057 = vpow2.f32 %v8346_v22  ;;  %v8588_v1 = vadd.f32 1.0, %v8587_v7  ;;  %v8250_v25 = vand.u32 2147483647, %v17076_v61 }
 0xc88   : > { %v8547_v16 = vsel %vm8546_vm7, %v8544_v23, %v8541_v0  ;;  %v12042_v17 = vpop.eup %12041  ;;  %v8572_v28 = vand.u32 2147483647, %v17051_v2  ;;  %v9429_v45 = vmul.f32 -1.442695, %v17076_v61  ;;  %v17099_v62 = vadd.f32 %v16824_v46, %v16740_v8 }
 0xc89   : > { %v8693_v6 = vsel %vm8181_vm4, %v16866_v52, %v8661_v26  ;;  %v8659_v49 = vadd.f32 %v8547_v16, %v8147_v13  ;;  %v17092_v15 = vpop.eup %12043  ;;  %v8570_v52 = vadd.f32 1.0, %v8569_v4  ;;  %v8916_v47 = vsel %vm8702_vm0, %v12038_v12, %v16877_v21 }
 0xc8a   : > { %v8950_v35 = vsel %vm8125_vm1, %v8693_v6, %v8918_v60  ;;  %v12046_v30 = vpop.eup %12045  ;;  %v8593_v53 = vadd.f32 1.0, %v17092_v15  ;;  %v8826_v50 = vadd.f32 1.0, %v12040_v34  ;;  %vm17111_vm9 = vcmp.lt.f32.partialorder %v8590_v5, 0.0004427343 }
 0xc8b   : > { %8982 = vst [vmem:[%s16458_s24 + $0xb8] sm:$0xff] %v8950_v35  ;;  %v8691_v10 = vsel %vm8179_vm6, %v16877_v21, %v8659_v49  ;;  %v8282_v59 = vsub.f32 0.0, %v8250_v25  ;;  %12059 = vpow2.f32 %v9429_v45  ;;  %v8589_v43 = vmul.f32 %v17048_v44, %v8588_v1 }
 0xc8c   : > { %v12048_v3 = vpop.eup %12047  ;;  %v8948_v38 = vsel %vm8125_vm1, %v8691_v10, %v8916_v47  ;;  %12061 = vlog2.f32 %v8593_v53  ;;  %v8596_v21 = vmul.f32 -0.5, %v17092_v15  ;;  %v8571_v13 = vmul.f32 %v17051_v2, %v8570_v52 }
 0xc8d   : > { %v12050_v14 = vpop.eup %12049  ;;  %8980 = vst [vmem:[%s16458_s24 + $0xa8] sm:$0xff] %v8948_v38  ;;  %v8586_v33 = vmul.f32 0.6931472, %v12048_v3  ;;  %v8342_v56 = vmul.f32 1.442695, %v8282_v59  ;;  %v8150_v63 = vmax.f32 %v16965_v18, 0.0  ;;  %12063 = vrcp.f32 %v8826_v50 }
 0xc8e   : > { %v12052_v27 = vpop.eup %12051  ;;  %v8568_v54 = vmul.f32 0.6931472, %v12050_v14  ;;  %v8253_v11 = vand.u32 2147483647, %v17099_v62  ;;  %vm8573_vm10 = vcmp.lt.f32.partialorder %v8572_v28, 0.0004427343  ;;  %vm8182_vm11 = vcmp.ne.f32.partialorder %v16965_v18, %v16965_v18 }
 0xc8f   : > { %v8592_v36 = vsel %vm17111_vm9, %v8589_v43, %v8586_v33  ;;  %v17123_v31 = vpop.eup %12053  ;;  %12065 = vpow2.f32 %v8342_v56  ;;  %v8824_v23 = vadd.f32 1.0, %v12052_v27  ;;  %v8921_v41 = vsel %vm8702_vm0, %v12042_v17, %v16954_v9 }
 0xc90   : > { %v8664_v44 = vadd.f32 %v8592_v36, %v8152_v19  ;;  %v8574_v37 = vsel %vm8573_vm10, %v8571_v13, %v8568_v54  ;;  %v8285_v58 = vsub.f32 0.0, %v8253_v11  ;;  %v12056_v55 = vpop.eup %12055  ;;  %v8575_v40 = vadd.f32 1.0, %v17123_v31 }
 0xc91   : > { %v8662_v2 = vadd.f32 %v8574_v37, %v8150_v63  ;;  %v17128_v7 = vpop.eup %12057  ;;  %v8919_v32 = vsel %vm8702_vm0, %v12046_v30, %v16965_v18  ;;  %v8597_v24 = vadd.f32 1.0, %v8596_v21  ;;  %v8578_v22 = vmul.f32 -0.5, %v17123_v31 }
 0xc92   : > { %v8696_v20 = vsel %vm8184_vm8, %v16954_v9, %v8664_v44  ;;  %12067 = vlog2.f32 %v8575_v40  ;;  %v8348_v26 = vmul.f32 1.442695, %v8285_v58  ;;  %v8620_v9 = vadd.f32 1.0, %v17128_v7 }
 0xc93   : > { %v8953_v4 = vsel %vm8125_vm1, %v8696_v20, %v8921_v41  ;;  %v8694_v39 = vsel %vm8182_vm11, %v16965_v18, %v8662_v2  ;;  %v9432_v12 = vmul.f32 -1.442695, %v17099_v62  ;;  %v8599_v60 = vand.u32 2147483647, %v17092_v15 }
 0xc94   : > { %8985 = vst [vmem:[%s16458_s24 + $0xd0] sm:$0xff] %v8953_v4  ;;  %v8951_v0 = vsel %vm8125_vm1, %v8694_v39, %v8919_v32  ;;  %12069 = vrcp.f32 %v8824_v23  ;;  %v8829_v19 = vadd.f32 1.0, %v12056_v55  ;;  %v17153_v18 = vadd.f32 %v16824_v46, %v16749_v57 }
 0xc95   : > { %8983 = vst [vmem:[%s16458_s24 + $0xc0] sm:$0xff] %v8951_v0  ;;  %v12060_v34 = vpop.eup %12059  ;;  %12071 = vlog2.f32 %v8620_v9  ;;  %v8153_v16 = vmax.f32 %v16989_v42, 0.0  ;;  %v8598_v17 = vmul.f32 %v17092_v15, %v8597_v24  ;;  %v8579_v35 = vadd.f32 1.0, %v8578_v22 }
 0xc96   : > { %v12062_v6 = vpop.eup %12061  ;;  %12073 = vpow2.f32 %v8348_v26  ;;  %vm8600_vm12 = vcmp.lt.f32.partialorder %v8599_v60, 0.0004427343  ;;  %v8623_v1 = vmul.f32 -0.5, %v17128_v7  ;;  %v8251_v25 = vand.u32 2147483647, %v17153_v18 }
 0xc97   : > { %v8595_v5 = vmul.f32 0.6931472, %v12062_v6  ;;  %12075 = vpow2.f32 %v9432_v12  ;;  %v12064_v49 = vpop.eup %12063  ;;  %v8827_v57 = vadd.f32 1.0, %v12060_v34  ;;  %v8581_v45 = vand.u32 2147483647, %v17123_v31 }
 0xc98   : > { %12077 = vrcp.f32 %v8829_v19  ;;  %v9430_v10 = vmul.f32 -1.442695, %v17153_v18  ;;  %vm8185_vm13 = vcmp.ne.f32.partialorder %v16989_v42, %v16989_v42  ;;  %v8922_v15 = vsel %vm8702_vm0, %v12064_v49, %v16989_v42 }
 0xc99   : > { %v12066_v52 = vpop.eup %12065  ;;  %v8601_v28 = vsel %vm8600_vm12, %v8598_v17, %v8595_v5  ;;  %v8580_v47 = vmul.f32 %v17123_v31, %v8579_v35  ;;  %v8283_v53 = vsub.f32 0.0, %v8251_v25  ;;  %v8624_v38 = vadd.f32 1.0, %v8623_v1 }
 0xc9a   : > { %v8665_v46 = vadd.f32 %v8601_v28, %v8153_v16  ;;  %v8602_v30 = vadd.f32 1.0, %v12066_v52  ;;  %v8626_v8 = vand.u32 2147483647, %v17128_v7  ;;  %v8151_v21 = vmax.f32 %v17040_v48, 0.0 }
 0xc9b   : > { %v8344_v33 = vmul.f32 1.442695, %v8283_v53  ;;  %vm8582_vm14 = vcmp.lt.f32.partialorder %v8581_v45, 0.0004427343  ;;  %v8605_v13 = vmul.f32 -0.5, %v12066_v52  ;;  %v8625_v36 = vmul.f32 %v17128_v7, %v8624_v38 }
 0xc9c   : > { %v12068_v50 = vpop.eup %12067  ;;  %v8697_v3 = vsel %vm8185_vm13, %v16989_v42, %v8665_v46  ;;  %12079 = vlog2.f32 %v8602_v30  ;;  %vm8183_vm15 = vcmp.ne.f32.partialorder %v17040_v48, %v17040_v48  ;;  %v8156_v31 = vmax.f32 %v17046_v51, 0.0 }
 0xc9d   : > { %v8954_v59 = vsel %vm8125_vm1, %v8697_v3, %v8922_v15  ;;  %v8577_v14 = vmul.f32 0.6931472, %v12068_v50  ;;  %12081 = vrcp.f32 %v8827_v57  ;;  %vm8627_vm2 = vcmp.lt.f32.partialorder %v8626_v8, 0.0004427343 }
 0xc9e   : > { %v12070_v43 = vpop.eup %12069  ;;  %8986 = vst [vmem:[%s16458_s24 + $0xd8] sm:$0xff] %v8954_v59  ;;  %12083 = vpow2.f32 %v9430_v10  ;;  %v8606_v20 = vadd.f32 1.0, %v8605_v13  ;;  %vm8188_vm3 = vcmp.ne.f32.partialorder %v17046_v51, %v17046_v51  ;;  %v8608_v41 = vand.u32 2147483647, %v12066_v52 }
 0xc9f   : > { %v12072_v27 = vpop.eup %12071  ;;  %v8583_v54 = vsel %vm8582_vm14, %v8580_v47, %v8577_v14  ;;  %12085 = vpow2.f32 %v8344_v33  ;;  %v8920_v55 = vsel %vm8702_vm0, %v12070_v43, %v17040_v48  ;;  %v8154_v12 = vmax.f32 %v17076_v61, 0.0 }
 0xca0   : > { %v12074_v42 = vpop.eup %12073  ;;  %v8663_v56 = vadd.f32 %v8583_v54, %v8151_v21  ;;  %v8622_v11 = vmul.f32 0.6931472, %v12072_v27  ;;  %v8607_v22 = vmul.f32 %v12066_v52, %v8606_v20  ;;  %vm8609_vm4 = vcmp.lt.f32.partialorder %v8608_v41, 0.0004427343 }
 0xca1   : > { %v12076_v63 = vpop.eup %12075  ;;  %v8629_v44 = vadd.f32 1.0, %v12074_v42  ;;  %v8632_v39 = vmul.f32 -0.5, %v12074_v42  ;;  %vm8186_vm5 = vcmp.ne.f32.partialorder %v17076_v61, %v17076_v61  ;;  %v8635_v16 = vand.u32 2147483647, %v12074_v42 }
 0xca2   : > { %v12078_v37 = vpop.eup %12077  ;;  %v8695_v58 = vsel %vm8183_vm15, %v17040_v48, %v8663_v56  ;;  %v8628_v2 = vsel %vm8627_vm2, %v8625_v36, %v8622_v11  ;;  %v8830_v40 = vadd.f32 1.0, %v12076_v63  ;;  %v8157_v28 = vmax.f32 %v17099_v62, 0.0 }
 0xca3   : > { %v8952_v23 = vsel %vm8125_vm1, %v8695_v58, %v8920_v55  ;;  %v8668_v7 = vadd.f32 %v8628_v2, %v8156_v31  ;;  %12087 = vlog2.f32 %v8629_v44  ;;  %v8925_v48 = vsel %vm8702_vm0, %v12078_v37, %v17046_v51 }
 0xca4   : > { %8984 = vst [vmem:[%s16458_s24 + $0xc8] sm:$0xff] %v8952_v23  ;;  %12089 = vrcp.f32 %v8830_v40  ;;  %v8633_v6 = vadd.f32 1.0, %v8632_v39  ;;  %vm8636_vm6 = vcmp.lt.f32.partialorder %v8635_v16, 0.0004427343  ;;  %vm8189_vm7 = vcmp.ne.f32.partialorder %v17099_v62, %v17099_v62 }
 0xca5   : > { %v8700_v32 = vsel %vm8188_vm3, %v17046_v51, %v8668_v7  ;;  %v8155_v8 = vmax.f32 %v17153_v18, 0.0  ;;  %vm8187_vm9 = vcmp.ne.f32.partialorder %v17153_v18, %v17153_v18 }
 0xca6   : > { %v12080_v24 = vpop.eup %12079  ;;  %v8957_v4 = vsel %vm8125_vm1, %v8700_v32, %v8925_v48  ;;  %v8634_v52 = vmul.f32 %v12074_v42, %v8633_v6 }
 0xca7   : > { %v12082_v26 = vpop.eup %12081  ;;  %8989 = vst [vmem:[%s16458_s24 + $0xf0] sm:$0xff] %v8957_v4  ;;  %v8604_v0 = vmul.f32 0.6931472, %v12080_v24 }
 0xca8   : > { %v12084_v9 = vpop.eup %12083  ;;  %v8923_v35 = vsel %vm8702_vm0, %v12082_v26, %v17076_v61 }
 0xca9   : > { %v12086_v60 = vpop.eup %12085  ;;  %v8610_v19 = vsel %vm8609_vm4, %v8607_v22, %v8604_v0  ;;  %v8828_v5 = vadd.f32 1.0, %v12084_v9 }
 0xcaa   : > { %v8666_v34 = vadd.f32 %v8610_v19, %v8154_v12  ;;  %v8611_v51 = vadd.f32 1.0, %v12086_v60  ;;  %v8614_v57 = vmul.f32 -0.5, %v12086_v60  ;;  %v8617_v53 = vand.u32 2147483647, %v12086_v60 }
 0xcac   : > { %v8698_v17 = vsel %vm8186_vm5, %v17076_v61, %v8666_v34  ;;  %12091 = vlog2.f32 %v8611_v51  ;;  %v8615_v15 = vadd.f32 1.0, %v8614_v57  ;;  %vm8618_vm8 = vcmp.lt.f32.partialorder %v8617_v53, 0.0004427343 }
 0xcad   : > { %v12088_v49 = vpop.eup %12087  ;;  %v8955_v1 = vsel %vm8125_vm1, %v8698_v17, %v8923_v35  ;;  %12093 = vrcp.f32 %v8828_v5 }
 0xcae   : > { %8987 = vst [vmem:[%s16458_s24 + $0xe0] sm:$0xff] %v8955_v1  ;;  %v8631_v25 = vmul.f32 0.6931472, %v12088_v49  ;;  %v12090_v46 = vpop.eup %12089  ;;  %v8616_v38 = vmul.f32 %v12086_v60, %v8615_v15 }
 0xcaf   : > { %v8926_v10 = vsel %vm8702_vm0, %v12090_v46, %v17099_v62 }
 0xcb0   : > { %v8637_v45 = vsel %vm8636_vm6, %v8634_v52, %v8631_v25 }
 0xcb1   : > { %v8669_v30 = vadd.f32 %v8637_v45, %v8157_v28 }
 0xcb3   : > { %v8701_v61 = vsel %vm8189_vm7, %v17099_v62, %v8669_v30 }
 0xcb4   : > { %v8958_v47 = vsel %vm8125_vm1, %v8701_v61, %v8926_v10 }
 0xcb5   : > { %8990 = vst [vmem:[%s16458_s24 + $0xf8] sm:$0xff] %v8958_v47 }
 0xcb6   : > { %v12092_v50 = vpop.eup %12091 }
 0xcb7   : > { %v8613_v3 = vmul.f32 0.6931472, %v12092_v50  ;;  %v12094_v59 = vpop.eup %12093 }
 0xcb8   : > { %v8924_v43 = vsel %vm8702_vm0, %v12094_v59, %v17153_v18 }
 0xcb9   : > { %v8619_v14 = vsel %vm8618_vm8, %v8616_v38, %v8613_v3 }
 0xcba   : > { %v8667_v33 = vadd.f32 %v8619_v14, %v8155_v8 }
 0xcbc   : > { %v8699_v62 = vsel %vm8187_vm9, %v17153_v18, %v8667_v33 }
 0xcbd   : > { %v8956_v21 = vsel %vm8125_vm1, %v8699_v62, %v8924_v43 }
 0xcbe   : > { %8988 = vst [vmem:[%s16458_s24 + $0xe8] sm:$0xff] %v8956_v21 }
 0xcbf PF: > { %s19_s15 = sadd.s32 1, %s12154_s15   ;;  %s18141_s17 = sld [smem:[#allocation3_spill]] }
 0xcc0   : > { %p16_p12 = scmp.ge.s32.totalorder %s19_s15, 10   ;;  %s18142_s30 = smov %s12134_s10 }
 0xcc1   : > { %s18143_s10 = smov %s12258_s22  ;;  %s18144_s11 = smov %s12146_s13 }
 0xcc2   : > { %s18145_s12 = smov %s12150_s14  ;;  %s18146_s13 = smov %s18149_s16 }
 0xcc3   :  { %18 = sbr.rel (!%p16_p12) target bundleno = 4 (0x4), region = 148 }
 0xcc5   : > { %s18147_s14 = smov %s18141_s17 }

</bundles_post_ra>
